<compile_context>
chip_gen: v7x
topology: tpu7x:2x2x1
jax: 0.10.0
libtpu: 0.0.40
codegen_flags: <defaults>
</compile_context>

<pallas_src>
import functools

import jax
import jax.numpy as jnp
from jax.experimental import pallas as pl
from jax.experimental.pallas import tpu as pltpu


def _round_up(x, m):
    return (x + m - 1) // m * m


# ----------------------------------------------------------------------------
# Pallas kernel: whole-K matmul (bf16 x bf16 -> f32) + fused activation
# ----------------------------------------------------------------------------
def _mm_kernel(a_ref, w_ref, *out_refs, act, with_sigmoid):
    z = jnp.dot(a_ref[...], w_ref[...], preferred_element_type=jnp.float32)
    if act == 'lrelu':
        z = jnp.where(z >= 0.0, z, 0.2 * z)
    out_refs[0][...] = z
    if with_sigmoid:
        out_refs[1][...] = 1.0 / (1.0 + jnp.exp(-z))


def matmul_act(a, w_p, act='none', with_sigmoid=False, tm_max=256):
    """a: (M, K) float, w_p: (K, Np) bf16 with Np a multiple of 128 (pre-padded).

    Whole-K contraction in a single grid step; bf16 MXU operands with f32
    accumulation; activation fused into the epilogue. M is tiled with tm<=256
    so large-M layers keep >=2 parallel M tiles (v7x megacore)."""
    M, K = a.shape
    Kw, Np = w_p.shape
    assert Kw == K

    a_bf = a.astype(jnp.bfloat16)
    tm = _round_up(M, 8) if M <= tm_max else tm_max
    Mp = _round_up(M, tm)
    if Mp != M:                                   # skip pad when already aligned
        a_bf = jnp.pad(a_bf, ((0, Mp - M), (0, 0)))

    tn = Np if Np <= 512 else 512
    if Np % tn != 0:
        tn = 128
    grid = (Mp // tm, Np // tn)

    in_specs = [
        pl.BlockSpec((tm, K), lambda i, j: (i, 0)),   # whole-K block
        pl.BlockSpec((K, tn), lambda i, j: (0, j)),
    ]
    out_spec = pl.BlockSpec((tm, tn), lambda i, j: (i, j))
    if with_sigmoid:
        out_shape = (jax.ShapeDtypeStruct((Mp, Np), jnp.float32),
                     jax.ShapeDtypeStruct((Mp, Np), jnp.float32))
        out_specs = (out_spec, out_spec)
    else:
        out_shape = jax.ShapeDtypeStruct((Mp, Np), jnp.float32)
        out_specs = out_spec

    kernel = functools.partial(_mm_kernel, act=act, with_sigmoid=with_sigmoid)
    return pl.pallas_call(
        kernel,
        out_shape=out_shape,
        grid_spec=pltpu.PrefetchScalarGridSpec(
            num_scalar_prefetch=0,
            grid=grid,
            in_specs=in_specs,
            out_specs=out_specs),
        compiler_params=pltpu.CompilerParams(
            dimension_semantics=("parallel", "parallel")),
    )(a_bf, w_p)


# ----------------------------------------------------------------------------
# Conv2d = im2col (glue) + fused Pallas matmul kernel
# ----------------------------------------------------------------------------
def conv2d(x, w_p, cout, k, stride, padding, act='none', with_sigmoid=False):
    """x: NHWC.  w_p: prepared (k*k*Cin, Np) bf16 weight matrix (no bias)."""
    N, H, W, C = x.shape
    if padding > 0:
        x = jnp.pad(x, ((0, 0), (padding, padding), (padding, padding), (0, 0)))
    Hp, Wp = x.shape[1], x.shape[2]
    Ho = (Hp - k) // stride + 1
    Wo = (Wp - k) // stride + 1

    # TODO(synk): move this im2col gather into the Pallas kernel (window DMA /
    # Element index maps) so activations are not duplicated k*k times in HBM.
    cols = []
    for i in range(k):
        for j in range(k):
            cols.append(x[:, i:i + (Ho - 1) * stride + 1:stride,
                             j:j + (Wo - 1) * stride + 1:stride, :])
    patches = jnp.concatenate(cols, axis=-1).reshape(N * Ho * Wo, k * k * C)

    out = matmul_act(patches, w_p, act=act, with_sigmoid=with_sigmoid)
    M = N * Ho * Wo
    if with_sigmoid:
        raw, sig = out
        return (raw[:M, :cout].reshape(N, Ho, Wo, cout),
                sig[:M, :cout].reshape(N, Ho, Wo, cout))
    return out[:M, :cout].reshape(N, Ho, Wo, cout)


# ----------------------------------------------------------------------------
# Parameters (deterministic synthetic init, prepared ONCE for the kernel)
# ----------------------------------------------------------------------------
_LAYERS = [
    # name,   cout, cin (None -> in_channels), k, stride, pad
    ('conv1',  64,  None, 4, 2, 1),
    ('conv2', 128,   64,  4, 2, 1),
    ('conv3', 256,  128,  4, 2, 1),
    ('conv4', 512,  256,  4, 1, 1),
    ('conv5',   1,  512,  4, 1, 1),
]


def _spectral_normalize(w, n_iter=10):
    """Approximate nn.utils.spectral_norm: divide by the largest singular value
    of the (Cout, Cin*k*k) weight matrix (power iteration, done once at init)."""
    cout = w.shape[0]
    wm = w.reshape(cout, -1).astype(jnp.float32)
    u = jnp.full((cout,), 1.0 / jnp.sqrt(cout), jnp.float32)
    v = wm.T @ u
    for _ in range(n_iter):
        v = wm.T @ u
        v = v / (jnp.linalg.norm(v) + 1e-12)
        u = wm @ v
        u = u / (jnp.linalg.norm(u) + 1e-12)
    sigma = u @ (wm @ v)
    return w / sigma


def init_params(key, in_channels=3):
    """Weights are prepared once: spectral-normalized, transposed to the
    (k*k*Cin, Cout) matmul layout (matching the im2col patch ordering),
    lane-padded (Cout -> multiple of 128) and cast to bf16, so conv2d does no
    per-call weight reshuffling / padding."""
    params = {}
    keys = jax.random.split(key, len(_LAYERS))
    for (name, cout, cin_spec, k, _s, _p), wk in zip(_LAYERS, keys):
        c_in = in_channels if cin_spec is None else cin_spec
        w = jax.random.normal(wk, (cout, c_in, k, k), jnp.float32) * 0.05
        w = _spectral_normalize(w)
        w_mat = jnp.transpose(w, (2, 3, 1, 0)).reshape(k * k * c_in, cout)
        np_ = _round_up(cout, 128)
        if np_ != cout:
            w_mat = jnp.pad(w_mat, ((0, 0), (0, np_ - cout)))
        params[name] = w_mat.astype(jnp.bfloat16)
    return params


# ----------------------------------------------------------------------------
# Discriminator forward (mirrors the PyTorch module: 5 convs, LeakyReLU 0.2,
# sigmoid head, returns (outputs, [conv1..conv5]); bias=False via spectral norm)
# ----------------------------------------------------------------------------
def discriminator_forward(params, x_nchw, use_sigmoid=True):
    x = jnp.transpose(x_nchw, (0, 2, 3, 1))          # NCHW -> NHWC
    c1 = conv2d(x,  params['conv1'],  64, 4, 2, 1, act='lrelu')
    c2 = conv2d(c1, params['conv2'], 128, 4, 2, 1, act='lrelu')
    c3 = conv2d(c2, params['conv3'], 256, 4, 2, 1, act='lrelu')
    c4 = conv2d(c3, params['conv4'], 512, 4, 1, 1, act='lrelu')
    if use_sigmoid:
        c5, out = conv2d(c4, params['conv5'], 1, 4, 1, 1,
                         act='none', with_sigmoid=True)   # raw + sigmoid, one pass
    else:
        c5 = conv2d(c4, params['conv5'], 1, 4, 1, 1, act='none')
        out = c5
    to_nchw = lambda t: jnp.transpose(t, (0, 3, 1, 2))
    feats = [to_nchw(c1), to_nchw(c2), to_nchw(c3), to_nchw(c4), to_nchw(c5)]
    return to_nchw(out), feats


# ----------------------------------------------------------------------------
if __name__ == "__main__":
    key = jax.random.PRNGKey(0)
    pkey, xkey = jax.random.split(key)
    in_channels = 3
    params = init_params(pkey, in_channels=in_channels)
    # 32x32 is the smallest clean spatial size: 32 -> 16 -> 8 -> 4 -> 3 -> 2
    # through the k=4 / s=2,2,2,1,1 / p=1 conv chain.
    x = jax.random.normal(xkey, (2, in_channels, 32, 32), jnp.float32)

    fwd = jax.jit(functools.partial(discriminator_forward, use_sigmoid=True))
    out, feats = fwd(params, x)
    out = jax.block_until_ready(out)

    assert out.shape == (2, 1, 2, 2), out.shape
    expected = [(2, 64, 16, 16), (2, 128, 8, 8), (2, 256, 4, 4),
                (2, 512, 3, 3), (2, 1, 2, 2)]
    assert [tuple(f.shape) for f in feats] == expected, \
        [tuple(f.shape) for f in feats]
    assert out.dtype == jnp.float32
    assert bool(jnp.all(jnp.isfinite(out)))
    assert bool(jnp.all((out >= 0.0) & (out <= 1.0)))  # sigmoid range
    for f in feats:
        assert bool(jnp.all(jnp.isfinite(f)))
    print("KERNEL_OK")
</pallas_src>

<mosaic_0001>
module attributes {stable_mosaic.version = 11 : i64} {
  func.func @_mm_kernel(%arg0: i32, %arg1: i32, %arg2: memref<256x48xbf16, #tpu.memory_space<vmem>>, %arg3: memref<48x128xbf16, #tpu.memory_space<vmem>>, %arg4: memref<256x128xf32, #tpu.memory_space<vmem>>) attributes {dimension_semantics = [#tpu.dimension_semantics<parallel>, #tpu.dimension_semantics<parallel>], iteration_bounds = array<i64: 2, 1>, scalar_prefetch = 0 : i64, scratch_operands = 0 : i64, tpu.core_type = #tpu.core_type<tc>, window_params = [{transform_indices = @transform_0, window_bounds = array<i64: 256, 48>}, {transform_indices = @transform_1, window_bounds = array<i64: 48, 128>}, {transform_indices = @transform_2, window_bounds = array<i64: 256, 128>}]} {
    %c0 = arith.constant 0 : index
    %c0_0 = arith.constant 0 : index
    %0 = vector.load %arg2[%c0, %c0_0] : memref<256x48xbf16, #tpu.memory_space<vmem>>, vector<256x48xbf16>
    %c0_1 = arith.constant 0 : index
    %c0_2 = arith.constant 0 : index
    %1 = vector.load %arg3[%c0_1, %c0_2] : memref<48x128xbf16, #tpu.memory_space<vmem>>, vector<48x128xbf16>
    %cst = arith.constant dense<0.000000e+00> : vector<256x128xf32>
    %2 = tpu.matmul %0, %1, %cst {dimension_numbers = #tpu.dot_dimension_numbers<[1], [0], [0], [1], [0, 0, 1, 1], [], []>} : vector<256x48xbf16>, vector<48x128xbf16>, vector<256x128xf32> -> vector<256x128xf32>
    %cst_3 = arith.constant 0.000000e+00 : f32
    %3 = vector.broadcast %cst_3 : f32 to vector<256x128xf32>
    %4 = arith.cmpf oge, %2, %3 : vector<256x128xf32>
    %cst_4 = arith.constant 2.000000e-01 : f32
    %5 = vector.broadcast %cst_4 : f32 to vector<256x128xf32>
    %6 = arith.mulf %5, %2 : vector<256x128xf32>
    %7 = arith.select %4, %2, %6 : vector<256x128xi1>, vector<256x128xf32>
    %c0_5 = arith.constant 0 : index
    %c0_6 = arith.constant 0 : index
    %8 = vector.load %arg4[%c0_5, %c0_6] : memref<256x128xf32, #tpu.memory_space<vmem>>, vector<256x128xf32>
    tpu.vector_store %arg4[%c0_5, %c0_6], %7 {strides = array<i32>} : memref<256x128xf32, #tpu.memory_space<vmem>>, vector<256x128xf32>,
    return
  }
  func.func @transform_0(%arg0: i32, %arg1: i32) -> (i32, i32) {
    %c0_i32 = arith.constant 0 : i32
    %c0_i32_0 = arith.constant 0 : i32
    return %arg0, %c0_i32 : i32, i32
  }
  func.func @transform_1(%arg0: i32, %arg1: i32) -> (i32, i32) {
    %c0_i32 = arith.constant 0 : i32
    %c0_i32_0 = arith.constant 0 : i32
    return %c0_i32, %arg1 : i32, i32
  }
  func.func @transform_2(%arg0: i32, %arg1: i32) -> (i32, i32) {
    %c0_i32 = arith.constant 0 : i32
    return %arg0, %arg1 : i32, i32
  }
}

module attributes {stable_mosaic.version = 11 : i64} {
  func.func @_mm_kernel(%arg0: i32, %arg1: i32, %arg2: memref<128x1024xbf16, #tpu.memory_space<vmem>>, %arg3: memref<1024x128xbf16, #tpu.memory_space<vmem>>, %arg4: memref<128x128xf32, #tpu.memory_space<vmem>>) attributes {dimension_semantics = [#tpu.dimension_semantics<parallel>, #tpu.dimension_semantics<parallel>], iteration_bounds = array<i64: 1, 1>, scalar_prefetch = 0 : i64, scratch_operands = 0 : i64, tpu.core_type = #tpu.core_type<tc>, window_params = [{transform_indices = @transform_0, window_bounds = array<i64: 128, 1024>}, {transform_indices = @transform_1, window_bounds = array<i64: 1024, 128>}, {transform_indices = @transform_2, window_bounds = array<i64: 128, 128>}]} {
    %c0 = arith.constant 0 : index
    %c0_0 = arith.constant 0 : index
    %0 = vector.load %arg2[%c0, %c0_0] : memref<128x1024xbf16, #tpu.memory_space<vmem>>, vector<128x1024xbf16>
    %c0_1 = arith.constant 0 : index
    %c0_2 = arith.constant 0 : index
    %1 = vector.load %arg3[%c0_1, %c0_2] : memref<1024x128xbf16, #tpu.memory_space<vmem>>, vector<1024x128xbf16>
    %cst = arith.constant dense<0.000000e+00> : vector<128x128xf32>
    %2 = tpu.matmul %0, %1, %cst {dimension_numbers = #tpu.dot_dimension_numbers<[1], [0], [0], [1], [0, 0, 1, 1], [], []>} : vector<128x1024xbf16>, vector<1024x128xbf16>, vector<128x128xf32> -> vector<128x128xf32>
    %cst_3 = arith.constant 0.000000e+00 : f32
    %3 = vector.broadcast %cst_3 : f32 to vector<128x128xf32>
    %4 = arith.cmpf oge, %2, %3 : vector<128x128xf32>
    %cst_4 = arith.constant 2.000000e-01 : f32
    %5 = vector.broadcast %cst_4 : f32 to vector<128x128xf32>
    %6 = arith.mulf %5, %2 : vector<128x128xf32>
    %7 = arith.select %4, %2, %6 : vector<128x128xi1>, vector<128x128xf32>
    %c0_5 = arith.constant 0 : index
    %c0_6 = arith.constant 0 : index
    %8 = vector.load %arg4[%c0_5, %c0_6] : memref<128x128xf32, #tpu.memory_space<vmem>>, vector<128x128xf32>
    tpu.vector_store %arg4[%c0_5, %c0_6], %7 {strides = array<i32>} : memref<128x128xf32, #tpu.memory_space<vmem>>, vector<128x128xf32>,
    return
  }
  func.func @transform_0(%arg0: i32, %arg1: i32) -> (i32, i32) {
    %c0_i32 = arith.constant 0 : i32
    %c0_i32_0 = arith.constant 0 : i32
    return %arg0, %c0_i32 : i32, i32
  }
  func.func @transform_1(%arg0: i32, %arg1: i32) -> (i32, i32) {
    %c0_i32 = arith.constant 0 : i32
    %c0_i32_0 = arith.constant 0 : i32
    return %c0_i32, %arg1 : i32, i32
  }
  func.func @transform_2(%arg0: i32, %arg1: i32) -> (i32, i32) {
    %c0_i32 = arith.constant 0 : i32
    return %arg0, %arg1 : i32, i32
  }
}

module attributes {stable_mosaic.version = 11 : i64} {
  func.func @_mm_kernel(%arg0: i32, %arg1: i32, %arg2: memref<32x2048xbf16, #tpu.memory_space<vmem>>, %arg3: memref<2048x256xbf16, #tpu.memory_space<vmem>>, %arg4: memref<32x256xf32, #tpu.memory_space<vmem>>) attributes {dimension_semantics = [#tpu.dimension_semantics<parallel>, #tpu.dimension_semantics<parallel>], iteration_bounds = array<i64: 1, 1>, scalar_prefetch = 0 : i64, scratch_operands = 0 : i64, tpu.core_type = #tpu.core_type<tc>, window_params = [{transform_indices = @transform_0, window_bounds = array<i64: 32, 2048>}, {transform_indices = @transform_1, window_bounds = array<i64: 2048, 256>}, {transform_indices = @transform_2, window_bounds = array<i64: 32, 256>}]} {
    %c0 = arith.constant 0 : index
    %c0_0 = arith.constant 0 : index
    %0 = vector.load %arg2[%c0, %c0_0] : memref<32x2048xbf16, #tpu.memory_space<vmem>>, vector<32x2048xbf16>
    %c0_1 = arith.constant 0 : index
    %c0_2 = arith.constant 0 : index
    %1 = vector.load %arg3[%c0_1, %c0_2] : memref<2048x256xbf16, #tpu.memory_space<vmem>>, vector<2048x256xbf16>
    %cst = arith.constant dense<0.000000e+00> : vector<32x256xf32>
    %2 = tpu.matmul %0, %1, %cst {dimension_numbers = #tpu.dot_dimension_numbers<[1], [0], [0], [1], [0, 0, 1, 1], [], []>} : vector<32x2048xbf16>, vector<2048x256xbf16>, vector<32x256xf32> -> vector<32x256xf32>
    %cst_3 = arith.constant 0.000000e+00 : f32
    %3 = vector.broadcast %cst_3 : f32 to vector<32x256xf32>
    %4 = arith.cmpf oge, %2, %3 : vector<32x256xf32>
    %cst_4 = arith.constant 2.000000e-01 : f32
    %5 = vector.broadcast %cst_4 : f32 to vector<32x256xf32>
    %6 = arith.mulf %5, %2 : vector<32x256xf32>
    %7 = arith.select %4, %2, %6 : vector<32x256xi1>, vector<32x256xf32>
    %c0_5 = arith.constant 0 : index
    %c0_6 = arith.constant 0 : index
    %8 = vector.load %arg4[%c0_5, %c0_6] : memref<32x256xf32, #tpu.memory_space<vmem>>, vector<32x256xf32>
    tpu.vector_store %arg4[%c0_5, %c0_6], %7 {strides = array<i32>} : memref<32x256xf32, #tpu.memory_space<vmem>>, vector<32x256xf32>,
    return
  }
  func.func @transform_0(%arg0: i32, %arg1: i32) -> (i32, i32) {
    %c0_i32 = arith.constant 0 : i32
    %c0_i32_0 = arith.constant 0 : i32
    return %arg0, %c0_i32 : i32, i32
  }
  func.func @transform_1(%arg0: i32, %arg1: i32) -> (i32, i32) {
    %c0_i32 = arith.constant 0 : i32
    %c0_i32_0 = arith.constant 0 : i32
    return %c0_i32, %arg1 : i32, i32
  }
  func.func @transform_2(%arg0: i32, %arg1: i32) -> (i32, i32) {
    %c0_i32 = arith.constant 0 : i32
    return %arg0, %arg1 : i32, i32
  }
}

module attributes {stable_mosaic.version = 11 : i64} {
  func.func @_mm_kernel(%arg0: i32, %arg1: i32, %arg2: memref<24x4096xbf16, #tpu.memory_space<vmem>>, %arg3: memref<4096x512xbf16, #tpu.memory_space<vmem>>, %arg4: memref<24x512xf32, #tpu.memory_space<vmem>>) attributes {dimension_semantics = [#tpu.dimension_semantics<parallel>, #tpu.dimension_semantics<parallel>], iteration_bounds = array<i64: 1, 1>, scalar_prefetch = 0 : i64, scratch_operands = 0 : i64, tpu.core_type = #tpu.core_type<tc>, window_params = [{transform_indices = @transform_0, window_bounds = array<i64: 24, 4096>}, {transform_indices = @transform_1, window_bounds = array<i64: 4096, 512>}, {transform_indices = @transform_2, window_bounds = array<i64: 24, 512>}]} {
    %c0 = arith.constant 0 : index
    %c0_0 = arith.constant 0 : index
    %0 = vector.load %arg2[%c0, %c0_0] : memref<24x4096xbf16, #tpu.memory_space<vmem>>, vector<24x4096xbf16>
    %c0_1 = arith.constant 0 : index
    %c0_2 = arith.constant 0 : index
    %1 = vector.load %arg3[%c0_1, %c0_2] : memref<4096x512xbf16, #tpu.memory_space<vmem>>, vector<4096x512xbf16>
    %cst = arith.constant dense<0.000000e+00> : vector<24x512xf32>
    %2 = tpu.matmul %0, %1, %cst {dimension_numbers = #tpu.dot_dimension_numbers<[1], [0], [0], [1], [0, 0, 1, 1], [], []>} : vector<24x4096xbf16>, vector<4096x512xbf16>, vector<24x512xf32> -> vector<24x512xf32>
    %cst_3 = arith.constant 0.000000e+00 : f32
    %3 = vector.broadcast %cst_3 : f32 to vector<24x512xf32>
    %4 = arith.cmpf oge, %2, %3 : vector<24x512xf32>
    %cst_4 = arith.constant 2.000000e-01 : f32
    %5 = vector.broadcast %cst_4 : f32 to vector<24x512xf32>
    %6 = arith.mulf %5, %2 : vector<24x512xf32>
    %7 = arith.select %4, %2, %6 : vector<24x512xi1>, vector<24x512xf32>
    %c0_5 = arith.constant 0 : index
    %c0_6 = arith.constant 0 : index
    %8 = vector.load %arg4[%c0_5, %c0_6] : memref<24x512xf32, #tpu.memory_space<vmem>>, vector<24x512xf32>
    tpu.vector_store %arg4[%c0_5, %c0_6], %7 {strides = array<i32>} : memref<24x512xf32, #tpu.memory_space<vmem>>, vector<24x512xf32>,
    return
  }
  func.func @transform_0(%arg0: i32, %arg1: i32) -> (i32, i32) {
    %c0_i32 = arith.constant 0 : i32
    %c0_i32_0 = arith.constant 0 : i32
    return %arg0, %c0_i32 : i32, i32
  }
  func.func @transform_1(%arg0: i32, %arg1: i32) -> (i32, i32) {
    %c0_i32 = arith.constant 0 : i32
    %c0_i32_0 = arith.constant 0 : i32
    return %c0_i32, %arg1 : i32, i32
  }
  func.func @transform_2(%arg0: i32, %arg1: i32) -> (i32, i32) {
    %c0_i32 = arith.constant 0 : i32
    return %arg0, %arg1 : i32, i32
  }
}

module attributes {stable_mosaic.version = 11 : i64} {
  func.func @_mm_kernel(%arg0: i32, %arg1: i32, %arg2: memref<8x8192xbf16, #tpu.memory_space<vmem>>, %arg3: memref<8192x128xbf16, #tpu.memory_space<vmem>>, %arg4: memref<8x128xf32, #tpu.memory_space<vmem>>, %arg5: memref<8x128xf32, #tpu.memory_space<vmem>>) attributes {dimension_semantics = [#tpu.dimension_semantics<parallel>, #tpu.dimension_semantics<parallel>], iteration_bounds = array<i64: 1, 1>, scalar_prefetch = 0 : i64, scratch_operands = 0 : i64, tpu.core_type = #tpu.core_type<tc>, window_params = [{transform_indices = @transform_0, window_bounds = array<i64: 8, 8192>}, {transform_indices = @transform_1, window_bounds = array<i64: 8192, 128>}, {transform_indices = @transform_2, window_bounds = array<i64: 8, 128>}, {transform_indices = @transform_3, window_bounds = array<i64: 8, 128>}]} {
    %c0 = arith.constant 0 : index
    %c0_0 = arith.constant 0 : index
    %0 = vector.load %arg2[%c0, %c0_0] : memref<8x8192xbf16, #tpu.memory_space<vmem>>, vector<8x8192xbf16>
    %c0_1 = arith.constant 0 : index
    %c0_2 = arith.constant 0 : index
    %1 = vector.load %arg3[%c0_1, %c0_2] : memref<8192x128xbf16, #tpu.memory_space<vmem>>, vector<8192x128xbf16>
    %cst = arith.constant dense<0.000000e+00> : vector<8x128xf32>
    %2 = tpu.matmul %0, %1, %cst {dimension_numbers = #tpu.dot_dimension_numbers<[1], [0], [0], [1], [0, 0, 1, 1], [], []>} : vector<8x8192xbf16>, vector<8192x128xbf16>, vector<8x128xf32> -> vector<8x128xf32>
    %c0_3 = arith.constant 0 : index
    %c0_4 = arith.constant 0 : index
    %3 = vector.load %arg4[%c0_3, %c0_4] : memref<8x128xf32, #tpu.memory_space<vmem>>, vector<8x128xf32>
    tpu.vector_store %arg4[%c0_3, %c0_4], %2 {strides = array<i32>} : memref<8x128xf32, #tpu.memory_space<vmem>>, vector<8x128xf32>,
    %cst_5 = arith.constant 0.000000e+00 : f32
    %4 = vector.broadcast %cst_5 : f32 to vector<8x128xf32>
    %5 = arith.subf %4, %2 : vector<8x128xf32>
    %6 = math.exp %5 : vector<8x128xf32>
    %cst_6 = arith.constant 1.000000e+00 : f32
    %7 = vector.broadcast %cst_6 : f32 to vector<8x128xf32>
    %8 = arith.addf %7, %6 : vector<8x128xf32>
    %cst_7 = arith.constant 1.000000e+00 : f32
    %9 = vector.broadcast %cst_7 : f32 to vector<8x128xf32>
    %10 = arith.divf %9, %8 : vector<8x128xf32>
    %c0_8 = arith.constant 0 : index
    %c0_9 = arith.constant 0 : index
    %11 = vector.load %arg5[%c0_8, %c0_9] : memref<8x128xf32, #tpu.memory_space<vmem>>, vector<8x128xf32>
    tpu.vector_store %arg5[%c0_8, %c0_9], %10 {strides = array<i32>} : memref<8x128xf32, #tpu.memory_space<vmem>>, vector<8x128xf32>,
    return
  }
  func.func @transform_0(%arg0: i32, %arg1: i32) -> (i32, i32) {
    %c0_i32 = arith.constant 0 : i32
    %c0_i32_0 = arith.constant 0 : i32
    return %arg0, %c0_i32 : i32, i32
  }
  func.func @transform_1(%arg0: i32, %arg1: i32) -> (i32, i32) {
    %c0_i32 = arith.constant 0 : i32
    %c0_i32_0 = arith.constant 0 : i32
    return %c0_i32, %arg1 : i32, i32
  }
  func.func @transform_2(%arg0: i32, %arg1: i32) -> (i32, i32) {
    %c0_i32 = arith.constant 0 : i32
    return %arg0, %arg1 : i32, i32
  }
  func.func @transform_3(%arg0: i32, %arg1: i32) -> (i32, i32) {
    %c0_i32 = arith.constant 0 : i32
    return %arg0, %arg1 : i32, i32
  }
}

</mosaic_0001>

<bundles_post_ra>
// kernel: discriminator_forward.5
= control target key start
LH: loop header
LB: loop body
LE: loop exit
PB: predicated region body
PF: predicated region fallthrough
CT: control target
= control target key end

     0   :  { %s941_s9 = smov 0   ;;  %s943_s10 = smov 0   ;;  %s1055_s0 = inlined_call_operand.vmem [shape: bf16[512,48], index: 0, kind: input, shape index: {}]   ;;  %s1056_s1 = inlined_call_operand.vmem [shape: bf16[48,128], index: 1, kind: input, shape index: {}]   ;;  %s1057_s2 = inlined_call_operand.vmem [shape: f32[512,128], index: 2, kind: output, shape index: {}]  }
   0x1   :  { %s945_s11 = smov 0  }
   0x2 LB: > { %s24_s12 = sadd.s32 1, %s920_s10  ;;  %p754_p0 = scmp.ge.s32.totalorder %s924_s11, 1  ;;  %s924_s11 = sphi %s945_s11, %s12_s11   ;;  %s920_s10 = sphi %s943_s10, %s1059_s10   ;;  %s916_s9 = sphi %s941_s9, %s1058_s9  }
   0x3   : > { %p26_p1 = scmp.ge.s32.totalorder %s24_s12, 2  ;;  %p136_p2 = scmp.lt.s32.totalorder %s924_s11, 3 }
   0x5   : > { %s1061_s12 = smov (%p26_p1, %s24_s12), 0  ;;  %p137_p3 = pnand %p754_p0, %p136_p2 }
   0x6   : > { %v883_v0 = vld [vmem:[%s1056_s1] sm:$0xff] (!%p137_p3)   ;;  %s755_s15 = sshll.u32 (!%p137_p3), %s916_s9, 5  ;;  %v884_v1 = vld [vmem:[%s1056_s1 + $0x8] sm:$0xff] (!%p137_p3)   ;;  %v885_v2 = vld [vmem:[%s1056_s1 + $0x10] sm:$0xff] (!%p137_p3)   ;;  %vm321_vm0 = vcmask (!%p137_p3), 392192  }
   0x7   : > { %140 = sbr.rel (%p137_p3) target bundleno = 265 (0x109), region = 28  ;;  %p166_p4 = scmp.lt.s32.totalorder (!%p137_p3), %s755_s15, 63  ;;  %815 = vmatprep.subr.bf16.mxu0 (!%p137_p3), %v883_v0  ;;  %853 = vmatprep.subr.bf16.mxu1 (!%p137_p3), %v883_v0 }
   0x8   : > { %816 = vmatpush3.bf16.msra.mxu0 (!%p137_p3), %v883_v0  ;;  %856 = vmatpush3.bf16.msra.mxu1 (!%p137_p3), %v883_v0 }
   0x9   : > { %817 = vmatprep.subr.bf16.mxu0 (!%p137_p3), %v884_v1  ;;  %854 = vmatprep.subr.bf16.mxu1 (!%p137_p3), %v884_v1 }
   0xc   : > { %818 = vmatpush3.bf16.msra.mxu0 (!%p137_p3), %v884_v1  ;;  %857 = vmatpush3.bf16.msra.mxu1 (!%p137_p3), %v884_v1 }
   0xd   : > { %819 = vmatprep.subr.bf16.mxu0 (!%p137_p3), %v885_v2  ;;  %855 = vmatprep.subr.bf16.mxu1 (!%p137_p3), %v885_v2 }
   0xe   : > { %s1063_s15 = smov (!%p166_p4, %s755_s15), 63 }
   0xf   : > { %s756_s20 = sshll.u32 %s1063_s15, 2  ;;  %s758_s24 = sshll.u32 %s1063_s15, 3 }
  0x10   : > { %s974_s23 = scalar_lea.vmem %s1055_s0, %s756_s20  ;;  %820 = vmatpush3.bf16.msra.mxu0 %v885_v2  ;;  %858 = vmatpush3.bf16.msra.mxu1 %v885_v2  ;;  %s1012_s27 = scalar_lea.vmem %s1057_s2, %s758_s24 }
  0x11   : > { %v886_v3 = vld [vmem:[%s974_s23] sm:$0xff]   ;;  %v888_v5 = vld [vmem:[%s974_s23 + $0x8] sm:$0xff]   ;;  %v890_v7 = vld [vmem:[%s974_s23 + $0x10] sm:$0xff]  }
  0x12   : > { %v887_v4 = vld [vmem:[%s974_s23 + $0x40] sm:$0xff]   ;;  %821 = vmatprep.mubr.msk.bf16.mxu0 %vm321_vm0, %v886_v3  ;;  %v889_v6 = vld [vmem:[%s974_s23 + $0x48] sm:$0xff]   ;;  %v891_v8 = vld [vmem:[%s974_s23 + $0x50] sm:$0xff]  }
  0x13   : > { %837 = vmatprep.mubr.msk.bf16.mxu1 %vm321_vm0, %v887_v4  ;;  %822 = vmatmul.mubr.msk.bf16.vlgmr.msra.gmra.mrb[0].mxu0 %vm321_vm0, %v888_v5  ;;  %v892_v9 = vld [vmem:[%s974_s23 + $0x18] sm:$0xff]   ;;  %v894_v11 = vld [vmem:[%s974_s23 + $0x20] sm:$0xff]   ;;  %v896_v13 = vld [vmem:[%s974_s23 + $0x28] sm:$0xff]  }
  0x14   : > { %838 = vmatmul.mubr.msk.bf16.vlgmr.msra.gmra.mrb[0].mxu1 %vm321_vm0, %v889_v6  ;;  %825 = vmatprep.mubr.msk.bf16.mxu0 %vm321_vm0, %v890_v7  ;;  %v893_v10 = vld [vmem:[%s974_s23 + $0x58] sm:$0xff]   ;;  %v895_v12 = vld [vmem:[%s974_s23 + $0x60] sm:$0xff]   ;;  %v897_v14 = vld [vmem:[%s974_s23 + $0x68] sm:$0xff]  }
  0x15   : > { %841 = vmatprep.mubr.msk.bf16.mxu1 %vm321_vm0, %v891_v8  ;;  %v898_v15 = vld [vmem:[%s974_s23 + $0x30] sm:$0xff]   ;;  %v900_v17 = vld [vmem:[%s974_s23 + $0x38] sm:$0xff]  }
  0x16   : > { %v899_v16 = vld [vmem:[%s974_s23 + $0x70] sm:$0xff]   ;;  %v901_v18 = vld [vmem:[%s974_s23 + $0x78] sm:$0xff]  }
  0x1b   : > { %826 = vmatmul.mubr.msk.bf16.gmra.mrb[4].mxu0 %vm321_vm0, %v892_v9 }
  0x1c   : > { %842 = vmatmul.mubr.msk.bf16.gmra.mrb[4].mxu1 %vm321_vm0, %v893_v10  ;;  %829 = vmatprep.mubr.msk.bf16.mxu0 %vm321_vm0, %v894_v11 }
  0x1d   : > { %845 = vmatprep.mubr.msk.bf16.mxu1 %vm321_vm0, %v895_v12 }
  0x23   : > { %830 = vmatmul.mubr.msk.bf16.gmra.mrb[8].mxu0 %vm321_vm0, %v896_v13 }
  0x24   : > { %846 = vmatmul.mubr.msk.bf16.gmra.mrb[8].mxu1 %vm321_vm0, %v897_v14  ;;  %833 = vmatprep.mubr.msk.bf16.mxu0 %vm321_vm0, %v898_v15 }
  0x25   : > { %849 = vmatprep.mubr.msk.bf16.mxu1 %vm321_vm0, %v899_v16 }
  0x2b   : > { %834 = vmatmul.mubr.msk.bf16.gmra.mrb[12].mxu0 %vm321_vm0, %v900_v17 }
  0x2c   : > { %850 = vmatmul.mubr.msk.bf16.gmra.mrb[12].mxu1 %vm321_vm0, %v901_v18 }
  0xe6   : > { %v823_v19 = vpop.f32.mrb[0].mxu0 }
  0xe7   : > { %v839_v20 = vpop.f32.mrb[0].mxu1  ;;  %vm533_vm1 = vcmp.ge.f32.partialorder %v823_v19, 0.0  ;;  %v565_v21 = vmul.f32 0.2, %v823_v19  ;;  %v404_v23 = vpop.f32.mrb[1].mxu0 }
  0xe8   : > { %vm549_vm2 = vcmp.ge.f32.partialorder %v839_v20, 0.0  ;;  %v581_v22 = vmul.f32 0.2, %v839_v20  ;;  %v468_v24 = vpop.f32.mrb[1].mxu1  ;;  %vm531_vm3 = vcmp.ge.f32.partialorder %v404_v23, 0.0  ;;  %v824_v28 = vpop.f32.mrb[2].mxu0 }
  0xe9   : > { %v597_v25 = vsel %vm533_vm1, %v823_v19, %v565_v21  ;;  %v563_v27 = vmul.f32 0.2, %v404_v23  ;;  %v840_v29 = vpop.f32.mrb[2].mxu1  ;;  %vm547_vm4 = vcmp.ge.f32.partialorder %v468_v24, 0.0  ;;  %v579_v30 = vmul.f32 0.2, %v468_v24 }
  0xea   : > { %v613_v26 = vsel %vm549_vm2, %v839_v20, %v581_v22  ;;  %629 = vst [vmem:[%s1012_s27 + $0x10] sm:$0xff] %v597_v25  ;;  %vm534_vm5 = vcmp.ge.f32.partialorder %v824_v28, 0.0  ;;  %v566_v31 = vmul.f32 0.2, %v824_v28  ;;  %vm550_vm6 = vcmp.ge.f32.partialorder %v840_v29, 0.0  ;;  %v407_v34 = vpop.f32.mrb[3].mxu0 }
  0xeb   : > { %645 = vst [vmem:[%s1012_s27 + $0x90] sm:$0xff] %v613_v26  ;;  %v595_v32 = vsel %vm531_vm3, %v404_v23, %v563_v27  ;;  %v582_v33 = vmul.f32 0.2, %v840_v29  ;;  %v471_v35 = vpop.f32.mrb[3].mxu1  ;;  %v611_v36 = vsel %vm547_vm4, %v468_v24, %v579_v30  ;;  %vm532_vm7 = vcmp.ge.f32.partialorder %v407_v34, 0.0 }
  0xec   : > { %627 = vst [vmem:[%s1012_s27] sm:$0xff] %v595_v32  ;;  %v598_v37 = vsel %vm534_vm5, %v824_v28, %v566_v31  ;;  %v564_v38 = vmul.f32 0.2, %v407_v34  ;;  %643 = vst [vmem:[%s1012_s27 + $0x80] sm:$0xff] %v611_v36  ;;  %vm548_vm8 = vcmp.ge.f32.partialorder %v471_v35, 0.0  ;;  %v580_v40 = vmul.f32 0.2, %v471_v35 }
  0xed   : > { %630 = vst [vmem:[%s1012_s27 + $0x18] sm:$0xff] %v598_v37  ;;  %v614_v39 = vsel %vm550_vm6, %v840_v29, %v582_v33 }
  0xee   : > { %646 = vst [vmem:[%s1012_s27 + $0x98] sm:$0xff] %v614_v39  ;;  %v596_v41 = vsel %vm532_vm7, %v407_v34, %v564_v38  ;;  %v827_v42 = vpop.f32.mrb[4].mxu0  ;;  %v612_v44 = vsel %vm548_vm8, %v471_v35, %v580_v40 }
  0xef   : > { %v843_v43 = vpop.f32.mrb[4].mxu1  ;;  %628 = vst [vmem:[%s1012_s27 + $0x8] sm:$0xff] %v596_v41  ;;  %vm537_vm9 = vcmp.ge.f32.partialorder %v827_v42, 0.0  ;;  %v569_v45 = vmul.f32 0.2, %v827_v42  ;;  %v420_v46 = vpop.f32.mrb[5].mxu0 }
  0xf0   : > { %vm553_vm10 = vcmp.ge.f32.partialorder %v843_v43, 0.0  ;;  %v484_v47 = vpop.f32.mrb[5].mxu1  ;;  %644 = vst [vmem:[%s1012_s27 + $0x88] sm:$0xff] %v612_v44  ;;  %v585_v48 = vmul.f32 0.2, %v843_v43  ;;  %vm535_vm11 = vcmp.ge.f32.partialorder %v420_v46, 0.0 }
  0xf1   : > { %v567_v49 = vmul.f32 0.2, %v420_v46  ;;  %vm551_vm12 = vcmp.ge.f32.partialorder %v484_v47, 0.0  ;;  %v601_v50 = vsel %vm537_vm9, %v827_v42, %v569_v45  ;;  %v583_v51 = vmul.f32 0.2, %v484_v47  ;;  %v828_v52 = vpop.f32.mrb[6].mxu0 }
  0xf2   : > { %v844_v53 = vpop.f32.mrb[6].mxu1  ;;  %633 = vst [vmem:[%s1012_s27 + $0x30] sm:$0xff] %v601_v50  ;;  %v617_v54 = vsel %vm553_vm10, %v843_v43, %v585_v48  ;;  %vm538_vm13 = vcmp.ge.f32.partialorder %v828_v52, 0.0  ;;  %v570_v56 = vmul.f32 0.2, %v828_v52  ;;  %v423_v57 = vpop.f32.mrb[7].mxu0 }
  0xf3   : > { %v599_v55 = vsel %vm535_vm11, %v420_v46, %v567_v49  ;;  %v487_v58 = vpop.f32.mrb[7].mxu1  ;;  %649 = vst [vmem:[%s1012_s27 + $0xb0] sm:$0xff] %v617_v54  ;;  %v615_v59 = vsel %vm551_vm12, %v484_v47, %v583_v51  ;;  %vm554_vm14 = vcmp.ge.f32.partialorder %v844_v53, 0.0  ;;  %v586_v60 = vmul.f32 0.2, %v844_v53 }
  0xf4   : > { %631 = vst [vmem:[%s1012_s27 + $0x20] sm:$0xff] %v599_v55  ;;  %vm536_vm15 = vcmp.ge.f32.partialorder %v423_v57, 0.0  ;;  %647 = vst [vmem:[%s1012_s27 + $0xa0] sm:$0xff] %v615_v59  ;;  %v602_v61 = vsel %vm538_vm13, %v828_v52, %v570_v56  ;;  %v568_v62 = vmul.f32 0.2, %v423_v57  ;;  %vm552_vm0 = vcmp.ge.f32.partialorder %v487_v58, 0.0 }
  0xf5   : > { %v584_v63 = vmul.f32 0.2, %v487_v58  ;;  %634 = vst [vmem:[%s1012_s27 + $0x38] sm:$0xff] %v602_v61  ;;  %v618_v0 = vsel %vm554_vm14, %v844_v53, %v586_v60 }
  0xf6   : > { %650 = vst [vmem:[%s1012_s27 + $0xb8] sm:$0xff] %v618_v0  ;;  %v600_v1 = vsel %vm536_vm15, %v423_v57, %v568_v62  ;;  %v831_v3 = vpop.f32.mrb[8].mxu0 }
  0xf7   : > { %v616_v2 = vsel %vm552_vm0, %v487_v58, %v584_v63  ;;  %v847_v4 = vpop.f32.mrb[8].mxu1  ;;  %632 = vst [vmem:[%s1012_s27 + $0x28] sm:$0xff] %v600_v1  ;;  %vm541_vm1 = vcmp.ge.f32.partialorder %v831_v3, 0.0  ;;  %v573_v5 = vmul.f32 0.2, %v831_v3  ;;  %v436_v7 = vpop.f32.mrb[9].mxu0 }
  0xf8   : > { %648 = vst [vmem:[%s1012_s27 + $0xa8] sm:$0xff] %v616_v2  ;;  %vm557_vm2 = vcmp.ge.f32.partialorder %v847_v4, 0.0  ;;  %v589_v6 = vmul.f32 0.2, %v847_v4  ;;  %v500_v8 = vpop.f32.mrb[9].mxu1  ;;  %vm539_vm3 = vcmp.ge.f32.partialorder %v436_v7, 0.0 }
  0xf9   : > { %v605_v9 = vsel %vm541_vm1, %v831_v3, %v573_v5  ;;  %v571_v11 = vmul.f32 0.2, %v436_v7  ;;  %v832_v12 = vpop.f32.mrb[10].mxu0  ;;  %v848_v13 = vpop.f32.mrb[10].mxu1  ;;  %vm555_vm4 = vcmp.ge.f32.partialorder %v500_v8, 0.0 }
  0xfa   : > { %v621_v10 = vsel %vm557_vm2, %v847_v4, %v589_v6  ;;  %637 = vst [vmem:[%s1012_s27 + $0x50] sm:$0xff] %v605_v9  ;;  %v587_v14 = vmul.f32 0.2, %v500_v8  ;;  %vm542_vm5 = vcmp.ge.f32.partialorder %v832_v12, 0.0  ;;  %v574_v15 = vmul.f32 0.2, %v832_v12 }
  0xfb   : > { %653 = vst [vmem:[%s1012_s27 + $0xd0] sm:$0xff] %v621_v10  ;;  %v603_v16 = vsel %vm539_vm3, %v436_v7, %v571_v11  ;;  %vm558_vm6 = vcmp.ge.f32.partialorder %v848_v13, 0.0  ;;  %v590_v17 = vmul.f32 0.2, %v848_v13  ;;  %v439_v18 = vpop.f32.mrb[11].mxu0  ;;  %v503_v19 = vpop.f32.mrb[11].mxu1 }
  0xfc   : > { %635 = vst [vmem:[%s1012_s27 + $0x40] sm:$0xff] %v603_v16  ;;  %v619_v20 = vsel %vm555_vm4, %v500_v8, %v587_v14  ;;  %v606_v21 = vsel %vm542_vm5, %v832_v12, %v574_v15  ;;  %vm540_vm7 = vcmp.ge.f32.partialorder %v439_v18, 0.0  ;;  %v572_v22 = vmul.f32 0.2, %v439_v18 }
  0xfd   : > { %651 = vst [vmem:[%s1012_s27 + $0xc0] sm:$0xff] %v619_v20  ;;  %638 = vst [vmem:[%s1012_s27 + $0x58] sm:$0xff] %v606_v21  ;;  %v622_v23 = vsel %vm558_vm6, %v848_v13, %v590_v17  ;;  %vm556_vm8 = vcmp.ge.f32.partialorder %v503_v19, 0.0  ;;  %v588_v24 = vmul.f32 0.2, %v503_v19 }
  0xfe   : > { %654 = vst [vmem:[%s1012_s27 + $0xd8] sm:$0xff] %v622_v23  ;;  %v604_v25 = vsel %vm540_vm7, %v439_v18, %v572_v22  ;;  %v835_v26 = vpop.f32.mrb[12].mxu0 }
  0xff   : > { %v851_v27 = vpop.f32.mrb[12].mxu1  ;;  %636 = vst [vmem:[%s1012_s27 + $0x48] sm:$0xff] %v604_v25  ;;  %v620_v28 = vsel %vm556_vm8, %v503_v19, %v588_v24  ;;  %vm545_vm9 = vcmp.ge.f32.partialorder %v835_v26, 0.0  ;;  %v577_v29 = vmul.f32 0.2, %v835_v26  ;;  %v452_v30 = vpop.f32.mrb[13].mxu0 }
 0x100   : > { %vm561_vm10 = vcmp.ge.f32.partialorder %v851_v27, 0.0  ;;  %v516_v31 = vpop.f32.mrb[13].mxu1  ;;  %652 = vst [vmem:[%s1012_s27 + $0xc8] sm:$0xff] %v620_v28  ;;  %v593_v32 = vmul.f32 0.2, %v851_v27  ;;  %vm543_vm11 = vcmp.ge.f32.partialorder %v452_v30, 0.0 }
 0x101   : > { %v575_v33 = vmul.f32 0.2, %v452_v30  ;;  %vm559_vm12 = vcmp.ge.f32.partialorder %v516_v31, 0.0  ;;  %v609_v34 = vsel %vm545_vm9, %v835_v26, %v577_v29  ;;  %v591_v35 = vmul.f32 0.2, %v516_v31  ;;  %v836_v36 = vpop.f32.mrb[14].mxu0 }
 0x102   : > { %v852_v37 = vpop.f32.mrb[14].mxu1  ;;  %641 = vst [vmem:[%s1012_s27 + $0x70] sm:$0xff] %v609_v34  ;;  %v625_v38 = vsel %vm561_vm10, %v851_v27, %v593_v32  ;;  %vm546_vm13 = vcmp.ge.f32.partialorder %v836_v36, 0.0  ;;  %v578_v40 = vmul.f32 0.2, %v836_v36  ;;  %v455_v41 = vpop.f32.mrb[15].mxu0 }
 0x103   : > { %v607_v39 = vsel %vm543_vm11, %v452_v30, %v575_v33  ;;  %v519_v42 = vpop.f32.mrb[15].mxu1  ;;  %657 = vst [vmem:[%s1012_s27 + $0xf0] sm:$0xff] %v625_v38  ;;  %v623_v43 = vsel %vm559_vm12, %v516_v31, %v591_v35  ;;  %vm562_vm14 = vcmp.ge.f32.partialorder %v852_v37, 0.0  ;;  %v594_v44 = vmul.f32 0.2, %v852_v37 }
 0x104   : > { %639 = vst [vmem:[%s1012_s27 + $0x60] sm:$0xff] %v607_v39  ;;  %vm544_vm15 = vcmp.ge.f32.partialorder %v455_v41, 0.0  ;;  %655 = vst [vmem:[%s1012_s27 + $0xe0] sm:$0xff] %v623_v43  ;;  %v610_v45 = vsel %vm546_vm13, %v836_v36, %v578_v40  ;;  %v576_v46 = vmul.f32 0.2, %v455_v41  ;;  %vm560_vm0 = vcmp.ge.f32.partialorder %v519_v42, 0.0 }
 0x105   : > { %v592_v47 = vmul.f32 0.2, %v519_v42  ;;  %642 = vst [vmem:[%s1012_s27 + $0x78] sm:$0xff] %v610_v45  ;;  %v626_v48 = vsel %vm562_vm14, %v852_v37, %v594_v44 }
 0x106   : > { %658 = vst [vmem:[%s1012_s27 + $0xf8] sm:$0xff] %v626_v48  ;;  %v608_v49 = vsel %vm544_vm15, %v455_v41, %v576_v46 }
 0x107   : > { %v624_v50 = vsel %vm560_vm0, %v519_v42, %v592_v47  ;;  %640 = vst [vmem:[%s1012_s27 + $0x68] sm:$0xff] %v608_v49 }
 0x108   : > { %656 = vst [vmem:[%s1012_s27 + $0xe8] sm:$0xff] %v624_v50 }
 0x109 PF: > { %s12_s11 = sadd.s32 1, %s924_s11   ;;  %s1058_s9 = smov %s920_s10 }
 0x10a   : > { %p9_p5 = scmp.ge.s32.totalorder %s12_s11, 4   ;;  %s1059_s10 = smov %s1061_s12 }
 0x10c   :  { %11 = sbr.rel (!%p9_p5) target bundleno = 2 (0x2), region = 61 }

// kernel: discriminator_forward.6
= control target key start
LH: loop header
LB: loop body
LE: loop exit
PB: predicated region body
PF: predicated region fallthrough
CT: control target
= control target key end

     0   :  { %s2307_s1 = inlined_call_operand.vmem [shape: bf16[1024,128], index: 1, kind: input, shape index: {}]   ;;  %s2308_s0 = inlined_call_operand.vmem [shape: bf16[128,1024], index: 0, kind: input, shape index: {}]   ;;  %s2309_s2 = inlined_call_operand.vmem [shape: f32[128,128], index: 2, kind: output, shape index: {}]  }
   0x1   :  { %v1748_v0 = vld [vmem:[%s2307_s1 + $0x40] sm:$0xff]   ;;  %v1752_v4 = vld [vmem:[%s2307_s1 + $0x48] sm:$0xff]   ;;  %v1756_v8 = vld [vmem:[%s2307_s1 + $0x50] sm:$0xff]  }
   0x2   :  { %v1749_v1 = vld [vmem:[%s2307_s1 + $0xc0] sm:$0xff]   ;;  %1492 = vmatprep.subr.bf16.mxu0 %v1748_v0  ;;  %v1753_v5 = vld [vmem:[%s2307_s1 + $0xc8] sm:$0xff]   ;;  %v1757_v9 = vld [vmem:[%s2307_s1 + $0xd0] sm:$0xff]  }
   0x3   :  { %v1750_v2 = vld [vmem:[%s2307_s1] sm:$0xff]   ;;  %1556 = vmatprep.subr.bf16.mxu1 %v1749_v1  ;;  %v1754_v6 = vld [vmem:[%s2307_s1 + $0x8] sm:$0xff]   ;;  %v1758_v10 = vld [vmem:[%s2307_s1 + $0x10] sm:$0xff]  }
   0x4   :  { %v1751_v3 = vld [vmem:[%s2307_s1 + $0x80] sm:$0xff]   ;;  %1493 = vmatpush3.bf16.msra.mxu0 %v1750_v2  ;;  %v1755_v7 = vld [vmem:[%s2307_s1 + $0x88] sm:$0xff]   ;;  %v1759_v11 = vld [vmem:[%s2307_s1 + $0x90] sm:$0xff]  }
   0x5   :  { %1557 = vmatpush3.bf16.msra.mxu1 %v1751_v3  ;;  %1494 = vmatprep.subr.bf16.mxu0 %v1752_v4  ;;  %v1760_v12 = vld [vmem:[%s2307_s1 + $0x58] sm:$0xff]   ;;  %v1764_v16 = vld [vmem:[%s2307_s1 + $0x60] sm:$0xff]   ;;  %v1768_v20 = vld [vmem:[%s2307_s1 + $0x68] sm:$0xff]  }
   0x6   :  { %1558 = vmatprep.subr.bf16.mxu1 %v1753_v5  ;;  %v1761_v13 = vld [vmem:[%s2307_s1 + $0xd8] sm:$0xff]   ;;  %v1765_v17 = vld [vmem:[%s2307_s1 + $0xe0] sm:$0xff]   ;;  %v1769_v21 = vld [vmem:[%s2307_s1 + $0xe8] sm:$0xff]  }
   0x7   :  { %v1762_v14 = vld [vmem:[%s2307_s1 + $0x18] sm:$0xff]   ;;  %v1766_v18 = vld [vmem:[%s2307_s1 + $0x20] sm:$0xff]   ;;  %v1770_v22 = vld [vmem:[%s2307_s1 + $0x28] sm:$0xff]  }
   0x8   :  { %1495 = vmatpush3.bf16.msra.mxu0 %v1754_v6  ;;  %v1763_v15 = vld [vmem:[%s2307_s1 + $0x98] sm:$0xff]   ;;  %v1767_v19 = vld [vmem:[%s2307_s1 + $0xa0] sm:$0xff]   ;;  %v1771_v23 = vld [vmem:[%s2307_s1 + $0xa8] sm:$0xff]  }
   0x9   :  { %1559 = vmatpush3.bf16.msra.mxu1 %v1755_v7  ;;  %1496 = vmatprep.subr.bf16.mxu0 %v1756_v8  ;;  %v1772_v24 = vld [vmem:[%s2307_s1 + $0x70] sm:$0xff]   ;;  %v1776_v28 = vld [vmem:[%s2307_s1 + $0x78] sm:$0xff]   ;;  %v12_v32 = vld [vmem:[%s2308_s0] sm:$0xff] }
   0xa   :  { %1560 = vmatprep.subr.bf16.mxu1 %v1757_v9  ;;  %v1773_v25 = vld [vmem:[%s2307_s1 + $0xf0] sm:$0xff]   ;;  %v1777_v29 = vld [vmem:[%s2307_s1 + $0xf8] sm:$0xff]   ;;  %v16_v33 = vld [vmem:[%s2308_s0 + $0x20] sm:$0xff] }
   0xb   :  { %v1774_v26 = vld [vmem:[%s2307_s1 + $0x30] sm:$0xff]   ;;  %v1778_v30 = vld [vmem:[%s2307_s1 + $0x38] sm:$0xff]   ;;  %v13_v34 = vld [vmem:[%s2308_s0 + $0x8] sm:$0xff]  ;;  %v1364_v35 = vcombine.low %v12_v32, %v16_v33  ;;  %v1365_v36 = vcombine.high %v12_v32, %v16_v33 }
   0xc   :  { %1497 = vmatpush3.bf16.msra.mxu0 %v1758_v10  ;;  %v1775_v27 = vld [vmem:[%s2307_s1 + $0xb0] sm:$0xff]   ;;  %v1779_v31 = vld [vmem:[%s2307_s1 + $0xb8] sm:$0xff]   ;;  %v17_v37 = vld [vmem:[%s2308_s0 + $0x28] sm:$0xff] }
   0xd   :  { %1561 = vmatpush3.bf16.msra.mxu1 %v1759_v11  ;;  %1498 = vmatprep.subr.bf16.mxu0 %v1760_v12  ;;  %v1366_v38 = vcombine.low %v13_v34, %v17_v37  ;;  %v1367_v39 = vcombine.high %v13_v34, %v17_v37  ;;  %v1780_v40 = vld [vmem:[%s2307_s1 + $0x140] sm:$0xff]   ;;  %v21_v47 = vld [vmem:[%s2308_s0 + $0x48] sm:$0xff]  ;;  %v1788_v62 = vld [vmem:[%s2307_s1 + $0x150] sm:$0xff]  }
   0xe   :  { %1562 = vmatprep.subr.bf16.mxu1 %v1761_v13  ;;  %940 = vmatprep.mubr.bf16.mxu0 %v1365_v36  ;;  %v1781_v41 = vld [vmem:[%s2307_s1 + $0x100] sm:$0xff]   ;;  %v25_v48 = vld [vmem:[%s2308_s0 + $0x68] sm:$0xff]  ;;  %v1789_v63 = vld [vmem:[%s2307_s1 + $0x110] sm:$0xff]  }
   0xf   :  { %1037 = vmatprep.mubr.bf16.mxu1 %v1367_v39  ;;  %v1782_v42 = vld [vmem:[%s2307_s1 + $0x1c0] sm:$0xff]   ;;  %v1375_v49 = vcombine.high %v21_v47, %v25_v48  ;;  %v1784_v50 = vld [vmem:[%s2307_s1 + $0x148] sm:$0xff]   ;;  %v1374_v53 = vcombine.low %v21_v47, %v25_v48  ;;  %v1790_v0 = vld [vmem:[%s2307_s1 + $0x1d0] sm:$0xff]  }
  0x10   :  { %1499 = vmatpush3.bf16.msra.mxu0 %v1762_v14  ;;  %v1783_v43 = vld [vmem:[%s2307_s1 + $0x180] sm:$0xff]   ;;  %v1785_v52 = vld [vmem:[%s2307_s1 + $0x108] sm:$0xff]   ;;  %v1791_v1 = vld [vmem:[%s2307_s1 + $0x190] sm:$0xff]  }
  0x11   :  { %1563 = vmatpush3.bf16.msra.mxu1 %v1763_v15  ;;  %1500 = vmatprep.subr.bf16.mxu0 %v1764_v16  ;;  %v20_v44 = vld [vmem:[%s2308_s0 + $0x40] sm:$0xff]  ;;  %v1786_v54 = vld [vmem:[%s2307_s1 + $0x1c8] sm:$0xff]   ;;  %v1792_v10 = vld [vmem:[%s2307_s1 + $0x158] sm:$0xff]  }
  0x12   :  { %1564 = vmatprep.subr.bf16.mxu1 %v1765_v17  ;;  %v24_v45 = vld [vmem:[%s2308_s0 + $0x60] sm:$0xff]  ;;  %v1787_v55 = vld [vmem:[%s2307_s1 + $0x188] sm:$0xff]   ;;  %v1793_v11 = vld [vmem:[%s2307_s1 + $0x118] sm:$0xff]  }
  0x13   :  { %v1373_v46 = vcombine.high %v20_v44, %v24_v45  ;;  %v1372_v51 = vcombine.low %v20_v44, %v24_v45  ;;  %v28_v56 = vld [vmem:[%s2308_s0 + $0x80] sm:$0xff]  ;;  %v29_v58 = vld [vmem:[%s2308_s0 + $0x88] sm:$0xff]  ;;  %v1794_v12 = vld [vmem:[%s2307_s1 + $0x1d8] sm:$0xff]  }
  0x14   :  { %1501 = vmatpush3.bf16.msra.mxu0 %v1766_v18  ;;  %v32_v57 = vld [vmem:[%s2308_s0 + $0xa0] sm:$0xff]  ;;  %v33_v59 = vld [vmem:[%s2308_s0 + $0xa8] sm:$0xff]  ;;  %v1795_v13 = vld [vmem:[%s2307_s1 + $0x198] sm:$0xff]  }
  0x15   :  { %1565 = vmatpush3.bf16.msra.mxu1 %v1767_v19  ;;  %1502 = vmatprep.subr.bf16.mxu0 %v1768_v20  ;;  %v1381_v60 = vcombine.high %v28_v56, %v32_v57  ;;  %v1383_v61 = vcombine.high %v29_v58, %v33_v59  ;;  %v1380_v2 = vcombine.low %v28_v56, %v32_v57  ;;  %v36_v3 = vld [vmem:[%s2308_s0 + $0xc0] sm:$0xff]  ;;  %v37_v5 = vld [vmem:[%s2308_s0 + $0xc8] sm:$0xff]  ;;  %v1805_v39 = vld [vmem:[%s2307_s1 + $0x130] sm:$0xff]  }
  0x16   :  { %1566 = vmatprep.subr.bf16.mxu1 %v1769_v21  ;;  %v40_v4 = vld [vmem:[%s2308_s0 + $0xe0] sm:$0xff]  ;;  %v1382_v6 = vcombine.low %v29_v58, %v33_v59  ;;  %v41_v8 = vld [vmem:[%s2308_s0 + $0xe8] sm:$0xff]  ;;  %v1809_v48 = vld [vmem:[%s2307_s1 + $0x138] sm:$0xff]  }
  0x17   :  { %v1389_v7 = vcombine.high %v36_v3, %v40_v4  ;;  %v1391_v9 = vcombine.high %v37_v5, %v41_v8  ;;  %v44_v14 = vld [vmem:[%s2308_s0 + $0x100] sm:$0xff]  ;;  %v45_v16 = vld [vmem:[%s2308_s0 + $0x108] sm:$0xff]  ;;  %v1388_v19 = vcombine.low %v36_v3, %v40_v4  ;;  %v1390_v21 = vcombine.low %v37_v5, %v41_v8  ;;  %v23_v8 = vld [vmem:[%s2308_s0 + $0x58] sm:$0xff] }
  0x18   :  { %1503 = vmatpush3.bf16.msra.mxu0 %v1770_v22  ;;  %v48_v15 = vld [vmem:[%s2308_s0 + $0x120] sm:$0xff]  ;;  %v49_v17 = vld [vmem:[%s2308_s0 + $0x128] sm:$0xff] }
  0x19   :  { %1567 = vmatpush3.bf16.msra.mxu1 %v1771_v23  ;;  %1504 = vmatprep.subr.bf16.mxu0 %v1772_v24  ;;  %v1796_v18 = vld [vmem:[%s2307_s1 + $0x160] sm:$0xff]   ;;  %v1397_v22 = vcombine.high %v44_v14, %v48_v15  ;;  %v1399_v24 = vcombine.high %v45_v16, %v49_v17  ;;  %v1802_v32 = vld [vmem:[%s2307_s1 + $0x1e8] sm:$0xff]   ;;  %v1396_v34 = vcombine.low %v44_v14, %v48_v15  ;;  %v30_v14 = vld [vmem:[%s2308_s0 + $0x90] sm:$0xff] }
  0x1a   :  { %1568 = vmatprep.subr.bf16.mxu1 %v1773_v25  ;;  %v1797_v20 = vld [vmem:[%s2307_s1 + $0x120] sm:$0xff]   ;;  %v1803_v33 = vld [vmem:[%s2307_s1 + $0x1a8] sm:$0xff]   ;;  %v34_v15 = vld [vmem:[%s2308_s0 + $0xb0] sm:$0xff] }
  0x1b   :  { %v1798_v23 = vld [vmem:[%s2307_s1 + $0x1e0] sm:$0xff]   ;;  %v61_v44 = vld [vmem:[%s2308_s0 + $0x188] sm:$0xff] }
  0x1c   :  { %1505 = vmatpush3.bf16.msra.mxu0 %v1774_v26  ;;  %v1799_v25 = vld [vmem:[%s2307_s1 + $0x1a0] sm:$0xff]   ;;  %v65_v45 = vld [vmem:[%s2308_s0 + $0x1a8] sm:$0xff] }
  0x1d   :  { %1569 = vmatpush3.bf16.msra.mxu1 %v1775_v27  ;;  %1506 = vmatprep.subr.bf16.mxu0 %v1776_v28  ;;  %v52_v26 = vld [vmem:[%s2308_s0 + $0x140] sm:$0xff]  ;;  %v1800_v28 = vld [vmem:[%s2307_s1 + $0x168] sm:$0xff]   ;;  %v1414_v59 = vcombine.low %v61_v44, %v65_v45 }
  0x1e   :  { %1570 = vmatprep.subr.bf16.mxu1 %v1777_v29  ;;  %v56_v27 = vld [vmem:[%s2308_s0 + $0x160] sm:$0xff]  ;;  %v53_v29 = vld [vmem:[%s2308_s0 + $0x148] sm:$0xff] }
  0x1f   :  { %v1405_v36 = vcombine.high %v52_v26, %v56_v27  ;;  %v1404_v47 = vcombine.low %v52_v26, %v56_v27  ;;  %v69_v56 = vld [vmem:[%s2308_s0 + $0x1c8] sm:$0xff]  ;;  %v1384_v26 = vcombine.low %v30_v14, %v34_v15 }
  0x20   :  { %1507 = vmatpush3.bf16.msra.mxu0 %v1778_v30  ;;  %v57_v30 = vld [vmem:[%s2308_s0 + $0x168] sm:$0xff] }
  0x21   :  { %1571 = vmatpush3.bf16.msra.mxu1 %v1779_v31  ;;  %1620 = vmatprep.subr.bf16.mxu0 %v1780_v40  ;;  %v1801_v31 = vld [vmem:[%s2307_s1 + $0x128] sm:$0xff]   ;;  %v1407_v37 = vcombine.high %v53_v29, %v57_v30  ;;  %v1806_v40 = vld [vmem:[%s2307_s1 + $0x1f0] sm:$0xff]  }
  0x22   :  { %1684 = vmatprep.subr.bf16.mxu1 %v1782_v42  ;;  %v64_v42 = vld [vmem:[%s2308_s0 + $0x1a0] sm:$0xff]  ;;  %v73_v57 = vld [vmem:[%s2308_s0 + $0x1e8] sm:$0xff] }
  0x23   :  { %941 = vmatmul.mubr.bf16.vlgmr.msra.gmra.mrb[0].mxu0 %v1364_v35  ;;  %v1398_v35 = vcombine.low %v45_v16, %v49_v17  ;;  %v1422_v3 = vcombine.low %v69_v56, %v73_v57  ;;  %v31_v16 = vld [vmem:[%s2308_s0 + $0x98] sm:$0xff] }
  0x24   :  { %1038 = vmatmul.mubr.bf16.vlgmr.msra.gmra.mrb[0].mxu1 %v1366_v38  ;;  %1621 = vmatpush3.bf16.msra.mxu0 %v1781_v41  ;;  %v1804_v38 = vld [vmem:[%s2307_s1 + $0x170] sm:$0xff]   ;;  %v60_v41 = vld [vmem:[%s2308_s0 + $0x180] sm:$0xff]  ;;  %v35_v17 = vld [vmem:[%s2308_s0 + $0xb8] sm:$0xff] }
  0x25   :  { %1685 = vmatpush3.bf16.msra.mxu1 %v1783_v43  ;;  %948 = vmatprep.mubr.bf16.mxu0 %v1373_v46  ;;  %v1807_v43 = vld [vmem:[%s2307_s1 + $0x1b0] sm:$0xff]   ;;  %v1808_v46 = vld [vmem:[%s2307_s1 + $0x178] sm:$0xff]   ;;  %v1412_v58 = vcombine.low %v60_v41, %v64_v42  ;;  %v1386_v27 = vcombine.low %v31_v16, %v35_v17 }
  0x26   :  { %1045 = vmatprep.mubr.bf16.mxu1 %v1375_v49  ;;  %1622 = vmatprep.subr.bf16.mxu0 %v1784_v50  ;;  %v1406_v49 = vcombine.low %v53_v29, %v57_v30  ;;  %v1413_v50 = vcombine.high %v60_v41, %v64_v42  ;;  %v46_v30 = vld [vmem:[%s2308_s0 + $0x110] sm:$0xff]  ;;  %v59_v41 = vld [vmem:[%s2308_s0 + $0x178] sm:$0xff] }
  0x27   :  { %1686 = vmatprep.subr.bf16.mxu1 %v1786_v54  ;;  %v68_v54 = vld [vmem:[%s2308_s0 + $0x1c0] sm:$0xff] }
  0x28   :  { %1623 = vmatpush3.bf16.msra.mxu0 %v1785_v52  ;;  %v1415_v52 = vcombine.high %v61_v44, %v65_v45 }
  0x29   :  { %1687 = vmatpush3.bf16.msra.mxu1 %v1787_v55  ;;  %1624 = vmatprep.subr.bf16.mxu0 %v1788_v62  ;;  %v72_v55 = vld [vmem:[%s2308_s0 + $0x1e0] sm:$0xff]  ;;  %v14_v62 = vld [vmem:[%s2308_s0 + $0x10] sm:$0xff] }
  0x2a   :  { %1688 = vmatprep.subr.bf16.mxu1 %v1790_v0  ;;  %v15_v0 = vld [vmem:[%s2308_s0 + $0x18] sm:$0xff] }
  0x2b   :  { %949 = vmatmul.mubr.bf16.gmra.mrb[4].mxu0 %v1372_v51  ;;  %v1810_v51 = vld [vmem:[%s2307_s1 + $0x1f8] sm:$0xff]  }
  0x2c   :  { %1046 = vmatmul.mubr.bf16.gmra.mrb[4].mxu1 %v1374_v53  ;;  %956 = vmatprep.mubr.bf16.mxu0 %v1381_v60  ;;  %v1811_v53 = vld [vmem:[%s2307_s1 + $0x1b8] sm:$0xff]   ;;  %v1421_v60 = vcombine.high %v68_v54, %v72_v55 }
  0x2d   :  { %1053 = vmatprep.mubr.bf16.mxu1 %v1383_v61  ;;  %1625 = vmatpush3.bf16.msra.mxu0 %v1789_v63  ;;  %v1423_v61 = vcombine.high %v69_v56, %v73_v57  ;;  %v18_v63 = vld [vmem:[%s2308_s0 + $0x30] sm:$0xff]  ;;  %v71_v56 = vld [vmem:[%s2308_s0 + $0x1d8] sm:$0xff] }
  0x2e   :  { %1689 = vmatpush3.bf16.msra.mxu1 %v1791_v1  ;;  %1626 = vmatprep.subr.bf16.mxu0 %v1792_v10  ;;  %v19_v1 = vld [vmem:[%s2308_s0 + $0x38] sm:$0xff]  ;;  %v1369_v4 = vcombine.high %v14_v62, %v18_v63  ;;  %v1368_v10 = vcombine.low %v14_v62, %v18_v63 }
  0x2f   :  { %1690 = vmatprep.subr.bf16.mxu1 %v1794_v12  ;;  %v1371_v5 = vcombine.high %v15_v0, %v19_v1  ;;  %v75_v57 = vld [vmem:[%s2308_s0 + $0x1f8] sm:$0xff] }
  0x30   :  { %v1426_v63 = vcombine.low %v71_v56, %v75_v57 }
  0x31   :  { %1627 = vmatpush3.bf16.msra.mxu0 %v1793_v11  ;;  %v1370_v11 = vcombine.low %v15_v0, %v19_v1 }
  0x32   :  { %1691 = vmatpush3.bf16.msra.mxu1 %v1795_v13  ;;  %1628 = vmatprep.subr.bf16.mxu0 %v1796_v18 }
  0x33   :  { %957 = vmatmul.mubr.bf16.gmra.mrb[8].mxu0 %v1380_v2  ;;  %1692 = vmatprep.subr.bf16.mxu1 %v1798_v23  ;;  %v1420_v2 = vcombine.low %v68_v54, %v72_v55  ;;  %v42_v23 = vld [vmem:[%s2308_s0 + $0xf0] sm:$0xff] }
  0x34   :  { %1054 = vmatmul.mubr.bf16.gmra.mrb[8].mxu1 %v1382_v6  ;;  %964 = vmatprep.mubr.bf16.mxu0 %v1389_v7  ;;  %v22_v6 = vld [vmem:[%s2308_s0 + $0x50] sm:$0xff] }
  0x35   :  { %1061 = vmatprep.mubr.bf16.mxu1 %v1391_v9  ;;  %1629 = vmatpush3.bf16.msra.mxu0 %v1797_v20  ;;  %v26_v7 = vld [vmem:[%s2308_s0 + $0x70] sm:$0xff]  ;;  %v27_v9 = vld [vmem:[%s2308_s0 + $0x78] sm:$0xff]  ;;  %v1385_v20 = vcombine.high %v30_v14, %v34_v15 }
  0x36   :  { %1693 = vmatpush3.bf16.msra.mxu1 %v1799_v25  ;;  %1630 = vmatprep.subr.bf16.mxu0 %v1800_v28  ;;  %v1377_v12 = vcombine.high %v22_v6, %v26_v7  ;;  %v1379_v13 = vcombine.high %v23_v8, %v27_v9  ;;  %v1376_v18 = vcombine.low %v22_v6, %v26_v7  ;;  %v43_v25 = vld [vmem:[%s2308_s0 + $0xf8] sm:$0xff]  ;;  %v70_v54 = vld [vmem:[%s2308_s0 + $0x1d0] sm:$0xff] }
  0x37   :  { %1694 = vmatprep.subr.bf16.mxu1 %v1802_v32  ;;  %v47_v32 = vld [vmem:[%s2308_s0 + $0x118] sm:$0xff]  ;;  %v74_v55 = vld [vmem:[%s2308_s0 + $0x1f0] sm:$0xff] }
  0x38   :  { %v1424_v62 = vcombine.low %v70_v54, %v74_v55 }
  0x39   :  { %1631 = vmatpush3.bf16.msra.mxu0 %v1801_v31  ;;  %v50_v31 = vld [vmem:[%s2308_s0 + $0x130] sm:$0xff] }
  0x3a   :  { %1695 = vmatpush3.bf16.msra.mxu1 %v1803_v33  ;;  %1632 = vmatprep.subr.bf16.mxu0 %v1804_v38  ;;  %v51_v33 = vld [vmem:[%s2308_s0 + $0x138] sm:$0xff]  ;;  %v54_v38 = vld [vmem:[%s2308_s0 + $0x150] sm:$0xff]  ;;  %v1400_v42 = vcombine.low %v46_v30, %v50_v31 }
  0x3b   :  { %965 = vmatmul.mubr.bf16.gmra.mrb[12].mxu0 %v1388_v19  ;;  %1696 = vmatprep.subr.bf16.mxu1 %v1806_v40  ;;  %v1378_v19 = vcombine.low %v23_v8, %v27_v9  ;;  %v55_v40 = vld [vmem:[%s2308_s0 + $0x158] sm:$0xff] }
  0x3c   :  { %1062 = vmatmul.mubr.bf16.gmra.mrb[12].mxu1 %v1390_v21  ;;  %972 = vmatprep.mubr.bf16.mxu0 %v1397_v22  ;;  %v1387_v21 = vcombine.high %v31_v16, %v35_v17  ;;  %v38_v22 = vld [vmem:[%s2308_s0 + $0xd0] sm:$0xff]  ;;  %v1411_v45 = vcombine.high %v55_v40, %v59_v41 }
  0x3d   :  { %1069 = vmatprep.mubr.bf16.mxu1 %v1399_v24  ;;  %1633 = vmatpush3.bf16.msra.mxu0 %v1805_v39  ;;  %v39_v24 = vld [vmem:[%s2308_s0 + $0xd8] sm:$0xff]  ;;  %v1393_v28 = vcombine.high %v38_v22, %v42_v23  ;;  %v58_v39 = vld [vmem:[%s2308_s0 + $0x170] sm:$0xff] }
  0x3e   :  { %1697 = vmatpush3.bf16.msra.mxu1 %v1807_v43  ;;  %1634 = vmatprep.subr.bf16.mxu0 %v1808_v46  ;;  %v1395_v29 = vcombine.high %v39_v24, %v43_v25  ;;  %v1402_v43 = vcombine.low %v47_v32, %v51_v33  ;;  %v1409_v44 = vcombine.high %v54_v38, %v58_v39  ;;  %v62_v46 = vld [vmem:[%s2308_s0 + $0x190] sm:$0xff] }
  0x3f   :  { %1698 = vmatprep.subr.bf16.mxu1 %v1810_v51  ;;  %v1410_v51 = vcombine.low %v55_v40, %v59_v41 }
  0x41   :  { %1635 = vmatpush3.bf16.msra.mxu0 %v1809_v48  ;;  %v63_v48 = vld [vmem:[%s2308_s0 + $0x198] sm:$0xff] }
  0x42   :  { %1699 = vmatpush3.bf16.msra.mxu1 %v1811_v53 }
  0x43   :  { %973 = vmatmul.mubr.bf16.gmra.mrb[16].mxu0 %v1396_v34  ;;  %v1392_v34 = vcombine.low %v38_v22, %v42_v23 }
  0x44   :  { %1070 = vmatmul.mubr.bf16.gmra.mrb[16].mxu1 %v1398_v35  ;;  %980 = vmatprep.mubr.bf16.mxu0 %v1405_v36  ;;  %v1394_v35 = vcombine.low %v39_v24, %v43_v25  ;;  %v1401_v36 = vcombine.high %v46_v30, %v50_v31 }
  0x45   :  { %1077 = vmatprep.mubr.bf16.mxu1 %v1407_v37  ;;  %v1403_v37 = vcombine.high %v47_v32, %v51_v33 }
  0x4b   :  { %981 = vmatmul.mubr.bf16.gmra.mrb[20].mxu0 %v1404_v47  ;;  %v66_v47 = vld [vmem:[%s2308_s0 + $0x1b0] sm:$0xff] }
  0x4c   :  { %1078 = vmatmul.mubr.bf16.gmra.mrb[20].mxu1 %v1406_v49  ;;  %988 = vmatprep.mubr.bf16.mxu0 %v1413_v50  ;;  %v67_v49 = vld [vmem:[%s2308_s0 + $0x1b8] sm:$0xff]  ;;  %v1408_v50 = vcombine.low %v54_v38, %v58_v39 }
  0x4d   :  { %1085 = vmatprep.mubr.bf16.mxu1 %v1415_v52  ;;  %v1417_v52 = vcombine.high %v62_v46, %v66_v47  ;;  %v1419_v53 = vcombine.high %v63_v48, %v67_v49 }
  0x53   :  { %989 = vmatmul.mubr.bf16.gmra.mrb[24].mxu0 %v1412_v58  ;;  %v1416_v58 = vcombine.low %v62_v46, %v66_v47 }
  0x54   :  { %1086 = vmatmul.mubr.bf16.gmra.mrb[24].mxu1 %v1414_v59  ;;  %996 = vmatprep.mubr.bf16.mxu0 %v1421_v60  ;;  %v1418_v59 = vcombine.low %v63_v48, %v67_v49  ;;  %v1425_v60 = vcombine.high %v70_v54, %v74_v55 }
  0x55   :  { %1093 = vmatprep.mubr.bf16.mxu1 %v1423_v61  ;;  %v1427_v61 = vcombine.high %v71_v56, %v75_v57 }
  0x5b   :  { %997 = vmatmul.mubr.bf16.gmra.mrb[28].mxu0 %v1420_v2 }
  0x5c   :  { %1094 = vmatmul.mubr.bf16.gmra.mrb[28].mxu1 %v1422_v3  ;;  %1134 = vmatprep.mubr.bf16.mxu0 %v1369_v4 }
  0x5d   :  { %1231 = vmatprep.mubr.bf16.mxu1 %v1371_v5 }
  0x63   :  { %1135 = vmatmul.mubr.bf16.vlgmr.msra.gmra.mrb[32].mxu0 %v1368_v10 }
  0x64   :  { %1232 = vmatmul.mubr.bf16.vlgmr.msra.gmra.mrb[32].mxu1 %v1370_v11  ;;  %1142 = vmatprep.mubr.bf16.mxu0 %v1377_v12 }
  0x65   :  { %1239 = vmatprep.mubr.bf16.mxu1 %v1379_v13 }
  0x6b   :  { %1143 = vmatmul.mubr.bf16.gmra.mrb[36].mxu0 %v1376_v18 }
  0x6c   :  { %1240 = vmatmul.mubr.bf16.gmra.mrb[36].mxu1 %v1378_v19  ;;  %1150 = vmatprep.mubr.bf16.mxu0 %v1385_v20 }
  0x6d   :  { %1247 = vmatprep.mubr.bf16.mxu1 %v1387_v21 }
  0x73   :  { %1151 = vmatmul.mubr.bf16.gmra.mrb[40].mxu0 %v1384_v26 }
  0x74   :  { %1248 = vmatmul.mubr.bf16.gmra.mrb[40].mxu1 %v1386_v27  ;;  %1158 = vmatprep.mubr.bf16.mxu0 %v1393_v28 }
  0x75   :  { %1255 = vmatprep.mubr.bf16.mxu1 %v1395_v29 }
  0x7b   :  { %1159 = vmatmul.mubr.bf16.gmra.mrb[44].mxu0 %v1392_v34 }
  0x7c   :  { %1256 = vmatmul.mubr.bf16.gmra.mrb[44].mxu1 %v1394_v35  ;;  %1166 = vmatprep.mubr.bf16.mxu0 %v1401_v36 }
  0x7d   :  { %1263 = vmatprep.mubr.bf16.mxu1 %v1403_v37 }
  0x83   :  { %1167 = vmatmul.mubr.bf16.gmra.mrb[48].mxu0 %v1400_v42 }
  0x84   :  { %1264 = vmatmul.mubr.bf16.gmra.mrb[48].mxu1 %v1402_v43  ;;  %1174 = vmatprep.mubr.bf16.mxu0 %v1409_v44 }
  0x85   :  { %1271 = vmatprep.mubr.bf16.mxu1 %v1411_v45 }
  0x8b   :  { %1175 = vmatmul.mubr.bf16.gmra.mrb[52].mxu0 %v1408_v50 }
  0x8c   :  { %1272 = vmatmul.mubr.bf16.gmra.mrb[52].mxu1 %v1410_v51  ;;  %1182 = vmatprep.mubr.bf16.mxu0 %v1417_v52 }
  0x8d   :  { %1279 = vmatprep.mubr.bf16.mxu1 %v1419_v53 }
  0x93   :  { %1183 = vmatmul.mubr.bf16.gmra.mrb[56].mxu0 %v1416_v58 }
  0x94   :  { %1280 = vmatmul.mubr.bf16.gmra.mrb[56].mxu1 %v1418_v59  ;;  %1190 = vmatprep.mubr.bf16.mxu0 %v1425_v60 }
  0x95   :  { %1287 = vmatprep.mubr.bf16.mxu1 %v1427_v61 }
  0x9b   :  { %1191 = vmatmul.mubr.bf16.gmra.mrb[60].mxu0 %v1424_v62 }
  0x9c   :  { %1288 = vmatmul.mubr.bf16.gmra.mrb[60].mxu1 %v1426_v63 }
  0xf6   :  { %v1508_v0 = vpop.f32.mrb[0].mxu0 }
  0xf7   :  { %v1572_v1 = vpop.f32.mrb[0].mxu1  ;;  %v1509_v2 = vpop.f32.mrb[1].mxu0 }
  0xf8   :  { %v1510_v3 = vadd.f32 %v1509_v2, %v1508_v0  ;;  %v1573_v4 = vpop.f32.mrb[1].mxu1  ;;  %v1511_v5 = vpop.f32.mrb[2].mxu0 }
  0xf9   :  { %v1574_v6 = vadd.f32 %v1573_v4, %v1572_v1  ;;  %v1575_v7 = vpop.f32.mrb[2].mxu1  ;;  %v1512_v8 = vpop.f32.mrb[3].mxu0 }
  0xfa   :  { %v1513_v9 = vadd.f32 %v1512_v8, %v1511_v5  ;;  %v1576_v10 = vpop.f32.mrb[3].mxu1 }
  0xfb   :  { %v2211_v11 = vadd.f32 %v1574_v6, %v1510_v3  ;;  %v1577_v12 = vadd.f32 %v1576_v10, %v1575_v7 }
  0xfd   :  { %v2213_v13 = vadd.f32 %v1577_v12, %v1513_v9 }
  0xfe   :  { %v1514_v14 = vpop.f32.mrb[4].mxu0 }
  0xff   :  { %v1578_v15 = vpop.f32.mrb[4].mxu1  ;;  %v1515_v16 = vpop.f32.mrb[5].mxu0 }
 0x100   :  { %v1516_v17 = vadd.f32 %v1515_v16, %v1514_v14  ;;  %v1579_v18 = vpop.f32.mrb[5].mxu1  ;;  %v1517_v19 = vpop.f32.mrb[6].mxu0 }
 0x101   :  { %v1580_v20 = vadd.f32 %v1579_v18, %v1578_v15  ;;  %v1581_v21 = vpop.f32.mrb[6].mxu1  ;;  %v1518_v22 = vpop.f32.mrb[7].mxu0 }
 0x102   :  { %v1519_v23 = vadd.f32 %v1518_v22, %v1517_v19  ;;  %v1582_v24 = vpop.f32.mrb[7].mxu1 }
 0x103   :  { %v2215_v25 = vadd.f32 %v1580_v20, %v1516_v17  ;;  %v1583_v26 = vadd.f32 %v1582_v24, %v1581_v21 }
 0x105   :  { %v2217_v27 = vadd.f32 %v1583_v26, %v1519_v23 }
 0x106   :  { %v1520_v28 = vpop.f32.mrb[8].mxu0 }
 0x107   :  { %v1584_v29 = vpop.f32.mrb[8].mxu1  ;;  %v1521_v30 = vpop.f32.mrb[9].mxu0 }
 0x108   :  { %v1522_v31 = vadd.f32 %v1521_v30, %v1520_v28  ;;  %v1585_v32 = vpop.f32.mrb[9].mxu1  ;;  %v1523_v33 = vpop.f32.mrb[10].mxu0 }
 0x109   :  { %v1586_v34 = vadd.f32 %v1585_v32, %v1584_v29  ;;  %v1587_v35 = vpop.f32.mrb[10].mxu1  ;;  %v1524_v36 = vpop.f32.mrb[11].mxu0 }
 0x10a   :  { %v1525_v37 = vadd.f32 %v1524_v36, %v1523_v33  ;;  %v1588_v38 = vpop.f32.mrb[11].mxu1 }
 0x10b   :  { %v2219_v39 = vadd.f32 %v1586_v34, %v1522_v31  ;;  %v1589_v40 = vadd.f32 %v1588_v38, %v1587_v35 }
 0x10d   :  { %v2221_v41 = vadd.f32 %v1589_v40, %v1525_v37 }
 0x10e   :  { %v1526_v42 = vpop.f32.mrb[12].mxu0 }
 0x10f   :  { %v1590_v43 = vpop.f32.mrb[12].mxu1  ;;  %v1527_v44 = vpop.f32.mrb[13].mxu0 }
 0x110   :  { %v1528_v45 = vadd.f32 %v1527_v44, %v1526_v42  ;;  %v1591_v46 = vpop.f32.mrb[13].mxu1  ;;  %v1529_v47 = vpop.f32.mrb[14].mxu0 }
 0x111   :  { %v1592_v48 = vadd.f32 %v1591_v46, %v1590_v43  ;;  %v1593_v49 = vpop.f32.mrb[14].mxu1  ;;  %v1530_v50 = vpop.f32.mrb[15].mxu0 }
 0x112   :  { %v1531_v51 = vadd.f32 %v1530_v50, %v1529_v47  ;;  %v1594_v52 = vpop.f32.mrb[15].mxu1 }
 0x113   :  { %v2223_v53 = vadd.f32 %v1592_v48, %v1528_v45  ;;  %v1595_v54 = vadd.f32 %v1594_v52, %v1593_v49 }
 0x115   :  { %v2225_v55 = vadd.f32 %v1595_v54, %v1531_v51 }
 0x116   :  { %v1532_v56 = vpop.f32.mrb[16].mxu0 }
 0x117   :  { %v1596_v57 = vpop.f32.mrb[16].mxu1  ;;  %v1533_v58 = vpop.f32.mrb[17].mxu0 }
 0x118   :  { %v1534_v59 = vadd.f32 %v1533_v58, %v1532_v56  ;;  %v1597_v60 = vpop.f32.mrb[17].mxu1  ;;  %v1535_v61 = vpop.f32.mrb[18].mxu0 }
 0x119   :  { %v1598_v62 = vadd.f32 %v1597_v60, %v1596_v57  ;;  %v1599_v63 = vpop.f32.mrb[18].mxu1  ;;  %v1536_v0 = vpop.f32.mrb[19].mxu0 }
 0x11a   :  { %v1537_v1 = vadd.f32 %v1536_v0, %v1535_v61  ;;  %v1600_v2 = vpop.f32.mrb[19].mxu1 }
 0x11b   :  { %v2227_v3 = vadd.f32 %v1598_v62, %v1534_v59  ;;  %v1601_v4 = vadd.f32 %v1600_v2, %v1599_v63 }
 0x11d   :  { %v2229_v5 = vadd.f32 %v1601_v4, %v1537_v1 }
 0x11e   :  { %v1538_v6 = vpop.f32.mrb[20].mxu0 }
 0x11f   :  { %v1602_v7 = vpop.f32.mrb[20].mxu1  ;;  %v1539_v8 = vpop.f32.mrb[21].mxu0 }
 0x120   :  { %v1540_v9 = vadd.f32 %v1539_v8, %v1538_v6  ;;  %v1603_v10 = vpop.f32.mrb[21].mxu1  ;;  %v1541_v12 = vpop.f32.mrb[22].mxu0 }
 0x121   :  { %v1604_v14 = vadd.f32 %v1603_v10, %v1602_v7  ;;  %v1605_v15 = vpop.f32.mrb[22].mxu1  ;;  %v1542_v16 = vpop.f32.mrb[23].mxu0 }
 0x122   :  { %v1543_v17 = vadd.f32 %v1542_v16, %v1541_v12  ;;  %v1606_v18 = vpop.f32.mrb[23].mxu1 }
 0x123   :  { %v2231_v19 = vadd.f32 %v1604_v14, %v1540_v9  ;;  %v1607_v20 = vadd.f32 %v1606_v18, %v1605_v15 }
 0x125   :  { %v2233_v21 = vadd.f32 %v1607_v20, %v1543_v17 }
 0x126   :  { %v1544_v22 = vpop.f32.mrb[24].mxu0 }
 0x127   :  { %v1608_v23 = vpop.f32.mrb[24].mxu1  ;;  %v1545_v24 = vpop.f32.mrb[25].mxu0 }
 0x128   :  { %v1546_v26 = vadd.f32 %v1545_v24, %v1544_v22  ;;  %v1609_v28 = vpop.f32.mrb[25].mxu1  ;;  %v1547_v29 = vpop.f32.mrb[26].mxu0 }
 0x129   :  { %v1610_v30 = vadd.f32 %v1609_v28, %v1608_v23  ;;  %v1611_v31 = vpop.f32.mrb[26].mxu1  ;;  %v1548_v32 = vpop.f32.mrb[27].mxu0 }
 0x12a   :  { %v1549_v33 = vadd.f32 %v1548_v32, %v1547_v29  ;;  %v1612_v34 = vpop.f32.mrb[27].mxu1 }
 0x12b   :  { %v2235_v35 = vadd.f32 %v1610_v30, %v1546_v26  ;;  %v1613_v36 = vadd.f32 %v1612_v34, %v1611_v31 }
 0x12d   :  { %v2237_v37 = vadd.f32 %v1613_v36, %v1549_v33 }
 0x12e   :  { %v1550_v38 = vpop.f32.mrb[28].mxu0 }
 0x12f   :  { %v1614_v40 = vpop.f32.mrb[28].mxu1  ;;  %v1551_v42 = vpop.f32.mrb[29].mxu0 }
 0x130   :  { %v1552_v43 = vadd.f32 %v1551_v42, %v1550_v38  ;;  %v1615_v44 = vpop.f32.mrb[29].mxu1  ;;  %v1553_v45 = vpop.f32.mrb[30].mxu0 }
 0x131   :  { %v1616_v46 = vadd.f32 %v1615_v44, %v1614_v40  ;;  %v1617_v47 = vpop.f32.mrb[30].mxu1  ;;  %v1554_v48 = vpop.f32.mrb[31].mxu0 }
 0x132   :  { %v1555_v49 = vadd.f32 %v1554_v48, %v1553_v45  ;;  %v1618_v50 = vpop.f32.mrb[31].mxu1 }
 0x133   :  { %v2239_v51 = vadd.f32 %v1616_v46, %v1552_v43  ;;  %v1619_v52 = vadd.f32 %v1618_v50, %v1617_v47 }
 0x135   :  { %v2241_v54 = vadd.f32 %v1619_v52, %v1555_v49 }
 0x136   :  { %v1636_v56 = vpop.f32.mrb[32].mxu0 }
 0x137   :  { %v1700_v57 = vpop.f32.mrb[32].mxu1  ;;  %v1637_v58 = vpop.f32.mrb[33].mxu0 }
 0x138   :  { %v1638_v59 = vadd.f32 %v1637_v58, %v1636_v56  ;;  %v1701_v60 = vpop.f32.mrb[33].mxu1  ;;  %v1639_v61 = vpop.f32.mrb[34].mxu0 }
 0x139   :  { %v1702_v62 = vadd.f32 %v1701_v60, %v1700_v57  ;;  %v1703_v63 = vpop.f32.mrb[34].mxu1  ;;  %v1640_v0 = vpop.f32.mrb[35].mxu0 }
 0x13a   :  { %v1137_v1 = vadd.f32 %v1638_v59, %v2211_v11  ;;  %v1641_v2 = vadd.f32 %v1640_v0, %v1639_v61  ;;  %v1704_v4 = vpop.f32.mrb[35].mxu1 }
 0x13b   :  { %v1705_v6 = vadd.f32 %v1704_v4, %v1703_v63 }
 0x13c   :  { %v1234_v7 = vadd.f32 %v1702_v62, %v1137_v1  ;;  %v1140_v8 = vadd.f32 %v1641_v2, %v2213_v13 }
 0x13e   :  { %vm1296_vm0 = vcmp.ge.f32.partialorder %v1234_v7, 0.0  ;;  %v1312_v9 = vmul.f32 0.2, %v1234_v7  ;;  %v1237_v10 = vadd.f32 %v1705_v6, %v1140_v8  ;;  %v1642_v12 = vpop.f32.mrb[36].mxu0 }
 0x13f   :  { %v1706_v14 = vpop.f32.mrb[36].mxu1  ;;  %v1643_v15 = vpop.f32.mrb[37].mxu0 }
 0x140   :  { %v1328_v16 = vsel %vm1296_vm0, %v1234_v7, %v1312_v9  ;;  %vm1297_vm1 = vcmp.ge.f32.partialorder %v1237_v10, 0.0  ;;  %v1313_v17 = vmul.f32 0.2, %v1237_v10  ;;  %v1644_v18 = vadd.f32 %v1643_v15, %v1642_v12  ;;  %v1707_v20 = vpop.f32.mrb[37].mxu1  ;;  %v1645_v22 = vpop.f32.mrb[38].mxu0 }
 0x141   :  { %1344 = vst [vmem:[%s2309_s2] sm:$0xff] %v1328_v16  ;;  %v1708_v11 = vadd.f32 %v1707_v20, %v1706_v14  ;;  %v1709_v23 = vpop.f32.mrb[38].mxu1  ;;  %v1646_v24 = vpop.f32.mrb[39].mxu0 }
 0x142   :  { %v1329_v13 = vsel %vm1297_vm1, %v1237_v10, %v1313_v17  ;;  %v1145_v26 = vadd.f32 %v1644_v18, %v2215_v25  ;;  %v1647_v28 = vadd.f32 %v1646_v24, %v1645_v22  ;;  %v1710_v29 = vpop.f32.mrb[39].mxu1 }
 0x143   :  { %1345 = vst [vmem:[%s2309_s2 + $0x8] sm:$0xff] %v1329_v13  ;;  %v1711_v30 = vadd.f32 %v1710_v29, %v1709_v23 }
 0x144   :  { %v1242_v31 = vadd.f32 %v1708_v11, %v1145_v26  ;;  %v1148_v32 = vadd.f32 %v1647_v28, %v2217_v27 }
 0x146   :  { %vm1298_vm2 = vcmp.ge.f32.partialorder %v1242_v31, 0.0  ;;  %v1314_v33 = vmul.f32 0.2, %v1242_v31  ;;  %v1245_v34 = vadd.f32 %v1711_v30, %v1148_v32  ;;  %v1648_v36 = vpop.f32.mrb[40].mxu0 }
 0x147   :  { %v1712_v38 = vpop.f32.mrb[40].mxu1  ;;  %v1649_v40 = vpop.f32.mrb[41].mxu0 }
 0x148   :  { %v1330_v42 = vsel %vm1298_vm2, %v1242_v31, %v1314_v33  ;;  %vm1299_vm3 = vcmp.ge.f32.partialorder %v1245_v34, 0.0  ;;  %v1315_v43 = vmul.f32 0.2, %v1245_v34  ;;  %v1650_v25 = vadd.f32 %v1649_v40, %v1648_v36  ;;  %v1713_v44 = vpop.f32.mrb[41].mxu1  ;;  %v1651_v45 = vpop.f32.mrb[42].mxu0 }
 0x149   :  { %1346 = vst [vmem:[%s2309_s2 + $0x10] sm:$0xff] %v1330_v42  ;;  %v1714_v46 = vadd.f32 %v1713_v44, %v1712_v38  ;;  %v1715_v47 = vpop.f32.mrb[42].mxu1  ;;  %v1652_v48 = vpop.f32.mrb[43].mxu0 }
 0x14a   :  { %v1331_v27 = vsel %vm1299_vm3, %v1245_v34, %v1315_v43  ;;  %v1153_v49 = vadd.f32 %v1650_v25, %v2219_v39  ;;  %v1653_v50 = vadd.f32 %v1652_v48, %v1651_v45  ;;  %v1716_v52 = vpop.f32.mrb[43].mxu1 }
 0x14b   :  { %1347 = vst [vmem:[%s2309_s2 + $0x18] sm:$0xff] %v1331_v27  ;;  %v1717_v56 = vadd.f32 %v1716_v52, %v1715_v47 }
 0x14c   :  { %v1250_v57 = vadd.f32 %v1714_v46, %v1153_v49  ;;  %v1156_v58 = vadd.f32 %v1653_v50, %v2221_v41 }
 0x14e   :  { %vm1300_vm4 = vcmp.ge.f32.partialorder %v1250_v57, 0.0  ;;  %v1316_v59 = vmul.f32 0.2, %v1250_v57  ;;  %v1253_v60 = vadd.f32 %v1717_v56, %v1156_v58  ;;  %v1654_v61 = vpop.f32.mrb[44].mxu0 }
 0x14f   :  { %v1718_v62 = vpop.f32.mrb[44].mxu1  ;;  %v1655_v63 = vpop.f32.mrb[45].mxu0 }
 0x150   :  { %v1332_v0 = vsel %vm1300_vm4, %v1250_v57, %v1316_v59  ;;  %vm1301_vm5 = vcmp.ge.f32.partialorder %v1253_v60, 0.0  ;;  %v1317_v1 = vmul.f32 0.2, %v1253_v60  ;;  %v1656_v39 = vadd.f32 %v1655_v63, %v1654_v61  ;;  %v1719_v2 = vpop.f32.mrb[45].mxu1  ;;  %v1657_v4 = vpop.f32.mrb[46].mxu0 }
 0x151   :  { %1348 = vst [vmem:[%s2309_s2 + $0x20] sm:$0xff] %v1332_v0  ;;  %v1720_v6 = vadd.f32 %v1719_v2, %v1718_v62  ;;  %v1721_v7 = vpop.f32.mrb[46].mxu1  ;;  %v1658_v8 = vpop.f32.mrb[47].mxu0 }
 0x152   :  { %v1333_v41 = vsel %vm1301_vm5, %v1253_v60, %v1317_v1  ;;  %v1161_v9 = vadd.f32 %v1656_v39, %v2223_v53  ;;  %v1659_v10 = vadd.f32 %v1658_v8, %v1657_v4  ;;  %v1722_v12 = vpop.f32.mrb[47].mxu1 }
 0x153   :  { %1349 = vst [vmem:[%s2309_s2 + $0x28] sm:$0xff] %v1333_v41  ;;  %v1723_v14 = vadd.f32 %v1722_v12, %v1721_v7 }
 0x154   :  { %v1258_v15 = vadd.f32 %v1720_v6, %v1161_v9  ;;  %v1164_v16 = vadd.f32 %v1659_v10, %v2225_v55 }
 0x156   :  { %vm1302_vm6 = vcmp.ge.f32.partialorder %v1258_v15, 0.0  ;;  %v1318_v17 = vmul.f32 0.2, %v1258_v15  ;;  %v1261_v18 = vadd.f32 %v1723_v14, %v1164_v16  ;;  %v1660_v20 = vpop.f32.mrb[48].mxu0 }
 0x157   :  { %v1724_v22 = vpop.f32.mrb[48].mxu1  ;;  %v1661_v11 = vpop.f32.mrb[49].mxu0 }
 0x158   :  { %v1334_v23 = vsel %vm1302_vm6, %v1258_v15, %v1318_v17  ;;  %vm1303_vm7 = vcmp.ge.f32.partialorder %v1261_v18, 0.0  ;;  %v1319_v24 = vmul.f32 0.2, %v1261_v18  ;;  %v1662_v53 = vadd.f32 %v1661_v11, %v1660_v20  ;;  %v1725_v13 = vpop.f32.mrb[49].mxu1  ;;  %v1663_v26 = vpop.f32.mrb[50].mxu0 }
 0x159   :  { %1350 = vst [vmem:[%s2309_s2 + $0x30] sm:$0xff] %v1334_v23  ;;  %v1726_v28 = vadd.f32 %v1725_v13, %v1724_v22  ;;  %v1727_v29 = vpop.f32.mrb[50].mxu1  ;;  %v1664_v30 = vpop.f32.mrb[51].mxu0 }
 0x15a   :  { %v1335_v55 = vsel %vm1303_vm7, %v1261_v18, %v1319_v24  ;;  %v1169_v31 = vadd.f32 %v1662_v53, %v2227_v3  ;;  %v1665_v32 = vadd.f32 %v1664_v30, %v1663_v26  ;;  %v1728_v33 = vpop.f32.mrb[51].mxu1 }
 0x15b   :  { %1351 = vst [vmem:[%s2309_s2 + $0x38] sm:$0xff] %v1335_v55  ;;  %v1729_v34 = vadd.f32 %v1728_v33, %v1727_v29 }
 0x15c   :  { %v1266_v36 = vadd.f32 %v1726_v28, %v1169_v31  ;;  %v1172_v38 = vadd.f32 %v1665_v32, %v2229_v5 }
 0x15e   :  { %vm1304_vm8 = vcmp.ge.f32.partialorder %v1266_v36, 0.0  ;;  %v1320_v40 = vmul.f32 0.2, %v1266_v36  ;;  %v1269_v42 = vadd.f32 %v1729_v34, %v1172_v38  ;;  %v1666_v43 = vpop.f32.mrb[52].mxu0 }
 0x15f   :  { %v1730_v25 = vpop.f32.mrb[52].mxu1  ;;  %v1667_v44 = vpop.f32.mrb[53].mxu0 }
 0x160   :  { %v1336_v45 = vsel %vm1304_vm8, %v1266_v36, %v1320_v40  ;;  %vm1305_vm9 = vcmp.ge.f32.partialorder %v1269_v42, 0.0  ;;  %v1321_v46 = vmul.f32 0.2, %v1269_v42  ;;  %v1668_v3 = vadd.f32 %v1667_v44, %v1666_v43  ;;  %v1731_v47 = vpop.f32.mrb[53].mxu1  ;;  %v1669_v48 = vpop.f32.mrb[54].mxu0 }
 0x161   :  { %1352 = vst [vmem:[%s2309_s2 + $0x40] sm:$0xff] %v1336_v45  ;;  %v1732_v27 = vadd.f32 %v1731_v47, %v1730_v25  ;;  %v1733_v49 = vpop.f32.mrb[54].mxu1  ;;  %v1670_v50 = vpop.f32.mrb[55].mxu0 }
 0x162   :  { %v1337_v5 = vsel %vm1305_vm9, %v1269_v42, %v1321_v46  ;;  %v1177_v52 = vadd.f32 %v1668_v3, %v2231_v19  ;;  %v1671_v56 = vadd.f32 %v1670_v50, %v1669_v48  ;;  %v1734_v57 = vpop.f32.mrb[55].mxu1 }
 0x163   :  { %1353 = vst [vmem:[%s2309_s2 + $0x48] sm:$0xff] %v1337_v5  ;;  %v1735_v58 = vadd.f32 %v1734_v57, %v1733_v49 }
 0x164   :  { %v1274_v59 = vadd.f32 %v1732_v27, %v1177_v52  ;;  %v1180_v60 = vadd.f32 %v1671_v56, %v2233_v21 }
 0x166   :  { %vm1306_vm10 = vcmp.ge.f32.partialorder %v1274_v59, 0.0  ;;  %v1322_v61 = vmul.f32 0.2, %v1274_v59  ;;  %v1277_v62 = vadd.f32 %v1735_v58, %v1180_v60  ;;  %v1672_v63 = vpop.f32.mrb[56].mxu0 }
 0x167   :  { %v1736_v0 = vpop.f32.mrb[56].mxu1  ;;  %v1673_v1 = vpop.f32.mrb[57].mxu0 }
 0x168   :  { %v1338_v39 = vsel %vm1306_vm10, %v1274_v59, %v1322_v61  ;;  %vm1307_vm11 = vcmp.ge.f32.partialorder %v1277_v62, 0.0  ;;  %v1323_v2 = vmul.f32 0.2, %v1277_v62  ;;  %v1674_v19 = vadd.f32 %v1673_v1, %v1672_v63  ;;  %v1737_v4 = vpop.f32.mrb[57].mxu1  ;;  %v1675_v6 = vpop.f32.mrb[58].mxu0 }
 0x169   :  { %1354 = vst [vmem:[%s2309_s2 + $0x50] sm:$0xff] %v1338_v39  ;;  %v1738_v7 = vadd.f32 %v1737_v4, %v1736_v0  ;;  %v1739_v8 = vpop.f32.mrb[58].mxu1  ;;  %v1676_v41 = vpop.f32.mrb[59].mxu0 }
 0x16a   :  { %v1339_v21 = vsel %vm1307_vm11, %v1277_v62, %v1323_v2  ;;  %v1185_v9 = vadd.f32 %v1674_v19, %v2235_v35  ;;  %v1677_v10 = vadd.f32 %v1676_v41, %v1675_v6  ;;  %v1740_v12 = vpop.f32.mrb[59].mxu1 }
 0x16b   :  { %1355 = vst [vmem:[%s2309_s2 + $0x58] sm:$0xff] %v1339_v21  ;;  %v1741_v14 = vadd.f32 %v1740_v12, %v1739_v8 }
 0x16c   :  { %v1282_v15 = vadd.f32 %v1738_v7, %v1185_v9  ;;  %v1188_v16 = vadd.f32 %v1677_v10, %v2237_v37 }
 0x16e   :  { %vm1308_vm12 = vcmp.ge.f32.partialorder %v1282_v15, 0.0  ;;  %v1324_v17 = vmul.f32 0.2, %v1282_v15  ;;  %v1285_v18 = vadd.f32 %v1741_v14, %v1188_v16  ;;  %v1678_v20 = vpop.f32.mrb[60].mxu0 }
 0x16f   :  { %v1742_v22 = vpop.f32.mrb[60].mxu1  ;;  %v1679_v11 = vpop.f32.mrb[61].mxu0 }
 0x170   :  { %v1340_v23 = vsel %vm1308_vm12, %v1282_v15, %v1324_v17  ;;  %vm1309_vm13 = vcmp.ge.f32.partialorder %v1285_v18, 0.0  ;;  %v1325_v24 = vmul.f32 0.2, %v1285_v18  ;;  %v1680_v35 = vadd.f32 %v1679_v11, %v1678_v20  ;;  %v1743_v53 = vpop.f32.mrb[61].mxu1  ;;  %v1681_v13 = vpop.f32.mrb[62].mxu0 }
 0x171   :  { %1356 = vst [vmem:[%s2309_s2 + $0x60] sm:$0xff] %v1340_v23  ;;  %v1744_v26 = vadd.f32 %v1743_v53, %v1742_v22  ;;  %v1745_v28 = vpop.f32.mrb[62].mxu1  ;;  %v1682_v29 = vpop.f32.mrb[63].mxu0 }
 0x172   :  { %v1341_v37 = vsel %vm1309_vm13, %v1285_v18, %v1325_v24  ;;  %v1193_v30 = vadd.f32 %v1680_v35, %v2239_v51  ;;  %v1683_v55 = vadd.f32 %v1682_v29, %v1681_v13  ;;  %v1746_v31 = vpop.f32.mrb[63].mxu1 }
 0x173   :  { %1357 = vst [vmem:[%s2309_s2 + $0x68] sm:$0xff] %v1341_v37  ;;  %v1747_v32 = vadd.f32 %v1746_v31, %v1745_v28 }
 0x174   :  { %v1290_v33 = vadd.f32 %v1744_v26, %v1193_v30  ;;  %v1196_v34 = vadd.f32 %v1683_v55, %v2241_v54 }
 0x176   :  { %vm1310_vm14 = vcmp.ge.f32.partialorder %v1290_v33, 0.0  ;;  %v1326_v36 = vmul.f32 0.2, %v1290_v33  ;;  %v1293_v38 = vadd.f32 %v1747_v32, %v1196_v34 }
 0x178   :  { %v1342_v40 = vsel %vm1310_vm14, %v1290_v33, %v1326_v36  ;;  %vm1311_vm15 = vcmp.ge.f32.partialorder %v1293_v38, 0.0  ;;  %v1327_v42 = vmul.f32 0.2, %v1293_v38 }
 0x179   :  { %1358 = vst [vmem:[%s2309_s2 + $0x70] sm:$0xff] %v1342_v40 }
 0x17a   :  { %v1343_v51 = vsel %vm1311_vm15, %v1293_v38, %v1327_v42 }
 0x17b   :  { %1359 = vst [vmem:[%s2309_s2 + $0x78] sm:$0xff] %v1343_v51 }

// kernel: discriminator_forward.7
= control target key start
LH: loop header
LB: loop body
LE: loop exit
PB: predicated region body
PF: predicated region fallthrough
CT: control target
= control target key end

     0   :  { %s3878_s1 = inlined_call_operand.vmem [shape: bf16[2048,256], index: 1, kind: input, shape index: {}]   ;;  %s3879_s0 = inlined_call_operand.vmem [shape: bf16[32,2048], index: 0, kind: input, shape index: {}]   ;;  %s3880_s2 = inlined_call_operand.vmem [shape: f32[32,256], index: 2, kind: output, shape index: {}]  }
   0x1   :  { %v2543_v0 = vld [vmem:[%s3878_s1 + $0x4] ss:$8 sps:$4 sm:$0xff]   ;;  %v2547_v2 = vld [vmem:[%s3878_s1] ss:$8 sps:$4 sm:$0xff]   ;;  %v2549_v4 = vld [vmem:[%s3878_s1 + $0x14] ss:$8 sps:$4 sm:$0xff]  }
   0x2   :  { %v2545_v1 = vld [vmem:[%s3878_s1 + $0x404] ss:$8 sps:$4 sm:$0xff]   ;;  %1739 = vmatprep.subr.bf16.mxu1 %v2543_v0  ;;  %v2548_v3 = vld [vmem:[%s3878_s1 + $0x400] ss:$8 sps:$4 sm:$0xff]   ;;  %v2551_v5 = vld [vmem:[%s3878_s1 + $0x414] ss:$8 sps:$4 sm:$0xff]  }
   0x3   :  { %1951 = vmatprep.subr.bf16.mxu0 %v2545_v1  ;;  %1740 = vmatpush1.bf16.msra.mxu1 %v2547_v2  ;;  %v2553_v6 = vld [vmem:[%s3878_s1 + $0x10] ss:$8 sps:$4 sm:$0xff]   ;;  %v2555_v8 = vld [vmem:[%s3878_s1 + $0x24] ss:$8 sps:$4 sm:$0xff]   ;;  %v2559_v10 = vld [vmem:[%s3878_s1 + $0x20] ss:$8 sps:$4 sm:$0xff]  }
   0x4   :  { %1952 = vmatpush1.bf16.msra.mxu0 %v2548_v3  ;;  %1741 = vmatprep.subr.bf16.mxu1 %v2549_v4  ;;  %v2554_v7 = vld [vmem:[%s3878_s1 + $0x410] ss:$8 sps:$4 sm:$0xff]   ;;  %v2557_v9 = vld [vmem:[%s3878_s1 + $0x424] ss:$8 sps:$4 sm:$0xff]   ;;  %v2560_v11 = vld [vmem:[%s3878_s1 + $0x420] ss:$8 sps:$4 sm:$0xff]  }
   0x5   :  { %1953 = vmatprep.subr.bf16.mxu0 %v2551_v5  ;;  %v2561_v12 = vld [vmem:[%s3878_s1 + $0x34] ss:$8 sps:$4 sm:$0xff]   ;;  %v2565_v14 = vld [vmem:[%s3878_s1 + $0x30] ss:$8 sps:$4 sm:$0xff]   ;;  %v2567_v16 = vld [vmem:[%s3878_s1 + $0x44] ss:$8 sps:$4 sm:$0xff]  }
   0x6   :  { %v2563_v13 = vld [vmem:[%s3878_s1 + $0x434] ss:$8 sps:$4 sm:$0xff]   ;;  %v2566_v15 = vld [vmem:[%s3878_s1 + $0x430] ss:$8 sps:$4 sm:$0xff]   ;;  %v2569_v17 = vld [vmem:[%s3878_s1 + $0x444] ss:$8 sps:$4 sm:$0xff]  }
   0x7   :  { %1742 = vmatpush1.bf16.msra.mxu1 %v2553_v6  ;;  %v2571_v18 = vld [vmem:[%s3878_s1 + $0x40] ss:$8 sps:$4 sm:$0xff]   ;;  %v2573_v20 = vld [vmem:[%s3878_s1 + $0x54] ss:$8 sps:$4 sm:$0xff]   ;;  %v2577_v22 = vld [vmem:[%s3878_s1 + $0x50] ss:$8 sps:$4 sm:$0xff]  }
   0x8   :  { %1954 = vmatpush1.bf16.msra.mxu0 %v2554_v7  ;;  %1743 = vmatprep.subr.bf16.mxu1 %v2555_v8  ;;  %v2572_v19 = vld [vmem:[%s3878_s1 + $0x440] ss:$8 sps:$4 sm:$0xff]   ;;  %v2575_v21 = vld [vmem:[%s3878_s1 + $0x454] ss:$8 sps:$4 sm:$0xff]   ;;  %v2578_v23 = vld [vmem:[%s3878_s1 + $0x450] ss:$8 sps:$4 sm:$0xff]  }
   0x9   :  { %1955 = vmatprep.subr.bf16.mxu0 %v2557_v9  ;;  %v2579_v24 = vld [vmem:[%s3878_s1 + $0x64] ss:$8 sps:$4 sm:$0xff]   ;;  %v2583_v26 = vld [vmem:[%s3878_s1 + $0x60] ss:$8 sps:$4 sm:$0xff]   ;;  %v2585_v28 = vld [vmem:[%s3878_s1 + $0x74] ss:$8 sps:$4 sm:$0xff]  }
   0xa   :  { %v2581_v25 = vld [vmem:[%s3878_s1 + $0x464] ss:$8 sps:$4 sm:$0xff]   ;;  %v2584_v27 = vld [vmem:[%s3878_s1 + $0x460] ss:$8 sps:$4 sm:$0xff]   ;;  %v2587_v29 = vld [vmem:[%s3878_s1 + $0x474] ss:$8 sps:$4 sm:$0xff]  }
   0xb   :  { %1744 = vmatpush1.bf16.msra.mxu1 %v2559_v10  ;;  %v2589_v30 = vld [vmem:[%s3878_s1 + $0x70] ss:$8 sps:$4 sm:$0xff]   ;;  %v2591_v32 = vld [vmem:[%s3878_s1 + $0x84] ss:$8 sps:$4 sm:$0xff]   ;;  %v2595_v34 = vld [vmem:[%s3878_s1 + $0x80] ss:$8 sps:$4 sm:$0xff]  }
   0xc   :  { %1956 = vmatpush1.bf16.msra.mxu0 %v2560_v11  ;;  %1745 = vmatprep.subr.bf16.mxu1 %v2561_v12  ;;  %v2590_v31 = vld [vmem:[%s3878_s1 + $0x470] ss:$8 sps:$4 sm:$0xff]   ;;  %v2593_v33 = vld [vmem:[%s3878_s1 + $0x484] ss:$8 sps:$4 sm:$0xff]   ;;  %v2596_v35 = vld [vmem:[%s3878_s1 + $0x480] ss:$8 sps:$4 sm:$0xff]  }
   0xd   :  { %1957 = vmatprep.subr.bf16.mxu0 %v2563_v13  ;;  %v2597_v36 = vld [vmem:[%s3878_s1 + $0x94] ss:$8 sps:$4 sm:$0xff]   ;;  %v2601_v38 = vld [vmem:[%s3878_s1 + $0x90] ss:$8 sps:$4 sm:$0xff]   ;;  %v2603_v40 = vld [vmem:[%s3878_s1 + $0xa4] ss:$8 sps:$4 sm:$0xff]  }
   0xe   :  { %v2599_v37 = vld [vmem:[%s3878_s1 + $0x494] ss:$8 sps:$4 sm:$0xff]   ;;  %v2602_v39 = vld [vmem:[%s3878_s1 + $0x490] ss:$8 sps:$4 sm:$0xff]   ;;  %v2605_v41 = vld [vmem:[%s3878_s1 + $0x4a4] ss:$8 sps:$4 sm:$0xff]  }
   0xf   :  { %1746 = vmatpush1.bf16.msra.mxu1 %v2565_v14  ;;  %v2607_v42 = vld [vmem:[%s3878_s1 + $0xa0] ss:$8 sps:$4 sm:$0xff]   ;;  %v2609_v44 = vld [vmem:[%s3878_s1 + $0xb4] ss:$8 sps:$4 sm:$0xff]   ;;  %v2613_v46 = vld [vmem:[%s3878_s1 + $0xb0] ss:$8 sps:$4 sm:$0xff]  }
  0x10   :  { %1958 = vmatpush1.bf16.msra.mxu0 %v2566_v15  ;;  %1747 = vmatprep.subr.bf16.mxu1 %v2567_v16  ;;  %v2608_v43 = vld [vmem:[%s3878_s1 + $0x4a0] ss:$8 sps:$4 sm:$0xff]   ;;  %v2611_v45 = vld [vmem:[%s3878_s1 + $0x4b4] ss:$8 sps:$4 sm:$0xff]   ;;  %v2614_v47 = vld [vmem:[%s3878_s1 + $0x4b0] ss:$8 sps:$4 sm:$0xff]  }
  0x11   :  { %1959 = vmatprep.subr.bf16.mxu0 %v2569_v17  ;;  %v11_v48 = vld [vmem:[%s3879_s0] sm:$0xff]  ;;  %v2621_v58 = vld [vmem:[%s3878_s1 + $0xd4] ss:$8 sps:$4 sm:$0xff]   ;;  %v2625_v60 = vld [vmem:[%s3878_s1 + $0xd0] ss:$8 sps:$4 sm:$0xff]  }
  0x12   :  { %v19_v49 = vld [vmem:[%s3879_s0 + $0x40] sm:$0xff]  ;;  %v2623_v59 = vld [vmem:[%s3878_s1 + $0x4d4] ss:$8 sps:$4 sm:$0xff]   ;;  %v2626_v61 = vld [vmem:[%s3878_s1 + $0x4d0] ss:$8 sps:$4 sm:$0xff]  }
  0x13   :  { %1748 = vmatpush1.bf16.msra.mxu1 %v2571_v18  ;;  %v2615_v50 = vld [vmem:[%s3878_s1 + $0xc4] ss:$8 sps:$4 sm:$0xff]   ;;  %v2200_v52 = vcombine.high %v11_v48, %v19_v49  ;;  %v2619_v56 = vld [vmem:[%s3878_s1 + $0xc0] ss:$8 sps:$4 sm:$0xff]   ;;  %v2633_v2 = vld [vmem:[%s3878_s1 + $0xf4] ss:$8 sps:$4 sm:$0xff]   ;;  %v2199_v8 = vcombine.low %v11_v48, %v19_v49 }
  0x14   :  { %1960 = vmatpush1.bf16.msra.mxu0 %v2572_v19  ;;  %1749 = vmatprep.subr.bf16.mxu1 %v2573_v20  ;;  %v2617_v51 = vld [vmem:[%s3878_s1 + $0x4c4] ss:$8 sps:$4 sm:$0xff]   ;;  %v2620_v57 = vld [vmem:[%s3878_s1 + $0x4c0] ss:$8 sps:$4 sm:$0xff]   ;;  %v2635_v3 = vld [vmem:[%s3878_s1 + $0x4f4] ss:$8 sps:$4 sm:$0xff]  }
  0x15   :  { %1961 = vmatprep.subr.bf16.mxu0 %v2575_v21  ;;  %v15_v53 = vld [vmem:[%s3879_s0 + $0x20] sm:$0xff]  ;;  %1771 = vmatprep.mubr.bf16.mxu1 %v2200_v52  ;;  %v2637_v4 = vld [vmem:[%s3878_s1 + $0xf0] ss:$8 sps:$4 sm:$0xff]   ;;  %v2647_v12 = vld [vmem:[%s3878_s1 + $0x114] ss:$8 sps:$4 sm:$0xff]  }
  0x16   :  { %v23_v54 = vld [vmem:[%s3879_s0 + $0x60] sm:$0xff]  ;;  %v2638_v5 = vld [vmem:[%s3878_s1 + $0x4f0] ss:$8 sps:$4 sm:$0xff]   ;;  %v2650_v13 = vld [vmem:[%s3878_s1 + $0x514] ss:$8 sps:$4 sm:$0xff]  }
  0x17   :  { %1750 = vmatpush1.bf16.msra.mxu1 %v2577_v22  ;;  %v2208_v55 = vcombine.high %v15_v53, %v23_v54  ;;  %v2627_v62 = vld [vmem:[%s3878_s1 + $0xe4] ss:$8 sps:$4 sm:$0xff]   ;;  %v2631_v0 = vld [vmem:[%s3878_s1 + $0xe0] ss:$8 sps:$4 sm:$0xff]   ;;  %v2207_v10 = vcombine.low %v15_v53, %v23_v54  ;;  %v2645_v14 = vld [vmem:[%s3878_s1 + $0x110] ss:$8 sps:$4 sm:$0xff]  }
  0x18   :  { %1962 = vmatpush1.bf16.msra.mxu0 %v2578_v23  ;;  %1751 = vmatprep.subr.bf16.mxu1 %v2579_v24  ;;  %v2629_v63 = vld [vmem:[%s3878_s1 + $0x4e4] ss:$8 sps:$4 sm:$0xff]   ;;  %v2632_v1 = vld [vmem:[%s3878_s1 + $0x4e0] ss:$8 sps:$4 sm:$0xff]   ;;  %v2648_v15 = vld [vmem:[%s3878_s1 + $0x510] ss:$8 sps:$4 sm:$0xff]  }
  0x19   :  { %1963 = vmatprep.subr.bf16.mxu0 %v2581_v25  ;;  %1983 = vmatprep.mubr.bf16.mxu0 %v2208_v55  ;;  %v2641_v6 = vld [vmem:[%s3878_s1 + $0x104] ss:$8 sps:$4 sm:$0xff]   ;;  %v2639_v9 = vld [vmem:[%s3878_s1 + $0x100] ss:$8 sps:$4 sm:$0xff]   ;;  %v2659_v20 = vld [vmem:[%s3878_s1 + $0x134] ss:$8 sps:$4 sm:$0xff]  }
  0x1a   :  { %v2644_v7 = vld [vmem:[%s3878_s1 + $0x504] ss:$8 sps:$4 sm:$0xff]   ;;  %v2642_v11 = vld [vmem:[%s3878_s1 + $0x500] ss:$8 sps:$4 sm:$0xff]   ;;  %v2662_v21 = vld [vmem:[%s3878_s1 + $0x534] ss:$8 sps:$4 sm:$0xff]  }
  0x1b   :  { %1752 = vmatpush1.bf16.msra.mxu1 %v2583_v26  ;;  %v2653_v16 = vld [vmem:[%s3878_s1 + $0x124] ss:$8 sps:$4 sm:$0xff]   ;;  %v2651_v18 = vld [vmem:[%s3878_s1 + $0x120] ss:$8 sps:$4 sm:$0xff]   ;;  %v2657_v22 = vld [vmem:[%s3878_s1 + $0x130] ss:$8 sps:$4 sm:$0xff]  }
  0x1c   :  { %1964 = vmatpush1.bf16.msra.mxu0 %v2584_v27  ;;  %1753 = vmatprep.subr.bf16.mxu1 %v2585_v28  ;;  %v2656_v17 = vld [vmem:[%s3878_s1 + $0x524] ss:$8 sps:$4 sm:$0xff]   ;;  %v2654_v19 = vld [vmem:[%s3878_s1 + $0x520] ss:$8 sps:$4 sm:$0xff]   ;;  %v2660_v23 = vld [vmem:[%s3878_s1 + $0x530] ss:$8 sps:$4 sm:$0xff]  }
  0x1d   :  { %1965 = vmatprep.subr.bf16.mxu0 %v2587_v29  ;;  %v2665_v24 = vld [vmem:[%s3878_s1 + $0x144] ss:$8 sps:$4 sm:$0xff]   ;;  %v2663_v26 = vld [vmem:[%s3878_s1 + $0x140] ss:$8 sps:$4 sm:$0xff]   ;;  %v2671_v28 = vld [vmem:[%s3878_s1 + $0x154] ss:$8 sps:$4 sm:$0xff]  }
  0x1e   :  { %v2668_v25 = vld [vmem:[%s3878_s1 + $0x544] ss:$8 sps:$4 sm:$0xff]   ;;  %v2666_v27 = vld [vmem:[%s3878_s1 + $0x540] ss:$8 sps:$4 sm:$0xff]   ;;  %v2674_v29 = vld [vmem:[%s3878_s1 + $0x554] ss:$8 sps:$4 sm:$0xff]  }
  0x1f   :  { %1754 = vmatpush1.bf16.msra.mxu1 %v2589_v30  ;;  %v27_v30 = vld [vmem:[%s3879_s0 + $0x80] sm:$0xff]  ;;  %v3263_v49 = vld [vmem:[%s3879_s0 + $0x28] sm:$0xff]  ;;  %v2684_v52 = vld [vmem:[%s3878_s1 + $0x570] ss:$8 sps:$4 sm:$0xff]  }
  0x20   :  { %1966 = vmatpush1.bf16.msra.mxu0 %v2590_v31  ;;  %1755 = vmatprep.subr.bf16.mxu1 %v2591_v32  ;;  %v35_v31 = vld [vmem:[%s3879_s0 + $0xc0] sm:$0xff]  ;;  %v2669_v32 = vld [vmem:[%s3878_s1 + $0x150] ss:$8 sps:$4 sm:$0xff]  }
  0x21   :  { %1967 = vmatprep.subr.bf16.mxu0 %v2593_v33  ;;  %v2216_v33 = vcombine.high %v27_v30, %v35_v31  ;;  %v2689_v54 = vld [vmem:[%s3878_s1 + $0x184] ss:$8 sps:$4 sm:$0xff]  }
  0x22   :  { %v2692_v55 = vld [vmem:[%s3878_s1 + $0x584] ss:$8 sps:$4 sm:$0xff]  }
  0x23   :  { %1756 = vmatpush1.bf16.msra.mxu1 %v2595_v34  ;;  %v2672_v34 = vld [vmem:[%s3878_s1 + $0x550] ss:$8 sps:$4 sm:$0xff]  }
  0x24   :  { %1968 = vmatpush1.bf16.msra.mxu0 %v2596_v35  ;;  %1757 = vmatprep.subr.bf16.mxu1 %v2597_v36  ;;  %v31_v35 = vld [vmem:[%s3879_s0 + $0xa0] sm:$0xff] }
  0x25   :  { %1969 = vmatprep.subr.bf16.mxu0 %v2599_v37  ;;  %v39_v36 = vld [vmem:[%s3879_s0 + $0xe0] sm:$0xff]  ;;  %v2215_v37 = vcombine.low %v27_v30, %v35_v31  ;;  %v2743_v30 = vld [vmem:[%s3878_s1 + $0x214] ss:$8 sps:$4 sm:$0xff]  }
  0x26   :  { %v2746_v31 = vld [vmem:[%s3878_s1 + $0x614] ss:$8 sps:$4 sm:$0xff]  }
  0x27   :  { %1758 = vmatpush1.bf16.msra.mxu1 %v2601_v38  ;;  %v2677_v38 = vld [vmem:[%s3878_s1 + $0x164] ss:$8 sps:$4 sm:$0xff]  }
  0x28   :  { %1970 = vmatpush1.bf16.msra.mxu0 %v2602_v39  ;;  %1759 = vmatprep.subr.bf16.mxu1 %v2603_v40  ;;  %v2224_v39 = vcombine.high %v31_v35, %v39_v36  ;;  %v2223_v40 = vcombine.low %v31_v35, %v39_v36  ;;  %v2741_v36 = vld [vmem:[%s3878_s1 + $0x210] ss:$8 sps:$4 sm:$0xff]  }
  0x29   :  { %1971 = vmatprep.subr.bf16.mxu0 %v2605_v41  ;;  %v2680_v41 = vld [vmem:[%s3878_s1 + $0x564] ss:$8 sps:$4 sm:$0xff]  }
  0x2b   :  { %1760 = vmatpush1.bf16.msra.mxu1 %v2607_v42  ;;  %v2675_v42 = vld [vmem:[%s3878_s1 + $0x160] ss:$8 sps:$4 sm:$0xff]  }
  0x2c   :  { %1972 = vmatpush1.bf16.msra.mxu0 %v2608_v43  ;;  %1761 = vmatprep.subr.bf16.mxu1 %v2609_v44  ;;  %v2678_v43 = vld [vmem:[%s3878_s1 + $0x560] ss:$8 sps:$4 sm:$0xff]  }
  0x2d   :  { %1973 = vmatprep.subr.bf16.mxu0 %v2611_v45  ;;  %v3245_v44 = vld [vmem:[%s3879_s0 + $0x8] sm:$0xff] }
  0x2e   :  { %v3250_v45 = vld [vmem:[%s3879_s0 + $0x48] sm:$0xff] }
  0x2f   :  { %1762 = vmatpush1.bf16.msra.mxu1 %v2613_v46  ;;  %v2683_v46 = vld [vmem:[%s3878_s1 + $0x174] ss:$8 sps:$4 sm:$0xff]   ;;  %v2202_v48 = vcombine.high %v3245_v44, %v3250_v45 }
  0x30   :  { %1974 = vmatpush1.bf16.msra.mxu0 %v2614_v47  ;;  %1763 = vmatprep.subr.bf16.mxu1 %v2615_v50  ;;  %v2686_v47 = vld [vmem:[%s3878_s1 + $0x574] ss:$8 sps:$4 sm:$0xff]   ;;  %v3268_v50 = vld [vmem:[%s3879_s0 + $0x68] sm:$0xff] }
  0x31   :  { %1975 = vmatprep.subr.bf16.mxu0 %v2617_v51  ;;  %v2681_v51 = vld [vmem:[%s3878_s1 + $0x170] ss:$8 sps:$4 sm:$0xff]   ;;  %v2210_v53 = vcombine.high %v3263_v49, %v3268_v50 }
  0x33   :  { %1764 = vmatpush1.bf16.msra.mxu1 %v2619_v56  ;;  %v2687_v56 = vld [vmem:[%s3878_s1 + $0x180] ss:$8 sps:$4 sm:$0xff]  }
  0x34   :  { %1976 = vmatpush1.bf16.msra.mxu0 %v2620_v57  ;;  %1765 = vmatprep.subr.bf16.mxu1 %v2621_v58  ;;  %v2690_v57 = vld [vmem:[%s3878_s1 + $0x580] ss:$8 sps:$4 sm:$0xff]   ;;  %v2695_v58 = vld [vmem:[%s3878_s1 + $0x194] ss:$8 sps:$4 sm:$0xff]  }
  0x35   :  { %1977 = vmatprep.subr.bf16.mxu0 %v2623_v59  ;;  %v2698_v59 = vld [vmem:[%s3878_s1 + $0x594] ss:$8 sps:$4 sm:$0xff]  }
  0x37   :  { %1766 = vmatpush1.bf16.msra.mxu1 %v2625_v60  ;;  %v2693_v60 = vld [vmem:[%s3878_s1 + $0x190] ss:$8 sps:$4 sm:$0xff]  }
  0x38   :  { %1978 = vmatpush1.bf16.msra.mxu0 %v2626_v61  ;;  %1767 = vmatprep.subr.bf16.mxu1 %v2627_v62  ;;  %v2696_v61 = vld [vmem:[%s3878_s1 + $0x590] ss:$8 sps:$4 sm:$0xff]   ;;  %v2701_v62 = vld [vmem:[%s3878_s1 + $0x1a4] ss:$8 sps:$4 sm:$0xff]  }
  0x39   :  { %1979 = vmatprep.subr.bf16.mxu0 %v2629_v63  ;;  %v2704_v63 = vld [vmem:[%s3878_s1 + $0x5a4] ss:$8 sps:$4 sm:$0xff]  }
  0x3b   :  { %1768 = vmatpush1.bf16.msra.mxu1 %v2631_v0  ;;  %v2699_v0 = vld [vmem:[%s3878_s1 + $0x1a0] ss:$8 sps:$4 sm:$0xff]  }
  0x3c   :  { %1980 = vmatpush1.bf16.msra.mxu0 %v2632_v1  ;;  %1769 = vmatprep.subr.bf16.mxu1 %v2633_v2  ;;  %v2702_v1 = vld [vmem:[%s3878_s1 + $0x5a0] ss:$8 sps:$4 sm:$0xff]   ;;  %v2707_v2 = vld [vmem:[%s3878_s1 + $0x1b4] ss:$8 sps:$4 sm:$0xff]  }
  0x3d   :  { %1981 = vmatprep.subr.bf16.mxu0 %v2635_v3  ;;  %v2710_v3 = vld [vmem:[%s3878_s1 + $0x5b4] ss:$8 sps:$4 sm:$0xff]  }
  0x3f   :  { %1770 = vmatpush1.bf16.msra.mxu1 %v2637_v4  ;;  %v2705_v4 = vld [vmem:[%s3878_s1 + $0x1b0] ss:$8 sps:$4 sm:$0xff]  }
  0x40   :  { %1982 = vmatpush1.bf16.msra.mxu0 %v2638_v5  ;;  %1792 = vmatprep.subr.bf16.mxu1 %v2641_v6  ;;  %v2708_v5 = vld [vmem:[%s3878_s1 + $0x5b0] ss:$8 sps:$4 sm:$0xff]   ;;  %v2713_v6 = vld [vmem:[%s3878_s1 + $0x1c4] ss:$8 sps:$4 sm:$0xff]  }
  0x41   :  { %2004 = vmatprep.subr.bf16.mxu0 %v2644_v7  ;;  %v2716_v7 = vld [vmem:[%s3878_s1 + $0x5c4] ss:$8 sps:$4 sm:$0xff]  }
  0x42   :  { %1772 = vmatmul.mubr.bf16.vlgmr.msra.gmra.mrb[0].mxu1 %v2199_v8  ;;  %v2711_v8 = vld [vmem:[%s3878_s1 + $0x1c0] ss:$8 sps:$4 sm:$0xff]  }
  0x43   :  { %1984 = vmatmul.mubr.bf16.vlgmr.msra.gmra.mrb[0].mxu0 %v2207_v10  ;;  %1793 = vmatpush1.bf16.msra.mxu1 %v2639_v9  ;;  %v2714_v9 = vld [vmem:[%s3878_s1 + $0x5c0] ss:$8 sps:$4 sm:$0xff]   ;;  %v2719_v10 = vld [vmem:[%s3878_s1 + $0x1d4] ss:$8 sps:$4 sm:$0xff]  }
  0x44   :  { %2005 = vmatpush1.bf16.msra.mxu0 %v2642_v11  ;;  %1794 = vmatprep.subr.bf16.mxu1 %v2647_v12  ;;  %v2722_v11 = vld [vmem:[%s3878_s1 + $0x5d4] ss:$8 sps:$4 sm:$0xff]   ;;  %v2717_v12 = vld [vmem:[%s3878_s1 + $0x1d0] ss:$8 sps:$4 sm:$0xff]  }
  0x45   :  { %2006 = vmatprep.subr.bf16.mxu0 %v2650_v13  ;;  %1781 = vmatprep.mubr.bf16.mxu1 %v2216_v33  ;;  %v2720_v13 = vld [vmem:[%s3878_s1 + $0x5d0] ss:$8 sps:$4 sm:$0xff]   ;;  %v40_v33 = vld [vmem:[%s3879_s0 + $0xe8] sm:$0xff] }
  0x46   :  { %1993 = vmatprep.mubr.bf16.mxu0 %v2224_v39  ;;  %v2752_v39 = vld [vmem:[%s3878_s1 + $0x624] ss:$8 sps:$4 sm:$0xff]  }
  0x47   :  { %1795 = vmatpush1.bf16.msra.mxu1 %v2645_v14  ;;  %v2725_v14 = vld [vmem:[%s3878_s1 + $0x1e4] ss:$8 sps:$4 sm:$0xff]  }
  0x48   :  { %2007 = vmatpush1.bf16.msra.mxu0 %v2648_v15  ;;  %1796 = vmatprep.subr.bf16.mxu1 %v2653_v16  ;;  %v2728_v15 = vld [vmem:[%s3878_s1 + $0x5e4] ss:$8 sps:$4 sm:$0xff]   ;;  %v2723_v16 = vld [vmem:[%s3878_s1 + $0x1e0] ss:$8 sps:$4 sm:$0xff]  }
  0x49   :  { %2008 = vmatprep.subr.bf16.mxu0 %v2656_v17  ;;  %v2726_v17 = vld [vmem:[%s3878_s1 + $0x5e0] ss:$8 sps:$4 sm:$0xff]  }
  0x4a   :  { %1782 = vmatmul.mubr.bf16.gmra.mrb[4].mxu1 %v2215_v37  ;;  %v2744_v37 = vld [vmem:[%s3878_s1 + $0x610] ss:$8 sps:$4 sm:$0xff]  }
  0x4b   :  { %1797 = vmatpush1.bf16.msra.mxu1 %v2651_v18  ;;  %1994 = vmatmul.mubr.bf16.gmra.mrb[4].mxu0 %v2223_v40  ;;  %v2731_v18 = vld [vmem:[%s3878_s1 + $0x1f4] ss:$8 sps:$4 sm:$0xff]   ;;  %v2747_v40 = vld [vmem:[%s3878_s1 + $0x220] ss:$8 sps:$4 sm:$0xff]  }
  0x4c   :  { %2009 = vmatpush1.bf16.msra.mxu0 %v2654_v19  ;;  %1798 = vmatprep.subr.bf16.mxu1 %v2659_v20  ;;  %v2734_v19 = vld [vmem:[%s3878_s1 + $0x5f4] ss:$8 sps:$4 sm:$0xff]   ;;  %v2729_v20 = vld [vmem:[%s3878_s1 + $0x1f0] ss:$8 sps:$4 sm:$0xff]  }
  0x4d   :  { %2010 = vmatprep.subr.bf16.mxu0 %v2662_v21  ;;  %1824 = vmatprep.mubr.bf16.mxu1 %v2202_v48  ;;  %v2732_v21 = vld [vmem:[%s3878_s1 + $0x5f0] ss:$8 sps:$4 sm:$0xff]   ;;  %v2755_v48 = vld [vmem:[%s3878_s1 + $0x234] ss:$8 sps:$4 sm:$0xff]  }
  0x4e   :  { %2036 = vmatprep.mubr.bf16.mxu0 %v2210_v53  ;;  %v2756_v53 = vld [vmem:[%s3878_s1 + $0x630] ss:$8 sps:$4 sm:$0xff]  }
  0x4f   :  { %1799 = vmatpush1.bf16.msra.mxu1 %v2657_v22  ;;  %v2737_v22 = vld [vmem:[%s3878_s1 + $0x204] ss:$8 sps:$4 sm:$0xff]  }
  0x50   :  { %2011 = vmatpush1.bf16.msra.mxu0 %v2660_v23  ;;  %1800 = vmatprep.subr.bf16.mxu1 %v2665_v24  ;;  %v2740_v23 = vld [vmem:[%s3878_s1 + $0x604] ss:$8 sps:$4 sm:$0xff]   ;;  %v2735_v24 = vld [vmem:[%s3878_s1 + $0x200] ss:$8 sps:$4 sm:$0xff]  }
  0x51   :  { %2012 = vmatprep.subr.bf16.mxu0 %v2668_v25  ;;  %v2738_v25 = vld [vmem:[%s3878_s1 + $0x600] ss:$8 sps:$4 sm:$0xff]  }
  0x53   :  { %1801 = vmatpush1.bf16.msra.mxu1 %v2663_v26  ;;  %v28_v26 = vld [vmem:[%s3879_s0 + $0x88] sm:$0xff] }
  0x54   :  { %2013 = vmatpush1.bf16.msra.mxu0 %v2666_v27  ;;  %1802 = vmatprep.subr.bf16.mxu1 %v2671_v28  ;;  %v2201_v27 = vcombine.low %v3245_v44, %v3250_v45  ;;  %v2209_v28 = vcombine.low %v3263_v49, %v3268_v50  ;;  %v3434_v45 = vld [vmem:[%s3879_s0 + $0x50] sm:$0xff] }
  0x55   :  { %2014 = vmatprep.subr.bf16.mxu0 %v2674_v29  ;;  %v36_v29 = vld [vmem:[%s3879_s0 + $0xc8] sm:$0xff]  ;;  %v2758_v49 = vld [vmem:[%s3878_s1 + $0x634] ss:$8 sps:$4 sm:$0xff]  }
  0x57   :  { %1803 = vmatpush1.bf16.msra.mxu1 %v2669_v32  ;;  %v32_v32 = vld [vmem:[%s3879_s0 + $0xa8] sm:$0xff] }
  0x58   :  { %2015 = vmatpush1.bf16.msra.mxu0 %v2672_v34  ;;  %1804 = vmatprep.subr.bf16.mxu1 %v2677_v38  ;;  %v2218_v34 = vcombine.high %v28_v26, %v36_v29  ;;  %v2226_v35 = vcombine.high %v32_v32, %v40_v33  ;;  %v2749_v38 = vld [vmem:[%s3878_s1 + $0x224] ss:$8 sps:$4 sm:$0xff]   ;;  %v2225_v44 = vcombine.low %v32_v32, %v40_v33  ;;  %v2819_v32 = vld [vmem:[%s3878_s1 + $0x2e0] ss:$8 sps:$4 sm:$0xff]  }
  0x59   :  { %2016 = vmatprep.subr.bf16.mxu0 %v2680_v41  ;;  %v2750_v41 = vld [vmem:[%s3878_s1 + $0x620] ss:$8 sps:$4 sm:$0xff]  }
  0x5a   :  { %v2822_v33 = vld [vmem:[%s3878_s1 + $0x6e0] ss:$8 sps:$4 sm:$0xff]  }
  0x5b   :  { %1805 = vmatpush1.bf16.msra.mxu1 %v2675_v42  ;;  %v3429_v42 = vld [vmem:[%s3879_s0 + $0x10] sm:$0xff] }
  0x5c   :  { %2017 = vmatpush1.bf16.msra.mxu0 %v2678_v43  ;;  %1806 = vmatprep.subr.bf16.mxu1 %v2683_v46  ;;  %v2217_v43 = vcombine.low %v28_v26, %v36_v29  ;;  %v3439_v46 = vld [vmem:[%s3879_s0 + $0x30] sm:$0xff]  ;;  %v2204_v50 = vcombine.high %v3429_v42, %v3434_v45 }
  0x5d   :  { %2018 = vmatprep.subr.bf16.mxu0 %v2686_v47  ;;  %v3444_v47 = vld [vmem:[%s3879_s0 + $0x70] sm:$0xff] }
  0x5e   :  { %v2815_v26 = vld [vmem:[%s3878_s1 + $0x2d4] ss:$8 sps:$4 sm:$0xff]   ;;  %v2816_v29 = vld [vmem:[%s3878_s1 + $0x6d0] ss:$8 sps:$4 sm:$0xff]  }
  0x5f   :  { %1807 = vmatpush1.bf16.msra.mxu1 %v2681_v51  ;;  %v2212_v51 = vcombine.high %v3439_v46, %v3444_v47 }
  0x60   :  { %2019 = vmatpush1.bf16.msra.mxu0 %v2684_v52  ;;  %1808 = vmatprep.subr.bf16.mxu1 %v2689_v54  ;;  %v2753_v52 = vld [vmem:[%s3878_s1 + $0x230] ss:$8 sps:$4 sm:$0xff]   ;;  %v2761_v54 = vld [vmem:[%s3878_s1 + $0x244] ss:$8 sps:$4 sm:$0xff]  }
  0x61   :  { %2020 = vmatprep.subr.bf16.mxu0 %v2692_v55  ;;  %v2764_v55 = vld [vmem:[%s3878_s1 + $0x644] ss:$8 sps:$4 sm:$0xff]  }
  0x63   :  { %1809 = vmatpush1.bf16.msra.mxu1 %v2687_v56  ;;  %v2759_v56 = vld [vmem:[%s3878_s1 + $0x240] ss:$8 sps:$4 sm:$0xff]  }
  0x64   :  { %2021 = vmatpush1.bf16.msra.mxu0 %v2690_v57  ;;  %1810 = vmatprep.subr.bf16.mxu1 %v2695_v58  ;;  %v2762_v57 = vld [vmem:[%s3878_s1 + $0x640] ss:$8 sps:$4 sm:$0xff]   ;;  %v2767_v58 = vld [vmem:[%s3878_s1 + $0x254] ss:$8 sps:$4 sm:$0xff]  }
  0x65   :  { %2022 = vmatprep.subr.bf16.mxu0 %v2698_v59  ;;  %v2770_v59 = vld [vmem:[%s3878_s1 + $0x654] ss:$8 sps:$4 sm:$0xff]  }
  0x67   :  { %1811 = vmatpush1.bf16.msra.mxu1 %v2693_v60  ;;  %v2765_v60 = vld [vmem:[%s3878_s1 + $0x250] ss:$8 sps:$4 sm:$0xff]  }
  0x68   :  { %2023 = vmatpush1.bf16.msra.mxu0 %v2696_v61  ;;  %1812 = vmatprep.subr.bf16.mxu1 %v2701_v62  ;;  %v2768_v61 = vld [vmem:[%s3878_s1 + $0x650] ss:$8 sps:$4 sm:$0xff]   ;;  %v2773_v62 = vld [vmem:[%s3878_s1 + $0x264] ss:$8 sps:$4 sm:$0xff]  }
  0x69   :  { %2024 = vmatprep.subr.bf16.mxu0 %v2704_v63  ;;  %v2776_v63 = vld [vmem:[%s3878_s1 + $0x664] ss:$8 sps:$4 sm:$0xff]  }
  0x6b   :  { %1813 = vmatpush1.bf16.msra.mxu1 %v2699_v0  ;;  %v2771_v0 = vld [vmem:[%s3878_s1 + $0x260] ss:$8 sps:$4 sm:$0xff]  }
  0x6c   :  { %2025 = vmatpush1.bf16.msra.mxu0 %v2702_v1  ;;  %1814 = vmatprep.subr.bf16.mxu1 %v2707_v2  ;;  %v2774_v1 = vld [vmem:[%s3878_s1 + $0x660] ss:$8 sps:$4 sm:$0xff]   ;;  %v2779_v2 = vld [vmem:[%s3878_s1 + $0x274] ss:$8 sps:$4 sm:$0xff]  }
  0x6d   :  { %2026 = vmatprep.subr.bf16.mxu0 %v2710_v3  ;;  %v2782_v3 = vld [vmem:[%s3878_s1 + $0x674] ss:$8 sps:$4 sm:$0xff]  }
  0x6f   :  { %1815 = vmatpush1.bf16.msra.mxu1 %v2705_v4  ;;  %v2777_v4 = vld [vmem:[%s3878_s1 + $0x270] ss:$8 sps:$4 sm:$0xff]  }
  0x70   :  { %2027 = vmatpush1.bf16.msra.mxu0 %v2708_v5  ;;  %1816 = vmatprep.subr.bf16.mxu1 %v2713_v6  ;;  %v2780_v5 = vld [vmem:[%s3878_s1 + $0x670] ss:$8 sps:$4 sm:$0xff]   ;;  %v2785_v6 = vld [vmem:[%s3878_s1 + $0x284] ss:$8 sps:$4 sm:$0xff]  }
  0x71   :  { %2028 = vmatprep.subr.bf16.mxu0 %v2716_v7  ;;  %v2788_v7 = vld [vmem:[%s3878_s1 + $0x684] ss:$8 sps:$4 sm:$0xff]  }
  0x73   :  { %1817 = vmatpush1.bf16.msra.mxu1 %v2711_v8  ;;  %v2783_v8 = vld [vmem:[%s3878_s1 + $0x280] ss:$8 sps:$4 sm:$0xff]  }
  0x74   :  { %2029 = vmatpush1.bf16.msra.mxu0 %v2714_v9  ;;  %1818 = vmatprep.subr.bf16.mxu1 %v2719_v10  ;;  %v2786_v9 = vld [vmem:[%s3878_s1 + $0x680] ss:$8 sps:$4 sm:$0xff]   ;;  %v2791_v10 = vld [vmem:[%s3878_s1 + $0x294] ss:$8 sps:$4 sm:$0xff]  }
  0x75   :  { %2030 = vmatprep.subr.bf16.mxu0 %v2722_v11  ;;  %v2794_v11 = vld [vmem:[%s3878_s1 + $0x694] ss:$8 sps:$4 sm:$0xff]  }
  0x77   :  { %1819 = vmatpush1.bf16.msra.mxu1 %v2717_v12  ;;  %v2789_v12 = vld [vmem:[%s3878_s1 + $0x290] ss:$8 sps:$4 sm:$0xff]  }
  0x78   :  { %2031 = vmatpush1.bf16.msra.mxu0 %v2720_v13  ;;  %1820 = vmatprep.subr.bf16.mxu1 %v2725_v14  ;;  %v2792_v13 = vld [vmem:[%s3878_s1 + $0x690] ss:$8 sps:$4 sm:$0xff]   ;;  %v2797_v14 = vld [vmem:[%s3878_s1 + $0x2a4] ss:$8 sps:$4 sm:$0xff]  }
  0x79   :  { %2032 = vmatprep.subr.bf16.mxu0 %v2728_v15  ;;  %v2800_v15 = vld [vmem:[%s3878_s1 + $0x6a4] ss:$8 sps:$4 sm:$0xff]  }
  0x7b   :  { %1821 = vmatpush1.bf16.msra.mxu1 %v2723_v16  ;;  %v2795_v16 = vld [vmem:[%s3878_s1 + $0x2a0] ss:$8 sps:$4 sm:$0xff]  }
  0x7c   :  { %2033 = vmatpush1.bf16.msra.mxu0 %v2726_v17  ;;  %1822 = vmatprep.subr.bf16.mxu1 %v2731_v18  ;;  %v2798_v17 = vld [vmem:[%s3878_s1 + $0x6a0] ss:$8 sps:$4 sm:$0xff]   ;;  %v2803_v18 = vld [vmem:[%s3878_s1 + $0x2b4] ss:$8 sps:$4 sm:$0xff]  }
  0x7d   :  { %2034 = vmatprep.subr.bf16.mxu0 %v2734_v19  ;;  %v2806_v19 = vld [vmem:[%s3878_s1 + $0x6b4] ss:$8 sps:$4 sm:$0xff]  }
  0x7f   :  { %1823 = vmatpush1.bf16.msra.mxu1 %v2729_v20  ;;  %v2801_v20 = vld [vmem:[%s3878_s1 + $0x2b0] ss:$8 sps:$4 sm:$0xff]  }
  0x80   :  { %2035 = vmatpush1.bf16.msra.mxu0 %v2732_v21  ;;  %1845 = vmatprep.subr.bf16.mxu1 %v2737_v22  ;;  %v2804_v21 = vld [vmem:[%s3878_s1 + $0x6b0] ss:$8 sps:$4 sm:$0xff]   ;;  %v2809_v22 = vld [vmem:[%s3878_s1 + $0x2c4] ss:$8 sps:$4 sm:$0xff]  }
  0x81   :  { %2057 = vmatprep.subr.bf16.mxu0 %v2740_v23  ;;  %v2812_v23 = vld [vmem:[%s3878_s1 + $0x6c4] ss:$8 sps:$4 sm:$0xff]  }
  0x82   :  { %1825 = vmatmul.mubr.bf16.vlgmr.msra.gmra.mrb[0].mxu1 %v2201_v27  ;;  %v2818_v27 = vld [vmem:[%s3878_s1 + $0x6d4] ss:$8 sps:$4 sm:$0xff]  }
  0x83   :  { %2037 = vmatmul.mubr.bf16.vlgmr.msra.gmra.mrb[0].mxu0 %v2209_v28  ;;  %1846 = vmatpush1.bf16.msra.mxu1 %v2735_v24  ;;  %v2807_v24 = vld [vmem:[%s3878_s1 + $0x2c0] ss:$8 sps:$4 sm:$0xff]   ;;  %v2813_v28 = vld [vmem:[%s3878_s1 + $0x2d0] ss:$8 sps:$4 sm:$0xff]  }
  0x84   :  { %2058 = vmatpush1.bf16.msra.mxu0 %v2738_v25  ;;  %1847 = vmatprep.subr.bf16.mxu1 %v2743_v30  ;;  %v2810_v25 = vld [vmem:[%s3878_s1 + $0x6c0] ss:$8 sps:$4 sm:$0xff]   ;;  %v2821_v30 = vld [vmem:[%s3878_s1 + $0x2e4] ss:$8 sps:$4 sm:$0xff]  }
  0x85   :  { %2059 = vmatprep.subr.bf16.mxu0 %v2746_v31  ;;  %1834 = vmatprep.mubr.bf16.mxu1 %v2218_v34  ;;  %v2824_v31 = vld [vmem:[%s3878_s1 + $0x6e4] ss:$8 sps:$4 sm:$0xff]   ;;  %v2827_v34 = vld [vmem:[%s3878_s1 + $0x2f4] ss:$8 sps:$4 sm:$0xff]  }
  0x86   :  { %2046 = vmatprep.mubr.bf16.mxu0 %v2226_v35  ;;  %v2830_v35 = vld [vmem:[%s3878_s1 + $0x6f4] ss:$8 sps:$4 sm:$0xff]  }
  0x87   :  { %1848 = vmatpush1.bf16.msra.mxu1 %v2741_v36  ;;  %v2825_v36 = vld [vmem:[%s3878_s1 + $0x2f0] ss:$8 sps:$4 sm:$0xff]  }
  0x88   :  { %2060 = vmatpush1.bf16.msra.mxu0 %v2744_v37  ;;  %1849 = vmatprep.subr.bf16.mxu1 %v2749_v38  ;;  %v2828_v37 = vld [vmem:[%s3878_s1 + $0x6f0] ss:$8 sps:$4 sm:$0xff]   ;;  %v2833_v38 = vld [vmem:[%s3878_s1 + $0x304] ss:$8 sps:$4 sm:$0xff]  }
  0x89   :  { %2061 = vmatprep.subr.bf16.mxu0 %v2752_v39  ;;  %v2836_v39 = vld [vmem:[%s3878_s1 + $0x704] ss:$8 sps:$4 sm:$0xff]  }
  0x8a   :  { %1835 = vmatmul.mubr.bf16.gmra.mrb[4].mxu1 %v2217_v43  ;;  %v2211_v43 = vcombine.low %v3439_v46, %v3444_v47  ;;  %v2839_v46 = vld [vmem:[%s3878_s1 + $0x314] ss:$8 sps:$4 sm:$0xff]  }
  0x8b   :  { %2047 = vmatmul.mubr.bf16.gmra.mrb[4].mxu0 %v2225_v44  ;;  %1850 = vmatpush1.bf16.msra.mxu1 %v2747_v40  ;;  %v29_v40 = vld [vmem:[%s3879_s0 + $0x90] sm:$0xff] }
  0x8c   :  { %2062 = vmatpush1.bf16.msra.mxu0 %v2750_v41  ;;  %1851 = vmatprep.subr.bf16.mxu1 %v2755_v48  ;;  %v2203_v41 = vcombine.low %v3429_v42, %v3434_v45  ;;  %v37_v44 = vld [vmem:[%s3879_s0 + $0xd0] sm:$0xff]  ;;  %v2831_v42 = vld [vmem:[%s3878_s1 + $0x300] ss:$8 sps:$4 sm:$0xff]  }
  0x8d   :  { %2063 = vmatprep.subr.bf16.mxu0 %v2758_v49  ;;  %1877 = vmatprep.mubr.bf16.mxu1 %v2204_v50  ;;  %v33_v48 = vld [vmem:[%s3879_s0 + $0xb0] sm:$0xff]  ;;  %v2834_v45 = vld [vmem:[%s3878_s1 + $0x700] ss:$8 sps:$4 sm:$0xff]   ;;  %v2220_v50 = vcombine.high %v29_v40, %v37_v44 }
  0x8e   :  { %2089 = vmatprep.mubr.bf16.mxu0 %v2212_v51  ;;  %v41_v49 = vld [vmem:[%s3879_s0 + $0xf0] sm:$0xff] }
  0x8f   :  { %1852 = vmatpush1.bf16.msra.mxu1 %v2753_v52  ;;  %v2842_v47 = vld [vmem:[%s3878_s1 + $0x714] ss:$8 sps:$4 sm:$0xff]   ;;  %v2228_v51 = vcombine.high %v33_v48, %v41_v49  ;;  %v2837_v52 = vld [vmem:[%s3878_s1 + $0x310] ss:$8 sps:$4 sm:$0xff]  }
  0x90   :  { %2064 = vmatpush1.bf16.msra.mxu0 %v2756_v53  ;;  %1853 = vmatprep.subr.bf16.mxu1 %v2761_v54  ;;  %v2840_v53 = vld [vmem:[%s3878_s1 + $0x710] ss:$8 sps:$4 sm:$0xff]   ;;  %v2845_v54 = vld [vmem:[%s3878_s1 + $0x324] ss:$8 sps:$4 sm:$0xff]  }
  0x91   :  { %2065 = vmatprep.subr.bf16.mxu0 %v2764_v55  ;;  %v2848_v55 = vld [vmem:[%s3878_s1 + $0x724] ss:$8 sps:$4 sm:$0xff]  }
  0x93   :  { %1854 = vmatpush1.bf16.msra.mxu1 %v2759_v56  ;;  %v3655_v56 = vld [vmem:[%s3879_s0 + $0x18] sm:$0xff] }
  0x94   :  { %2066 = vmatpush1.bf16.msra.mxu0 %v2762_v57  ;;  %1855 = vmatprep.subr.bf16.mxu1 %v2767_v58  ;;  %v2219_v57 = vcombine.low %v29_v40, %v37_v44  ;;  %v2227_v58 = vcombine.low %v33_v48, %v41_v49  ;;  %v2903_v40 = vld [vmem:[%s3878_s1 + $0x3c0] ss:$8 sps:$4 sm:$0xff]   ;;  %v2914_v44 = vld [vmem:[%s3878_s1 + $0x7d4] ss:$8 sps:$4 sm:$0xff]   ;;  %v2909_v48 = vld [vmem:[%s3878_s1 + $0x3d0] ss:$8 sps:$4 sm:$0xff]  }
  0x95   :  { %2067 = vmatprep.subr.bf16.mxu0 %v2770_v59  ;;  %v3660_v59 = vld [vmem:[%s3879_s0 + $0x58] sm:$0xff] }
  0x96   :  { %v2912_v49 = vld [vmem:[%s3878_s1 + $0x7d0] ss:$8 sps:$4 sm:$0xff]  }
  0x97   :  { %1856 = vmatpush1.bf16.msra.mxu1 %v2765_v60  ;;  %v3665_v60 = vld [vmem:[%s3879_s0 + $0x38] sm:$0xff] }
  0x98   :  { %2068 = vmatpush1.bf16.msra.mxu0 %v2768_v61  ;;  %1857 = vmatprep.subr.bf16.mxu1 %v2773_v62  ;;  %v3670_v61 = vld [vmem:[%s3879_s0 + $0x78] sm:$0xff]  ;;  %v2843_v62 = vld [vmem:[%s3878_s1 + $0x320] ss:$8 sps:$4 sm:$0xff]  }
  0x99   :  { %2069 = vmatprep.subr.bf16.mxu0 %v2776_v63  ;;  %v2846_v63 = vld [vmem:[%s3878_s1 + $0x720] ss:$8 sps:$4 sm:$0xff]  }
  0x9b   :  { %1858 = vmatpush1.bf16.msra.mxu1 %v2771_v0  ;;  %v2851_v0 = vld [vmem:[%s3878_s1 + $0x334] ss:$8 sps:$4 sm:$0xff]  }
  0x9c   :  { %2070 = vmatpush1.bf16.msra.mxu0 %v2774_v1  ;;  %1859 = vmatprep.subr.bf16.mxu1 %v2779_v2  ;;  %v2854_v1 = vld [vmem:[%s3878_s1 + $0x734] ss:$8 sps:$4 sm:$0xff]   ;;  %v2206_v2 = vcombine.high %v3655_v56, %v3660_v59 }
  0x9d   :  { %2071 = vmatprep.subr.bf16.mxu0 %v2782_v3  ;;  %v2214_v3 = vcombine.high %v3665_v60, %v3670_v61 }
  0x9f   :  { %1860 = vmatpush1.bf16.msra.mxu1 %v2777_v4  ;;  %v2849_v4 = vld [vmem:[%s3878_s1 + $0x330] ss:$8 sps:$4 sm:$0xff]  }
  0xa0   :  { %2072 = vmatpush1.bf16.msra.mxu0 %v2780_v5  ;;  %1861 = vmatprep.subr.bf16.mxu1 %v2785_v6  ;;  %v2852_v5 = vld [vmem:[%s3878_s1 + $0x730] ss:$8 sps:$4 sm:$0xff]   ;;  %v2857_v6 = vld [vmem:[%s3878_s1 + $0x344] ss:$8 sps:$4 sm:$0xff]  }
  0xa1   :  { %2073 = vmatprep.subr.bf16.mxu0 %v2788_v7  ;;  %v2860_v7 = vld [vmem:[%s3878_s1 + $0x744] ss:$8 sps:$4 sm:$0xff]  }
  0xa3   :  { %1862 = vmatpush1.bf16.msra.mxu1 %v2783_v8  ;;  %v2855_v8 = vld [vmem:[%s3878_s1 + $0x340] ss:$8 sps:$4 sm:$0xff]  }
  0xa4   :  { %2074 = vmatpush1.bf16.msra.mxu0 %v2786_v9  ;;  %1863 = vmatprep.subr.bf16.mxu1 %v2791_v10  ;;  %v2858_v9 = vld [vmem:[%s3878_s1 + $0x740] ss:$8 sps:$4 sm:$0xff]   ;;  %v2863_v10 = vld [vmem:[%s3878_s1 + $0x354] ss:$8 sps:$4 sm:$0xff]  }
  0xa5   :  { %2075 = vmatprep.subr.bf16.mxu0 %v2794_v11  ;;  %v2866_v11 = vld [vmem:[%s3878_s1 + $0x754] ss:$8 sps:$4 sm:$0xff]  }
  0xa7   :  { %1864 = vmatpush1.bf16.msra.mxu1 %v2789_v12  ;;  %v2861_v12 = vld [vmem:[%s3878_s1 + $0x350] ss:$8 sps:$4 sm:$0xff]  }
  0xa8   :  { %2076 = vmatpush1.bf16.msra.mxu0 %v2792_v13  ;;  %1865 = vmatprep.subr.bf16.mxu1 %v2797_v14  ;;  %v2864_v13 = vld [vmem:[%s3878_s1 + $0x750] ss:$8 sps:$4 sm:$0xff]   ;;  %v2869_v14 = vld [vmem:[%s3878_s1 + $0x364] ss:$8 sps:$4 sm:$0xff]  }
  0xa9   :  { %2077 = vmatprep.subr.bf16.mxu0 %v2800_v15  ;;  %v2872_v15 = vld [vmem:[%s3878_s1 + $0x764] ss:$8 sps:$4 sm:$0xff]  }
  0xab   :  { %1866 = vmatpush1.bf16.msra.mxu1 %v2795_v16  ;;  %v2867_v16 = vld [vmem:[%s3878_s1 + $0x360] ss:$8 sps:$4 sm:$0xff]  }
  0xac   :  { %2078 = vmatpush1.bf16.msra.mxu0 %v2798_v17  ;;  %1867 = vmatprep.subr.bf16.mxu1 %v2803_v18  ;;  %v2870_v17 = vld [vmem:[%s3878_s1 + $0x760] ss:$8 sps:$4 sm:$0xff]   ;;  %v2875_v18 = vld [vmem:[%s3878_s1 + $0x374] ss:$8 sps:$4 sm:$0xff]  }
  0xad   :  { %2079 = vmatprep.subr.bf16.mxu0 %v2806_v19  ;;  %v2878_v19 = vld [vmem:[%s3878_s1 + $0x774] ss:$8 sps:$4 sm:$0xff]  }
  0xaf   :  { %1868 = vmatpush1.bf16.msra.mxu1 %v2801_v20  ;;  %v2873_v20 = vld [vmem:[%s3878_s1 + $0x370] ss:$8 sps:$4 sm:$0xff]  }
  0xb0   :  { %2080 = vmatpush1.bf16.msra.mxu0 %v2804_v21  ;;  %1869 = vmatprep.subr.bf16.mxu1 %v2809_v22  ;;  %v2876_v21 = vld [vmem:[%s3878_s1 + $0x770] ss:$8 sps:$4 sm:$0xff]   ;;  %v2881_v22 = vld [vmem:[%s3878_s1 + $0x384] ss:$8 sps:$4 sm:$0xff]  }
  0xb1   :  { %2081 = vmatprep.subr.bf16.mxu0 %v2812_v23  ;;  %v2884_v23 = vld [vmem:[%s3878_s1 + $0x784] ss:$8 sps:$4 sm:$0xff]  }
  0xb3   :  { %1870 = vmatpush1.bf16.msra.mxu1 %v2807_v24  ;;  %v2879_v24 = vld [vmem:[%s3878_s1 + $0x380] ss:$8 sps:$4 sm:$0xff]  }
  0xb4   :  { %2082 = vmatpush1.bf16.msra.mxu0 %v2810_v25  ;;  %1871 = vmatprep.subr.bf16.mxu1 %v2815_v26  ;;  %v2882_v25 = vld [vmem:[%s3878_s1 + $0x780] ss:$8 sps:$4 sm:$0xff]   ;;  %v2887_v26 = vld [vmem:[%s3878_s1 + $0x394] ss:$8 sps:$4 sm:$0xff]  }
  0xb5   :  { %2083 = vmatprep.subr.bf16.mxu0 %v2818_v27  ;;  %v2890_v27 = vld [vmem:[%s3878_s1 + $0x794] ss:$8 sps:$4 sm:$0xff]  }
  0xb7   :  { %1872 = vmatpush1.bf16.msra.mxu1 %v2813_v28  ;;  %v2885_v28 = vld [vmem:[%s3878_s1 + $0x390] ss:$8 sps:$4 sm:$0xff]  }
  0xb8   :  { %2084 = vmatpush1.bf16.msra.mxu0 %v2816_v29  ;;  %1873 = vmatprep.subr.bf16.mxu1 %v2821_v30  ;;  %v2888_v29 = vld [vmem:[%s3878_s1 + $0x790] ss:$8 sps:$4 sm:$0xff]   ;;  %v2893_v30 = vld [vmem:[%s3878_s1 + $0x3a4] ss:$8 sps:$4 sm:$0xff]  }
  0xb9   :  { %2085 = vmatprep.subr.bf16.mxu0 %v2824_v31  ;;  %v2896_v31 = vld [vmem:[%s3878_s1 + $0x7a4] ss:$8 sps:$4 sm:$0xff]  }
  0xbb   :  { %1874 = vmatpush1.bf16.msra.mxu1 %v2819_v32  ;;  %v2891_v32 = vld [vmem:[%s3878_s1 + $0x3a0] ss:$8 sps:$4 sm:$0xff]  }
  0xbc   :  { %2086 = vmatpush1.bf16.msra.mxu0 %v2822_v33  ;;  %1875 = vmatprep.subr.bf16.mxu1 %v2827_v34  ;;  %v2894_v33 = vld [vmem:[%s3878_s1 + $0x7a0] ss:$8 sps:$4 sm:$0xff]   ;;  %v2899_v34 = vld [vmem:[%s3878_s1 + $0x3b4] ss:$8 sps:$4 sm:$0xff]  }
  0xbd   :  { %2087 = vmatprep.subr.bf16.mxu0 %v2830_v35  ;;  %v2902_v35 = vld [vmem:[%s3878_s1 + $0x7b4] ss:$8 sps:$4 sm:$0xff]  }
  0xbf   :  { %1876 = vmatpush1.bf16.msra.mxu1 %v2825_v36  ;;  %v2897_v36 = vld [vmem:[%s3878_s1 + $0x3b0] ss:$8 sps:$4 sm:$0xff]  }
  0xc0   :  { %2088 = vmatpush1.bf16.msra.mxu0 %v2828_v37  ;;  %1898 = vmatprep.subr.bf16.mxu1 %v2833_v38  ;;  %v2900_v37 = vld [vmem:[%s3878_s1 + $0x7b0] ss:$8 sps:$4 sm:$0xff]   ;;  %v2905_v38 = vld [vmem:[%s3878_s1 + $0x3c4] ss:$8 sps:$4 sm:$0xff]  }
  0xc1   :  { %2110 = vmatprep.subr.bf16.mxu0 %v2836_v39  ;;  %v2908_v39 = vld [vmem:[%s3878_s1 + $0x7c4] ss:$8 sps:$4 sm:$0xff]  }
  0xc2   :  { %1878 = vmatmul.mubr.bf16.vlgmr.msra.gmra.mrb[0].mxu1 %v2203_v41  ;;  %v2906_v41 = vld [vmem:[%s3878_s1 + $0x7c0] ss:$8 sps:$4 sm:$0xff]  }
  0xc3   :  { %2090 = vmatmul.mubr.bf16.vlgmr.msra.gmra.mrb[0].mxu0 %v2211_v43  ;;  %1899 = vmatpush1.bf16.msra.mxu1 %v2831_v42  ;;  %v2911_v43 = vld [vmem:[%s3878_s1 + $0x3d4] ss:$8 sps:$4 sm:$0xff]   ;;  %v2917_v42 = vld [vmem:[%s3878_s1 + $0x3e4] ss:$8 sps:$4 sm:$0xff]  }
  0xc4   :  { %2111 = vmatpush1.bf16.msra.mxu0 %v2834_v45  ;;  %1900 = vmatprep.subr.bf16.mxu1 %v2839_v46  ;;  %v2920_v45 = vld [vmem:[%s3878_s1 + $0x7e4] ss:$8 sps:$4 sm:$0xff]   ;;  %v2915_v46 = vld [vmem:[%s3878_s1 + $0x3e0] ss:$8 sps:$4 sm:$0xff]  }
  0xc5   :  { %2112 = vmatprep.subr.bf16.mxu0 %v2842_v47  ;;  %1887 = vmatprep.mubr.bf16.mxu1 %v2220_v50  ;;  %v2918_v47 = vld [vmem:[%s3878_s1 + $0x7e0] ss:$8 sps:$4 sm:$0xff]   ;;  %v2923_v50 = vld [vmem:[%s3878_s1 + $0x3f4] ss:$8 sps:$4 sm:$0xff]  }
  0xc6   :  { %2099 = vmatprep.mubr.bf16.mxu0 %v2228_v51  ;;  %v2926_v51 = vld [vmem:[%s3878_s1 + $0x7f4] ss:$8 sps:$4 sm:$0xff]  }
  0xc7   :  { %1901 = vmatpush1.bf16.msra.mxu1 %v2837_v52  ;;  %v2921_v52 = vld [vmem:[%s3878_s1 + $0x3f0] ss:$8 sps:$4 sm:$0xff]  }
  0xc8   :  { %2113 = vmatpush1.bf16.msra.mxu0 %v2840_v53  ;;  %1902 = vmatprep.subr.bf16.mxu1 %v2845_v54  ;;  %v2924_v53 = vld [vmem:[%s3878_s1 + $0x7f0] ss:$8 sps:$4 sm:$0xff]  }
  0xc9   :  { %2114 = vmatprep.subr.bf16.mxu0 %v2848_v55  ;;  %v30_v54 = vld [vmem:[%s3879_s0 + $0x98] sm:$0xff] }
  0xca   :  { %1888 = vmatmul.mubr.bf16.gmra.mrb[4].mxu1 %v2219_v57  ;;  %v38_v55 = vld [vmem:[%s3879_s0 + $0xd8] sm:$0xff] }
  0xcb   :  { %2100 = vmatmul.mubr.bf16.gmra.mrb[4].mxu0 %v2227_v58  ;;  %1903 = vmatpush1.bf16.msra.mxu1 %v2843_v62  ;;  %v34_v57 = vld [vmem:[%s3879_s0 + $0xb8] sm:$0xff]  ;;  %v2205_v62 = vcombine.low %v3655_v56, %v3660_v59 }
  0xcc   :  { %2115 = vmatpush1.bf16.msra.mxu0 %v2846_v63  ;;  %1904 = vmatprep.subr.bf16.mxu1 %v2851_v0  ;;  %v42_v58 = vld [vmem:[%s3879_s0 + $0xf8] sm:$0xff]  ;;  %v2213_v63 = vcombine.low %v3665_v60, %v3670_v61  ;;  %v2222_v0 = vcombine.high %v30_v54, %v38_v55 }
  0xcd   :  { %2116 = vmatprep.subr.bf16.mxu0 %v2854_v1  ;;  %1930 = vmatprep.mubr.bf16.mxu1 %v2206_v2  ;;  %v2230_v1 = vcombine.high %v34_v57, %v42_v58  ;;  %v2221_v2 = vcombine.low %v30_v54, %v38_v55 }
  0xce   :  { %2142 = vmatprep.mubr.bf16.mxu0 %v2214_v3  ;;  %v2229_v3 = vcombine.low %v34_v57, %v42_v58 }
  0xcf   :  { %1905 = vmatpush1.bf16.msra.mxu1 %v2849_v4 }
  0xd0   :  { %2117 = vmatpush1.bf16.msra.mxu0 %v2852_v5  ;;  %1906 = vmatprep.subr.bf16.mxu1 %v2857_v6 }
  0xd1   :  { %2118 = vmatprep.subr.bf16.mxu0 %v2860_v7 }
  0xd3   :  { %1907 = vmatpush1.bf16.msra.mxu1 %v2855_v8 }
  0xd4   :  { %2119 = vmatpush1.bf16.msra.mxu0 %v2858_v9  ;;  %1908 = vmatprep.subr.bf16.mxu1 %v2863_v10 }
  0xd5   :  { %2120 = vmatprep.subr.bf16.mxu0 %v2866_v11 }
  0xd7   :  { %1909 = vmatpush1.bf16.msra.mxu1 %v2861_v12 }
  0xd8   :  { %2121 = vmatpush1.bf16.msra.mxu0 %v2864_v13  ;;  %1910 = vmatprep.subr.bf16.mxu1 %v2869_v14 }
  0xd9   :  { %2122 = vmatprep.subr.bf16.mxu0 %v2872_v15 }
  0xdb   :  { %1911 = vmatpush1.bf16.msra.mxu1 %v2867_v16 }
  0xdc   :  { %2123 = vmatpush1.bf16.msra.mxu0 %v2870_v17  ;;  %1912 = vmatprep.subr.bf16.mxu1 %v2875_v18 }
  0xdd   :  { %2124 = vmatprep.subr.bf16.mxu0 %v2878_v19 }
  0xdf   :  { %1913 = vmatpush1.bf16.msra.mxu1 %v2873_v20 }
  0xe0   :  { %2125 = vmatpush1.bf16.msra.mxu0 %v2876_v21  ;;  %1914 = vmatprep.subr.bf16.mxu1 %v2881_v22 }
  0xe1   :  { %2126 = vmatprep.subr.bf16.mxu0 %v2884_v23 }
  0xe3   :  { %1915 = vmatpush1.bf16.msra.mxu1 %v2879_v24 }
  0xe4   :  { %2127 = vmatpush1.bf16.msra.mxu0 %v2882_v25  ;;  %1916 = vmatprep.subr.bf16.mxu1 %v2887_v26 }
  0xe5   :  { %2128 = vmatprep.subr.bf16.mxu0 %v2890_v27 }
  0xe7   :  { %1917 = vmatpush1.bf16.msra.mxu1 %v2885_v28 }
  0xe8   :  { %2129 = vmatpush1.bf16.msra.mxu0 %v2888_v29  ;;  %1918 = vmatprep.subr.bf16.mxu1 %v2893_v30 }
  0xe9   :  { %2130 = vmatprep.subr.bf16.mxu0 %v2896_v31 }
  0xeb   :  { %1919 = vmatpush1.bf16.msra.mxu1 %v2891_v32 }
  0xec   :  { %2131 = vmatpush1.bf16.msra.mxu0 %v2894_v33  ;;  %1920 = vmatprep.subr.bf16.mxu1 %v2899_v34 }
  0xed   :  { %2132 = vmatprep.subr.bf16.mxu0 %v2902_v35 }
  0xef   :  { %1921 = vmatpush1.bf16.msra.mxu1 %v2897_v36 }
  0xf0   :  { %2133 = vmatpush1.bf16.msra.mxu0 %v2900_v37  ;;  %1922 = vmatprep.subr.bf16.mxu1 %v2905_v38 }
  0xf1   :  { %2134 = vmatprep.subr.bf16.mxu0 %v2908_v39 }
  0xf3   :  { %1923 = vmatpush1.bf16.msra.mxu1 %v2903_v40 }
  0xf4   :  { %2135 = vmatpush1.bf16.msra.mxu0 %v2906_v41  ;;  %1924 = vmatprep.subr.bf16.mxu1 %v2911_v43 }
  0xf5   :  { %2136 = vmatprep.subr.bf16.mxu0 %v2914_v44 }
  0xf7   :  { %1925 = vmatpush1.bf16.msra.mxu1 %v2909_v48 }
  0xf8   :  { %2137 = vmatpush1.bf16.msra.mxu0 %v2912_v49  ;;  %1926 = vmatprep.subr.bf16.mxu1 %v2917_v42 }
  0xf9   :  { %2138 = vmatprep.subr.bf16.mxu0 %v2920_v45 }
  0xfb   :  { %1927 = vmatpush1.bf16.msra.mxu1 %v2915_v46 }
  0xfc   :  { %2139 = vmatpush1.bf16.msra.mxu0 %v2918_v47  ;;  %1928 = vmatprep.subr.bf16.mxu1 %v2923_v50 }
  0xfd   :  { %2140 = vmatprep.subr.bf16.mxu0 %v2926_v51 }
  0xff   :  { %1929 = vmatpush1.bf16.msra.mxu1 %v2921_v52 }
 0x100   :  { %2141 = vmatpush1.bf16.msra.mxu0 %v2924_v53 }
 0x102   :  { %1931 = vmatmul.mubr.bf16.vlgmr.msra.gmra.mrb[0].mxu1 %v2205_v62 }
 0x103   :  { %2143 = vmatmul.mubr.bf16.vlgmr.msra.gmra.mrb[0].mxu0 %v2213_v63  ;;  %1940 = vmatprep.mubr.bf16.mxu1 %v2222_v0 }
 0x104   :  { %2152 = vmatprep.mubr.bf16.mxu0 %v2230_v1 }
 0x10a   :  { %1941 = vmatmul.mubr.bf16.gmra.mrb[4].mxu1 %v2221_v2 }
 0x10b   :  { %2153 = vmatmul.mubr.bf16.gmra.mrb[4].mxu0 %v2229_v3 }
 0x1d5   :  { %v1932_v4 = vpop.f32.mrb[0].mxu1 }
 0x1d6   :  { %v2144_v5 = vpop.f32.mrb[0].mxu0  ;;  %v1934_v7 = vpop.f32.mrb[1].mxu1 }
 0x1d7   :  { %v2487_v6 = vadd.f32 %v2144_v5, %v1932_v4  ;;  %v2146_v56 = vpop.f32.mrb[1].mxu0  ;;  %v1936_v8 = vpop.f32.mrb[2].mxu1 }
 0x1d8   :  { %v2488_v59 = vadd.f32 %v2146_v56, %v1934_v7  ;;  %v2148_v60 = vpop.f32.mrb[2].mxu0  ;;  %v1938_v10 = vpop.f32.mrb[3].mxu1 }
 0x1d9   :  { %vm2163_vm0 = vcmp.ge.f32.partialorder %v2487_v6, 0.0  ;;  %v2171_v61 = vmul.f32 0.2, %v2487_v6  ;;  %v2489_v9 = vadd.f32 %v2148_v60, %v1936_v8  ;;  %v2150_v11 = vpop.f32.mrb[3].mxu0 }
 0x1da   :  { %vm2164_vm1 = vcmp.ge.f32.partialorder %v2488_v59, 0.0  ;;  %v2172_v12 = vmul.f32 0.2, %v2488_v59  ;;  %v2490_v13 = vadd.f32 %v2150_v11, %v1938_v10 }
 0x1db   :  { %v2179_v14 = vsel %vm2163_vm0, %v2487_v6, %v2171_v61  ;;  %vm2165_vm2 = vcmp.ge.f32.partialorder %v2489_v9, 0.0  ;;  %v2173_v15 = vmul.f32 0.2, %v2489_v9 }
 0x1dc   :  { %2187 = vst [vmem:[%s3880_s2] sm:$0xff] %v2179_v14  ;;  %v2180_v16 = vsel %vm2164_vm1, %v2488_v59, %v2172_v12  ;;  %vm2166_vm3 = vcmp.ge.f32.partialorder %v2490_v13, 0.0  ;;  %v2174_v17 = vmul.f32 0.2, %v2490_v13 }
 0x1dd   :  { %2188 = vst [vmem:[%s3880_s2 + $0x8] sm:$0xff] %v2180_v16  ;;  %v2181_v18 = vsel %vm2165_vm2, %v2489_v9, %v2173_v15  ;;  %v1942_v20 = vpop.f32.mrb[4].mxu1 }
 0x1de   :  { %2189 = vst [vmem:[%s3880_s2 + $0x10] sm:$0xff] %v2181_v18  ;;  %v2182_v19 = vsel %vm2166_vm3, %v2490_v13, %v2174_v17  ;;  %v2154_v21 = vpop.f32.mrb[4].mxu0  ;;  %v1944_v23 = vpop.f32.mrb[5].mxu1 }
 0x1df   :  { %2190 = vst [vmem:[%s3880_s2 + $0x18] sm:$0xff] %v2182_v19  ;;  %v2491_v22 = vadd.f32 %v2154_v21, %v1942_v20  ;;  %v2156_v24 = vpop.f32.mrb[5].mxu0  ;;  %v1946_v26 = vpop.f32.mrb[6].mxu1 }
 0x1e0   :  { %v2492_v25 = vadd.f32 %v2156_v24, %v1944_v23  ;;  %v2158_v27 = vpop.f32.mrb[6].mxu0  ;;  %v1948_v30 = vpop.f32.mrb[7].mxu1 }
 0x1e1   :  { %vm2167_vm4 = vcmp.ge.f32.partialorder %v2491_v22, 0.0  ;;  %v2175_v28 = vmul.f32 0.2, %v2491_v22  ;;  %v2493_v29 = vadd.f32 %v2158_v27, %v1946_v26  ;;  %v2160_v31 = vpop.f32.mrb[7].mxu0 }
 0x1e2   :  { %vm2168_vm5 = vcmp.ge.f32.partialorder %v2492_v25, 0.0  ;;  %v2176_v32 = vmul.f32 0.2, %v2492_v25  ;;  %v2494_v33 = vadd.f32 %v2160_v31, %v1948_v30 }
 0x1e3   :  { %v2183_v34 = vsel %vm2167_vm4, %v2491_v22, %v2175_v28  ;;  %vm2169_vm6 = vcmp.ge.f32.partialorder %v2493_v29, 0.0  ;;  %v2177_v35 = vmul.f32 0.2, %v2493_v29 }
 0x1e4   :  { %2191 = vst [vmem:[%s3880_s2 + $0x20] sm:$0xff] %v2183_v34  ;;  %v2184_v36 = vsel %vm2168_vm5, %v2492_v25, %v2176_v32  ;;  %vm2170_vm7 = vcmp.ge.f32.partialorder %v2494_v33, 0.0  ;;  %v2178_v37 = vmul.f32 0.2, %v2494_v33 }
 0x1e5   :  { %2192 = vst [vmem:[%s3880_s2 + $0x28] sm:$0xff] %v2184_v36  ;;  %v2185_v38 = vsel %vm2169_vm6, %v2493_v29, %v2177_v35 }
 0x1e6   :  { %2193 = vst [vmem:[%s3880_s2 + $0x30] sm:$0xff] %v2185_v38  ;;  %v2186_v39 = vsel %vm2170_vm7, %v2494_v33, %v2178_v37 }
 0x1e7   :  { %2194 = vst [vmem:[%s3880_s2 + $0x38] sm:$0xff] %v2186_v39 }

// kernel: discriminator_forward.8
= control target key start
LH: loop header
LB: loop body
LE: loop exit
PB: predicated region body
PF: predicated region fallthrough
CT: control target
= control target key end

     0   :  { %s14442_s1 = inlined_call_operand.vmem [shape: bf16[4096,512], index: 1, kind: input, shape index: {}]   ;;  %s14443_s0 = inlined_call_operand.vmem [shape: bf16[24,4096], index: 0, kind: input, shape index: {}]   ;;  %s14444_s2 = inlined_call_operand.vmem [shape: f32[24,512], index: 2, kind: output, shape index: {}]  }
   0x1   :  { %v9487_v0 = vld [vmem:[%s14442_s1 + $0x4] ss:$16 sps:$4 sm:$0xff]   ;;  %v9489_v1 = vld [vmem:[%s14442_s1 + $0xc] ss:$16 sps:$4 sm:$0xff]   ;;  %v9491_v2 = vld [vmem:[%s14442_s1] ss:$16 sps:$4 sm:$0xff]  }
   0x2   :  { %6475 = vmatprep.subr.bf16.mxu0 %v9487_v0  ;;  %v9492_v3 = vld [vmem:[%s14442_s1 + $0x8] ss:$16 sps:$4 sm:$0xff]   ;;  %7291 = vmatprep.subr.bf16.mxu1 %v9489_v1  ;;  %v9493_v4 = vld [vmem:[%s14442_s1 + $0x24] ss:$16 sps:$4 sm:$0xff]   ;;  %v9495_v5 = vld [vmem:[%s14442_s1 + $0x2c] ss:$16 sps:$4 sm:$0xff]  }
   0x3   :  { %6476 = vmatpush1.bf16.msra.mxu0 %v9491_v2  ;;  %7292 = vmatpush1.bf16.msra.mxu1 %v9492_v3  ;;  %v9497_v6 = vld [vmem:[%s14442_s1 + $0x20] ss:$16 sps:$4 sm:$0xff]   ;;  %v9498_v7 = vld [vmem:[%s14442_s1 + $0x28] ss:$16 sps:$4 sm:$0xff]   ;;  %v9499_v8 = vld [vmem:[%s14442_s1 + $0x44] ss:$16 sps:$4 sm:$0xff]  }
   0x4   :  { %6477 = vmatprep.subr.bf16.mxu0 %v9493_v4  ;;  %7293 = vmatprep.subr.bf16.mxu1 %v9495_v5  ;;  %v9501_v9 = vld [vmem:[%s14442_s1 + $0x4c] ss:$16 sps:$4 sm:$0xff]   ;;  %v9503_v10 = vld [vmem:[%s14442_s1 + $0x40] ss:$16 sps:$4 sm:$0xff]   ;;  %v9504_v11 = vld [vmem:[%s14442_s1 + $0x48] ss:$16 sps:$4 sm:$0xff]  }
   0x5   :  { %v9505_v12 = vld [vmem:[%s14442_s1 + $0x64] ss:$16 sps:$4 sm:$0xff]   ;;  %v9507_v13 = vld [vmem:[%s14442_s1 + $0x6c] ss:$16 sps:$4 sm:$0xff]   ;;  %v9509_v14 = vld [vmem:[%s14442_s1 + $0x60] ss:$16 sps:$4 sm:$0xff]  }
   0x6   :  { %v9510_v15 = vld [vmem:[%s14442_s1 + $0x68] ss:$16 sps:$4 sm:$0xff]   ;;  %v9511_v16 = vld [vmem:[%s14442_s1 + $0x84] ss:$16 sps:$4 sm:$0xff]   ;;  %v9513_v17 = vld [vmem:[%s14442_s1 + $0x8c] ss:$16 sps:$4 sm:$0xff]  }
   0x7   :  { %6478 = vmatpush1.bf16.msra.mxu0 %v9497_v6  ;;  %7294 = vmatpush1.bf16.msra.mxu1 %v9498_v7  ;;  %v9515_v18 = vld [vmem:[%s14442_s1 + $0x80] ss:$16 sps:$4 sm:$0xff]   ;;  %v9516_v19 = vld [vmem:[%s14442_s1 + $0x88] ss:$16 sps:$4 sm:$0xff]   ;;  %v9517_v20 = vld [vmem:[%s14442_s1 + $0xa4] ss:$16 sps:$4 sm:$0xff]  }
   0x8   :  { %6479 = vmatprep.subr.bf16.mxu0 %v9499_v8  ;;  %7295 = vmatprep.subr.bf16.mxu1 %v9501_v9  ;;  %v9519_v21 = vld [vmem:[%s14442_s1 + $0xac] ss:$16 sps:$4 sm:$0xff]   ;;  %v9521_v22 = vld [vmem:[%s14442_s1 + $0xa0] ss:$16 sps:$4 sm:$0xff]   ;;  %v9522_v23 = vld [vmem:[%s14442_s1 + $0xa8] ss:$16 sps:$4 sm:$0xff]  }
   0x9   :  { %v9523_v24 = vld [vmem:[%s14442_s1 + $0xc4] ss:$16 sps:$4 sm:$0xff]   ;;  %v9525_v25 = vld [vmem:[%s14442_s1 + $0xcc] ss:$16 sps:$4 sm:$0xff]   ;;  %v9527_v26 = vld [vmem:[%s14442_s1 + $0xc0] ss:$16 sps:$4 sm:$0xff]  }
   0xa   :  { %v9528_v27 = vld [vmem:[%s14442_s1 + $0xc8] ss:$16 sps:$4 sm:$0xff]   ;;  %v9529_v28 = vld [vmem:[%s14442_s1 + $0xe4] ss:$16 sps:$4 sm:$0xff]   ;;  %v9531_v29 = vld [vmem:[%s14442_s1 + $0xec] ss:$16 sps:$4 sm:$0xff]  }
   0xb   :  { %6480 = vmatpush1.bf16.msra.mxu0 %v9503_v10  ;;  %7296 = vmatpush1.bf16.msra.mxu1 %v9504_v11  ;;  %v9533_v30 = vld [vmem:[%s14442_s1 + $0xe0] ss:$16 sps:$4 sm:$0xff]   ;;  %v9534_v31 = vld [vmem:[%s14442_s1 + $0xe8] ss:$16 sps:$4 sm:$0xff]   ;;  %v9535_v32 = vld [vmem:[%s14442_s1 + $0x104] ss:$16 sps:$4 sm:$0xff]  }
   0xc   :  { %6481 = vmatprep.subr.bf16.mxu0 %v9505_v12  ;;  %7297 = vmatprep.subr.bf16.mxu1 %v9507_v13  ;;  %v9537_v33 = vld [vmem:[%s14442_s1 + $0x10c] ss:$16 sps:$4 sm:$0xff]   ;;  %v9539_v34 = vld [vmem:[%s14442_s1 + $0x100] ss:$16 sps:$4 sm:$0xff]   ;;  %v9540_v35 = vld [vmem:[%s14442_s1 + $0x108] ss:$16 sps:$4 sm:$0xff]  }
   0xd   :  { %v9541_v36 = vld [vmem:[%s14442_s1 + $0x124] ss:$16 sps:$4 sm:$0xff]   ;;  %v9543_v37 = vld [vmem:[%s14442_s1 + $0x12c] ss:$16 sps:$4 sm:$0xff]   ;;  %v9545_v38 = vld [vmem:[%s14442_s1 + $0x120] ss:$16 sps:$4 sm:$0xff]  }
   0xe   :  { %v9546_v39 = vld [vmem:[%s14442_s1 + $0x128] ss:$16 sps:$4 sm:$0xff]   ;;  %v9547_v40 = vld [vmem:[%s14442_s1 + $0x144] ss:$16 sps:$4 sm:$0xff]   ;;  %v9549_v41 = vld [vmem:[%s14442_s1 + $0x14c] ss:$16 sps:$4 sm:$0xff]  }
   0xf   :  { %6482 = vmatpush1.bf16.msra.mxu0 %v9509_v14  ;;  %7298 = vmatpush1.bf16.msra.mxu1 %v9510_v15  ;;  %v9551_v42 = vld [vmem:[%s14442_s1 + $0x140] ss:$16 sps:$4 sm:$0xff]   ;;  %v9552_v43 = vld [vmem:[%s14442_s1 + $0x148] ss:$16 sps:$4 sm:$0xff]   ;;  %v9553_v44 = vld [vmem:[%s14442_s1 + $0x164] ss:$16 sps:$4 sm:$0xff]  }
  0x10   :  { %6483 = vmatprep.subr.bf16.mxu0 %v9511_v16  ;;  %7299 = vmatprep.subr.bf16.mxu1 %v9513_v17  ;;  %v9555_v45 = vld [vmem:[%s14442_s1 + $0x16c] ss:$16 sps:$4 sm:$0xff]   ;;  %v11_v46 = vld [vmem:[%s14443_s0] sm:$0xff]  ;;  %v9558_v49 = vld [vmem:[%s14442_s1 + $0x168] ss:$16 sps:$4 sm:$0xff]  }
  0x11   :  { %v27_v47 = vld [vmem:[%s14443_s0 + $0x80] sm:$0xff]  ;;  %v9561_v52 = vld [vmem:[%s14442_s1 + $0x18c] ss:$16 sps:$4 sm:$0xff]   ;;  %v9564_v54 = vld [vmem:[%s14442_s1 + $0x188] ss:$16 sps:$4 sm:$0xff]  }
  0x12   :  { %v9557_v48 = vld [vmem:[%s14442_s1 + $0x160] ss:$16 sps:$4 sm:$0xff]   ;;  %v8160_v50 = vcombine.high %v11_v46, %v27_v47  ;;  %v9559_v51 = vld [vmem:[%s14442_s1 + $0x184] ss:$16 sps:$4 sm:$0xff]   ;;  %v9567_v56 = vld [vmem:[%s14442_s1 + $0x1ac] ss:$16 sps:$4 sm:$0xff]   ;;  %v8159_v5 = vcombine.low %v11_v46, %v27_v47 }
  0x13   :  { %6484 = vmatpush1.bf16.msra.mxu0 %v9515_v18  ;;  %7300 = vmatpush1.bf16.msra.mxu1 %v9516_v19  ;;  %v9563_v53 = vld [vmem:[%s14442_s1 + $0x180] ss:$16 sps:$4 sm:$0xff]   ;;  %v9565_v55 = vld [vmem:[%s14442_s1 + $0x1a4] ss:$16 sps:$4 sm:$0xff]   ;;  %v9570_v58 = vld [vmem:[%s14442_s1 + $0x1a8] ss:$16 sps:$4 sm:$0xff]  }
  0x14   :  { %6485 = vmatprep.subr.bf16.mxu0 %v9517_v20  ;;  %7301 = vmatprep.subr.bf16.mxu1 %v9519_v21  ;;  %v9569_v57 = vld [vmem:[%s14442_s1 + $0x1a0] ss:$16 sps:$4 sm:$0xff]   ;;  %v9571_v59 = vld [vmem:[%s14442_s1 + $0x1c4] ss:$16 sps:$4 sm:$0xff]   ;;  %v9573_v60 = vld [vmem:[%s14442_s1 + $0x1cc] ss:$16 sps:$4 sm:$0xff]  }
  0x15   :  { %6507 = vmatprep.mubr.bf16.mxu0 %v8160_v50  ;;  %7323 = vmatprep.mubr.bf16.mxu1 %v8160_v50  ;;  %v9575_v61 = vld [vmem:[%s14442_s1 + $0x1c0] ss:$16 sps:$4 sm:$0xff]   ;;  %v9576_v62 = vld [vmem:[%s14442_s1 + $0x1c8] ss:$16 sps:$4 sm:$0xff]   ;;  %v9577_v63 = vld [vmem:[%s14442_s1 + $0x1e4] ss:$16 sps:$4 sm:$0xff]  }
  0x16   :  { %v9579_v0 = vld [vmem:[%s14442_s1 + $0x1ec] ss:$16 sps:$4 sm:$0xff]   ;;  %v9581_v1 = vld [vmem:[%s14442_s1 + $0x1e0] ss:$16 sps:$4 sm:$0xff]   ;;  %v9582_v2 = vld [vmem:[%s14442_s1 + $0x1e8] ss:$16 sps:$4 sm:$0xff]  }
  0x17   :  { %6486 = vmatpush1.bf16.msra.mxu0 %v9521_v22  ;;  %7302 = vmatpush1.bf16.msra.mxu1 %v9522_v23  ;;  %v9585_v3 = vld [vmem:[%s14442_s1 + $0x204] ss:$16 sps:$4 sm:$0xff]   ;;  %v9588_v4 = vld [vmem:[%s14442_s1 + $0x20c] ss:$16 sps:$4 sm:$0xff]   ;;  %v9583_v6 = vld [vmem:[%s14442_s1 + $0x200] ss:$16 sps:$4 sm:$0xff]  }
  0x18   :  { %6487 = vmatprep.subr.bf16.mxu0 %v9523_v24  ;;  %7303 = vmatprep.subr.bf16.mxu1 %v9525_v25  ;;  %v9586_v7 = vld [vmem:[%s14442_s1 + $0x208] ss:$16 sps:$4 sm:$0xff]   ;;  %v9591_v8 = vld [vmem:[%s14442_s1 + $0x224] ss:$16 sps:$4 sm:$0xff]   ;;  %v9594_v9 = vld [vmem:[%s14442_s1 + $0x22c] ss:$16 sps:$4 sm:$0xff]  }
  0x19   :  { %v9589_v10 = vld [vmem:[%s14442_s1 + $0x220] ss:$16 sps:$4 sm:$0xff]   ;;  %v9592_v11 = vld [vmem:[%s14442_s1 + $0x228] ss:$16 sps:$4 sm:$0xff]   ;;  %v9597_v12 = vld [vmem:[%s14442_s1 + $0x244] ss:$16 sps:$4 sm:$0xff]  }
  0x1a   :  { %v9600_v13 = vld [vmem:[%s14442_s1 + $0x24c] ss:$16 sps:$4 sm:$0xff]   ;;  %v9595_v14 = vld [vmem:[%s14442_s1 + $0x240] ss:$16 sps:$4 sm:$0xff]   ;;  %v9598_v15 = vld [vmem:[%s14442_s1 + $0x248] ss:$16 sps:$4 sm:$0xff]  }
  0x1b   :  { %6488 = vmatpush1.bf16.msra.mxu0 %v9527_v26  ;;  %7304 = vmatpush1.bf16.msra.mxu1 %v9528_v27  ;;  %v9603_v16 = vld [vmem:[%s14442_s1 + $0x264] ss:$16 sps:$4 sm:$0xff]   ;;  %v9606_v17 = vld [vmem:[%s14442_s1 + $0x26c] ss:$16 sps:$4 sm:$0xff]   ;;  %v9601_v18 = vld [vmem:[%s14442_s1 + $0x260] ss:$16 sps:$4 sm:$0xff]  }
  0x1c   :  { %6489 = vmatprep.subr.bf16.mxu0 %v9529_v28  ;;  %7305 = vmatprep.subr.bf16.mxu1 %v9531_v29  ;;  %v9604_v19 = vld [vmem:[%s14442_s1 + $0x268] ss:$16 sps:$4 sm:$0xff]   ;;  %v9609_v20 = vld [vmem:[%s14442_s1 + $0x284] ss:$16 sps:$4 sm:$0xff]   ;;  %v9612_v21 = vld [vmem:[%s14442_s1 + $0x28c] ss:$16 sps:$4 sm:$0xff]  }
  0x1d   :  { %v9607_v22 = vld [vmem:[%s14442_s1 + $0x280] ss:$16 sps:$4 sm:$0xff]   ;;  %v9610_v23 = vld [vmem:[%s14442_s1 + $0x288] ss:$16 sps:$4 sm:$0xff]   ;;  %v9615_v24 = vld [vmem:[%s14442_s1 + $0x2a4] ss:$16 sps:$4 sm:$0xff]  }
  0x1e   :  { %v43_v25 = vld [vmem:[%s14443_s0 + $0x100] sm:$0xff]  ;;  %v9618_v26 = vld [vmem:[%s14442_s1 + $0x2ac] ss:$16 sps:$4 sm:$0xff]  }
  0x1f   :  { %6490 = vmatpush1.bf16.msra.mxu0 %v9533_v30  ;;  %7306 = vmatpush1.bf16.msra.mxu1 %v9534_v31  ;;  %v8192_v27 = vcombine.high %v43_v25, %v43_v25  ;;  %v8191_v28 = vcombine.low %v43_v25, %v43_v25  ;;  %v9613_v29 = vld [vmem:[%s14442_s1 + $0x2a0] ss:$16 sps:$4 sm:$0xff]   ;;  %v9616_v30 = vld [vmem:[%s14442_s1 + $0x2a8] ss:$16 sps:$4 sm:$0xff]   ;;  %v9621_v31 = vld [vmem:[%s14442_s1 + $0x2c4] ss:$16 sps:$4 sm:$0xff]  }
  0x20   :  { %6491 = vmatprep.subr.bf16.mxu0 %v9535_v32  ;;  %7307 = vmatprep.subr.bf16.mxu1 %v9537_v33  ;;  %v9624_v32 = vld [vmem:[%s14442_s1 + $0x2cc] ss:$16 sps:$4 sm:$0xff]   ;;  %v9639_v46 = vld [vmem:[%s14442_s1 + $0x324] ss:$16 sps:$4 sm:$0xff]  }
  0x21   :  { %v11352_v33 = vld [vmem:[%s14443_s0 + $0x8] sm:$0xff]  ;;  %v9645_v50 = vld [vmem:[%s14442_s1 + $0x344] ss:$16 sps:$4 sm:$0xff]  }
  0x22   :  { %v9642_v47 = vld [vmem:[%s14442_s1 + $0x32c] ss:$16 sps:$4 sm:$0xff]  }
  0x23   :  { %6492 = vmatpush1.bf16.msra.mxu0 %v9539_v34  ;;  %7308 = vmatpush1.bf16.msra.mxu1 %v9540_v35  ;;  %v11357_v34 = vld [vmem:[%s14443_s0 + $0x88] sm:$0xff]  ;;  %v9619_v35 = vld [vmem:[%s14442_s1 + $0x2c0] ss:$16 sps:$4 sm:$0xff]  }
  0x24   :  { %6493 = vmatprep.subr.bf16.mxu0 %v9541_v36  ;;  %7309 = vmatprep.subr.bf16.mxu1 %v9543_v37  ;;  %v8162_v36 = vcombine.high %v11352_v33, %v11357_v34  ;;  %v9622_v37 = vld [vmem:[%s14442_s1 + $0x2c8] ss:$16 sps:$4 sm:$0xff]  }
  0x27   :  { %6494 = vmatpush1.bf16.msra.mxu0 %v9545_v38  ;;  %7310 = vmatpush1.bf16.msra.mxu1 %v9546_v39  ;;  %v9627_v38 = vld [vmem:[%s14442_s1 + $0x2e4] ss:$16 sps:$4 sm:$0xff]   ;;  %v9630_v39 = vld [vmem:[%s14442_s1 + $0x2ec] ss:$16 sps:$4 sm:$0xff]  }
  0x28   :  { %6495 = vmatprep.subr.bf16.mxu0 %v9547_v40  ;;  %7311 = vmatprep.subr.bf16.mxu1 %v9549_v41  ;;  %v9625_v40 = vld [vmem:[%s14442_s1 + $0x2e0] ss:$16 sps:$4 sm:$0xff]   ;;  %v9628_v41 = vld [vmem:[%s14442_s1 + $0x2e8] ss:$16 sps:$4 sm:$0xff]  }
  0x2b   :  { %6496 = vmatpush1.bf16.msra.mxu0 %v9551_v42  ;;  %7312 = vmatpush1.bf16.msra.mxu1 %v9552_v43  ;;  %v9633_v42 = vld [vmem:[%s14442_s1 + $0x304] ss:$16 sps:$4 sm:$0xff]   ;;  %v9636_v43 = vld [vmem:[%s14442_s1 + $0x30c] ss:$16 sps:$4 sm:$0xff]  }
  0x2c   :  { %6497 = vmatprep.subr.bf16.mxu0 %v9553_v44  ;;  %7313 = vmatprep.subr.bf16.mxu1 %v9555_v45  ;;  %v9631_v44 = vld [vmem:[%s14442_s1 + $0x300] ss:$16 sps:$4 sm:$0xff]   ;;  %v9634_v45 = vld [vmem:[%s14442_s1 + $0x308] ss:$16 sps:$4 sm:$0xff]  }
  0x2f   :  { %6498 = vmatpush1.bf16.msra.mxu0 %v9557_v48  ;;  %7314 = vmatpush1.bf16.msra.mxu1 %v9558_v49  ;;  %v9637_v48 = vld [vmem:[%s14442_s1 + $0x320] ss:$16 sps:$4 sm:$0xff]   ;;  %v9640_v49 = vld [vmem:[%s14442_s1 + $0x328] ss:$16 sps:$4 sm:$0xff]  }
  0x30   :  { %6499 = vmatprep.subr.bf16.mxu0 %v9559_v51  ;;  %7315 = vmatprep.subr.bf16.mxu1 %v9561_v52  ;;  %v9648_v51 = vld [vmem:[%s14442_s1 + $0x34c] ss:$16 sps:$4 sm:$0xff]   ;;  %v9643_v52 = vld [vmem:[%s14442_s1 + $0x340] ss:$16 sps:$4 sm:$0xff]  }
  0x33   :  { %6500 = vmatpush1.bf16.msra.mxu0 %v9563_v53  ;;  %7316 = vmatpush1.bf16.msra.mxu1 %v9564_v54  ;;  %v9646_v53 = vld [vmem:[%s14442_s1 + $0x348] ss:$16 sps:$4 sm:$0xff]   ;;  %v9651_v54 = vld [vmem:[%s14442_s1 + $0x364] ss:$16 sps:$4 sm:$0xff]  }
  0x34   :  { %6501 = vmatprep.subr.bf16.mxu0 %v9565_v55  ;;  %7317 = vmatprep.subr.bf16.mxu1 %v9567_v56  ;;  %v9654_v55 = vld [vmem:[%s14442_s1 + $0x36c] ss:$16 sps:$4 sm:$0xff]   ;;  %v9649_v56 = vld [vmem:[%s14442_s1 + $0x360] ss:$16 sps:$4 sm:$0xff]  }
  0x37   :  { %6502 = vmatpush1.bf16.msra.mxu0 %v9569_v57  ;;  %7318 = vmatpush1.bf16.msra.mxu1 %v9570_v58  ;;  %v9652_v57 = vld [vmem:[%s14442_s1 + $0x368] ss:$16 sps:$4 sm:$0xff]   ;;  %v9657_v58 = vld [vmem:[%s14442_s1 + $0x384] ss:$16 sps:$4 sm:$0xff]  }
  0x38   :  { %6503 = vmatprep.subr.bf16.mxu0 %v9571_v59  ;;  %7319 = vmatprep.subr.bf16.mxu1 %v9573_v60  ;;  %v9660_v59 = vld [vmem:[%s14442_s1 + $0x38c] ss:$16 sps:$4 sm:$0xff]   ;;  %v9655_v60 = vld [vmem:[%s14442_s1 + $0x380] ss:$16 sps:$4 sm:$0xff]  }
  0x3b   :  { %6504 = vmatpush1.bf16.msra.mxu0 %v9575_v61  ;;  %7320 = vmatpush1.bf16.msra.mxu1 %v9576_v62  ;;  %v9658_v61 = vld [vmem:[%s14442_s1 + $0x388] ss:$16 sps:$4 sm:$0xff]   ;;  %v9663_v62 = vld [vmem:[%s14442_s1 + $0x3a4] ss:$16 sps:$4 sm:$0xff]  }
  0x3c   :  { %6505 = vmatprep.subr.bf16.mxu0 %v9577_v63  ;;  %7321 = vmatprep.subr.bf16.mxu1 %v9579_v0  ;;  %v9666_v63 = vld [vmem:[%s14442_s1 + $0x3ac] ss:$16 sps:$4 sm:$0xff]   ;;  %v9661_v0 = vld [vmem:[%s14442_s1 + $0x3a0] ss:$16 sps:$4 sm:$0xff]  }
  0x3f   :  { %6506 = vmatpush1.bf16.msra.mxu0 %v9581_v1  ;;  %7322 = vmatpush1.bf16.msra.mxu1 %v9582_v2  ;;  %v9664_v1 = vld [vmem:[%s14442_s1 + $0x3a8] ss:$16 sps:$4 sm:$0xff]   ;;  %v9670_v2 = vld [vmem:[%s14442_s1 + $0x3c4] ss:$16 sps:$4 sm:$0xff]  }
  0x40   :  { %6526 = vmatprep.subr.bf16.mxu0 %v9585_v3  ;;  %7342 = vmatprep.subr.bf16.mxu1 %v9588_v4  ;;  %v9673_v3 = vld [vmem:[%s14442_s1 + $0x3cc] ss:$16 sps:$4 sm:$0xff]   ;;  %v9668_v4 = vld [vmem:[%s14442_s1 + $0x3c0] ss:$16 sps:$4 sm:$0xff]  }
  0x42   :  { %6508 = vmatmul.mubr.bf16.vlgmr.msra.gmra.mrb[0].mxu0 %v8159_v5  ;;  %7324 = vmatmul.mubr.bf16.vlgmr.msra.gmra.mrb[0].mxu1 %v8159_v5  ;;  %v9671_v5 = vld [vmem:[%s14442_s1 + $0x3c8] ss:$16 sps:$4 sm:$0xff]  }
  0x43   :  { %6527 = vmatpush1.bf16.msra.mxu0 %v9583_v6  ;;  %7343 = vmatpush1.bf16.msra.mxu1 %v9586_v7  ;;  %v9677_v6 = vld [vmem:[%s14442_s1 + $0x3e4] ss:$16 sps:$4 sm:$0xff]   ;;  %v9680_v7 = vld [vmem:[%s14442_s1 + $0x3ec] ss:$16 sps:$4 sm:$0xff]  }
  0x44   :  { %6528 = vmatprep.subr.bf16.mxu0 %v9591_v8  ;;  %7344 = vmatprep.subr.bf16.mxu1 %v9594_v9  ;;  %v9675_v8 = vld [vmem:[%s14442_s1 + $0x3e0] ss:$16 sps:$4 sm:$0xff]   ;;  %v9678_v9 = vld [vmem:[%s14442_s1 + $0x3e8] ss:$16 sps:$4 sm:$0xff]  }
  0x45   :  { %6517 = vmatprep.mubr.bf16.mxu0 %v8192_v27  ;;  %7333 = vmatprep.mubr.bf16.mxu1 %v8192_v27  ;;  %v11524_v27 = vld [vmem:[%s14443_s0 + $0x90] sm:$0xff] }
  0x47   :  { %6529 = vmatpush1.bf16.msra.mxu0 %v9589_v10  ;;  %7345 = vmatpush1.bf16.msra.mxu1 %v9592_v11  ;;  %v9683_v10 = vld [vmem:[%s14442_s1 + $0x404] ss:$16 sps:$4 sm:$0xff]   ;;  %v9686_v11 = vld [vmem:[%s14442_s1 + $0x40c] ss:$16 sps:$4 sm:$0xff]  }
  0x48   :  { %6530 = vmatprep.subr.bf16.mxu0 %v9597_v12  ;;  %7346 = vmatprep.subr.bf16.mxu1 %v9600_v13  ;;  %v8161_v12 = vcombine.low %v11352_v33, %v11357_v34  ;;  %v44_v13 = vld [vmem:[%s14443_s0 + $0x108] sm:$0xff]  ;;  %v9707_v33 = vld [vmem:[%s14442_s1 + $0x484] ss:$16 sps:$4 sm:$0xff]  }
  0x49   :  { %v8193_v25 = vcombine.low %v44_v13, %v44_v13  ;;  %v9710_v34 = vld [vmem:[%s14442_s1 + $0x48c] ss:$16 sps:$4 sm:$0xff]  }
  0x4a   :  { %6518 = vmatmul.mubr.bf16.gmra.mrb[4].mxu0 %v8191_v28  ;;  %7334 = vmatmul.mubr.bf16.gmra.mrb[4].mxu1 %v8191_v28  ;;  %v9701_v28 = vld [vmem:[%s14442_s1 + $0x464] ss:$16 sps:$4 sm:$0xff]  }
  0x4b   :  { %6531 = vmatpush1.bf16.msra.mxu0 %v9595_v14  ;;  %7347 = vmatpush1.bf16.msra.mxu1 %v9598_v15  ;;  %v9681_v14 = vld [vmem:[%s14442_s1 + $0x400] ss:$16 sps:$4 sm:$0xff]   ;;  %v9684_v15 = vld [vmem:[%s14442_s1 + $0x408] ss:$16 sps:$4 sm:$0xff]  }
  0x4c   :  { %6532 = vmatprep.subr.bf16.mxu0 %v9603_v16  ;;  %7348 = vmatprep.subr.bf16.mxu1 %v9606_v17  ;;  %v9689_v16 = vld [vmem:[%s14442_s1 + $0x424] ss:$16 sps:$4 sm:$0xff]   ;;  %v9692_v17 = vld [vmem:[%s14442_s1 + $0x42c] ss:$16 sps:$4 sm:$0xff]  }
  0x4d   :  { %6558 = vmatprep.mubr.bf16.mxu0 %v8162_v36  ;;  %7374 = vmatprep.mubr.bf16.mxu1 %v8162_v36  ;;  %v9708_v36 = vld [vmem:[%s14442_s1 + $0x488] ss:$16 sps:$4 sm:$0xff]  }
  0x4f   :  { %6533 = vmatpush1.bf16.msra.mxu0 %v9601_v18  ;;  %7349 = vmatpush1.bf16.msra.mxu1 %v9604_v19  ;;  %v8194_v18 = vcombine.high %v44_v13, %v44_v13  ;;  %v9687_v19 = vld [vmem:[%s14442_s1 + $0x420] ss:$16 sps:$4 sm:$0xff]   ;;  %v9775_v13 = vld [vmem:[%s14442_s1 + $0x5e4] ss:$16 sps:$4 sm:$0xff]  }
  0x50   :  { %6534 = vmatprep.subr.bf16.mxu0 %v9609_v20  ;;  %7350 = vmatprep.subr.bf16.mxu1 %v9612_v21  ;;  %v9690_v20 = vld [vmem:[%s14442_s1 + $0x428] ss:$16 sps:$4 sm:$0xff]   ;;  %v9695_v21 = vld [vmem:[%s14442_s1 + $0x444] ss:$16 sps:$4 sm:$0xff]  }
  0x53   :  { %6535 = vmatpush1.bf16.msra.mxu0 %v9607_v22  ;;  %7351 = vmatpush1.bf16.msra.mxu1 %v9610_v23  ;;  %v9698_v22 = vld [vmem:[%s14442_s1 + $0x44c] ss:$16 sps:$4 sm:$0xff]   ;;  %v9693_v23 = vld [vmem:[%s14442_s1 + $0x440] ss:$16 sps:$4 sm:$0xff]  }
  0x54   :  { %6536 = vmatprep.subr.bf16.mxu0 %v9615_v24  ;;  %7352 = vmatprep.subr.bf16.mxu1 %v9618_v26  ;;  %v9696_v24 = vld [vmem:[%s14442_s1 + $0x448] ss:$16 sps:$4 sm:$0xff]   ;;  %v11519_v26 = vld [vmem:[%s14443_s0 + $0x10] sm:$0xff] }
  0x57   :  { %6537 = vmatpush1.bf16.msra.mxu0 %v9613_v29  ;;  %7353 = vmatpush1.bf16.msra.mxu1 %v9616_v30  ;;  %v9704_v29 = vld [vmem:[%s14442_s1 + $0x46c] ss:$16 sps:$4 sm:$0xff]   ;;  %v8164_v30 = vcombine.high %v11519_v26, %v11524_v27 }
  0x58   :  { %6538 = vmatprep.subr.bf16.mxu0 %v9621_v31  ;;  %7354 = vmatprep.subr.bf16.mxu1 %v9624_v32  ;;  %v9699_v31 = vld [vmem:[%s14442_s1 + $0x460] ss:$16 sps:$4 sm:$0xff]   ;;  %v9702_v32 = vld [vmem:[%s14442_s1 + $0x468] ss:$16 sps:$4 sm:$0xff]  }
  0x5b   :  { %6539 = vmatpush1.bf16.msra.mxu0 %v9619_v35  ;;  %7355 = vmatpush1.bf16.msra.mxu1 %v9622_v37  ;;  %v9705_v35 = vld [vmem:[%s14442_s1 + $0x480] ss:$16 sps:$4 sm:$0xff]   ;;  %v9713_v37 = vld [vmem:[%s14442_s1 + $0x4a4] ss:$16 sps:$4 sm:$0xff]  }
  0x5c   :  { %6540 = vmatprep.subr.bf16.mxu0 %v9627_v38  ;;  %7356 = vmatprep.subr.bf16.mxu1 %v9630_v39  ;;  %v9716_v38 = vld [vmem:[%s14442_s1 + $0x4ac] ss:$16 sps:$4 sm:$0xff]   ;;  %v9711_v39 = vld [vmem:[%s14442_s1 + $0x4a0] ss:$16 sps:$4 sm:$0xff]  }
  0x5f   :  { %6541 = vmatpush1.bf16.msra.mxu0 %v9625_v40  ;;  %7357 = vmatpush1.bf16.msra.mxu1 %v9628_v41  ;;  %v9714_v40 = vld [vmem:[%s14442_s1 + $0x4a8] ss:$16 sps:$4 sm:$0xff]   ;;  %v9719_v41 = vld [vmem:[%s14442_s1 + $0x4c4] ss:$16 sps:$4 sm:$0xff]  }
  0x60   :  { %6542 = vmatprep.subr.bf16.mxu0 %v9633_v42  ;;  %7358 = vmatprep.subr.bf16.mxu1 %v9636_v43  ;;  %v9722_v42 = vld [vmem:[%s14442_s1 + $0x4cc] ss:$16 sps:$4 sm:$0xff]   ;;  %v9717_v43 = vld [vmem:[%s14442_s1 + $0x4c0] ss:$16 sps:$4 sm:$0xff]  }
  0x63   :  { %6543 = vmatpush1.bf16.msra.mxu0 %v9631_v44  ;;  %7359 = vmatpush1.bf16.msra.mxu1 %v9634_v45  ;;  %v9720_v44 = vld [vmem:[%s14442_s1 + $0x4c8] ss:$16 sps:$4 sm:$0xff]   ;;  %v9725_v45 = vld [vmem:[%s14442_s1 + $0x4e4] ss:$16 sps:$4 sm:$0xff]  }
  0x64   :  { %6544 = vmatprep.subr.bf16.mxu0 %v9639_v46  ;;  %7360 = vmatprep.subr.bf16.mxu1 %v9642_v47  ;;  %v9728_v46 = vld [vmem:[%s14442_s1 + $0x4ec] ss:$16 sps:$4 sm:$0xff]   ;;  %v9723_v47 = vld [vmem:[%s14442_s1 + $0x4e0] ss:$16 sps:$4 sm:$0xff]  }
  0x67   :  { %6545 = vmatpush1.bf16.msra.mxu0 %v9637_v48  ;;  %7361 = vmatpush1.bf16.msra.mxu1 %v9640_v49  ;;  %v9726_v48 = vld [vmem:[%s14442_s1 + $0x4e8] ss:$16 sps:$4 sm:$0xff]   ;;  %v9731_v49 = vld [vmem:[%s14442_s1 + $0x504] ss:$16 sps:$4 sm:$0xff]  }
  0x68   :  { %6546 = vmatprep.subr.bf16.mxu0 %v9645_v50  ;;  %7362 = vmatprep.subr.bf16.mxu1 %v9648_v51  ;;  %v9734_v50 = vld [vmem:[%s14442_s1 + $0x50c] ss:$16 sps:$4 sm:$0xff]   ;;  %v9729_v51 = vld [vmem:[%s14442_s1 + $0x500] ss:$16 sps:$4 sm:$0xff]  }
  0x6b   :  { %6547 = vmatpush1.bf16.msra.mxu0 %v9643_v52  ;;  %7363 = vmatpush1.bf16.msra.mxu1 %v9646_v53  ;;  %v9732_v52 = vld [vmem:[%s14442_s1 + $0x508] ss:$16 sps:$4 sm:$0xff]   ;;  %v9737_v53 = vld [vmem:[%s14442_s1 + $0x524] ss:$16 sps:$4 sm:$0xff]  }
  0x6c   :  { %6548 = vmatprep.subr.bf16.mxu0 %v9651_v54  ;;  %7364 = vmatprep.subr.bf16.mxu1 %v9654_v55  ;;  %v9740_v54 = vld [vmem:[%s14442_s1 + $0x52c] ss:$16 sps:$4 sm:$0xff]   ;;  %v9735_v55 = vld [vmem:[%s14442_s1 + $0x520] ss:$16 sps:$4 sm:$0xff]  }
  0x6f   :  { %6549 = vmatpush1.bf16.msra.mxu0 %v9649_v56  ;;  %7365 = vmatpush1.bf16.msra.mxu1 %v9652_v57  ;;  %v9738_v56 = vld [vmem:[%s14442_s1 + $0x528] ss:$16 sps:$4 sm:$0xff]   ;;  %v9743_v57 = vld [vmem:[%s14442_s1 + $0x544] ss:$16 sps:$4 sm:$0xff]  }
  0x70   :  { %6550 = vmatprep.subr.bf16.mxu0 %v9657_v58  ;;  %7366 = vmatprep.subr.bf16.mxu1 %v9660_v59  ;;  %v9746_v58 = vld [vmem:[%s14442_s1 + $0x54c] ss:$16 sps:$4 sm:$0xff]   ;;  %v9741_v59 = vld [vmem:[%s14442_s1 + $0x540] ss:$16 sps:$4 sm:$0xff]  }
  0x73   :  { %6551 = vmatpush1.bf16.msra.mxu0 %v9655_v60  ;;  %7367 = vmatpush1.bf16.msra.mxu1 %v9658_v61  ;;  %v9744_v60 = vld [vmem:[%s14442_s1 + $0x548] ss:$16 sps:$4 sm:$0xff]   ;;  %v9749_v61 = vld [vmem:[%s14442_s1 + $0x564] ss:$16 sps:$4 sm:$0xff]  }
  0x74   :  { %6552 = vmatprep.subr.bf16.mxu0 %v9663_v62  ;;  %7368 = vmatprep.subr.bf16.mxu1 %v9666_v63  ;;  %v9752_v62 = vld [vmem:[%s14442_s1 + $0x56c] ss:$16 sps:$4 sm:$0xff]   ;;  %v9747_v63 = vld [vmem:[%s14442_s1 + $0x560] ss:$16 sps:$4 sm:$0xff]  }
  0x77   :  { %6553 = vmatpush1.bf16.msra.mxu0 %v9661_v0  ;;  %7369 = vmatpush1.bf16.msra.mxu1 %v9664_v1  ;;  %v9750_v0 = vld [vmem:[%s14442_s1 + $0x568] ss:$16 sps:$4 sm:$0xff]   ;;  %v9755_v1 = vld [vmem:[%s14442_s1 + $0x584] ss:$16 sps:$4 sm:$0xff]  }
  0x78   :  { %6554 = vmatprep.subr.bf16.mxu0 %v9670_v2  ;;  %7370 = vmatprep.subr.bf16.mxu1 %v9673_v3  ;;  %v9758_v2 = vld [vmem:[%s14442_s1 + $0x58c] ss:$16 sps:$4 sm:$0xff]   ;;  %v9753_v3 = vld [vmem:[%s14442_s1 + $0x580] ss:$16 sps:$4 sm:$0xff]  }
  0x7b   :  { %6555 = vmatpush1.bf16.msra.mxu0 %v9668_v4  ;;  %7371 = vmatpush1.bf16.msra.mxu1 %v9671_v5  ;;  %v9756_v4 = vld [vmem:[%s14442_s1 + $0x588] ss:$16 sps:$4 sm:$0xff]   ;;  %v9761_v5 = vld [vmem:[%s14442_s1 + $0x5a4] ss:$16 sps:$4 sm:$0xff]  }
  0x7c   :  { %6556 = vmatprep.subr.bf16.mxu0 %v9677_v6  ;;  %7372 = vmatprep.subr.bf16.mxu1 %v9680_v7  ;;  %v9764_v6 = vld [vmem:[%s14442_s1 + $0x5ac] ss:$16 sps:$4 sm:$0xff]   ;;  %v9759_v7 = vld [vmem:[%s14442_s1 + $0x5a0] ss:$16 sps:$4 sm:$0xff]  }
  0x7f   :  { %6557 = vmatpush1.bf16.msra.mxu0 %v9675_v8  ;;  %7373 = vmatpush1.bf16.msra.mxu1 %v9678_v9  ;;  %v9762_v8 = vld [vmem:[%s14442_s1 + $0x5a8] ss:$16 sps:$4 sm:$0xff]   ;;  %v9768_v9 = vld [vmem:[%s14442_s1 + $0x5c4] ss:$16 sps:$4 sm:$0xff]  }
  0x80   :  { %6577 = vmatprep.subr.bf16.mxu0 %v9683_v10  ;;  %7393 = vmatprep.subr.bf16.mxu1 %v9686_v11  ;;  %v9771_v10 = vld [vmem:[%s14442_s1 + $0x5cc] ss:$16 sps:$4 sm:$0xff]   ;;  %v9766_v11 = vld [vmem:[%s14442_s1 + $0x5c0] ss:$16 sps:$4 sm:$0xff]  }
  0x82   :  { %6559 = vmatmul.mubr.bf16.vlgmr.msra.gmra.mrb[0].mxu0 %v8161_v12  ;;  %7375 = vmatmul.mubr.bf16.vlgmr.msra.gmra.mrb[0].mxu1 %v8161_v12  ;;  %v9769_v12 = vld [vmem:[%s14442_s1 + $0x5c8] ss:$16 sps:$4 sm:$0xff]  }
  0x83   :  { %6578 = vmatpush1.bf16.msra.mxu0 %v9681_v14  ;;  %7394 = vmatpush1.bf16.msra.mxu1 %v9684_v15  ;;  %v9778_v14 = vld [vmem:[%s14442_s1 + $0x5ec] ss:$16 sps:$4 sm:$0xff]   ;;  %v9773_v15 = vld [vmem:[%s14442_s1 + $0x5e0] ss:$16 sps:$4 sm:$0xff]  }
  0x84   :  { %6579 = vmatprep.subr.bf16.mxu0 %v9689_v16  ;;  %7395 = vmatprep.subr.bf16.mxu1 %v9692_v17  ;;  %v9776_v16 = vld [vmem:[%s14442_s1 + $0x5e8] ss:$16 sps:$4 sm:$0xff]   ;;  %v9781_v17 = vld [vmem:[%s14442_s1 + $0x604] ss:$16 sps:$4 sm:$0xff]  }
  0x85   :  { %6568 = vmatprep.mubr.bf16.mxu0 %v8194_v18  ;;  %7384 = vmatprep.mubr.bf16.mxu1 %v8194_v18  ;;  %v9784_v18 = vld [vmem:[%s14442_s1 + $0x60c] ss:$16 sps:$4 sm:$0xff]  }
  0x87   :  { %6580 = vmatpush1.bf16.msra.mxu0 %v9687_v19  ;;  %7396 = vmatpush1.bf16.msra.mxu1 %v9690_v20  ;;  %v8163_v19 = vcombine.low %v11519_v26, %v11524_v27  ;;  %v9779_v20 = vld [vmem:[%s14442_s1 + $0x600] ss:$16 sps:$4 sm:$0xff]   ;;  %v9788_v27 = vld [vmem:[%s14442_s1 + $0x628] ss:$16 sps:$4 sm:$0xff]  }
  0x88   :  { %6581 = vmatprep.subr.bf16.mxu0 %v9695_v21  ;;  %7397 = vmatprep.subr.bf16.mxu1 %v9698_v22  ;;  %v45_v21 = vld [vmem:[%s14443_s0 + $0x110] sm:$0xff]  ;;  %v9782_v22 = vld [vmem:[%s14442_s1 + $0x608] ss:$16 sps:$4 sm:$0xff]  }
  0x89   :  { %v9785_v26 = vld [vmem:[%s14442_s1 + $0x620] ss:$16 sps:$4 sm:$0xff]  }
  0x8a   :  { %6569 = vmatmul.mubr.bf16.gmra.mrb[4].mxu0 %v8193_v25  ;;  %7385 = vmatmul.mubr.bf16.gmra.mrb[4].mxu1 %v8193_v25  ;;  %v8196_v25 = vcombine.high %v45_v21, %v45_v21 }
  0x8b   :  { %6582 = vmatpush1.bf16.msra.mxu0 %v9693_v23  ;;  %7398 = vmatpush1.bf16.msra.mxu1 %v9696_v24  ;;  %v9787_v23 = vld [vmem:[%s14442_s1 + $0x624] ss:$16 sps:$4 sm:$0xff]   ;;  %v9790_v24 = vld [vmem:[%s14442_s1 + $0x62c] ss:$16 sps:$4 sm:$0xff]  }
  0x8c   :  { %6583 = vmatprep.subr.bf16.mxu0 %v9701_v28  ;;  %7399 = vmatprep.subr.bf16.mxu1 %v9704_v29  ;;  %v9793_v28 = vld [vmem:[%s14442_s1 + $0x644] ss:$16 sps:$4 sm:$0xff]   ;;  %v9796_v29 = vld [vmem:[%s14442_s1 + $0x64c] ss:$16 sps:$4 sm:$0xff]  }
  0x8d   :  { %6609 = vmatprep.mubr.bf16.mxu0 %v8164_v30  ;;  %7425 = vmatprep.mubr.bf16.mxu1 %v8164_v30  ;;  %v9791_v30 = vld [vmem:[%s14442_s1 + $0x640] ss:$16 sps:$4 sm:$0xff]  }
  0x8f   :  { %6584 = vmatpush1.bf16.msra.mxu0 %v9699_v31  ;;  %7400 = vmatpush1.bf16.msra.mxu1 %v9702_v32  ;;  %v8195_v31 = vcombine.low %v45_v21, %v45_v21  ;;  %v11725_v32 = vld [vmem:[%s14443_s0 + $0x18] sm:$0xff] }
  0x90   :  { %6585 = vmatprep.subr.bf16.mxu0 %v9707_v33  ;;  %7401 = vmatprep.subr.bf16.mxu1 %v9710_v34  ;;  %v11730_v33 = vld [vmem:[%s14443_s0 + $0x98] sm:$0xff] }
  0x91   :  { %v9794_v34 = vld [vmem:[%s14442_s1 + $0x648] ss:$16 sps:$4 sm:$0xff]   ;;  %v9876_v21 = vld [vmem:[%s14442_s1 + $0x7ec] ss:$16 sps:$4 sm:$0xff]  }
  0x93   :  { %6586 = vmatpush1.bf16.msra.mxu0 %v9705_v35  ;;  %7402 = vmatpush1.bf16.msra.mxu1 %v9708_v36  ;;  %v9799_v35 = vld [vmem:[%s14442_s1 + $0x664] ss:$16 sps:$4 sm:$0xff]   ;;  %v9802_v36 = vld [vmem:[%s14442_s1 + $0x66c] ss:$16 sps:$4 sm:$0xff]  }
  0x94   :  { %6587 = vmatprep.subr.bf16.mxu0 %v9713_v37  ;;  %7403 = vmatprep.subr.bf16.mxu1 %v9716_v38  ;;  %v8166_v37 = vcombine.high %v11725_v32, %v11730_v33  ;;  %v9797_v38 = vld [vmem:[%s14442_s1 + $0x660] ss:$16 sps:$4 sm:$0xff]  }
  0x97   :  { %6588 = vmatpush1.bf16.msra.mxu0 %v9711_v39  ;;  %7404 = vmatpush1.bf16.msra.mxu1 %v9714_v40  ;;  %v9800_v39 = vld [vmem:[%s14442_s1 + $0x668] ss:$16 sps:$4 sm:$0xff]   ;;  %v9805_v40 = vld [vmem:[%s14442_s1 + $0x684] ss:$16 sps:$4 sm:$0xff]  }
  0x98   :  { %6589 = vmatprep.subr.bf16.mxu0 %v9719_v41  ;;  %7405 = vmatprep.subr.bf16.mxu1 %v9722_v42  ;;  %v9808_v41 = vld [vmem:[%s14442_s1 + $0x68c] ss:$16 sps:$4 sm:$0xff]   ;;  %v9803_v42 = vld [vmem:[%s14442_s1 + $0x680] ss:$16 sps:$4 sm:$0xff]  }
  0x9b   :  { %6590 = vmatpush1.bf16.msra.mxu0 %v9717_v43  ;;  %7406 = vmatpush1.bf16.msra.mxu1 %v9720_v44  ;;  %v9806_v43 = vld [vmem:[%s14442_s1 + $0x688] ss:$16 sps:$4 sm:$0xff]   ;;  %v9811_v44 = vld [vmem:[%s14442_s1 + $0x6a4] ss:$16 sps:$4 sm:$0xff]  }
  0x9c   :  { %6591 = vmatprep.subr.bf16.mxu0 %v9725_v45  ;;  %7407 = vmatprep.subr.bf16.mxu1 %v9728_v46  ;;  %v9814_v45 = vld [vmem:[%s14442_s1 + $0x6ac] ss:$16 sps:$4 sm:$0xff]   ;;  %v9809_v46 = vld [vmem:[%s14442_s1 + $0x6a0] ss:$16 sps:$4 sm:$0xff]  }
  0x9f   :  { %6592 = vmatpush1.bf16.msra.mxu0 %v9723_v47  ;;  %7408 = vmatpush1.bf16.msra.mxu1 %v9726_v48  ;;  %v9812_v47 = vld [vmem:[%s14442_s1 + $0x6a8] ss:$16 sps:$4 sm:$0xff]   ;;  %v9817_v48 = vld [vmem:[%s14442_s1 + $0x6c4] ss:$16 sps:$4 sm:$0xff]  }
  0xa0   :  { %6593 = vmatprep.subr.bf16.mxu0 %v9731_v49  ;;  %7409 = vmatprep.subr.bf16.mxu1 %v9734_v50  ;;  %v9820_v49 = vld [vmem:[%s14442_s1 + $0x6cc] ss:$16 sps:$4 sm:$0xff]   ;;  %v9815_v50 = vld [vmem:[%s14442_s1 + $0x6c0] ss:$16 sps:$4 sm:$0xff]  }
  0xa3   :  { %6594 = vmatpush1.bf16.msra.mxu0 %v9729_v51  ;;  %7410 = vmatpush1.bf16.msra.mxu1 %v9732_v52  ;;  %v9818_v51 = vld [vmem:[%s14442_s1 + $0x6c8] ss:$16 sps:$4 sm:$0xff]   ;;  %v9823_v52 = vld [vmem:[%s14442_s1 + $0x6e4] ss:$16 sps:$4 sm:$0xff]  }
  0xa4   :  { %6595 = vmatprep.subr.bf16.mxu0 %v9737_v53  ;;  %7411 = vmatprep.subr.bf16.mxu1 %v9740_v54  ;;  %v9826_v53 = vld [vmem:[%s14442_s1 + $0x6ec] ss:$16 sps:$4 sm:$0xff]   ;;  %v9821_v54 = vld [vmem:[%s14442_s1 + $0x6e0] ss:$16 sps:$4 sm:$0xff]  }
  0xa7   :  { %6596 = vmatpush1.bf16.msra.mxu0 %v9735_v55  ;;  %7412 = vmatpush1.bf16.msra.mxu1 %v9738_v56  ;;  %v9824_v55 = vld [vmem:[%s14442_s1 + $0x6e8] ss:$16 sps:$4 sm:$0xff]   ;;  %v9829_v56 = vld [vmem:[%s14442_s1 + $0x704] ss:$16 sps:$4 sm:$0xff]  }
  0xa8   :  { %6597 = vmatprep.subr.bf16.mxu0 %v9743_v57  ;;  %7413 = vmatprep.subr.bf16.mxu1 %v9746_v58  ;;  %v9832_v57 = vld [vmem:[%s14442_s1 + $0x70c] ss:$16 sps:$4 sm:$0xff]   ;;  %v9827_v58 = vld [vmem:[%s14442_s1 + $0x700] ss:$16 sps:$4 sm:$0xff]  }
  0xab   :  { %6598 = vmatpush1.bf16.msra.mxu0 %v9741_v59  ;;  %7414 = vmatpush1.bf16.msra.mxu1 %v9744_v60  ;;  %v9830_v59 = vld [vmem:[%s14442_s1 + $0x708] ss:$16 sps:$4 sm:$0xff]   ;;  %v9835_v60 = vld [vmem:[%s14442_s1 + $0x724] ss:$16 sps:$4 sm:$0xff]  }
  0xac   :  { %6599 = vmatprep.subr.bf16.mxu0 %v9749_v61  ;;  %7415 = vmatprep.subr.bf16.mxu1 %v9752_v62  ;;  %v9838_v61 = vld [vmem:[%s14442_s1 + $0x72c] ss:$16 sps:$4 sm:$0xff]   ;;  %v9833_v62 = vld [vmem:[%s14442_s1 + $0x720] ss:$16 sps:$4 sm:$0xff]  }
  0xaf   :  { %6600 = vmatpush1.bf16.msra.mxu0 %v9747_v63  ;;  %7416 = vmatpush1.bf16.msra.mxu1 %v9750_v0  ;;  %v9836_v63 = vld [vmem:[%s14442_s1 + $0x728] ss:$16 sps:$4 sm:$0xff]   ;;  %v9841_v0 = vld [vmem:[%s14442_s1 + $0x744] ss:$16 sps:$4 sm:$0xff]  }
  0xb0   :  { %6601 = vmatprep.subr.bf16.mxu0 %v9755_v1  ;;  %7417 = vmatprep.subr.bf16.mxu1 %v9758_v2  ;;  %v9844_v1 = vld [vmem:[%s14442_s1 + $0x74c] ss:$16 sps:$4 sm:$0xff]   ;;  %v9839_v2 = vld [vmem:[%s14442_s1 + $0x740] ss:$16 sps:$4 sm:$0xff]  }
  0xb3   :  { %6602 = vmatpush1.bf16.msra.mxu0 %v9753_v3  ;;  %7418 = vmatpush1.bf16.msra.mxu1 %v9756_v4  ;;  %v9842_v3 = vld [vmem:[%s14442_s1 + $0x748] ss:$16 sps:$4 sm:$0xff]   ;;  %v9847_v4 = vld [vmem:[%s14442_s1 + $0x764] ss:$16 sps:$4 sm:$0xff]  }
  0xb4   :  { %6603 = vmatprep.subr.bf16.mxu0 %v9761_v5  ;;  %7419 = vmatprep.subr.bf16.mxu1 %v9764_v6  ;;  %v9850_v5 = vld [vmem:[%s14442_s1 + $0x76c] ss:$16 sps:$4 sm:$0xff]   ;;  %v9845_v6 = vld [vmem:[%s14442_s1 + $0x760] ss:$16 sps:$4 sm:$0xff]  }
  0xb7   :  { %6604 = vmatpush1.bf16.msra.mxu0 %v9759_v7  ;;  %7420 = vmatpush1.bf16.msra.mxu1 %v9762_v8  ;;  %v9848_v7 = vld [vmem:[%s14442_s1 + $0x768] ss:$16 sps:$4 sm:$0xff]   ;;  %v9853_v8 = vld [vmem:[%s14442_s1 + $0x784] ss:$16 sps:$4 sm:$0xff]  }
  0xb8   :  { %6605 = vmatprep.subr.bf16.mxu0 %v9768_v9  ;;  %7421 = vmatprep.subr.bf16.mxu1 %v9771_v10  ;;  %v9856_v9 = vld [vmem:[%s14442_s1 + $0x78c] ss:$16 sps:$4 sm:$0xff]   ;;  %v9851_v10 = vld [vmem:[%s14442_s1 + $0x780] ss:$16 sps:$4 sm:$0xff]  }
  0xbb   :  { %6606 = vmatpush1.bf16.msra.mxu0 %v9766_v11  ;;  %7422 = vmatpush1.bf16.msra.mxu1 %v9769_v12  ;;  %v9854_v11 = vld [vmem:[%s14442_s1 + $0x788] ss:$16 sps:$4 sm:$0xff]   ;;  %v9859_v12 = vld [vmem:[%s14442_s1 + $0x7a4] ss:$16 sps:$4 sm:$0xff]  }
  0xbc   :  { %6607 = vmatprep.subr.bf16.mxu0 %v9775_v13  ;;  %7423 = vmatprep.subr.bf16.mxu1 %v9778_v14  ;;  %v9862_v13 = vld [vmem:[%s14442_s1 + $0x7ac] ss:$16 sps:$4 sm:$0xff]   ;;  %v9857_v14 = vld [vmem:[%s14442_s1 + $0x7a0] ss:$16 sps:$4 sm:$0xff]  }
  0xbf   :  { %6608 = vmatpush1.bf16.msra.mxu0 %v9773_v15  ;;  %7424 = vmatpush1.bf16.msra.mxu1 %v9776_v16  ;;  %v9860_v15 = vld [vmem:[%s14442_s1 + $0x7a8] ss:$16 sps:$4 sm:$0xff]   ;;  %v9866_v16 = vld [vmem:[%s14442_s1 + $0x7c4] ss:$16 sps:$4 sm:$0xff]  }
  0xc0   :  { %6628 = vmatprep.subr.bf16.mxu0 %v9781_v17  ;;  %7444 = vmatprep.subr.bf16.mxu1 %v9784_v18  ;;  %v9869_v17 = vld [vmem:[%s14442_s1 + $0x7cc] ss:$16 sps:$4 sm:$0xff]   ;;  %v9864_v18 = vld [vmem:[%s14442_s1 + $0x7c0] ss:$16 sps:$4 sm:$0xff]  }
  0xc2   :  { %6610 = vmatmul.mubr.bf16.vlgmr.msra.gmra.mrb[0].mxu0 %v8163_v19  ;;  %7426 = vmatmul.mubr.bf16.vlgmr.msra.gmra.mrb[0].mxu1 %v8163_v19  ;;  %v9867_v19 = vld [vmem:[%s14442_s1 + $0x7c8] ss:$16 sps:$4 sm:$0xff]  }
  0xc3   :  { %6629 = vmatpush1.bf16.msra.mxu0 %v9779_v20  ;;  %7445 = vmatpush1.bf16.msra.mxu1 %v9782_v22  ;;  %v9873_v20 = vld [vmem:[%s14442_s1 + $0x7e4] ss:$16 sps:$4 sm:$0xff]   ;;  %v9871_v22 = vld [vmem:[%s14442_s1 + $0x7e0] ss:$16 sps:$4 sm:$0xff]  }
  0xc4   :  { %6630 = vmatprep.subr.bf16.mxu0 %v9787_v23  ;;  %7446 = vmatprep.subr.bf16.mxu1 %v9790_v24  ;;  %v9874_v23 = vld [vmem:[%s14442_s1 + $0x7e8] ss:$16 sps:$4 sm:$0xff]   ;;  %v9879_v24 = vld [vmem:[%s14442_s1 + $0x804] ss:$16 sps:$4 sm:$0xff]  }
  0xc5   :  { %6619 = vmatprep.mubr.bf16.mxu0 %v8196_v25  ;;  %7435 = vmatprep.mubr.bf16.mxu1 %v8196_v25  ;;  %v9882_v25 = vld [vmem:[%s14442_s1 + $0x80c] ss:$16 sps:$4 sm:$0xff]  }
  0xc7   :  { %6631 = vmatpush1.bf16.msra.mxu0 %v9785_v26  ;;  %7447 = vmatpush1.bf16.msra.mxu1 %v9788_v27  ;;  %v8165_v26 = vcombine.low %v11725_v32, %v11730_v33  ;;  %v9877_v27 = vld [vmem:[%s14442_s1 + $0x800] ss:$16 sps:$4 sm:$0xff]  }
  0xc8   :  { %6632 = vmatprep.subr.bf16.mxu0 %v9793_v28  ;;  %7448 = vmatprep.subr.bf16.mxu1 %v9796_v29  ;;  %v46_v28 = vld [vmem:[%s14443_s0 + $0x118] sm:$0xff]  ;;  %v9883_v33 = vld [vmem:[%s14442_s1 + $0x820] ss:$16 sps:$4 sm:$0xff]  }
  0xc9   :  { %v9880_v29 = vld [vmem:[%s14442_s1 + $0x808] ss:$16 sps:$4 sm:$0xff]   ;;  %v8198_v32 = vcombine.high %v46_v28, %v46_v28 }
  0xca   :  { %6620 = vmatmul.mubr.bf16.gmra.mrb[4].mxu0 %v8195_v31  ;;  %7436 = vmatmul.mubr.bf16.gmra.mrb[4].mxu1 %v8195_v31  ;;  %v9888_v31 = vld [vmem:[%s14442_s1 + $0x82c] ss:$16 sps:$4 sm:$0xff]  }
  0xcb   :  { %6633 = vmatpush1.bf16.msra.mxu0 %v9791_v30  ;;  %7449 = vmatpush1.bf16.msra.mxu1 %v9794_v34  ;;  %v9885_v30 = vld [vmem:[%s14442_s1 + $0x824] ss:$16 sps:$4 sm:$0xff]   ;;  %v9886_v34 = vld [vmem:[%s14442_s1 + $0x828] ss:$16 sps:$4 sm:$0xff]  }
  0xcc   :  { %6634 = vmatprep.subr.bf16.mxu0 %v9799_v35  ;;  %7450 = vmatprep.subr.bf16.mxu1 %v9802_v36  ;;  %v9891_v35 = vld [vmem:[%s14442_s1 + $0x844] ss:$16 sps:$4 sm:$0xff]   ;;  %v9894_v36 = vld [vmem:[%s14442_s1 + $0x84c] ss:$16 sps:$4 sm:$0xff]  }
  0xcd   :  { %6660 = vmatprep.mubr.bf16.mxu0 %v8166_v37  ;;  %7476 = vmatprep.mubr.bf16.mxu1 %v8166_v37  ;;  %v9889_v37 = vld [vmem:[%s14442_s1 + $0x840] ss:$16 sps:$4 sm:$0xff]  }
  0xcf   :  { %6635 = vmatpush1.bf16.msra.mxu0 %v9797_v38  ;;  %7451 = vmatpush1.bf16.msra.mxu1 %v9800_v39  ;;  %v11934_v38 = vld [vmem:[%s14443_s0 + $0x20] sm:$0xff]  ;;  %v8197_v39 = vcombine.low %v46_v28, %v46_v28  ;;  %v9974_v28 = vld [vmem:[%s14442_s1 + $0x9ec] ss:$16 sps:$4 sm:$0xff]  }
  0xd0   :  { %6636 = vmatprep.subr.bf16.mxu0 %v9805_v40  ;;  %7452 = vmatprep.subr.bf16.mxu1 %v9808_v41  ;;  %v11939_v40 = vld [vmem:[%s14443_s0 + $0xa0] sm:$0xff]  ;;  %v9892_v41 = vld [vmem:[%s14442_s1 + $0x848] ss:$16 sps:$4 sm:$0xff]  }
  0xd3   :  { %6637 = vmatpush1.bf16.msra.mxu0 %v9803_v42  ;;  %7453 = vmatpush1.bf16.msra.mxu1 %v9806_v43  ;;  %v9897_v42 = vld [vmem:[%s14442_s1 + $0x864] ss:$16 sps:$4 sm:$0xff]   ;;  %v9900_v43 = vld [vmem:[%s14442_s1 + $0x86c] ss:$16 sps:$4 sm:$0xff]  }
  0xd4   :  { %6638 = vmatprep.subr.bf16.mxu0 %v9811_v44  ;;  %7454 = vmatprep.subr.bf16.mxu1 %v9814_v45  ;;  %v8168_v44 = vcombine.high %v11934_v38, %v11939_v40  ;;  %v9895_v45 = vld [vmem:[%s14442_s1 + $0x860] ss:$16 sps:$4 sm:$0xff]  }
  0xd7   :  { %6639 = vmatpush1.bf16.msra.mxu0 %v9809_v46  ;;  %7455 = vmatpush1.bf16.msra.mxu1 %v9812_v47  ;;  %v9898_v46 = vld [vmem:[%s14442_s1 + $0x868] ss:$16 sps:$4 sm:$0xff]   ;;  %v9903_v47 = vld [vmem:[%s14442_s1 + $0x884] ss:$16 sps:$4 sm:$0xff]  }
  0xd8   :  { %6640 = vmatprep.subr.bf16.mxu0 %v9817_v48  ;;  %7456 = vmatprep.subr.bf16.mxu1 %v9820_v49  ;;  %v9906_v48 = vld [vmem:[%s14442_s1 + $0x88c] ss:$16 sps:$4 sm:$0xff]   ;;  %v9901_v49 = vld [vmem:[%s14442_s1 + $0x880] ss:$16 sps:$4 sm:$0xff]  }
  0xdb   :  { %6641 = vmatpush1.bf16.msra.mxu0 %v9815_v50  ;;  %7457 = vmatpush1.bf16.msra.mxu1 %v9818_v51  ;;  %v9904_v50 = vld [vmem:[%s14442_s1 + $0x888] ss:$16 sps:$4 sm:$0xff]   ;;  %v9909_v51 = vld [vmem:[%s14442_s1 + $0x8a4] ss:$16 sps:$4 sm:$0xff]  }
  0xdc   :  { %6642 = vmatprep.subr.bf16.mxu0 %v9823_v52  ;;  %7458 = vmatprep.subr.bf16.mxu1 %v9826_v53  ;;  %v9912_v52 = vld [vmem:[%s14442_s1 + $0x8ac] ss:$16 sps:$4 sm:$0xff]   ;;  %v9907_v53 = vld [vmem:[%s14442_s1 + $0x8a0] ss:$16 sps:$4 sm:$0xff]  }
  0xdf   :  { %6643 = vmatpush1.bf16.msra.mxu0 %v9821_v54  ;;  %7459 = vmatpush1.bf16.msra.mxu1 %v9824_v55  ;;  %v9910_v54 = vld [vmem:[%s14442_s1 + $0x8a8] ss:$16 sps:$4 sm:$0xff]   ;;  %v9915_v55 = vld [vmem:[%s14442_s1 + $0x8c4] ss:$16 sps:$4 sm:$0xff]  }
  0xe0   :  { %6644 = vmatprep.subr.bf16.mxu0 %v9829_v56  ;;  %7460 = vmatprep.subr.bf16.mxu1 %v9832_v57  ;;  %v9918_v56 = vld [vmem:[%s14442_s1 + $0x8cc] ss:$16 sps:$4 sm:$0xff]   ;;  %v9913_v57 = vld [vmem:[%s14442_s1 + $0x8c0] ss:$16 sps:$4 sm:$0xff]  }
  0xe3   :  { %6645 = vmatpush1.bf16.msra.mxu0 %v9827_v58  ;;  %7461 = vmatpush1.bf16.msra.mxu1 %v9830_v59  ;;  %v9916_v58 = vld [vmem:[%s14442_s1 + $0x8c8] ss:$16 sps:$4 sm:$0xff]   ;;  %v9921_v59 = vld [vmem:[%s14442_s1 + $0x8e4] ss:$16 sps:$4 sm:$0xff]  }
  0xe4   :  { %6646 = vmatprep.subr.bf16.mxu0 %v9835_v60  ;;  %7462 = vmatprep.subr.bf16.mxu1 %v9838_v61  ;;  %v9924_v60 = vld [vmem:[%s14442_s1 + $0x8ec] ss:$16 sps:$4 sm:$0xff]   ;;  %v9919_v61 = vld [vmem:[%s14442_s1 + $0x8e0] ss:$16 sps:$4 sm:$0xff]  }
  0xe7   :  { %6647 = vmatpush1.bf16.msra.mxu0 %v9833_v62  ;;  %7463 = vmatpush1.bf16.msra.mxu1 %v9836_v63  ;;  %v9922_v62 = vld [vmem:[%s14442_s1 + $0x8e8] ss:$16 sps:$4 sm:$0xff]   ;;  %v9927_v63 = vld [vmem:[%s14442_s1 + $0x904] ss:$16 sps:$4 sm:$0xff]  }
  0xe8   :  { %6648 = vmatprep.subr.bf16.mxu0 %v9841_v0  ;;  %7464 = vmatprep.subr.bf16.mxu1 %v9844_v1  ;;  %v9930_v0 = vld [vmem:[%s14442_s1 + $0x90c] ss:$16 sps:$4 sm:$0xff]   ;;  %v9925_v1 = vld [vmem:[%s14442_s1 + $0x900] ss:$16 sps:$4 sm:$0xff]  }
  0xeb   :  { %6649 = vmatpush1.bf16.msra.mxu0 %v9839_v2  ;;  %7465 = vmatpush1.bf16.msra.mxu1 %v9842_v3  ;;  %v9928_v2 = vld [vmem:[%s14442_s1 + $0x908] ss:$16 sps:$4 sm:$0xff]   ;;  %v9933_v3 = vld [vmem:[%s14442_s1 + $0x924] ss:$16 sps:$4 sm:$0xff]  }
  0xec   :  { %6650 = vmatprep.subr.bf16.mxu0 %v9847_v4  ;;  %7466 = vmatprep.subr.bf16.mxu1 %v9850_v5  ;;  %v9936_v4 = vld [vmem:[%s14442_s1 + $0x92c] ss:$16 sps:$4 sm:$0xff]   ;;  %v9931_v5 = vld [vmem:[%s14442_s1 + $0x920] ss:$16 sps:$4 sm:$0xff]  }
  0xef   :  { %6651 = vmatpush1.bf16.msra.mxu0 %v9845_v6  ;;  %7467 = vmatpush1.bf16.msra.mxu1 %v9848_v7  ;;  %v9934_v6 = vld [vmem:[%s14442_s1 + $0x928] ss:$16 sps:$4 sm:$0xff]   ;;  %v9939_v7 = vld [vmem:[%s14442_s1 + $0x944] ss:$16 sps:$4 sm:$0xff]  }
  0xf0   :  { %6652 = vmatprep.subr.bf16.mxu0 %v9853_v8  ;;  %7468 = vmatprep.subr.bf16.mxu1 %v9856_v9  ;;  %v9942_v8 = vld [vmem:[%s14442_s1 + $0x94c] ss:$16 sps:$4 sm:$0xff]   ;;  %v9937_v9 = vld [vmem:[%s14442_s1 + $0x940] ss:$16 sps:$4 sm:$0xff]  }
  0xf3   :  { %6653 = vmatpush1.bf16.msra.mxu0 %v9851_v10  ;;  %7469 = vmatpush1.bf16.msra.mxu1 %v9854_v11  ;;  %v9940_v10 = vld [vmem:[%s14442_s1 + $0x948] ss:$16 sps:$4 sm:$0xff]   ;;  %v9945_v11 = vld [vmem:[%s14442_s1 + $0x964] ss:$16 sps:$4 sm:$0xff]  }
  0xf4   :  { %6654 = vmatprep.subr.bf16.mxu0 %v9859_v12  ;;  %7470 = vmatprep.subr.bf16.mxu1 %v9862_v13  ;;  %v9948_v12 = vld [vmem:[%s14442_s1 + $0x96c] ss:$16 sps:$4 sm:$0xff]   ;;  %v9943_v13 = vld [vmem:[%s14442_s1 + $0x960] ss:$16 sps:$4 sm:$0xff]  }
  0xf7   :  { %6655 = vmatpush1.bf16.msra.mxu0 %v9857_v14  ;;  %7471 = vmatpush1.bf16.msra.mxu1 %v9860_v15  ;;  %v9946_v14 = vld [vmem:[%s14442_s1 + $0x968] ss:$16 sps:$4 sm:$0xff]   ;;  %v9951_v15 = vld [vmem:[%s14442_s1 + $0x984] ss:$16 sps:$4 sm:$0xff]  }
  0xf8   :  { %6656 = vmatprep.subr.bf16.mxu0 %v9866_v16  ;;  %7472 = vmatprep.subr.bf16.mxu1 %v9869_v17  ;;  %v9954_v16 = vld [vmem:[%s14442_s1 + $0x98c] ss:$16 sps:$4 sm:$0xff]   ;;  %v9949_v17 = vld [vmem:[%s14442_s1 + $0x980] ss:$16 sps:$4 sm:$0xff]  }
  0xfb   :  { %6657 = vmatpush1.bf16.msra.mxu0 %v9864_v18  ;;  %7473 = vmatpush1.bf16.msra.mxu1 %v9867_v19  ;;  %v9952_v18 = vld [vmem:[%s14442_s1 + $0x988] ss:$16 sps:$4 sm:$0xff]   ;;  %v9957_v19 = vld [vmem:[%s14442_s1 + $0x9a4] ss:$16 sps:$4 sm:$0xff]  }
  0xfc   :  { %6658 = vmatprep.subr.bf16.mxu0 %v9873_v20  ;;  %7474 = vmatprep.subr.bf16.mxu1 %v9876_v21  ;;  %v9960_v20 = vld [vmem:[%s14442_s1 + $0x9ac] ss:$16 sps:$4 sm:$0xff]   ;;  %v9955_v21 = vld [vmem:[%s14442_s1 + $0x9a0] ss:$16 sps:$4 sm:$0xff]  }
  0xff   :  { %6659 = vmatpush1.bf16.msra.mxu0 %v9871_v22  ;;  %7475 = vmatpush1.bf16.msra.mxu1 %v9874_v23  ;;  %v9958_v22 = vld [vmem:[%s14442_s1 + $0x9a8] ss:$16 sps:$4 sm:$0xff]   ;;  %v9964_v23 = vld [vmem:[%s14442_s1 + $0x9c4] ss:$16 sps:$4 sm:$0xff]  }
 0x100   :  { %6679 = vmatprep.subr.bf16.mxu0 %v9879_v24  ;;  %7495 = vmatprep.subr.bf16.mxu1 %v9882_v25  ;;  %v9967_v24 = vld [vmem:[%s14442_s1 + $0x9cc] ss:$16 sps:$4 sm:$0xff]   ;;  %v9962_v25 = vld [vmem:[%s14442_s1 + $0x9c0] ss:$16 sps:$4 sm:$0xff]  }
 0x102   :  { %6661 = vmatmul.mubr.bf16.vlgmr.msra.gmra.mrb[0].mxu0 %v8165_v26  ;;  %7477 = vmatmul.mubr.bf16.vlgmr.msra.gmra.mrb[0].mxu1 %v8165_v26  ;;  %v9965_v26 = vld [vmem:[%s14442_s1 + $0x9c8] ss:$16 sps:$4 sm:$0xff]  }
 0x103   :  { %6680 = vmatpush1.bf16.msra.mxu0 %v9877_v27  ;;  %7496 = vmatpush1.bf16.msra.mxu1 %v9880_v29  ;;  %v9971_v27 = vld [vmem:[%s14442_s1 + $0x9e4] ss:$16 sps:$4 sm:$0xff]   ;;  %v9969_v29 = vld [vmem:[%s14442_s1 + $0x9e0] ss:$16 sps:$4 sm:$0xff]  }
 0x104   :  { %6681 = vmatprep.subr.bf16.mxu0 %v9885_v30  ;;  %7497 = vmatprep.subr.bf16.mxu1 %v9888_v31  ;;  %v9972_v30 = vld [vmem:[%s14442_s1 + $0x9e8] ss:$16 sps:$4 sm:$0xff]   ;;  %v9977_v31 = vld [vmem:[%s14442_s1 + $0xa04] ss:$16 sps:$4 sm:$0xff]  }
 0x105   :  { %6670 = vmatprep.mubr.bf16.mxu0 %v8198_v32  ;;  %7486 = vmatprep.mubr.bf16.mxu1 %v8198_v32  ;;  %v9980_v32 = vld [vmem:[%s14442_s1 + $0xa0c] ss:$16 sps:$4 sm:$0xff]  }
 0x107   :  { %6682 = vmatpush1.bf16.msra.mxu0 %v9883_v33  ;;  %7498 = vmatpush1.bf16.msra.mxu1 %v9886_v34  ;;  %v47_v33 = vld [vmem:[%s14443_s0 + $0x120] sm:$0xff]  ;;  %v8167_v34 = vcombine.low %v11934_v38, %v11939_v40  ;;  %v9986_v38 = vld [vmem:[%s14442_s1 + $0xa2c] ss:$16 sps:$4 sm:$0xff]   ;;  %v9984_v40 = vld [vmem:[%s14442_s1 + $0xa28] ss:$16 sps:$4 sm:$0xff]  }
 0x108   :  { %6683 = vmatprep.subr.bf16.mxu0 %v9891_v35  ;;  %7499 = vmatprep.subr.bf16.mxu1 %v9894_v36  ;;  %v9975_v35 = vld [vmem:[%s14442_s1 + $0xa00] ss:$16 sps:$4 sm:$0xff]   ;;  %v9978_v36 = vld [vmem:[%s14442_s1 + $0xa08] ss:$16 sps:$4 sm:$0xff]  }
 0x10a   :  { %6671 = vmatmul.mubr.bf16.gmra.mrb[4].mxu0 %v8197_v39  ;;  %7487 = vmatmul.mubr.bf16.gmra.mrb[4].mxu1 %v8197_v39  ;;  %v9981_v39 = vld [vmem:[%s14442_s1 + $0xa20] ss:$16 sps:$4 sm:$0xff]  }
 0x10b   :  { %6684 = vmatpush1.bf16.msra.mxu0 %v9889_v37  ;;  %7500 = vmatpush1.bf16.msra.mxu1 %v9892_v41  ;;  %v9983_v37 = vld [vmem:[%s14442_s1 + $0xa24] ss:$16 sps:$4 sm:$0xff]   ;;  %v8200_v41 = vcombine.high %v47_v33, %v47_v33 }
 0x10c   :  { %6685 = vmatprep.subr.bf16.mxu0 %v9897_v42  ;;  %7501 = vmatprep.subr.bf16.mxu1 %v9900_v43  ;;  %v9989_v42 = vld [vmem:[%s14442_s1 + $0xa44] ss:$16 sps:$4 sm:$0xff]   ;;  %v9992_v43 = vld [vmem:[%s14442_s1 + $0xa4c] ss:$16 sps:$4 sm:$0xff]  }
 0x10d   :  { %6711 = vmatprep.mubr.bf16.mxu0 %v8168_v44  ;;  %7527 = vmatprep.mubr.bf16.mxu1 %v8168_v44  ;;  %v12140_v44 = vld [vmem:[%s14443_s0 + $0x28] sm:$0xff] }
 0x10f   :  { %6686 = vmatpush1.bf16.msra.mxu0 %v9895_v45  ;;  %7502 = vmatpush1.bf16.msra.mxu1 %v9898_v46  ;;  %v12145_v45 = vld [vmem:[%s14443_s0 + $0xa8] sm:$0xff]  ;;  %v8199_v46 = vcombine.low %v47_v33, %v47_v33 }
 0x110   :  { %6687 = vmatprep.subr.bf16.mxu0 %v9903_v47  ;;  %7503 = vmatprep.subr.bf16.mxu1 %v9906_v48  ;;  %v9987_v47 = vld [vmem:[%s14442_s1 + $0xa40] ss:$16 sps:$4 sm:$0xff]   ;;  %v9990_v48 = vld [vmem:[%s14442_s1 + $0xa48] ss:$16 sps:$4 sm:$0xff]  }
 0x111   :  { %v10063_v33 = vld [vmem:[%s14442_s1 + $0xbc8] ss:$16 sps:$4 sm:$0xff]  }
 0x113   :  { %6688 = vmatpush1.bf16.msra.mxu0 %v9901_v49  ;;  %7504 = vmatpush1.bf16.msra.mxu1 %v9904_v50  ;;  %v9995_v49 = vld [vmem:[%s14442_s1 + $0xa64] ss:$16 sps:$4 sm:$0xff]   ;;  %v9998_v50 = vld [vmem:[%s14442_s1 + $0xa6c] ss:$16 sps:$4 sm:$0xff]  }
 0x114   :  { %6689 = vmatprep.subr.bf16.mxu0 %v9909_v51  ;;  %7505 = vmatprep.subr.bf16.mxu1 %v9912_v52  ;;  %v8170_v51 = vcombine.high %v12140_v44, %v12145_v45  ;;  %v9993_v52 = vld [vmem:[%s14442_s1 + $0xa60] ss:$16 sps:$4 sm:$0xff]  }
 0x117   :  { %6690 = vmatpush1.bf16.msra.mxu0 %v9907_v53  ;;  %7506 = vmatpush1.bf16.msra.mxu1 %v9910_v54  ;;  %v9996_v53 = vld [vmem:[%s14442_s1 + $0xa68] ss:$16 sps:$4 sm:$0xff]   ;;  %v10001_v54 = vld [vmem:[%s14442_s1 + $0xa84] ss:$16 sps:$4 sm:$0xff]  }
 0x118   :  { %6691 = vmatprep.subr.bf16.mxu0 %v9915_v55  ;;  %7507 = vmatprep.subr.bf16.mxu1 %v9918_v56  ;;  %v10004_v55 = vld [vmem:[%s14442_s1 + $0xa8c] ss:$16 sps:$4 sm:$0xff]   ;;  %v9999_v56 = vld [vmem:[%s14442_s1 + $0xa80] ss:$16 sps:$4 sm:$0xff]  }
 0x11b   :  { %6692 = vmatpush1.bf16.msra.mxu0 %v9913_v57  ;;  %7508 = vmatpush1.bf16.msra.mxu1 %v9916_v58  ;;  %v10002_v57 = vld [vmem:[%s14442_s1 + $0xa88] ss:$16 sps:$4 sm:$0xff]   ;;  %v10007_v58 = vld [vmem:[%s14442_s1 + $0xaa4] ss:$16 sps:$4 sm:$0xff]  }
 0x11c   :  { %6693 = vmatprep.subr.bf16.mxu0 %v9921_v59  ;;  %7509 = vmatprep.subr.bf16.mxu1 %v9924_v60  ;;  %v10010_v59 = vld [vmem:[%s14442_s1 + $0xaac] ss:$16 sps:$4 sm:$0xff]   ;;  %v10005_v60 = vld [vmem:[%s14442_s1 + $0xaa0] ss:$16 sps:$4 sm:$0xff]  }
 0x11f   :  { %6694 = vmatpush1.bf16.msra.mxu0 %v9919_v61  ;;  %7510 = vmatpush1.bf16.msra.mxu1 %v9922_v62  ;;  %v10008_v61 = vld [vmem:[%s14442_s1 + $0xaa8] ss:$16 sps:$4 sm:$0xff]   ;;  %v10013_v62 = vld [vmem:[%s14442_s1 + $0xac4] ss:$16 sps:$4 sm:$0xff]  }
 0x120   :  { %6695 = vmatprep.subr.bf16.mxu0 %v9927_v63  ;;  %7511 = vmatprep.subr.bf16.mxu1 %v9930_v0  ;;  %v10016_v63 = vld [vmem:[%s14442_s1 + $0xacc] ss:$16 sps:$4 sm:$0xff]   ;;  %v10011_v0 = vld [vmem:[%s14442_s1 + $0xac0] ss:$16 sps:$4 sm:$0xff]  }
 0x123   :  { %6696 = vmatpush1.bf16.msra.mxu0 %v9925_v1  ;;  %7512 = vmatpush1.bf16.msra.mxu1 %v9928_v2  ;;  %v10014_v1 = vld [vmem:[%s14442_s1 + $0xac8] ss:$16 sps:$4 sm:$0xff]   ;;  %v10019_v2 = vld [vmem:[%s14442_s1 + $0xae4] ss:$16 sps:$4 sm:$0xff]  }
 0x124   :  { %6697 = vmatprep.subr.bf16.mxu0 %v9933_v3  ;;  %7513 = vmatprep.subr.bf16.mxu1 %v9936_v4  ;;  %v10022_v3 = vld [vmem:[%s14442_s1 + $0xaec] ss:$16 sps:$4 sm:$0xff]   ;;  %v10017_v4 = vld [vmem:[%s14442_s1 + $0xae0] ss:$16 sps:$4 sm:$0xff]  }
 0x127   :  { %6698 = vmatpush1.bf16.msra.mxu0 %v9931_v5  ;;  %7514 = vmatpush1.bf16.msra.mxu1 %v9934_v6  ;;  %v10020_v5 = vld [vmem:[%s14442_s1 + $0xae8] ss:$16 sps:$4 sm:$0xff]   ;;  %v10025_v6 = vld [vmem:[%s14442_s1 + $0xb04] ss:$16 sps:$4 sm:$0xff]  }
 0x128   :  { %6699 = vmatprep.subr.bf16.mxu0 %v9939_v7  ;;  %7515 = vmatprep.subr.bf16.mxu1 %v9942_v8  ;;  %v10028_v7 = vld [vmem:[%s14442_s1 + $0xb0c] ss:$16 sps:$4 sm:$0xff]   ;;  %v10023_v8 = vld [vmem:[%s14442_s1 + $0xb00] ss:$16 sps:$4 sm:$0xff]  }
 0x12b   :  { %6700 = vmatpush1.bf16.msra.mxu0 %v9937_v9  ;;  %7516 = vmatpush1.bf16.msra.mxu1 %v9940_v10  ;;  %v10026_v9 = vld [vmem:[%s14442_s1 + $0xb08] ss:$16 sps:$4 sm:$0xff]   ;;  %v10031_v10 = vld [vmem:[%s14442_s1 + $0xb24] ss:$16 sps:$4 sm:$0xff]  }
 0x12c   :  { %6701 = vmatprep.subr.bf16.mxu0 %v9945_v11  ;;  %7517 = vmatprep.subr.bf16.mxu1 %v9948_v12  ;;  %v10034_v11 = vld [vmem:[%s14442_s1 + $0xb2c] ss:$16 sps:$4 sm:$0xff]   ;;  %v10029_v12 = vld [vmem:[%s14442_s1 + $0xb20] ss:$16 sps:$4 sm:$0xff]  }
 0x12f   :  { %6702 = vmatpush1.bf16.msra.mxu0 %v9943_v13  ;;  %7518 = vmatpush1.bf16.msra.mxu1 %v9946_v14  ;;  %v10032_v13 = vld [vmem:[%s14442_s1 + $0xb28] ss:$16 sps:$4 sm:$0xff]   ;;  %v10037_v14 = vld [vmem:[%s14442_s1 + $0xb44] ss:$16 sps:$4 sm:$0xff]  }
 0x130   :  { %6703 = vmatprep.subr.bf16.mxu0 %v9951_v15  ;;  %7519 = vmatprep.subr.bf16.mxu1 %v9954_v16  ;;  %v10040_v15 = vld [vmem:[%s14442_s1 + $0xb4c] ss:$16 sps:$4 sm:$0xff]   ;;  %v10035_v16 = vld [vmem:[%s14442_s1 + $0xb40] ss:$16 sps:$4 sm:$0xff]  }
 0x133   :  { %6704 = vmatpush1.bf16.msra.mxu0 %v9949_v17  ;;  %7520 = vmatpush1.bf16.msra.mxu1 %v9952_v18  ;;  %v10038_v17 = vld [vmem:[%s14442_s1 + $0xb48] ss:$16 sps:$4 sm:$0xff]   ;;  %v10043_v18 = vld [vmem:[%s14442_s1 + $0xb64] ss:$16 sps:$4 sm:$0xff]  }
 0x134   :  { %6705 = vmatprep.subr.bf16.mxu0 %v9957_v19  ;;  %7521 = vmatprep.subr.bf16.mxu1 %v9960_v20  ;;  %v10046_v19 = vld [vmem:[%s14442_s1 + $0xb6c] ss:$16 sps:$4 sm:$0xff]   ;;  %v10041_v20 = vld [vmem:[%s14442_s1 + $0xb60] ss:$16 sps:$4 sm:$0xff]  }
 0x137   :  { %6706 = vmatpush1.bf16.msra.mxu0 %v9955_v21  ;;  %7522 = vmatpush1.bf16.msra.mxu1 %v9958_v22  ;;  %v10044_v21 = vld [vmem:[%s14442_s1 + $0xb68] ss:$16 sps:$4 sm:$0xff]   ;;  %v10049_v22 = vld [vmem:[%s14442_s1 + $0xb84] ss:$16 sps:$4 sm:$0xff]  }
 0x138   :  { %6707 = vmatprep.subr.bf16.mxu0 %v9964_v23  ;;  %7523 = vmatprep.subr.bf16.mxu1 %v9967_v24  ;;  %v10052_v23 = vld [vmem:[%s14442_s1 + $0xb8c] ss:$16 sps:$4 sm:$0xff]   ;;  %v10047_v24 = vld [vmem:[%s14442_s1 + $0xb80] ss:$16 sps:$4 sm:$0xff]  }
 0x13b   :  { %6708 = vmatpush1.bf16.msra.mxu0 %v9962_v25  ;;  %7524 = vmatpush1.bf16.msra.mxu1 %v9965_v26  ;;  %v10050_v25 = vld [vmem:[%s14442_s1 + $0xb88] ss:$16 sps:$4 sm:$0xff]   ;;  %v10055_v26 = vld [vmem:[%s14442_s1 + $0xba4] ss:$16 sps:$4 sm:$0xff]  }
 0x13c   :  { %6709 = vmatprep.subr.bf16.mxu0 %v9971_v27  ;;  %7525 = vmatprep.subr.bf16.mxu1 %v9974_v28  ;;  %v10058_v27 = vld [vmem:[%s14442_s1 + $0xbac] ss:$16 sps:$4 sm:$0xff]   ;;  %v10053_v28 = vld [vmem:[%s14442_s1 + $0xba0] ss:$16 sps:$4 sm:$0xff]  }
 0x13f   :  { %6710 = vmatpush1.bf16.msra.mxu0 %v9969_v29  ;;  %7526 = vmatpush1.bf16.msra.mxu1 %v9972_v30  ;;  %v10056_v29 = vld [vmem:[%s14442_s1 + $0xba8] ss:$16 sps:$4 sm:$0xff]   ;;  %v10062_v30 = vld [vmem:[%s14442_s1 + $0xbc4] ss:$16 sps:$4 sm:$0xff]  }
 0x140   :  { %6730 = vmatprep.subr.bf16.mxu0 %v9977_v31  ;;  %7546 = vmatprep.subr.bf16.mxu1 %v9980_v32  ;;  %v10065_v31 = vld [vmem:[%s14442_s1 + $0xbcc] ss:$16 sps:$4 sm:$0xff]   ;;  %v10060_v32 = vld [vmem:[%s14442_s1 + $0xbc0] ss:$16 sps:$4 sm:$0xff]  }
 0x142   :  { %6712 = vmatmul.mubr.bf16.vlgmr.msra.gmra.mrb[0].mxu0 %v8167_v34  ;;  %7528 = vmatmul.mubr.bf16.vlgmr.msra.gmra.mrb[0].mxu1 %v8167_v34  ;;  %v10069_v34 = vld [vmem:[%s14442_s1 + $0xbe4] ss:$16 sps:$4 sm:$0xff]  }
 0x143   :  { %6731 = vmatpush1.bf16.msra.mxu0 %v9975_v35  ;;  %7547 = vmatpush1.bf16.msra.mxu1 %v9978_v36  ;;  %v10072_v35 = vld [vmem:[%s14442_s1 + $0xbec] ss:$16 sps:$4 sm:$0xff]   ;;  %v10067_v36 = vld [vmem:[%s14442_s1 + $0xbe0] ss:$16 sps:$4 sm:$0xff]  }
 0x144   :  { %6732 = vmatprep.subr.bf16.mxu0 %v9983_v37  ;;  %7548 = vmatprep.subr.bf16.mxu1 %v9986_v38  ;;  %v10070_v37 = vld [vmem:[%s14442_s1 + $0xbe8] ss:$16 sps:$4 sm:$0xff]   ;;  %v10075_v38 = vld [vmem:[%s14442_s1 + $0xc04] ss:$16 sps:$4 sm:$0xff]  }
 0x145   :  { %6721 = vmatprep.mubr.bf16.mxu0 %v8200_v41  ;;  %7537 = vmatprep.mubr.bf16.mxu1 %v8200_v41  ;;  %v8169_v41 = vcombine.low %v12140_v44, %v12145_v45  ;;  %v10084_v44 = vld [vmem:[%s14442_s1 + $0xc2c] ss:$16 sps:$4 sm:$0xff]   ;;  %v10079_v45 = vld [vmem:[%s14442_s1 + $0xc20] ss:$16 sps:$4 sm:$0xff]  }
 0x147   :  { %6733 = vmatpush1.bf16.msra.mxu0 %v9981_v39  ;;  %7549 = vmatpush1.bf16.msra.mxu1 %v9984_v40  ;;  %v10078_v39 = vld [vmem:[%s14442_s1 + $0xc0c] ss:$16 sps:$4 sm:$0xff]  }
 0x148   :  { %6734 = vmatprep.subr.bf16.mxu0 %v9989_v42  ;;  %7550 = vmatprep.subr.bf16.mxu1 %v9992_v43  ;;  %v48_v40 = vld [vmem:[%s14443_s0 + $0x128] sm:$0xff]  ;;  %v10073_v42 = vld [vmem:[%s14442_s1 + $0xc00] ss:$16 sps:$4 sm:$0xff]  }
 0x149   :  { %v10076_v43 = vld [vmem:[%s14442_s1 + $0xc08] ss:$16 sps:$4 sm:$0xff]  }
 0x14a   :  { %6722 = vmatmul.mubr.bf16.gmra.mrb[4].mxu0 %v8199_v46  ;;  %7538 = vmatmul.mubr.bf16.gmra.mrb[4].mxu1 %v8199_v46  ;;  %v10081_v46 = vld [vmem:[%s14442_s1 + $0xc24] ss:$16 sps:$4 sm:$0xff]  }
 0x14b   :  { %6735 = vmatpush1.bf16.msra.mxu0 %v9987_v47  ;;  %7551 = vmatpush1.bf16.msra.mxu1 %v9990_v48  ;;  %v10082_v47 = vld [vmem:[%s14442_s1 + $0xc28] ss:$16 sps:$4 sm:$0xff]   ;;  %v8202_v48 = vcombine.high %v48_v40, %v48_v40 }
 0x14c   :  { %6736 = vmatprep.subr.bf16.mxu0 %v9995_v49  ;;  %7552 = vmatprep.subr.bf16.mxu1 %v9998_v50  ;;  %v10087_v49 = vld [vmem:[%s14442_s1 + $0xc44] ss:$16 sps:$4 sm:$0xff]   ;;  %v10090_v50 = vld [vmem:[%s14442_s1 + $0xc4c] ss:$16 sps:$4 sm:$0xff]  }
 0x14d   :  { %6762 = vmatprep.mubr.bf16.mxu0 %v8170_v51  ;;  %7578 = vmatprep.mubr.bf16.mxu1 %v8170_v51  ;;  %v12349_v51 = vld [vmem:[%s14443_s0 + $0x30] sm:$0xff] }
 0x14f   :  { %6737 = vmatpush1.bf16.msra.mxu0 %v9993_v52  ;;  %7553 = vmatpush1.bf16.msra.mxu1 %v9996_v53  ;;  %v12354_v52 = vld [vmem:[%s14443_s0 + $0xb0] sm:$0xff]  ;;  %v8201_v53 = vcombine.low %v48_v40, %v48_v40  ;;  %v10161_v40 = vld [vmem:[%s14442_s1 + $0xdc8] ss:$16 sps:$4 sm:$0xff]  }
 0x150   :  { %6738 = vmatprep.subr.bf16.mxu0 %v10001_v54  ;;  %7554 = vmatprep.subr.bf16.mxu1 %v10004_v55  ;;  %v10085_v54 = vld [vmem:[%s14442_s1 + $0xc40] ss:$16 sps:$4 sm:$0xff]   ;;  %v10088_v55 = vld [vmem:[%s14442_s1 + $0xc48] ss:$16 sps:$4 sm:$0xff]  }
 0x153   :  { %6739 = vmatpush1.bf16.msra.mxu0 %v9999_v56  ;;  %7555 = vmatpush1.bf16.msra.mxu1 %v10002_v57  ;;  %v10093_v56 = vld [vmem:[%s14442_s1 + $0xc64] ss:$16 sps:$4 sm:$0xff]   ;;  %v10096_v57 = vld [vmem:[%s14442_s1 + $0xc6c] ss:$16 sps:$4 sm:$0xff]  }
 0x154   :  { %6740 = vmatprep.subr.bf16.mxu0 %v10007_v58  ;;  %7556 = vmatprep.subr.bf16.mxu1 %v10010_v59  ;;  %v8172_v58 = vcombine.high %v12349_v51, %v12354_v52  ;;  %v10091_v59 = vld [vmem:[%s14442_s1 + $0xc60] ss:$16 sps:$4 sm:$0xff]  }
 0x157   :  { %6741 = vmatpush1.bf16.msra.mxu0 %v10005_v60  ;;  %7557 = vmatpush1.bf16.msra.mxu1 %v10008_v61  ;;  %v10094_v60 = vld [vmem:[%s14442_s1 + $0xc68] ss:$16 sps:$4 sm:$0xff]   ;;  %v10099_v61 = vld [vmem:[%s14442_s1 + $0xc84] ss:$16 sps:$4 sm:$0xff]  }
 0x158   :  { %6742 = vmatprep.subr.bf16.mxu0 %v10013_v62  ;;  %7558 = vmatprep.subr.bf16.mxu1 %v10016_v63  ;;  %v10102_v62 = vld [vmem:[%s14442_s1 + $0xc8c] ss:$16 sps:$4 sm:$0xff]   ;;  %v10097_v63 = vld [vmem:[%s14442_s1 + $0xc80] ss:$16 sps:$4 sm:$0xff]  }
 0x15b   :  { %6743 = vmatpush1.bf16.msra.mxu0 %v10011_v0  ;;  %7559 = vmatpush1.bf16.msra.mxu1 %v10014_v1  ;;  %v10100_v0 = vld [vmem:[%s14442_s1 + $0xc88] ss:$16 sps:$4 sm:$0xff]   ;;  %v10105_v1 = vld [vmem:[%s14442_s1 + $0xca4] ss:$16 sps:$4 sm:$0xff]  }
 0x15c   :  { %6744 = vmatprep.subr.bf16.mxu0 %v10019_v2  ;;  %7560 = vmatprep.subr.bf16.mxu1 %v10022_v3  ;;  %v10108_v2 = vld [vmem:[%s14442_s1 + $0xcac] ss:$16 sps:$4 sm:$0xff]   ;;  %v10103_v3 = vld [vmem:[%s14442_s1 + $0xca0] ss:$16 sps:$4 sm:$0xff]  }
 0x15f   :  { %6745 = vmatpush1.bf16.msra.mxu0 %v10017_v4  ;;  %7561 = vmatpush1.bf16.msra.mxu1 %v10020_v5  ;;  %v10106_v4 = vld [vmem:[%s14442_s1 + $0xca8] ss:$16 sps:$4 sm:$0xff]   ;;  %v10111_v5 = vld [vmem:[%s14442_s1 + $0xcc4] ss:$16 sps:$4 sm:$0xff]  }
 0x160   :  { %6746 = vmatprep.subr.bf16.mxu0 %v10025_v6  ;;  %7562 = vmatprep.subr.bf16.mxu1 %v10028_v7  ;;  %v10114_v6 = vld [vmem:[%s14442_s1 + $0xccc] ss:$16 sps:$4 sm:$0xff]   ;;  %v10109_v7 = vld [vmem:[%s14442_s1 + $0xcc0] ss:$16 sps:$4 sm:$0xff]  }
 0x163   :  { %6747 = vmatpush1.bf16.msra.mxu0 %v10023_v8  ;;  %7563 = vmatpush1.bf16.msra.mxu1 %v10026_v9  ;;  %v10112_v8 = vld [vmem:[%s14442_s1 + $0xcc8] ss:$16 sps:$4 sm:$0xff]   ;;  %v10117_v9 = vld [vmem:[%s14442_s1 + $0xce4] ss:$16 sps:$4 sm:$0xff]  }
 0x164   :  { %6748 = vmatprep.subr.bf16.mxu0 %v10031_v10  ;;  %7564 = vmatprep.subr.bf16.mxu1 %v10034_v11  ;;  %v10120_v10 = vld [vmem:[%s14442_s1 + $0xcec] ss:$16 sps:$4 sm:$0xff]   ;;  %v10115_v11 = vld [vmem:[%s14442_s1 + $0xce0] ss:$16 sps:$4 sm:$0xff]  }
 0x167   :  { %6749 = vmatpush1.bf16.msra.mxu0 %v10029_v12  ;;  %7565 = vmatpush1.bf16.msra.mxu1 %v10032_v13  ;;  %v10118_v12 = vld [vmem:[%s14442_s1 + $0xce8] ss:$16 sps:$4 sm:$0xff]   ;;  %v10123_v13 = vld [vmem:[%s14442_s1 + $0xd04] ss:$16 sps:$4 sm:$0xff]  }
 0x168   :  { %6750 = vmatprep.subr.bf16.mxu0 %v10037_v14  ;;  %7566 = vmatprep.subr.bf16.mxu1 %v10040_v15  ;;  %v10126_v14 = vld [vmem:[%s14442_s1 + $0xd0c] ss:$16 sps:$4 sm:$0xff]   ;;  %v10121_v15 = vld [vmem:[%s14442_s1 + $0xd00] ss:$16 sps:$4 sm:$0xff]  }
 0x16b   :  { %6751 = vmatpush1.bf16.msra.mxu0 %v10035_v16  ;;  %7567 = vmatpush1.bf16.msra.mxu1 %v10038_v17  ;;  %v10124_v16 = vld [vmem:[%s14442_s1 + $0xd08] ss:$16 sps:$4 sm:$0xff]   ;;  %v10129_v17 = vld [vmem:[%s14442_s1 + $0xd24] ss:$16 sps:$4 sm:$0xff]  }
 0x16c   :  { %6752 = vmatprep.subr.bf16.mxu0 %v10043_v18  ;;  %7568 = vmatprep.subr.bf16.mxu1 %v10046_v19  ;;  %v10132_v18 = vld [vmem:[%s14442_s1 + $0xd2c] ss:$16 sps:$4 sm:$0xff]   ;;  %v10127_v19 = vld [vmem:[%s14442_s1 + $0xd20] ss:$16 sps:$4 sm:$0xff]  }
 0x16f   :  { %6753 = vmatpush1.bf16.msra.mxu0 %v10041_v20  ;;  %7569 = vmatpush1.bf16.msra.mxu1 %v10044_v21  ;;  %v10130_v20 = vld [vmem:[%s14442_s1 + $0xd28] ss:$16 sps:$4 sm:$0xff]   ;;  %v10135_v21 = vld [vmem:[%s14442_s1 + $0xd44] ss:$16 sps:$4 sm:$0xff]  }
 0x170   :  { %6754 = vmatprep.subr.bf16.mxu0 %v10049_v22  ;;  %7570 = vmatprep.subr.bf16.mxu1 %v10052_v23  ;;  %v10138_v22 = vld [vmem:[%s14442_s1 + $0xd4c] ss:$16 sps:$4 sm:$0xff]   ;;  %v10133_v23 = vld [vmem:[%s14442_s1 + $0xd40] ss:$16 sps:$4 sm:$0xff]  }
 0x173   :  { %6755 = vmatpush1.bf16.msra.mxu0 %v10047_v24  ;;  %7571 = vmatpush1.bf16.msra.mxu1 %v10050_v25  ;;  %v10136_v24 = vld [vmem:[%s14442_s1 + $0xd48] ss:$16 sps:$4 sm:$0xff]   ;;  %v10141_v25 = vld [vmem:[%s14442_s1 + $0xd64] ss:$16 sps:$4 sm:$0xff]  }
 0x174   :  { %6756 = vmatprep.subr.bf16.mxu0 %v10055_v26  ;;  %7572 = vmatprep.subr.bf16.mxu1 %v10058_v27  ;;  %v10144_v26 = vld [vmem:[%s14442_s1 + $0xd6c] ss:$16 sps:$4 sm:$0xff]   ;;  %v10139_v27 = vld [vmem:[%s14442_s1 + $0xd60] ss:$16 sps:$4 sm:$0xff]  }
 0x177   :  { %6757 = vmatpush1.bf16.msra.mxu0 %v10053_v28  ;;  %7573 = vmatpush1.bf16.msra.mxu1 %v10056_v29  ;;  %v10142_v28 = vld [vmem:[%s14442_s1 + $0xd68] ss:$16 sps:$4 sm:$0xff]   ;;  %v10147_v29 = vld [vmem:[%s14442_s1 + $0xd84] ss:$16 sps:$4 sm:$0xff]  }
 0x178   :  { %6758 = vmatprep.subr.bf16.mxu0 %v10062_v30  ;;  %7574 = vmatprep.subr.bf16.mxu1 %v10065_v31  ;;  %v10150_v30 = vld [vmem:[%s14442_s1 + $0xd8c] ss:$16 sps:$4 sm:$0xff]   ;;  %v10145_v31 = vld [vmem:[%s14442_s1 + $0xd80] ss:$16 sps:$4 sm:$0xff]  }
 0x17b   :  { %6759 = vmatpush1.bf16.msra.mxu0 %v10060_v32  ;;  %7575 = vmatpush1.bf16.msra.mxu1 %v10063_v33  ;;  %v10148_v32 = vld [vmem:[%s14442_s1 + $0xd88] ss:$16 sps:$4 sm:$0xff]   ;;  %v10153_v33 = vld [vmem:[%s14442_s1 + $0xda4] ss:$16 sps:$4 sm:$0xff]  }
 0x17c   :  { %6760 = vmatprep.subr.bf16.mxu0 %v10069_v34  ;;  %7576 = vmatprep.subr.bf16.mxu1 %v10072_v35  ;;  %v10156_v34 = vld [vmem:[%s14442_s1 + $0xdac] ss:$16 sps:$4 sm:$0xff]   ;;  %v10151_v35 = vld [vmem:[%s14442_s1 + $0xda0] ss:$16 sps:$4 sm:$0xff]  }
 0x17f   :  { %6761 = vmatpush1.bf16.msra.mxu0 %v10067_v36  ;;  %7577 = vmatpush1.bf16.msra.mxu1 %v10070_v37  ;;  %v10154_v36 = vld [vmem:[%s14442_s1 + $0xda8] ss:$16 sps:$4 sm:$0xff]   ;;  %v10160_v37 = vld [vmem:[%s14442_s1 + $0xdc4] ss:$16 sps:$4 sm:$0xff]  }
 0x180   :  { %6781 = vmatprep.subr.bf16.mxu0 %v10075_v38  ;;  %7597 = vmatprep.subr.bf16.mxu1 %v10078_v39  ;;  %v10163_v38 = vld [vmem:[%s14442_s1 + $0xdcc] ss:$16 sps:$4 sm:$0xff]   ;;  %v10158_v39 = vld [vmem:[%s14442_s1 + $0xdc0] ss:$16 sps:$4 sm:$0xff]  }
 0x182   :  { %6763 = vmatmul.mubr.bf16.vlgmr.msra.gmra.mrb[0].mxu0 %v8169_v41  ;;  %7579 = vmatmul.mubr.bf16.vlgmr.msra.gmra.mrb[0].mxu1 %v8169_v41  ;;  %v10167_v41 = vld [vmem:[%s14442_s1 + $0xde4] ss:$16 sps:$4 sm:$0xff]  }
 0x183   :  { %6782 = vmatpush1.bf16.msra.mxu0 %v10073_v42  ;;  %7598 = vmatpush1.bf16.msra.mxu1 %v10076_v43  ;;  %v10170_v42 = vld [vmem:[%s14442_s1 + $0xdec] ss:$16 sps:$4 sm:$0xff]   ;;  %v10165_v43 = vld [vmem:[%s14442_s1 + $0xde0] ss:$16 sps:$4 sm:$0xff]  }
 0x184   :  { %6783 = vmatprep.subr.bf16.mxu0 %v10081_v46  ;;  %7599 = vmatprep.subr.bf16.mxu1 %v10084_v44  ;;  %v10168_v46 = vld [vmem:[%s14442_s1 + $0xde8] ss:$16 sps:$4 sm:$0xff]   ;;  %v10173_v44 = vld [vmem:[%s14442_s1 + $0xe04] ss:$16 sps:$4 sm:$0xff]  }
 0x185   :  { %6772 = vmatprep.mubr.bf16.mxu0 %v8202_v48  ;;  %7588 = vmatprep.mubr.bf16.mxu1 %v8202_v48  ;;  %v8171_v48 = vcombine.low %v12349_v51, %v12354_v52  ;;  %v10182_v51 = vld [vmem:[%s14442_s1 + $0xe2c] ss:$16 sps:$4 sm:$0xff]   ;;  %v10177_v52 = vld [vmem:[%s14442_s1 + $0xe20] ss:$16 sps:$4 sm:$0xff]  }
 0x187   :  { %6784 = vmatpush1.bf16.msra.mxu0 %v10079_v45  ;;  %7600 = vmatpush1.bf16.msra.mxu1 %v10082_v47  ;;  %v10176_v45 = vld [vmem:[%s14442_s1 + $0xe0c] ss:$16 sps:$4 sm:$0xff]   ;;  %v49_v47 = vld [vmem:[%s14443_s0 + $0x130] sm:$0xff] }
 0x188   :  { %6785 = vmatprep.subr.bf16.mxu0 %v10087_v49  ;;  %7601 = vmatprep.subr.bf16.mxu1 %v10090_v50  ;;  %v10171_v49 = vld [vmem:[%s14442_s1 + $0xe00] ss:$16 sps:$4 sm:$0xff]   ;;  %v10174_v50 = vld [vmem:[%s14442_s1 + $0xe08] ss:$16 sps:$4 sm:$0xff]  }
 0x18a   :  { %6773 = vmatmul.mubr.bf16.gmra.mrb[4].mxu0 %v8201_v53  ;;  %7589 = vmatmul.mubr.bf16.gmra.mrb[4].mxu1 %v8201_v53  ;;  %v10179_v53 = vld [vmem:[%s14442_s1 + $0xe24] ss:$16 sps:$4 sm:$0xff]  }
 0x18b   :  { %6786 = vmatpush1.bf16.msra.mxu0 %v10085_v54  ;;  %7602 = vmatpush1.bf16.msra.mxu1 %v10088_v55  ;;  %v10180_v54 = vld [vmem:[%s14442_s1 + $0xe28] ss:$16 sps:$4 sm:$0xff]   ;;  %v8204_v55 = vcombine.high %v49_v47, %v49_v47 }
 0x18c   :  { %6787 = vmatprep.subr.bf16.mxu0 %v10093_v56  ;;  %7603 = vmatprep.subr.bf16.mxu1 %v10096_v57  ;;  %v10185_v56 = vld [vmem:[%s14442_s1 + $0xe44] ss:$16 sps:$4 sm:$0xff]   ;;  %v10188_v57 = vld [vmem:[%s14442_s1 + $0xe4c] ss:$16 sps:$4 sm:$0xff]  }
 0x18d   :  { %6813 = vmatprep.mubr.bf16.mxu0 %v8172_v58  ;;  %7629 = vmatprep.mubr.bf16.mxu1 %v8172_v58  ;;  %v12558_v58 = vld [vmem:[%s14443_s0 + $0x38] sm:$0xff] }
 0x18f   :  { %6788 = vmatpush1.bf16.msra.mxu0 %v10091_v59  ;;  %7604 = vmatpush1.bf16.msra.mxu1 %v10094_v60  ;;  %v12563_v59 = vld [vmem:[%s14443_s0 + $0xb8] sm:$0xff]  ;;  %v8203_v60 = vcombine.low %v49_v47, %v49_v47 }
 0x190   :  { %6789 = vmatprep.subr.bf16.mxu0 %v10099_v61  ;;  %7605 = vmatprep.subr.bf16.mxu1 %v10102_v62  ;;  %v10183_v61 = vld [vmem:[%s14442_s1 + $0xe40] ss:$16 sps:$4 sm:$0xff]   ;;  %v10186_v62 = vld [vmem:[%s14442_s1 + $0xe48] ss:$16 sps:$4 sm:$0xff]  }
 0x191   :  { %v10259_v47 = vld [vmem:[%s14442_s1 + $0xfc8] ss:$16 sps:$4 sm:$0xff]  }
 0x193   :  { %6790 = vmatpush1.bf16.msra.mxu0 %v10097_v63  ;;  %7606 = vmatpush1.bf16.msra.mxu1 %v10100_v0  ;;  %v10191_v63 = vld [vmem:[%s14442_s1 + $0xe64] ss:$16 sps:$4 sm:$0xff]   ;;  %v10194_v0 = vld [vmem:[%s14442_s1 + $0xe6c] ss:$16 sps:$4 sm:$0xff]  }
 0x194   :  { %6791 = vmatprep.subr.bf16.mxu0 %v10105_v1  ;;  %7607 = vmatprep.subr.bf16.mxu1 %v10108_v2  ;;  %v8174_v1 = vcombine.high %v12558_v58, %v12563_v59  ;;  %v10189_v2 = vld [vmem:[%s14442_s1 + $0xe60] ss:$16 sps:$4 sm:$0xff]  }
 0x197   :  { %6792 = vmatpush1.bf16.msra.mxu0 %v10103_v3  ;;  %7608 = vmatpush1.bf16.msra.mxu1 %v10106_v4  ;;  %v10192_v3 = vld [vmem:[%s14442_s1 + $0xe68] ss:$16 sps:$4 sm:$0xff]   ;;  %v10197_v4 = vld [vmem:[%s14442_s1 + $0xe84] ss:$16 sps:$4 sm:$0xff]  }
 0x198   :  { %6793 = vmatprep.subr.bf16.mxu0 %v10111_v5  ;;  %7609 = vmatprep.subr.bf16.mxu1 %v10114_v6  ;;  %v10200_v5 = vld [vmem:[%s14442_s1 + $0xe8c] ss:$16 sps:$4 sm:$0xff]   ;;  %v10195_v6 = vld [vmem:[%s14442_s1 + $0xe80] ss:$16 sps:$4 sm:$0xff]  }
 0x19b   :  { %6794 = vmatpush1.bf16.msra.mxu0 %v10109_v7  ;;  %7610 = vmatpush1.bf16.msra.mxu1 %v10112_v8  ;;  %v10198_v7 = vld [vmem:[%s14442_s1 + $0xe88] ss:$16 sps:$4 sm:$0xff]   ;;  %v10203_v8 = vld [vmem:[%s14442_s1 + $0xea4] ss:$16 sps:$4 sm:$0xff]  }
 0x19c   :  { %6795 = vmatprep.subr.bf16.mxu0 %v10117_v9  ;;  %7611 = vmatprep.subr.bf16.mxu1 %v10120_v10  ;;  %v10206_v9 = vld [vmem:[%s14442_s1 + $0xeac] ss:$16 sps:$4 sm:$0xff]   ;;  %v10201_v10 = vld [vmem:[%s14442_s1 + $0xea0] ss:$16 sps:$4 sm:$0xff]  }
 0x19f   :  { %6796 = vmatpush1.bf16.msra.mxu0 %v10115_v11  ;;  %7612 = vmatpush1.bf16.msra.mxu1 %v10118_v12  ;;  %v10204_v11 = vld [vmem:[%s14442_s1 + $0xea8] ss:$16 sps:$4 sm:$0xff]   ;;  %v10209_v12 = vld [vmem:[%s14442_s1 + $0xec4] ss:$16 sps:$4 sm:$0xff]  }
 0x1a0   :  { %6797 = vmatprep.subr.bf16.mxu0 %v10123_v13  ;;  %7613 = vmatprep.subr.bf16.mxu1 %v10126_v14  ;;  %v10212_v13 = vld [vmem:[%s14442_s1 + $0xecc] ss:$16 sps:$4 sm:$0xff]   ;;  %v10207_v14 = vld [vmem:[%s14442_s1 + $0xec0] ss:$16 sps:$4 sm:$0xff]  }
 0x1a3   :  { %6798 = vmatpush1.bf16.msra.mxu0 %v10121_v15  ;;  %7614 = vmatpush1.bf16.msra.mxu1 %v10124_v16  ;;  %v10210_v15 = vld [vmem:[%s14442_s1 + $0xec8] ss:$16 sps:$4 sm:$0xff]   ;;  %v10215_v16 = vld [vmem:[%s14442_s1 + $0xee4] ss:$16 sps:$4 sm:$0xff]  }
 0x1a4   :  { %6799 = vmatprep.subr.bf16.mxu0 %v10129_v17  ;;  %7615 = vmatprep.subr.bf16.mxu1 %v10132_v18  ;;  %v10218_v17 = vld [vmem:[%s14442_s1 + $0xeec] ss:$16 sps:$4 sm:$0xff]   ;;  %v10213_v18 = vld [vmem:[%s14442_s1 + $0xee0] ss:$16 sps:$4 sm:$0xff]  }
 0x1a7   :  { %6800 = vmatpush1.bf16.msra.mxu0 %v10127_v19  ;;  %7616 = vmatpush1.bf16.msra.mxu1 %v10130_v20  ;;  %v10216_v19 = vld [vmem:[%s14442_s1 + $0xee8] ss:$16 sps:$4 sm:$0xff]   ;;  %v10221_v20 = vld [vmem:[%s14442_s1 + $0xf04] ss:$16 sps:$4 sm:$0xff]  }
 0x1a8   :  { %6801 = vmatprep.subr.bf16.mxu0 %v10135_v21  ;;  %7617 = vmatprep.subr.bf16.mxu1 %v10138_v22  ;;  %v10224_v21 = vld [vmem:[%s14442_s1 + $0xf0c] ss:$16 sps:$4 sm:$0xff]   ;;  %v10219_v22 = vld [vmem:[%s14442_s1 + $0xf00] ss:$16 sps:$4 sm:$0xff]  }
 0x1ab   :  { %6802 = vmatpush1.bf16.msra.mxu0 %v10133_v23  ;;  %7618 = vmatpush1.bf16.msra.mxu1 %v10136_v24  ;;  %v10222_v23 = vld [vmem:[%s14442_s1 + $0xf08] ss:$16 sps:$4 sm:$0xff]   ;;  %v10227_v24 = vld [vmem:[%s14442_s1 + $0xf24] ss:$16 sps:$4 sm:$0xff]  }
 0x1ac   :  { %6803 = vmatprep.subr.bf16.mxu0 %v10141_v25  ;;  %7619 = vmatprep.subr.bf16.mxu1 %v10144_v26  ;;  %v10230_v25 = vld [vmem:[%s14442_s1 + $0xf2c] ss:$16 sps:$4 sm:$0xff]   ;;  %v10225_v26 = vld [vmem:[%s14442_s1 + $0xf20] ss:$16 sps:$4 sm:$0xff]  }
 0x1af   :  { %6804 = vmatpush1.bf16.msra.mxu0 %v10139_v27  ;;  %7620 = vmatpush1.bf16.msra.mxu1 %v10142_v28  ;;  %v10228_v27 = vld [vmem:[%s14442_s1 + $0xf28] ss:$16 sps:$4 sm:$0xff]   ;;  %v10233_v28 = vld [vmem:[%s14442_s1 + $0xf44] ss:$16 sps:$4 sm:$0xff]  }
 0x1b0   :  { %6805 = vmatprep.subr.bf16.mxu0 %v10147_v29  ;;  %7621 = vmatprep.subr.bf16.mxu1 %v10150_v30  ;;  %v10236_v29 = vld [vmem:[%s14442_s1 + $0xf4c] ss:$16 sps:$4 sm:$0xff]   ;;  %v10231_v30 = vld [vmem:[%s14442_s1 + $0xf40] ss:$16 sps:$4 sm:$0xff]  }
 0x1b3   :  { %6806 = vmatpush1.bf16.msra.mxu0 %v10145_v31  ;;  %7622 = vmatpush1.bf16.msra.mxu1 %v10148_v32  ;;  %v10234_v31 = vld [vmem:[%s14442_s1 + $0xf48] ss:$16 sps:$4 sm:$0xff]   ;;  %v10239_v32 = vld [vmem:[%s14442_s1 + $0xf64] ss:$16 sps:$4 sm:$0xff]  }
 0x1b4   :  { %6807 = vmatprep.subr.bf16.mxu0 %v10153_v33  ;;  %7623 = vmatprep.subr.bf16.mxu1 %v10156_v34  ;;  %v10242_v33 = vld [vmem:[%s14442_s1 + $0xf6c] ss:$16 sps:$4 sm:$0xff]   ;;  %v10237_v34 = vld [vmem:[%s14442_s1 + $0xf60] ss:$16 sps:$4 sm:$0xff]  }
 0x1b7   :  { %6808 = vmatpush1.bf16.msra.mxu0 %v10151_v35  ;;  %7624 = vmatpush1.bf16.msra.mxu1 %v10154_v36  ;;  %v10240_v35 = vld [vmem:[%s14442_s1 + $0xf68] ss:$16 sps:$4 sm:$0xff]   ;;  %v10245_v36 = vld [vmem:[%s14442_s1 + $0xf84] ss:$16 sps:$4 sm:$0xff]  }
 0x1b8   :  { %6809 = vmatprep.subr.bf16.mxu0 %v10160_v37  ;;  %7625 = vmatprep.subr.bf16.mxu1 %v10163_v38  ;;  %v10248_v37 = vld [vmem:[%s14442_s1 + $0xf8c] ss:$16 sps:$4 sm:$0xff]   ;;  %v10243_v38 = vld [vmem:[%s14442_s1 + $0xf80] ss:$16 sps:$4 sm:$0xff]  }
 0x1bb   :  { %6810 = vmatpush1.bf16.msra.mxu0 %v10158_v39  ;;  %7626 = vmatpush1.bf16.msra.mxu1 %v10161_v40  ;;  %v10246_v39 = vld [vmem:[%s14442_s1 + $0xf88] ss:$16 sps:$4 sm:$0xff]   ;;  %v10251_v40 = vld [vmem:[%s14442_s1 + $0xfa4] ss:$16 sps:$4 sm:$0xff]  }
 0x1bc   :  { %6811 = vmatprep.subr.bf16.mxu0 %v10167_v41  ;;  %7627 = vmatprep.subr.bf16.mxu1 %v10170_v42  ;;  %v10254_v41 = vld [vmem:[%s14442_s1 + $0xfac] ss:$16 sps:$4 sm:$0xff]   ;;  %v10249_v42 = vld [vmem:[%s14442_s1 + $0xfa0] ss:$16 sps:$4 sm:$0xff]  }
 0x1bf   :  { %6812 = vmatpush1.bf16.msra.mxu0 %v10165_v43  ;;  %7628 = vmatpush1.bf16.msra.mxu1 %v10168_v46  ;;  %v10252_v43 = vld [vmem:[%s14442_s1 + $0xfa8] ss:$16 sps:$4 sm:$0xff]   ;;  %v10258_v46 = vld [vmem:[%s14442_s1 + $0xfc4] ss:$16 sps:$4 sm:$0xff]  }
 0x1c0   :  { %6832 = vmatprep.subr.bf16.mxu0 %v10173_v44  ;;  %7648 = vmatprep.subr.bf16.mxu1 %v10176_v45  ;;  %v10261_v44 = vld [vmem:[%s14442_s1 + $0xfcc] ss:$16 sps:$4 sm:$0xff]   ;;  %v10256_v45 = vld [vmem:[%s14442_s1 + $0xfc0] ss:$16 sps:$4 sm:$0xff]  }
 0x1c2   :  { %6814 = vmatmul.mubr.bf16.vlgmr.msra.gmra.mrb[0].mxu0 %v8171_v48  ;;  %7630 = vmatmul.mubr.bf16.vlgmr.msra.gmra.mrb[0].mxu1 %v8171_v48  ;;  %v10265_v48 = vld [vmem:[%s14442_s1 + $0xfe4] ss:$16 sps:$4 sm:$0xff]  }
 0x1c3   :  { %6833 = vmatpush1.bf16.msra.mxu0 %v10171_v49  ;;  %7649 = vmatpush1.bf16.msra.mxu1 %v10174_v50  ;;  %v10268_v49 = vld [vmem:[%s14442_s1 + $0xfec] ss:$16 sps:$4 sm:$0xff]   ;;  %v10263_v50 = vld [vmem:[%s14442_s1 + $0xfe0] ss:$16 sps:$4 sm:$0xff]  }
 0x1c4   :  { %6834 = vmatprep.subr.bf16.mxu0 %v10179_v53  ;;  %7650 = vmatprep.subr.bf16.mxu1 %v10182_v51  ;;  %v10266_v53 = vld [vmem:[%s14442_s1 + $0xfe8] ss:$16 sps:$4 sm:$0xff]   ;;  %v10271_v51 = vld [vmem:[%s14442_s1 + $0x1004] ss:$16 sps:$4 sm:$0xff]  }
 0x1c5   :  { %6823 = vmatprep.mubr.bf16.mxu0 %v8204_v55  ;;  %7639 = vmatprep.mubr.bf16.mxu1 %v8204_v55  ;;  %v8173_v55 = vcombine.low %v12558_v58, %v12563_v59  ;;  %v10280_v58 = vld [vmem:[%s14442_s1 + $0x102c] ss:$16 sps:$4 sm:$0xff]   ;;  %v10275_v59 = vld [vmem:[%s14442_s1 + $0x1020] ss:$16 sps:$4 sm:$0xff]  }
 0x1c7   :  { %6835 = vmatpush1.bf16.msra.mxu0 %v10177_v52  ;;  %7651 = vmatpush1.bf16.msra.mxu1 %v10180_v54  ;;  %v10274_v52 = vld [vmem:[%s14442_s1 + $0x100c] ss:$16 sps:$4 sm:$0xff]  }
 0x1c8   :  { %6836 = vmatprep.subr.bf16.mxu0 %v10185_v56  ;;  %7652 = vmatprep.subr.bf16.mxu1 %v10188_v57  ;;  %v50_v54 = vld [vmem:[%s14443_s0 + $0x138] sm:$0xff]  ;;  %v10269_v56 = vld [vmem:[%s14442_s1 + $0x1000] ss:$16 sps:$4 sm:$0xff]  }
 0x1c9   :  { %v10272_v57 = vld [vmem:[%s14442_s1 + $0x1008] ss:$16 sps:$4 sm:$0xff]  }
 0x1ca   :  { %6824 = vmatmul.mubr.bf16.gmra.mrb[4].mxu0 %v8203_v60  ;;  %7640 = vmatmul.mubr.bf16.gmra.mrb[4].mxu1 %v8203_v60  ;;  %v10277_v60 = vld [vmem:[%s14442_s1 + $0x1024] ss:$16 sps:$4 sm:$0xff]  }
 0x1cb   :  { %6837 = vmatpush1.bf16.msra.mxu0 %v10183_v61  ;;  %7653 = vmatpush1.bf16.msra.mxu1 %v10186_v62  ;;  %v10278_v61 = vld [vmem:[%s14442_s1 + $0x1028] ss:$16 sps:$4 sm:$0xff]   ;;  %v8206_v62 = vcombine.high %v50_v54, %v50_v54 }
 0x1cc   :  { %6838 = vmatprep.subr.bf16.mxu0 %v10191_v63  ;;  %7654 = vmatprep.subr.bf16.mxu1 %v10194_v0  ;;  %v10283_v63 = vld [vmem:[%s14442_s1 + $0x1044] ss:$16 sps:$4 sm:$0xff]   ;;  %v10286_v0 = vld [vmem:[%s14442_s1 + $0x104c] ss:$16 sps:$4 sm:$0xff]  }
 0x1cd   :  { %6864 = vmatprep.mubr.bf16.mxu0 %v8174_v1  ;;  %7680 = vmatprep.mubr.bf16.mxu1 %v8174_v1  ;;  %v12767_v1 = vld [vmem:[%s14443_s0 + $0x40] sm:$0xff] }
 0x1cf   :  { %6839 = vmatpush1.bf16.msra.mxu0 %v10189_v2  ;;  %7655 = vmatpush1.bf16.msra.mxu1 %v10192_v3  ;;  %v12772_v2 = vld [vmem:[%s14443_s0 + $0xc0] sm:$0xff]  ;;  %v8205_v3 = vcombine.low %v50_v54, %v50_v54  ;;  %v10357_v54 = vld [vmem:[%s14442_s1 + $0x11c8] ss:$16 sps:$4 sm:$0xff]  }
 0x1d0   :  { %6840 = vmatprep.subr.bf16.mxu0 %v10197_v4  ;;  %7656 = vmatprep.subr.bf16.mxu1 %v10200_v5  ;;  %v10281_v4 = vld [vmem:[%s14442_s1 + $0x1040] ss:$16 sps:$4 sm:$0xff]   ;;  %v10284_v5 = vld [vmem:[%s14442_s1 + $0x1048] ss:$16 sps:$4 sm:$0xff]  }
 0x1d3   :  { %6841 = vmatpush1.bf16.msra.mxu0 %v10195_v6  ;;  %7657 = vmatpush1.bf16.msra.mxu1 %v10198_v7  ;;  %v10289_v6 = vld [vmem:[%s14442_s1 + $0x1064] ss:$16 sps:$4 sm:$0xff]   ;;  %v10292_v7 = vld [vmem:[%s14442_s1 + $0x106c] ss:$16 sps:$4 sm:$0xff]  }
 0x1d4   :  { %6842 = vmatprep.subr.bf16.mxu0 %v10203_v8  ;;  %7658 = vmatprep.subr.bf16.mxu1 %v10206_v9  ;;  %v8176_v8 = vcombine.high %v12767_v1, %v12772_v2  ;;  %v10287_v9 = vld [vmem:[%s14442_s1 + $0x1060] ss:$16 sps:$4 sm:$0xff]  }
 0x1d7   :  { %6843 = vmatpush1.bf16.msra.mxu0 %v10201_v10  ;;  %7659 = vmatpush1.bf16.msra.mxu1 %v10204_v11  ;;  %v10290_v10 = vld [vmem:[%s14442_s1 + $0x1068] ss:$16 sps:$4 sm:$0xff]   ;;  %v10295_v11 = vld [vmem:[%s14442_s1 + $0x1084] ss:$16 sps:$4 sm:$0xff]  }
 0x1d8   :  { %6844 = vmatprep.subr.bf16.mxu0 %v10209_v12  ;;  %7660 = vmatprep.subr.bf16.mxu1 %v10212_v13  ;;  %v10298_v12 = vld [vmem:[%s14442_s1 + $0x108c] ss:$16 sps:$4 sm:$0xff]   ;;  %v10293_v13 = vld [vmem:[%s14442_s1 + $0x1080] ss:$16 sps:$4 sm:$0xff]  }
 0x1db   :  { %6845 = vmatpush1.bf16.msra.mxu0 %v10207_v14  ;;  %7661 = vmatpush1.bf16.msra.mxu1 %v10210_v15  ;;  %v10296_v14 = vld [vmem:[%s14442_s1 + $0x1088] ss:$16 sps:$4 sm:$0xff]   ;;  %v10301_v15 = vld [vmem:[%s14442_s1 + $0x10a4] ss:$16 sps:$4 sm:$0xff]  }
 0x1dc   :  { %6846 = vmatprep.subr.bf16.mxu0 %v10215_v16  ;;  %7662 = vmatprep.subr.bf16.mxu1 %v10218_v17  ;;  %v10304_v16 = vld [vmem:[%s14442_s1 + $0x10ac] ss:$16 sps:$4 sm:$0xff]   ;;  %v10299_v17 = vld [vmem:[%s14442_s1 + $0x10a0] ss:$16 sps:$4 sm:$0xff]  }
 0x1df   :  { %6847 = vmatpush1.bf16.msra.mxu0 %v10213_v18  ;;  %7663 = vmatpush1.bf16.msra.mxu1 %v10216_v19  ;;  %v10302_v18 = vld [vmem:[%s14442_s1 + $0x10a8] ss:$16 sps:$4 sm:$0xff]   ;;  %v10307_v19 = vld [vmem:[%s14442_s1 + $0x10c4] ss:$16 sps:$4 sm:$0xff]  }
 0x1e0   :  { %6848 = vmatprep.subr.bf16.mxu0 %v10221_v20  ;;  %7664 = vmatprep.subr.bf16.mxu1 %v10224_v21  ;;  %v10310_v20 = vld [vmem:[%s14442_s1 + $0x10cc] ss:$16 sps:$4 sm:$0xff]   ;;  %v10305_v21 = vld [vmem:[%s14442_s1 + $0x10c0] ss:$16 sps:$4 sm:$0xff]  }
 0x1e3   :  { %6849 = vmatpush1.bf16.msra.mxu0 %v10219_v22  ;;  %7665 = vmatpush1.bf16.msra.mxu1 %v10222_v23  ;;  %v10308_v22 = vld [vmem:[%s14442_s1 + $0x10c8] ss:$16 sps:$4 sm:$0xff]   ;;  %v10313_v23 = vld [vmem:[%s14442_s1 + $0x10e4] ss:$16 sps:$4 sm:$0xff]  }
 0x1e4   :  { %6850 = vmatprep.subr.bf16.mxu0 %v10227_v24  ;;  %7666 = vmatprep.subr.bf16.mxu1 %v10230_v25  ;;  %v10316_v24 = vld [vmem:[%s14442_s1 + $0x10ec] ss:$16 sps:$4 sm:$0xff]   ;;  %v10311_v25 = vld [vmem:[%s14442_s1 + $0x10e0] ss:$16 sps:$4 sm:$0xff]  }
 0x1e7   :  { %6851 = vmatpush1.bf16.msra.mxu0 %v10225_v26  ;;  %7667 = vmatpush1.bf16.msra.mxu1 %v10228_v27  ;;  %v10314_v26 = vld [vmem:[%s14442_s1 + $0x10e8] ss:$16 sps:$4 sm:$0xff]   ;;  %v10319_v27 = vld [vmem:[%s14442_s1 + $0x1104] ss:$16 sps:$4 sm:$0xff]  }
 0x1e8   :  { %6852 = vmatprep.subr.bf16.mxu0 %v10233_v28  ;;  %7668 = vmatprep.subr.bf16.mxu1 %v10236_v29  ;;  %v10322_v28 = vld [vmem:[%s14442_s1 + $0x110c] ss:$16 sps:$4 sm:$0xff]   ;;  %v10317_v29 = vld [vmem:[%s14442_s1 + $0x1100] ss:$16 sps:$4 sm:$0xff]  }
 0x1eb   :  { %6853 = vmatpush1.bf16.msra.mxu0 %v10231_v30  ;;  %7669 = vmatpush1.bf16.msra.mxu1 %v10234_v31  ;;  %v10320_v30 = vld [vmem:[%s14442_s1 + $0x1108] ss:$16 sps:$4 sm:$0xff]   ;;  %v10325_v31 = vld [vmem:[%s14442_s1 + $0x1124] ss:$16 sps:$4 sm:$0xff]  }
 0x1ec   :  { %6854 = vmatprep.subr.bf16.mxu0 %v10239_v32  ;;  %7670 = vmatprep.subr.bf16.mxu1 %v10242_v33  ;;  %v10328_v32 = vld [vmem:[%s14442_s1 + $0x112c] ss:$16 sps:$4 sm:$0xff]   ;;  %v10323_v33 = vld [vmem:[%s14442_s1 + $0x1120] ss:$16 sps:$4 sm:$0xff]  }
 0x1ef   :  { %6855 = vmatpush1.bf16.msra.mxu0 %v10237_v34  ;;  %7671 = vmatpush1.bf16.msra.mxu1 %v10240_v35  ;;  %v10326_v34 = vld [vmem:[%s14442_s1 + $0x1128] ss:$16 sps:$4 sm:$0xff]   ;;  %v10331_v35 = vld [vmem:[%s14442_s1 + $0x1144] ss:$16 sps:$4 sm:$0xff]  }
 0x1f0   :  { %6856 = vmatprep.subr.bf16.mxu0 %v10245_v36  ;;  %7672 = vmatprep.subr.bf16.mxu1 %v10248_v37  ;;  %v10334_v36 = vld [vmem:[%s14442_s1 + $0x114c] ss:$16 sps:$4 sm:$0xff]   ;;  %v10329_v37 = vld [vmem:[%s14442_s1 + $0x1140] ss:$16 sps:$4 sm:$0xff]  }
 0x1f3   :  { %6857 = vmatpush1.bf16.msra.mxu0 %v10243_v38  ;;  %7673 = vmatpush1.bf16.msra.mxu1 %v10246_v39  ;;  %v10332_v38 = vld [vmem:[%s14442_s1 + $0x1148] ss:$16 sps:$4 sm:$0xff]   ;;  %v10337_v39 = vld [vmem:[%s14442_s1 + $0x1164] ss:$16 sps:$4 sm:$0xff]  }
 0x1f4   :  { %6858 = vmatprep.subr.bf16.mxu0 %v10251_v40  ;;  %7674 = vmatprep.subr.bf16.mxu1 %v10254_v41  ;;  %v10340_v40 = vld [vmem:[%s14442_s1 + $0x116c] ss:$16 sps:$4 sm:$0xff]   ;;  %v10335_v41 = vld [vmem:[%s14442_s1 + $0x1160] ss:$16 sps:$4 sm:$0xff]  }
 0x1f7   :  { %6859 = vmatpush1.bf16.msra.mxu0 %v10249_v42  ;;  %7675 = vmatpush1.bf16.msra.mxu1 %v10252_v43  ;;  %v10338_v42 = vld [vmem:[%s14442_s1 + $0x1168] ss:$16 sps:$4 sm:$0xff]   ;;  %v10343_v43 = vld [vmem:[%s14442_s1 + $0x1184] ss:$16 sps:$4 sm:$0xff]  }
 0x1f8   :  { %6860 = vmatprep.subr.bf16.mxu0 %v10258_v46  ;;  %7676 = vmatprep.subr.bf16.mxu1 %v10261_v44  ;;  %v10346_v46 = vld [vmem:[%s14442_s1 + $0x118c] ss:$16 sps:$4 sm:$0xff]   ;;  %v10341_v44 = vld [vmem:[%s14442_s1 + $0x1180] ss:$16 sps:$4 sm:$0xff]  }
 0x1fb   :  { %6861 = vmatpush1.bf16.msra.mxu0 %v10256_v45  ;;  %7677 = vmatpush1.bf16.msra.mxu1 %v10259_v47  ;;  %v10344_v45 = vld [vmem:[%s14442_s1 + $0x1188] ss:$16 sps:$4 sm:$0xff]   ;;  %v10349_v47 = vld [vmem:[%s14442_s1 + $0x11a4] ss:$16 sps:$4 sm:$0xff]  }
 0x1fc   :  { %6862 = vmatprep.subr.bf16.mxu0 %v10265_v48  ;;  %7678 = vmatprep.subr.bf16.mxu1 %v10268_v49  ;;  %v10352_v48 = vld [vmem:[%s14442_s1 + $0x11ac] ss:$16 sps:$4 sm:$0xff]   ;;  %v10347_v49 = vld [vmem:[%s14442_s1 + $0x11a0] ss:$16 sps:$4 sm:$0xff]  }
 0x1ff   :  { %6863 = vmatpush1.bf16.msra.mxu0 %v10263_v50  ;;  %7679 = vmatpush1.bf16.msra.mxu1 %v10266_v53  ;;  %v10350_v50 = vld [vmem:[%s14442_s1 + $0x11a8] ss:$16 sps:$4 sm:$0xff]   ;;  %v10356_v53 = vld [vmem:[%s14442_s1 + $0x11c4] ss:$16 sps:$4 sm:$0xff]  }
 0x200   :  { %6883 = vmatprep.subr.bf16.mxu0 %v10271_v51  ;;  %7699 = vmatprep.subr.bf16.mxu1 %v10274_v52  ;;  %v10359_v51 = vld [vmem:[%s14442_s1 + $0x11cc] ss:$16 sps:$4 sm:$0xff]   ;;  %v10354_v52 = vld [vmem:[%s14442_s1 + $0x11c0] ss:$16 sps:$4 sm:$0xff]  }
 0x202   :  { %6865 = vmatmul.mubr.bf16.vlgmr.msra.gmra.mrb[0].mxu0 %v8173_v55  ;;  %7681 = vmatmul.mubr.bf16.vlgmr.msra.gmra.mrb[0].mxu1 %v8173_v55  ;;  %v10363_v55 = vld [vmem:[%s14442_s1 + $0x11e4] ss:$16 sps:$4 sm:$0xff]  }
 0x203   :  { %6884 = vmatpush1.bf16.msra.mxu0 %v10269_v56  ;;  %7700 = vmatpush1.bf16.msra.mxu1 %v10272_v57  ;;  %v10366_v56 = vld [vmem:[%s14442_s1 + $0x11ec] ss:$16 sps:$4 sm:$0xff]   ;;  %v10361_v57 = vld [vmem:[%s14442_s1 + $0x11e0] ss:$16 sps:$4 sm:$0xff]  }
 0x204   :  { %6885 = vmatprep.subr.bf16.mxu0 %v10277_v60  ;;  %7701 = vmatprep.subr.bf16.mxu1 %v10280_v58  ;;  %v10364_v60 = vld [vmem:[%s14442_s1 + $0x11e8] ss:$16 sps:$4 sm:$0xff]   ;;  %v10369_v58 = vld [vmem:[%s14442_s1 + $0x1204] ss:$16 sps:$4 sm:$0xff]  }
 0x205   :  { %6874 = vmatprep.mubr.bf16.mxu0 %v8206_v62  ;;  %7690 = vmatprep.mubr.bf16.mxu1 %v8206_v62  ;;  %v8175_v62 = vcombine.low %v12767_v1, %v12772_v2  ;;  %v10378_v1 = vld [vmem:[%s14442_s1 + $0x122c] ss:$16 sps:$4 sm:$0xff]   ;;  %v10373_v2 = vld [vmem:[%s14442_s1 + $0x1220] ss:$16 sps:$4 sm:$0xff]  }
 0x207   :  { %6886 = vmatpush1.bf16.msra.mxu0 %v10275_v59  ;;  %7702 = vmatpush1.bf16.msra.mxu1 %v10278_v61  ;;  %v10372_v59 = vld [vmem:[%s14442_s1 + $0x120c] ss:$16 sps:$4 sm:$0xff]   ;;  %v51_v61 = vld [vmem:[%s14443_s0 + $0x140] sm:$0xff] }
 0x208   :  { %6887 = vmatprep.subr.bf16.mxu0 %v10283_v63  ;;  %7703 = vmatprep.subr.bf16.mxu1 %v10286_v0  ;;  %v10367_v63 = vld [vmem:[%s14442_s1 + $0x1200] ss:$16 sps:$4 sm:$0xff]   ;;  %v10370_v0 = vld [vmem:[%s14442_s1 + $0x1208] ss:$16 sps:$4 sm:$0xff]  }
 0x20a   :  { %6875 = vmatmul.mubr.bf16.gmra.mrb[4].mxu0 %v8205_v3  ;;  %7691 = vmatmul.mubr.bf16.gmra.mrb[4].mxu1 %v8205_v3  ;;  %v10375_v3 = vld [vmem:[%s14442_s1 + $0x1224] ss:$16 sps:$4 sm:$0xff]  }
 0x20b   :  { %6888 = vmatpush1.bf16.msra.mxu0 %v10281_v4  ;;  %7704 = vmatpush1.bf16.msra.mxu1 %v10284_v5  ;;  %v10376_v4 = vld [vmem:[%s14442_s1 + $0x1228] ss:$16 sps:$4 sm:$0xff]   ;;  %v8208_v5 = vcombine.high %v51_v61, %v51_v61 }
 0x20c   :  { %6889 = vmatprep.subr.bf16.mxu0 %v10289_v6  ;;  %7705 = vmatprep.subr.bf16.mxu1 %v10292_v7  ;;  %v10381_v6 = vld [vmem:[%s14442_s1 + $0x1244] ss:$16 sps:$4 sm:$0xff]   ;;  %v10384_v7 = vld [vmem:[%s14442_s1 + $0x124c] ss:$16 sps:$4 sm:$0xff]  }
 0x20d   :  { %6915 = vmatprep.mubr.bf16.mxu0 %v8176_v8  ;;  %7731 = vmatprep.mubr.bf16.mxu1 %v8176_v8  ;;  %v12976_v8 = vld [vmem:[%s14443_s0 + $0x48] sm:$0xff] }
 0x20f   :  { %6890 = vmatpush1.bf16.msra.mxu0 %v10287_v9  ;;  %7706 = vmatpush1.bf16.msra.mxu1 %v10290_v10  ;;  %v12981_v9 = vld [vmem:[%s14443_s0 + $0xc8] sm:$0xff]  ;;  %v8207_v10 = vcombine.low %v51_v61, %v51_v61 }
 0x210   :  { %6891 = vmatprep.subr.bf16.mxu0 %v10295_v11  ;;  %7707 = vmatprep.subr.bf16.mxu1 %v10298_v12  ;;  %v10379_v11 = vld [vmem:[%s14442_s1 + $0x1240] ss:$16 sps:$4 sm:$0xff]   ;;  %v10382_v12 = vld [vmem:[%s14442_s1 + $0x1248] ss:$16 sps:$4 sm:$0xff]  }
 0x211   :  { %v10455_v61 = vld [vmem:[%s14442_s1 + $0x13c8] ss:$16 sps:$4 sm:$0xff]  }
 0x213   :  { %6892 = vmatpush1.bf16.msra.mxu0 %v10293_v13  ;;  %7708 = vmatpush1.bf16.msra.mxu1 %v10296_v14  ;;  %v10387_v13 = vld [vmem:[%s14442_s1 + $0x1264] ss:$16 sps:$4 sm:$0xff]   ;;  %v10390_v14 = vld [vmem:[%s14442_s1 + $0x126c] ss:$16 sps:$4 sm:$0xff]  }
 0x214   :  { %6893 = vmatprep.subr.bf16.mxu0 %v10301_v15  ;;  %7709 = vmatprep.subr.bf16.mxu1 %v10304_v16  ;;  %v8178_v15 = vcombine.high %v12976_v8, %v12981_v9  ;;  %v10385_v16 = vld [vmem:[%s14442_s1 + $0x1260] ss:$16 sps:$4 sm:$0xff]  }
 0x217   :  { %6894 = vmatpush1.bf16.msra.mxu0 %v10299_v17  ;;  %7710 = vmatpush1.bf16.msra.mxu1 %v10302_v18  ;;  %v10388_v17 = vld [vmem:[%s14442_s1 + $0x1268] ss:$16 sps:$4 sm:$0xff]   ;;  %v10393_v18 = vld [vmem:[%s14442_s1 + $0x1284] ss:$16 sps:$4 sm:$0xff]  }
 0x218   :  { %6895 = vmatprep.subr.bf16.mxu0 %v10307_v19  ;;  %7711 = vmatprep.subr.bf16.mxu1 %v10310_v20  ;;  %v10396_v19 = vld [vmem:[%s14442_s1 + $0x128c] ss:$16 sps:$4 sm:$0xff]   ;;  %v10391_v20 = vld [vmem:[%s14442_s1 + $0x1280] ss:$16 sps:$4 sm:$0xff]  }
 0x21b   :  { %6896 = vmatpush1.bf16.msra.mxu0 %v10305_v21  ;;  %7712 = vmatpush1.bf16.msra.mxu1 %v10308_v22  ;;  %v10394_v21 = vld [vmem:[%s14442_s1 + $0x1288] ss:$16 sps:$4 sm:$0xff]   ;;  %v10399_v22 = vld [vmem:[%s14442_s1 + $0x12a4] ss:$16 sps:$4 sm:$0xff]  }
 0x21c   :  { %6897 = vmatprep.subr.bf16.mxu0 %v10313_v23  ;;  %7713 = vmatprep.subr.bf16.mxu1 %v10316_v24  ;;  %v10402_v23 = vld [vmem:[%s14442_s1 + $0x12ac] ss:$16 sps:$4 sm:$0xff]   ;;  %v10397_v24 = vld [vmem:[%s14442_s1 + $0x12a0] ss:$16 sps:$4 sm:$0xff]  }
 0x21f   :  { %6898 = vmatpush1.bf16.msra.mxu0 %v10311_v25  ;;  %7714 = vmatpush1.bf16.msra.mxu1 %v10314_v26  ;;  %v10400_v25 = vld [vmem:[%s14442_s1 + $0x12a8] ss:$16 sps:$4 sm:$0xff]   ;;  %v10405_v26 = vld [vmem:[%s14442_s1 + $0x12c4] ss:$16 sps:$4 sm:$0xff]  }
 0x220   :  { %6899 = vmatprep.subr.bf16.mxu0 %v10319_v27  ;;  %7715 = vmatprep.subr.bf16.mxu1 %v10322_v28  ;;  %v10408_v27 = vld [vmem:[%s14442_s1 + $0x12cc] ss:$16 sps:$4 sm:$0xff]   ;;  %v10403_v28 = vld [vmem:[%s14442_s1 + $0x12c0] ss:$16 sps:$4 sm:$0xff]  }
 0x223   :  { %6900 = vmatpush1.bf16.msra.mxu0 %v10317_v29  ;;  %7716 = vmatpush1.bf16.msra.mxu1 %v10320_v30  ;;  %v10406_v29 = vld [vmem:[%s14442_s1 + $0x12c8] ss:$16 sps:$4 sm:$0xff]   ;;  %v10411_v30 = vld [vmem:[%s14442_s1 + $0x12e4] ss:$16 sps:$4 sm:$0xff]  }
 0x224   :  { %6901 = vmatprep.subr.bf16.mxu0 %v10325_v31  ;;  %7717 = vmatprep.subr.bf16.mxu1 %v10328_v32  ;;  %v10414_v31 = vld [vmem:[%s14442_s1 + $0x12ec] ss:$16 sps:$4 sm:$0xff]   ;;  %v10409_v32 = vld [vmem:[%s14442_s1 + $0x12e0] ss:$16 sps:$4 sm:$0xff]  }
 0x227   :  { %6902 = vmatpush1.bf16.msra.mxu0 %v10323_v33  ;;  %7718 = vmatpush1.bf16.msra.mxu1 %v10326_v34  ;;  %v10412_v33 = vld [vmem:[%s14442_s1 + $0x12e8] ss:$16 sps:$4 sm:$0xff]   ;;  %v10417_v34 = vld [vmem:[%s14442_s1 + $0x1304] ss:$16 sps:$4 sm:$0xff]  }
 0x228   :  { %6903 = vmatprep.subr.bf16.mxu0 %v10331_v35  ;;  %7719 = vmatprep.subr.bf16.mxu1 %v10334_v36  ;;  %v10420_v35 = vld [vmem:[%s14442_s1 + $0x130c] ss:$16 sps:$4 sm:$0xff]   ;;  %v10415_v36 = vld [vmem:[%s14442_s1 + $0x1300] ss:$16 sps:$4 sm:$0xff]  }
 0x22b   :  { %6904 = vmatpush1.bf16.msra.mxu0 %v10329_v37  ;;  %7720 = vmatpush1.bf16.msra.mxu1 %v10332_v38  ;;  %v10418_v37 = vld [vmem:[%s14442_s1 + $0x1308] ss:$16 sps:$4 sm:$0xff]   ;;  %v10423_v38 = vld [vmem:[%s14442_s1 + $0x1324] ss:$16 sps:$4 sm:$0xff]  }
 0x22c   :  { %6905 = vmatprep.subr.bf16.mxu0 %v10337_v39  ;;  %7721 = vmatprep.subr.bf16.mxu1 %v10340_v40  ;;  %v10426_v39 = vld [vmem:[%s14442_s1 + $0x132c] ss:$16 sps:$4 sm:$0xff]   ;;  %v10421_v40 = vld [vmem:[%s14442_s1 + $0x1320] ss:$16 sps:$4 sm:$0xff]  }
 0x22f   :  { %6906 = vmatpush1.bf16.msra.mxu0 %v10335_v41  ;;  %7722 = vmatpush1.bf16.msra.mxu1 %v10338_v42  ;;  %v10424_v41 = vld [vmem:[%s14442_s1 + $0x1328] ss:$16 sps:$4 sm:$0xff]   ;;  %v10429_v42 = vld [vmem:[%s14442_s1 + $0x1344] ss:$16 sps:$4 sm:$0xff]  }
 0x230   :  { %6907 = vmatprep.subr.bf16.mxu0 %v10343_v43  ;;  %7723 = vmatprep.subr.bf16.mxu1 %v10346_v46  ;;  %v10432_v43 = vld [vmem:[%s14442_s1 + $0x134c] ss:$16 sps:$4 sm:$0xff]   ;;  %v10427_v46 = vld [vmem:[%s14442_s1 + $0x1340] ss:$16 sps:$4 sm:$0xff]  }
 0x233   :  { %6908 = vmatpush1.bf16.msra.mxu0 %v10341_v44  ;;  %7724 = vmatpush1.bf16.msra.mxu1 %v10344_v45  ;;  %v10430_v44 = vld [vmem:[%s14442_s1 + $0x1348] ss:$16 sps:$4 sm:$0xff]   ;;  %v10435_v45 = vld [vmem:[%s14442_s1 + $0x1364] ss:$16 sps:$4 sm:$0xff]  }
 0x234   :  { %6909 = vmatprep.subr.bf16.mxu0 %v10349_v47  ;;  %7725 = vmatprep.subr.bf16.mxu1 %v10352_v48  ;;  %v10438_v47 = vld [vmem:[%s14442_s1 + $0x136c] ss:$16 sps:$4 sm:$0xff]   ;;  %v10433_v48 = vld [vmem:[%s14442_s1 + $0x1360] ss:$16 sps:$4 sm:$0xff]  }
 0x237   :  { %6910 = vmatpush1.bf16.msra.mxu0 %v10347_v49  ;;  %7726 = vmatpush1.bf16.msra.mxu1 %v10350_v50  ;;  %v10436_v49 = vld [vmem:[%s14442_s1 + $0x1368] ss:$16 sps:$4 sm:$0xff]   ;;  %v10441_v50 = vld [vmem:[%s14442_s1 + $0x1384] ss:$16 sps:$4 sm:$0xff]  }
 0x238   :  { %6911 = vmatprep.subr.bf16.mxu0 %v10356_v53  ;;  %7727 = vmatprep.subr.bf16.mxu1 %v10359_v51  ;;  %v10444_v53 = vld [vmem:[%s14442_s1 + $0x138c] ss:$16 sps:$4 sm:$0xff]   ;;  %v10439_v51 = vld [vmem:[%s14442_s1 + $0x1380] ss:$16 sps:$4 sm:$0xff]  }
 0x23b   :  { %6912 = vmatpush1.bf16.msra.mxu0 %v10354_v52  ;;  %7728 = vmatpush1.bf16.msra.mxu1 %v10357_v54  ;;  %v10442_v52 = vld [vmem:[%s14442_s1 + $0x1388] ss:$16 sps:$4 sm:$0xff]   ;;  %v10447_v54 = vld [vmem:[%s14442_s1 + $0x13a4] ss:$16 sps:$4 sm:$0xff]  }
 0x23c   :  { %6913 = vmatprep.subr.bf16.mxu0 %v10363_v55  ;;  %7729 = vmatprep.subr.bf16.mxu1 %v10366_v56  ;;  %v10450_v55 = vld [vmem:[%s14442_s1 + $0x13ac] ss:$16 sps:$4 sm:$0xff]   ;;  %v10445_v56 = vld [vmem:[%s14442_s1 + $0x13a0] ss:$16 sps:$4 sm:$0xff]  }
 0x23f   :  { %6914 = vmatpush1.bf16.msra.mxu0 %v10361_v57  ;;  %7730 = vmatpush1.bf16.msra.mxu1 %v10364_v60  ;;  %v10448_v57 = vld [vmem:[%s14442_s1 + $0x13a8] ss:$16 sps:$4 sm:$0xff]   ;;  %v10454_v60 = vld [vmem:[%s14442_s1 + $0x13c4] ss:$16 sps:$4 sm:$0xff]  }
 0x240   :  { %6934 = vmatprep.subr.bf16.mxu0 %v10369_v58  ;;  %7750 = vmatprep.subr.bf16.mxu1 %v10372_v59  ;;  %v10457_v58 = vld [vmem:[%s14442_s1 + $0x13cc] ss:$16 sps:$4 sm:$0xff]   ;;  %v10452_v59 = vld [vmem:[%s14442_s1 + $0x13c0] ss:$16 sps:$4 sm:$0xff]  }
 0x242   :  { %6916 = vmatmul.mubr.bf16.vlgmr.msra.gmra.mrb[0].mxu0 %v8175_v62  ;;  %7732 = vmatmul.mubr.bf16.vlgmr.msra.gmra.mrb[0].mxu1 %v8175_v62  ;;  %v10461_v62 = vld [vmem:[%s14442_s1 + $0x13e4] ss:$16 sps:$4 sm:$0xff]  }
 0x243   :  { %6935 = vmatpush1.bf16.msra.mxu0 %v10367_v63  ;;  %7751 = vmatpush1.bf16.msra.mxu1 %v10370_v0  ;;  %v10464_v63 = vld [vmem:[%s14442_s1 + $0x13ec] ss:$16 sps:$4 sm:$0xff]   ;;  %v10459_v0 = vld [vmem:[%s14442_s1 + $0x13e0] ss:$16 sps:$4 sm:$0xff]  }
 0x244   :  { %6936 = vmatprep.subr.bf16.mxu0 %v10375_v3  ;;  %7752 = vmatprep.subr.bf16.mxu1 %v10378_v1  ;;  %v10462_v3 = vld [vmem:[%s14442_s1 + $0x13e8] ss:$16 sps:$4 sm:$0xff]   ;;  %v10467_v1 = vld [vmem:[%s14442_s1 + $0x1404] ss:$16 sps:$4 sm:$0xff]  }
 0x245   :  { %6925 = vmatprep.mubr.bf16.mxu0 %v8208_v5  ;;  %7741 = vmatprep.mubr.bf16.mxu1 %v8208_v5  ;;  %v52_v5 = vld [vmem:[%s14443_s0 + $0x148] sm:$0xff] }
 0x247   :  { %6937 = vmatpush1.bf16.msra.mxu0 %v10373_v2  ;;  %7753 = vmatpush1.bf16.msra.mxu1 %v10376_v4  ;;  %v10470_v2 = vld [vmem:[%s14442_s1 + $0x140c] ss:$16 sps:$4 sm:$0xff]   ;;  %v8177_v4 = vcombine.low %v12976_v8, %v12981_v9  ;;  %v10473_v8 = vld [vmem:[%s14442_s1 + $0x1424] ss:$16 sps:$4 sm:$0xff]  }
 0x248   :  { %6938 = vmatprep.subr.bf16.mxu0 %v10381_v6  ;;  %7754 = vmatprep.subr.bf16.mxu1 %v10384_v7  ;;  %v10465_v6 = vld [vmem:[%s14442_s1 + $0x1400] ss:$16 sps:$4 sm:$0xff]   ;;  %v10468_v7 = vld [vmem:[%s14442_s1 + $0x1408] ss:$16 sps:$4 sm:$0xff]   ;;  %v10476_v9 = vld [vmem:[%s14442_s1 + $0x142c] ss:$16 sps:$4 sm:$0xff]  }
 0x24a   :  { %6926 = vmatmul.mubr.bf16.gmra.mrb[4].mxu0 %v8207_v10  ;;  %7742 = vmatmul.mubr.bf16.gmra.mrb[4].mxu1 %v8207_v10  ;;  %v8210_v10 = vcombine.high %v52_v5, %v52_v5 }
 0x24b   :  { %6939 = vmatpush1.bf16.msra.mxu0 %v10379_v11  ;;  %7755 = vmatpush1.bf16.msra.mxu1 %v10382_v12  ;;  %v10471_v11 = vld [vmem:[%s14442_s1 + $0x1420] ss:$16 sps:$4 sm:$0xff]   ;;  %v10474_v12 = vld [vmem:[%s14442_s1 + $0x1428] ss:$16 sps:$4 sm:$0xff]  }
 0x24c   :  { %6940 = vmatprep.subr.bf16.mxu0 %v10387_v13  ;;  %7756 = vmatprep.subr.bf16.mxu1 %v10390_v14  ;;  %v10479_v13 = vld [vmem:[%s14442_s1 + $0x1444] ss:$16 sps:$4 sm:$0xff]   ;;  %v10482_v14 = vld [vmem:[%s14442_s1 + $0x144c] ss:$16 sps:$4 sm:$0xff]  }
 0x24d   :  { %6966 = vmatprep.mubr.bf16.mxu0 %v8178_v15  ;;  %7782 = vmatprep.mubr.bf16.mxu1 %v8178_v15  ;;  %v8209_v15 = vcombine.low %v52_v5, %v52_v5  ;;  %v10559_v5 = vld [vmem:[%s14442_s1 + $0x15e4] ss:$16 sps:$4 sm:$0xff]  }
 0x24f   :  { %6941 = vmatpush1.bf16.msra.mxu0 %v10385_v16  ;;  %7757 = vmatpush1.bf16.msra.mxu1 %v10388_v17  ;;  %v13185_v16 = vld [vmem:[%s14443_s0 + $0x50] sm:$0xff] }
 0x250   :  { %6942 = vmatprep.subr.bf16.mxu0 %v10393_v18  ;;  %7758 = vmatprep.subr.bf16.mxu1 %v10396_v19  ;;  %v13190_v17 = vld [vmem:[%s14443_s0 + $0xd0] sm:$0xff]  ;;  %v10480_v19 = vld [vmem:[%s14442_s1 + $0x1448] ss:$16 sps:$4 sm:$0xff]  }
 0x251   :  { %v10477_v18 = vld [vmem:[%s14442_s1 + $0x1440] ss:$16 sps:$4 sm:$0xff]  }
 0x253   :  { %6943 = vmatpush1.bf16.msra.mxu0 %v10391_v20  ;;  %7759 = vmatpush1.bf16.msra.mxu1 %v10394_v21  ;;  %v10485_v20 = vld [vmem:[%s14442_s1 + $0x1464] ss:$16 sps:$4 sm:$0xff]   ;;  %v10488_v21 = vld [vmem:[%s14442_s1 + $0x146c] ss:$16 sps:$4 sm:$0xff]  }
 0x254   :  { %6944 = vmatprep.subr.bf16.mxu0 %v10399_v22  ;;  %7760 = vmatprep.subr.bf16.mxu1 %v10402_v23  ;;  %v8180_v22 = vcombine.high %v13185_v16, %v13190_v17  ;;  %v10483_v23 = vld [vmem:[%s14442_s1 + $0x1460] ss:$16 sps:$4 sm:$0xff]  }
 0x257   :  { %6945 = vmatpush1.bf16.msra.mxu0 %v10397_v24  ;;  %7761 = vmatpush1.bf16.msra.mxu1 %v10400_v25  ;;  %v10486_v24 = vld [vmem:[%s14442_s1 + $0x1468] ss:$16 sps:$4 sm:$0xff]   ;;  %v10491_v25 = vld [vmem:[%s14442_s1 + $0x1484] ss:$16 sps:$4 sm:$0xff]  }
 0x258   :  { %6946 = vmatprep.subr.bf16.mxu0 %v10405_v26  ;;  %7762 = vmatprep.subr.bf16.mxu1 %v10408_v27  ;;  %v10494_v26 = vld [vmem:[%s14442_s1 + $0x148c] ss:$16 sps:$4 sm:$0xff]   ;;  %v10489_v27 = vld [vmem:[%s14442_s1 + $0x1480] ss:$16 sps:$4 sm:$0xff]  }
 0x25b   :  { %6947 = vmatpush1.bf16.msra.mxu0 %v10403_v28  ;;  %7763 = vmatpush1.bf16.msra.mxu1 %v10406_v29  ;;  %v10492_v28 = vld [vmem:[%s14442_s1 + $0x1488] ss:$16 sps:$4 sm:$0xff]   ;;  %v10497_v29 = vld [vmem:[%s14442_s1 + $0x14a4] ss:$16 sps:$4 sm:$0xff]  }
 0x25c   :  { %6948 = vmatprep.subr.bf16.mxu0 %v10411_v30  ;;  %7764 = vmatprep.subr.bf16.mxu1 %v10414_v31  ;;  %v10500_v30 = vld [vmem:[%s14442_s1 + $0x14ac] ss:$16 sps:$4 sm:$0xff]   ;;  %v10495_v31 = vld [vmem:[%s14442_s1 + $0x14a0] ss:$16 sps:$4 sm:$0xff]  }
 0x25f   :  { %6949 = vmatpush1.bf16.msra.mxu0 %v10409_v32  ;;  %7765 = vmatpush1.bf16.msra.mxu1 %v10412_v33  ;;  %v10498_v32 = vld [vmem:[%s14442_s1 + $0x14a8] ss:$16 sps:$4 sm:$0xff]   ;;  %v10503_v33 = vld [vmem:[%s14442_s1 + $0x14c4] ss:$16 sps:$4 sm:$0xff]  }
 0x260   :  { %6950 = vmatprep.subr.bf16.mxu0 %v10417_v34  ;;  %7766 = vmatprep.subr.bf16.mxu1 %v10420_v35  ;;  %v10506_v34 = vld [vmem:[%s14442_s1 + $0x14cc] ss:$16 sps:$4 sm:$0xff]   ;;  %v10501_v35 = vld [vmem:[%s14442_s1 + $0x14c0] ss:$16 sps:$4 sm:$0xff]  }
 0x263   :  { %6951 = vmatpush1.bf16.msra.mxu0 %v10415_v36  ;;  %7767 = vmatpush1.bf16.msra.mxu1 %v10418_v37  ;;  %v10504_v36 = vld [vmem:[%s14442_s1 + $0x14c8] ss:$16 sps:$4 sm:$0xff]   ;;  %v10509_v37 = vld [vmem:[%s14442_s1 + $0x14e4] ss:$16 sps:$4 sm:$0xff]  }
 0x264   :  { %6952 = vmatprep.subr.bf16.mxu0 %v10423_v38  ;;  %7768 = vmatprep.subr.bf16.mxu1 %v10426_v39  ;;  %v10512_v38 = vld [vmem:[%s14442_s1 + $0x14ec] ss:$16 sps:$4 sm:$0xff]   ;;  %v10507_v39 = vld [vmem:[%s14442_s1 + $0x14e0] ss:$16 sps:$4 sm:$0xff]  }
 0x267   :  { %6953 = vmatpush1.bf16.msra.mxu0 %v10421_v40  ;;  %7769 = vmatpush1.bf16.msra.mxu1 %v10424_v41  ;;  %v10510_v40 = vld [vmem:[%s14442_s1 + $0x14e8] ss:$16 sps:$4 sm:$0xff]   ;;  %v10515_v41 = vld [vmem:[%s14442_s1 + $0x1504] ss:$16 sps:$4 sm:$0xff]  }
 0x268   :  { %6954 = vmatprep.subr.bf16.mxu0 %v10429_v42  ;;  %7770 = vmatprep.subr.bf16.mxu1 %v10432_v43  ;;  %v10518_v42 = vld [vmem:[%s14442_s1 + $0x150c] ss:$16 sps:$4 sm:$0xff]   ;;  %v10513_v43 = vld [vmem:[%s14442_s1 + $0x1500] ss:$16 sps:$4 sm:$0xff]  }
 0x26b   :  { %6955 = vmatpush1.bf16.msra.mxu0 %v10427_v46  ;;  %7771 = vmatpush1.bf16.msra.mxu1 %v10430_v44  ;;  %v10516_v46 = vld [vmem:[%s14442_s1 + $0x1508] ss:$16 sps:$4 sm:$0xff]   ;;  %v10521_v44 = vld [vmem:[%s14442_s1 + $0x1524] ss:$16 sps:$4 sm:$0xff]  }
 0x26c   :  { %6956 = vmatprep.subr.bf16.mxu0 %v10435_v45  ;;  %7772 = vmatprep.subr.bf16.mxu1 %v10438_v47  ;;  %v10524_v45 = vld [vmem:[%s14442_s1 + $0x152c] ss:$16 sps:$4 sm:$0xff]   ;;  %v10519_v47 = vld [vmem:[%s14442_s1 + $0x1520] ss:$16 sps:$4 sm:$0xff]  }
 0x26f   :  { %6957 = vmatpush1.bf16.msra.mxu0 %v10433_v48  ;;  %7773 = vmatpush1.bf16.msra.mxu1 %v10436_v49  ;;  %v10522_v48 = vld [vmem:[%s14442_s1 + $0x1528] ss:$16 sps:$4 sm:$0xff]   ;;  %v10527_v49 = vld [vmem:[%s14442_s1 + $0x1544] ss:$16 sps:$4 sm:$0xff]  }
 0x270   :  { %6958 = vmatprep.subr.bf16.mxu0 %v10441_v50  ;;  %7774 = vmatprep.subr.bf16.mxu1 %v10444_v53  ;;  %v10530_v50 = vld [vmem:[%s14442_s1 + $0x154c] ss:$16 sps:$4 sm:$0xff]   ;;  %v10525_v53 = vld [vmem:[%s14442_s1 + $0x1540] ss:$16 sps:$4 sm:$0xff]  }
 0x273   :  { %6959 = vmatpush1.bf16.msra.mxu0 %v10439_v51  ;;  %7775 = vmatpush1.bf16.msra.mxu1 %v10442_v52  ;;  %v10528_v51 = vld [vmem:[%s14442_s1 + $0x1548] ss:$16 sps:$4 sm:$0xff]   ;;  %v10533_v52 = vld [vmem:[%s14442_s1 + $0x1564] ss:$16 sps:$4 sm:$0xff]  }
 0x274   :  { %6960 = vmatprep.subr.bf16.mxu0 %v10447_v54  ;;  %7776 = vmatprep.subr.bf16.mxu1 %v10450_v55  ;;  %v10536_v54 = vld [vmem:[%s14442_s1 + $0x156c] ss:$16 sps:$4 sm:$0xff]   ;;  %v10531_v55 = vld [vmem:[%s14442_s1 + $0x1560] ss:$16 sps:$4 sm:$0xff]  }
 0x277   :  { %6961 = vmatpush1.bf16.msra.mxu0 %v10445_v56  ;;  %7777 = vmatpush1.bf16.msra.mxu1 %v10448_v57  ;;  %v10534_v56 = vld [vmem:[%s14442_s1 + $0x1568] ss:$16 sps:$4 sm:$0xff]   ;;  %v10539_v57 = vld [vmem:[%s14442_s1 + $0x1584] ss:$16 sps:$4 sm:$0xff]  }
 0x278   :  { %6962 = vmatprep.subr.bf16.mxu0 %v10454_v60  ;;  %7778 = vmatprep.subr.bf16.mxu1 %v10457_v58  ;;  %v10542_v60 = vld [vmem:[%s14442_s1 + $0x158c] ss:$16 sps:$4 sm:$0xff]   ;;  %v10537_v58 = vld [vmem:[%s14442_s1 + $0x1580] ss:$16 sps:$4 sm:$0xff]  }
 0x27b   :  { %6963 = vmatpush1.bf16.msra.mxu0 %v10452_v59  ;;  %7779 = vmatpush1.bf16.msra.mxu1 %v10455_v61  ;;  %v10540_v59 = vld [vmem:[%s14442_s1 + $0x1588] ss:$16 sps:$4 sm:$0xff]   ;;  %v10545_v61 = vld [vmem:[%s14442_s1 + $0x15a4] ss:$16 sps:$4 sm:$0xff]  }
 0x27c   :  { %6964 = vmatprep.subr.bf16.mxu0 %v10461_v62  ;;  %7780 = vmatprep.subr.bf16.mxu1 %v10464_v63  ;;  %v10548_v62 = vld [vmem:[%s14442_s1 + $0x15ac] ss:$16 sps:$4 sm:$0xff]   ;;  %v10543_v63 = vld [vmem:[%s14442_s1 + $0x15a0] ss:$16 sps:$4 sm:$0xff]  }
 0x27f   :  { %6965 = vmatpush1.bf16.msra.mxu0 %v10459_v0  ;;  %7781 = vmatpush1.bf16.msra.mxu1 %v10462_v3  ;;  %v10546_v0 = vld [vmem:[%s14442_s1 + $0x15a8] ss:$16 sps:$4 sm:$0xff]   ;;  %v10552_v3 = vld [vmem:[%s14442_s1 + $0x15c4] ss:$16 sps:$4 sm:$0xff]  }
 0x280   :  { %6985 = vmatprep.subr.bf16.mxu0 %v10467_v1  ;;  %7801 = vmatprep.subr.bf16.mxu1 %v10470_v2  ;;  %v10555_v1 = vld [vmem:[%s14442_s1 + $0x15cc] ss:$16 sps:$4 sm:$0xff]   ;;  %v10550_v2 = vld [vmem:[%s14442_s1 + $0x15c0] ss:$16 sps:$4 sm:$0xff]  }
 0x282   :  { %6967 = vmatmul.mubr.bf16.vlgmr.msra.gmra.mrb[0].mxu0 %v8177_v4  ;;  %7783 = vmatmul.mubr.bf16.vlgmr.msra.gmra.mrb[0].mxu1 %v8177_v4  ;;  %v10553_v4 = vld [vmem:[%s14442_s1 + $0x15c8] ss:$16 sps:$4 sm:$0xff]  }
 0x283   :  { %6986 = vmatpush1.bf16.msra.mxu0 %v10465_v6  ;;  %7802 = vmatpush1.bf16.msra.mxu1 %v10468_v7  ;;  %v10562_v6 = vld [vmem:[%s14442_s1 + $0x15ec] ss:$16 sps:$4 sm:$0xff]   ;;  %v10557_v7 = vld [vmem:[%s14442_s1 + $0x15e0] ss:$16 sps:$4 sm:$0xff]  }
 0x284   :  { %6987 = vmatprep.subr.bf16.mxu0 %v10473_v8  ;;  %7803 = vmatprep.subr.bf16.mxu1 %v10476_v9  ;;  %v10560_v8 = vld [vmem:[%s14442_s1 + $0x15e8] ss:$16 sps:$4 sm:$0xff]   ;;  %v10565_v9 = vld [vmem:[%s14442_s1 + $0x1604] ss:$16 sps:$4 sm:$0xff]  }
 0x285   :  { %6976 = vmatprep.mubr.bf16.mxu0 %v8210_v10  ;;  %7792 = vmatprep.mubr.bf16.mxu1 %v8210_v10  ;;  %v10568_v10 = vld [vmem:[%s14442_s1 + $0x160c] ss:$16 sps:$4 sm:$0xff]  }
 0x287   :  { %6988 = vmatpush1.bf16.msra.mxu0 %v10471_v11  ;;  %7804 = vmatpush1.bf16.msra.mxu1 %v10474_v12  ;;  %v8179_v11 = vcombine.low %v13185_v16, %v13190_v17  ;;  %v53_v12 = vld [vmem:[%s14443_s0 + $0x150] sm:$0xff]  ;;  %v10574_v16 = vld [vmem:[%s14442_s1 + $0x162c] ss:$16 sps:$4 sm:$0xff]  }
 0x288   :  { %6989 = vmatprep.subr.bf16.mxu0 %v10479_v13  ;;  %7805 = vmatprep.subr.bf16.mxu1 %v10482_v14  ;;  %v10563_v13 = vld [vmem:[%s14442_s1 + $0x1600] ss:$16 sps:$4 sm:$0xff]   ;;  %v10566_v14 = vld [vmem:[%s14442_s1 + $0x1608] ss:$16 sps:$4 sm:$0xff]   ;;  %v8212_v17 = vcombine.high %v53_v12, %v53_v12 }
 0x28a   :  { %6977 = vmatmul.mubr.bf16.gmra.mrb[4].mxu0 %v8209_v15  ;;  %7793 = vmatmul.mubr.bf16.gmra.mrb[4].mxu1 %v8209_v15  ;;  %v10571_v15 = vld [vmem:[%s14442_s1 + $0x1624] ss:$16 sps:$4 sm:$0xff]  }
 0x28b   :  { %6990 = vmatpush1.bf16.msra.mxu0 %v10477_v18  ;;  %7806 = vmatpush1.bf16.msra.mxu1 %v10480_v19  ;;  %v10569_v18 = vld [vmem:[%s14442_s1 + $0x1620] ss:$16 sps:$4 sm:$0xff]   ;;  %v10572_v19 = vld [vmem:[%s14442_s1 + $0x1628] ss:$16 sps:$4 sm:$0xff]  }
 0x28c   :  { %6991 = vmatprep.subr.bf16.mxu0 %v10485_v20  ;;  %7807 = vmatprep.subr.bf16.mxu1 %v10488_v21  ;;  %v10577_v20 = vld [vmem:[%s14442_s1 + $0x1644] ss:$16 sps:$4 sm:$0xff]   ;;  %v10580_v21 = vld [vmem:[%s14442_s1 + $0x164c] ss:$16 sps:$4 sm:$0xff]  }
 0x28d   :  { %7017 = vmatprep.mubr.bf16.mxu0 %v8180_v22  ;;  %7833 = vmatprep.mubr.bf16.mxu1 %v8180_v22  ;;  %v8211_v22 = vcombine.low %v53_v12, %v53_v12  ;;  %v10657_v12 = vld [vmem:[%s14442_s1 + $0x17e4] ss:$16 sps:$4 sm:$0xff]  }
 0x28f   :  { %6992 = vmatpush1.bf16.msra.mxu0 %v10483_v23  ;;  %7808 = vmatpush1.bf16.msra.mxu1 %v10486_v24  ;;  %v13394_v23 = vld [vmem:[%s14443_s0 + $0x58] sm:$0xff] }
 0x290   :  { %6993 = vmatprep.subr.bf16.mxu0 %v10491_v25  ;;  %7809 = vmatprep.subr.bf16.mxu1 %v10494_v26  ;;  %v13399_v24 = vld [vmem:[%s14443_s0 + $0xd8] sm:$0xff]  ;;  %v10575_v25 = vld [vmem:[%s14442_s1 + $0x1640] ss:$16 sps:$4 sm:$0xff]  }
 0x291   :  { %v10578_v26 = vld [vmem:[%s14442_s1 + $0x1648] ss:$16 sps:$4 sm:$0xff]  }
 0x293   :  { %6994 = vmatpush1.bf16.msra.mxu0 %v10489_v27  ;;  %7810 = vmatpush1.bf16.msra.mxu1 %v10492_v28  ;;  %v10583_v27 = vld [vmem:[%s14442_s1 + $0x1664] ss:$16 sps:$4 sm:$0xff]   ;;  %v10586_v28 = vld [vmem:[%s14442_s1 + $0x166c] ss:$16 sps:$4 sm:$0xff]  }
 0x294   :  { %6995 = vmatprep.subr.bf16.mxu0 %v10497_v29  ;;  %7811 = vmatprep.subr.bf16.mxu1 %v10500_v30  ;;  %v8182_v29 = vcombine.high %v13394_v23, %v13399_v24  ;;  %v10581_v30 = vld [vmem:[%s14442_s1 + $0x1660] ss:$16 sps:$4 sm:$0xff]  }
 0x297   :  { %6996 = vmatpush1.bf16.msra.mxu0 %v10495_v31  ;;  %7812 = vmatpush1.bf16.msra.mxu1 %v10498_v32  ;;  %v10584_v31 = vld [vmem:[%s14442_s1 + $0x1668] ss:$16 sps:$4 sm:$0xff]   ;;  %v10589_v32 = vld [vmem:[%s14442_s1 + $0x1684] ss:$16 sps:$4 sm:$0xff]  }
 0x298   :  { %6997 = vmatprep.subr.bf16.mxu0 %v10503_v33  ;;  %7813 = vmatprep.subr.bf16.mxu1 %v10506_v34  ;;  %v10592_v33 = vld [vmem:[%s14442_s1 + $0x168c] ss:$16 sps:$4 sm:$0xff]   ;;  %v10587_v34 = vld [vmem:[%s14442_s1 + $0x1680] ss:$16 sps:$4 sm:$0xff]  }
 0x29b   :  { %6998 = vmatpush1.bf16.msra.mxu0 %v10501_v35  ;;  %7814 = vmatpush1.bf16.msra.mxu1 %v10504_v36  ;;  %v10590_v35 = vld [vmem:[%s14442_s1 + $0x1688] ss:$16 sps:$4 sm:$0xff]   ;;  %v10595_v36 = vld [vmem:[%s14442_s1 + $0x16a4] ss:$16 sps:$4 sm:$0xff]  }
 0x29c   :  { %6999 = vmatprep.subr.bf16.mxu0 %v10509_v37  ;;  %7815 = vmatprep.subr.bf16.mxu1 %v10512_v38  ;;  %v10598_v37 = vld [vmem:[%s14442_s1 + $0x16ac] ss:$16 sps:$4 sm:$0xff]   ;;  %v10593_v38 = vld [vmem:[%s14442_s1 + $0x16a0] ss:$16 sps:$4 sm:$0xff]  }
 0x29f   :  { %7000 = vmatpush1.bf16.msra.mxu0 %v10507_v39  ;;  %7816 = vmatpush1.bf16.msra.mxu1 %v10510_v40  ;;  %v10596_v39 = vld [vmem:[%s14442_s1 + $0x16a8] ss:$16 sps:$4 sm:$0xff]   ;;  %v10601_v40 = vld [vmem:[%s14442_s1 + $0x16c4] ss:$16 sps:$4 sm:$0xff]  }
 0x2a0   :  { %7001 = vmatprep.subr.bf16.mxu0 %v10515_v41  ;;  %7817 = vmatprep.subr.bf16.mxu1 %v10518_v42  ;;  %v10604_v41 = vld [vmem:[%s14442_s1 + $0x16cc] ss:$16 sps:$4 sm:$0xff]   ;;  %v10599_v42 = vld [vmem:[%s14442_s1 + $0x16c0] ss:$16 sps:$4 sm:$0xff]  }
 0x2a3   :  { %7002 = vmatpush1.bf16.msra.mxu0 %v10513_v43  ;;  %7818 = vmatpush1.bf16.msra.mxu1 %v10516_v46  ;;  %v10602_v43 = vld [vmem:[%s14442_s1 + $0x16c8] ss:$16 sps:$4 sm:$0xff]   ;;  %v10607_v46 = vld [vmem:[%s14442_s1 + $0x16e4] ss:$16 sps:$4 sm:$0xff]  }
 0x2a4   :  { %7003 = vmatprep.subr.bf16.mxu0 %v10521_v44  ;;  %7819 = vmatprep.subr.bf16.mxu1 %v10524_v45  ;;  %v10610_v44 = vld [vmem:[%s14442_s1 + $0x16ec] ss:$16 sps:$4 sm:$0xff]   ;;  %v10605_v45 = vld [vmem:[%s14442_s1 + $0x16e0] ss:$16 sps:$4 sm:$0xff]  }
 0x2a7   :  { %7004 = vmatpush1.bf16.msra.mxu0 %v10519_v47  ;;  %7820 = vmatpush1.bf16.msra.mxu1 %v10522_v48  ;;  %v10608_v47 = vld [vmem:[%s14442_s1 + $0x16e8] ss:$16 sps:$4 sm:$0xff]   ;;  %v10613_v48 = vld [vmem:[%s14442_s1 + $0x1704] ss:$16 sps:$4 sm:$0xff]  }
 0x2a8   :  { %7005 = vmatprep.subr.bf16.mxu0 %v10527_v49  ;;  %7821 = vmatprep.subr.bf16.mxu1 %v10530_v50  ;;  %v10616_v49 = vld [vmem:[%s14442_s1 + $0x170c] ss:$16 sps:$4 sm:$0xff]   ;;  %v10611_v50 = vld [vmem:[%s14442_s1 + $0x1700] ss:$16 sps:$4 sm:$0xff]  }
 0x2ab   :  { %7006 = vmatpush1.bf16.msra.mxu0 %v10525_v53  ;;  %7822 = vmatpush1.bf16.msra.mxu1 %v10528_v51  ;;  %v10614_v53 = vld [vmem:[%s14442_s1 + $0x1708] ss:$16 sps:$4 sm:$0xff]   ;;  %v10619_v51 = vld [vmem:[%s14442_s1 + $0x1724] ss:$16 sps:$4 sm:$0xff]  }
 0x2ac   :  { %7007 = vmatprep.subr.bf16.mxu0 %v10533_v52  ;;  %7823 = vmatprep.subr.bf16.mxu1 %v10536_v54  ;;  %v10622_v52 = vld [vmem:[%s14442_s1 + $0x172c] ss:$16 sps:$4 sm:$0xff]   ;;  %v10617_v54 = vld [vmem:[%s14442_s1 + $0x1720] ss:$16 sps:$4 sm:$0xff]  }
 0x2af   :  { %7008 = vmatpush1.bf16.msra.mxu0 %v10531_v55  ;;  %7824 = vmatpush1.bf16.msra.mxu1 %v10534_v56  ;;  %v10620_v55 = vld [vmem:[%s14442_s1 + $0x1728] ss:$16 sps:$4 sm:$0xff]   ;;  %v10625_v56 = vld [vmem:[%s14442_s1 + $0x1744] ss:$16 sps:$4 sm:$0xff]  }
 0x2b0   :  { %7009 = vmatprep.subr.bf16.mxu0 %v10539_v57  ;;  %7825 = vmatprep.subr.bf16.mxu1 %v10542_v60  ;;  %v10628_v57 = vld [vmem:[%s14442_s1 + $0x174c] ss:$16 sps:$4 sm:$0xff]   ;;  %v10623_v60 = vld [vmem:[%s14442_s1 + $0x1740] ss:$16 sps:$4 sm:$0xff]  }
 0x2b3   :  { %7010 = vmatpush1.bf16.msra.mxu0 %v10537_v58  ;;  %7826 = vmatpush1.bf16.msra.mxu1 %v10540_v59  ;;  %v10626_v58 = vld [vmem:[%s14442_s1 + $0x1748] ss:$16 sps:$4 sm:$0xff]   ;;  %v10631_v59 = vld [vmem:[%s14442_s1 + $0x1764] ss:$16 sps:$4 sm:$0xff]  }
 0x2b4   :  { %7011 = vmatprep.subr.bf16.mxu0 %v10545_v61  ;;  %7827 = vmatprep.subr.bf16.mxu1 %v10548_v62  ;;  %v10634_v61 = vld [vmem:[%s14442_s1 + $0x176c] ss:$16 sps:$4 sm:$0xff]   ;;  %v10629_v62 = vld [vmem:[%s14442_s1 + $0x1760] ss:$16 sps:$4 sm:$0xff]  }
 0x2b7   :  { %7012 = vmatpush1.bf16.msra.mxu0 %v10543_v63  ;;  %7828 = vmatpush1.bf16.msra.mxu1 %v10546_v0  ;;  %v10632_v63 = vld [vmem:[%s14442_s1 + $0x1768] ss:$16 sps:$4 sm:$0xff]   ;;  %v10637_v0 = vld [vmem:[%s14442_s1 + $0x1784] ss:$16 sps:$4 sm:$0xff]  }
 0x2b8   :  { %7013 = vmatprep.subr.bf16.mxu0 %v10552_v3  ;;  %7829 = vmatprep.subr.bf16.mxu1 %v10555_v1  ;;  %v10640_v3 = vld [vmem:[%s14442_s1 + $0x178c] ss:$16 sps:$4 sm:$0xff]   ;;  %v10635_v1 = vld [vmem:[%s14442_s1 + $0x1780] ss:$16 sps:$4 sm:$0xff]  }
 0x2bb   :  { %7014 = vmatpush1.bf16.msra.mxu0 %v10550_v2  ;;  %7830 = vmatpush1.bf16.msra.mxu1 %v10553_v4  ;;  %v10638_v2 = vld [vmem:[%s14442_s1 + $0x1788] ss:$16 sps:$4 sm:$0xff]   ;;  %v10643_v4 = vld [vmem:[%s14442_s1 + $0x17a4] ss:$16 sps:$4 sm:$0xff]  }
 0x2bc   :  { %7015 = vmatprep.subr.bf16.mxu0 %v10559_v5  ;;  %7831 = vmatprep.subr.bf16.mxu1 %v10562_v6  ;;  %v10646_v5 = vld [vmem:[%s14442_s1 + $0x17ac] ss:$16 sps:$4 sm:$0xff]   ;;  %v10641_v6 = vld [vmem:[%s14442_s1 + $0x17a0] ss:$16 sps:$4 sm:$0xff]  }
 0x2bf   :  { %7016 = vmatpush1.bf16.msra.mxu0 %v10557_v7  ;;  %7832 = vmatpush1.bf16.msra.mxu1 %v10560_v8  ;;  %v10644_v7 = vld [vmem:[%s14442_s1 + $0x17a8] ss:$16 sps:$4 sm:$0xff]   ;;  %v10650_v8 = vld [vmem:[%s14442_s1 + $0x17c4] ss:$16 sps:$4 sm:$0xff]  }
 0x2c0   :  { %7036 = vmatprep.subr.bf16.mxu0 %v10565_v9  ;;  %7852 = vmatprep.subr.bf16.mxu1 %v10568_v10  ;;  %v10653_v9 = vld [vmem:[%s14442_s1 + $0x17cc] ss:$16 sps:$4 sm:$0xff]   ;;  %v10648_v10 = vld [vmem:[%s14442_s1 + $0x17c0] ss:$16 sps:$4 sm:$0xff]  }
 0x2c2   :  { %7018 = vmatmul.mubr.bf16.vlgmr.msra.gmra.mrb[0].mxu0 %v8179_v11  ;;  %7834 = vmatmul.mubr.bf16.vlgmr.msra.gmra.mrb[0].mxu1 %v8179_v11  ;;  %v10651_v11 = vld [vmem:[%s14442_s1 + $0x17c8] ss:$16 sps:$4 sm:$0xff]  }
 0x2c3   :  { %7037 = vmatpush1.bf16.msra.mxu0 %v10563_v13  ;;  %7853 = vmatpush1.bf16.msra.mxu1 %v10566_v14  ;;  %v10660_v13 = vld [vmem:[%s14442_s1 + $0x17ec] ss:$16 sps:$4 sm:$0xff]   ;;  %v10655_v14 = vld [vmem:[%s14442_s1 + $0x17e0] ss:$16 sps:$4 sm:$0xff]  }
 0x2c4   :  { %7038 = vmatprep.subr.bf16.mxu0 %v10571_v15  ;;  %7854 = vmatprep.subr.bf16.mxu1 %v10574_v16  ;;  %v10658_v15 = vld [vmem:[%s14442_s1 + $0x17e8] ss:$16 sps:$4 sm:$0xff]   ;;  %v10663_v16 = vld [vmem:[%s14442_s1 + $0x1804] ss:$16 sps:$4 sm:$0xff]  }
 0x2c5   :  { %7027 = vmatprep.mubr.bf16.mxu0 %v8212_v17  ;;  %7843 = vmatprep.mubr.bf16.mxu1 %v8212_v17  ;;  %v10666_v17 = vld [vmem:[%s14442_s1 + $0x180c] ss:$16 sps:$4 sm:$0xff]  }
 0x2c7   :  { %7039 = vmatpush1.bf16.msra.mxu0 %v10569_v18  ;;  %7855 = vmatpush1.bf16.msra.mxu1 %v10572_v19  ;;  %v8181_v18 = vcombine.low %v13394_v23, %v13399_v24  ;;  %v54_v19 = vld [vmem:[%s14443_s0 + $0x158] sm:$0xff] }
 0x2c8   :  { %7040 = vmatprep.subr.bf16.mxu0 %v10577_v20  ;;  %7856 = vmatprep.subr.bf16.mxu1 %v10580_v21  ;;  %v10661_v20 = vld [vmem:[%s14442_s1 + $0x1800] ss:$16 sps:$4 sm:$0xff]   ;;  %v10664_v21 = vld [vmem:[%s14442_s1 + $0x1808] ss:$16 sps:$4 sm:$0xff]   ;;  %v10672_v23 = vld [vmem:[%s14442_s1 + $0x182c] ss:$16 sps:$4 sm:$0xff]   ;;  %v8214_v24 = vcombine.high %v54_v19, %v54_v19 }
 0x2ca   :  { %7028 = vmatmul.mubr.bf16.gmra.mrb[4].mxu0 %v8211_v22  ;;  %7844 = vmatmul.mubr.bf16.gmra.mrb[4].mxu1 %v8211_v22  ;;  %v10669_v22 = vld [vmem:[%s14442_s1 + $0x1824] ss:$16 sps:$4 sm:$0xff]  }
 0x2cb   :  { %7041 = vmatpush1.bf16.msra.mxu0 %v10575_v25  ;;  %7857 = vmatpush1.bf16.msra.mxu1 %v10578_v26  ;;  %v10667_v25 = vld [vmem:[%s14442_s1 + $0x1820] ss:$16 sps:$4 sm:$0xff]   ;;  %v10670_v26 = vld [vmem:[%s14442_s1 + $0x1828] ss:$16 sps:$4 sm:$0xff]  }
 0x2cc   :  { %7042 = vmatprep.subr.bf16.mxu0 %v10583_v27  ;;  %7858 = vmatprep.subr.bf16.mxu1 %v10586_v28  ;;  %v10675_v27 = vld [vmem:[%s14442_s1 + $0x1844] ss:$16 sps:$4 sm:$0xff]   ;;  %v10678_v28 = vld [vmem:[%s14442_s1 + $0x184c] ss:$16 sps:$4 sm:$0xff]  }
 0x2cd   :  { %7068 = vmatprep.mubr.bf16.mxu0 %v8182_v29  ;;  %7884 = vmatprep.mubr.bf16.mxu1 %v8182_v29  ;;  %v8213_v29 = vcombine.low %v54_v19, %v54_v19  ;;  %v10755_v19 = vld [vmem:[%s14442_s1 + $0x19e4] ss:$16 sps:$4 sm:$0xff]  }
 0x2cf   :  { %7043 = vmatpush1.bf16.msra.mxu0 %v10581_v30  ;;  %7859 = vmatpush1.bf16.msra.mxu1 %v10584_v31  ;;  %v13603_v30 = vld [vmem:[%s14443_s0 + $0x60] sm:$0xff] }
 0x2d0   :  { %7044 = vmatprep.subr.bf16.mxu0 %v10589_v32  ;;  %7860 = vmatprep.subr.bf16.mxu1 %v10592_v33  ;;  %v13608_v31 = vld [vmem:[%s14443_s0 + $0xe0] sm:$0xff]  ;;  %v10676_v33 = vld [vmem:[%s14442_s1 + $0x1848] ss:$16 sps:$4 sm:$0xff]  }
 0x2d1   :  { %v10673_v32 = vld [vmem:[%s14442_s1 + $0x1840] ss:$16 sps:$4 sm:$0xff]  }
 0x2d3   :  { %7045 = vmatpush1.bf16.msra.mxu0 %v10587_v34  ;;  %7861 = vmatpush1.bf16.msra.mxu1 %v10590_v35  ;;  %v10681_v34 = vld [vmem:[%s14442_s1 + $0x1864] ss:$16 sps:$4 sm:$0xff]   ;;  %v10684_v35 = vld [vmem:[%s14442_s1 + $0x186c] ss:$16 sps:$4 sm:$0xff]  }
 0x2d4   :  { %7046 = vmatprep.subr.bf16.mxu0 %v10595_v36  ;;  %7862 = vmatprep.subr.bf16.mxu1 %v10598_v37  ;;  %v8184_v36 = vcombine.high %v13603_v30, %v13608_v31  ;;  %v10679_v37 = vld [vmem:[%s14442_s1 + $0x1860] ss:$16 sps:$4 sm:$0xff]  }
 0x2d7   :  { %7047 = vmatpush1.bf16.msra.mxu0 %v10593_v38  ;;  %7863 = vmatpush1.bf16.msra.mxu1 %v10596_v39  ;;  %v10682_v38 = vld [vmem:[%s14442_s1 + $0x1868] ss:$16 sps:$4 sm:$0xff]   ;;  %v10687_v39 = vld [vmem:[%s14442_s1 + $0x1884] ss:$16 sps:$4 sm:$0xff]  }
 0x2d8   :  { %7048 = vmatprep.subr.bf16.mxu0 %v10601_v40  ;;  %7864 = vmatprep.subr.bf16.mxu1 %v10604_v41  ;;  %v10690_v40 = vld [vmem:[%s14442_s1 + $0x188c] ss:$16 sps:$4 sm:$0xff]   ;;  %v10685_v41 = vld [vmem:[%s14442_s1 + $0x1880] ss:$16 sps:$4 sm:$0xff]  }
 0x2db   :  { %7049 = vmatpush1.bf16.msra.mxu0 %v10599_v42  ;;  %7865 = vmatpush1.bf16.msra.mxu1 %v10602_v43  ;;  %v10688_v42 = vld [vmem:[%s14442_s1 + $0x1888] ss:$16 sps:$4 sm:$0xff]   ;;  %v10693_v43 = vld [vmem:[%s14442_s1 + $0x18a4] ss:$16 sps:$4 sm:$0xff]  }
 0x2dc   :  { %7050 = vmatprep.subr.bf16.mxu0 %v10607_v46  ;;  %7866 = vmatprep.subr.bf16.mxu1 %v10610_v44  ;;  %v10696_v46 = vld [vmem:[%s14442_s1 + $0x18ac] ss:$16 sps:$4 sm:$0xff]   ;;  %v10691_v44 = vld [vmem:[%s14442_s1 + $0x18a0] ss:$16 sps:$4 sm:$0xff]  }
 0x2df   :  { %7051 = vmatpush1.bf16.msra.mxu0 %v10605_v45  ;;  %7867 = vmatpush1.bf16.msra.mxu1 %v10608_v47  ;;  %v10694_v45 = vld [vmem:[%s14442_s1 + $0x18a8] ss:$16 sps:$4 sm:$0xff]   ;;  %v10699_v47 = vld [vmem:[%s14442_s1 + $0x18c4] ss:$16 sps:$4 sm:$0xff]  }
 0x2e0   :  { %7052 = vmatprep.subr.bf16.mxu0 %v10613_v48  ;;  %7868 = vmatprep.subr.bf16.mxu1 %v10616_v49  ;;  %v10702_v48 = vld [vmem:[%s14442_s1 + $0x18cc] ss:$16 sps:$4 sm:$0xff]   ;;  %v10697_v49 = vld [vmem:[%s14442_s1 + $0x18c0] ss:$16 sps:$4 sm:$0xff]  }
 0x2e3   :  { %7053 = vmatpush1.bf16.msra.mxu0 %v10611_v50  ;;  %7869 = vmatpush1.bf16.msra.mxu1 %v10614_v53  ;;  %v10700_v50 = vld [vmem:[%s14442_s1 + $0x18c8] ss:$16 sps:$4 sm:$0xff]   ;;  %v10705_v53 = vld [vmem:[%s14442_s1 + $0x18e4] ss:$16 sps:$4 sm:$0xff]  }
 0x2e4   :  { %7054 = vmatprep.subr.bf16.mxu0 %v10619_v51  ;;  %7870 = vmatprep.subr.bf16.mxu1 %v10622_v52  ;;  %v10708_v51 = vld [vmem:[%s14442_s1 + $0x18ec] ss:$16 sps:$4 sm:$0xff]   ;;  %v10703_v52 = vld [vmem:[%s14442_s1 + $0x18e0] ss:$16 sps:$4 sm:$0xff]  }
 0x2e7   :  { %7055 = vmatpush1.bf16.msra.mxu0 %v10617_v54  ;;  %7871 = vmatpush1.bf16.msra.mxu1 %v10620_v55  ;;  %v10706_v54 = vld [vmem:[%s14442_s1 + $0x18e8] ss:$16 sps:$4 sm:$0xff]   ;;  %v10711_v55 = vld [vmem:[%s14442_s1 + $0x1904] ss:$16 sps:$4 sm:$0xff]  }
 0x2e8   :  { %7056 = vmatprep.subr.bf16.mxu0 %v10625_v56  ;;  %7872 = vmatprep.subr.bf16.mxu1 %v10628_v57  ;;  %v10714_v56 = vld [vmem:[%s14442_s1 + $0x190c] ss:$16 sps:$4 sm:$0xff]   ;;  %v10709_v57 = vld [vmem:[%s14442_s1 + $0x1900] ss:$16 sps:$4 sm:$0xff]  }
 0x2eb   :  { %7057 = vmatpush1.bf16.msra.mxu0 %v10623_v60  ;;  %7873 = vmatpush1.bf16.msra.mxu1 %v10626_v58  ;;  %v10712_v60 = vld [vmem:[%s14442_s1 + $0x1908] ss:$16 sps:$4 sm:$0xff]   ;;  %v10717_v58 = vld [vmem:[%s14442_s1 + $0x1924] ss:$16 sps:$4 sm:$0xff]  }
 0x2ec   :  { %7058 = vmatprep.subr.bf16.mxu0 %v10631_v59  ;;  %7874 = vmatprep.subr.bf16.mxu1 %v10634_v61  ;;  %v10720_v59 = vld [vmem:[%s14442_s1 + $0x192c] ss:$16 sps:$4 sm:$0xff]   ;;  %v10715_v61 = vld [vmem:[%s14442_s1 + $0x1920] ss:$16 sps:$4 sm:$0xff]  }
 0x2ef   :  { %7059 = vmatpush1.bf16.msra.mxu0 %v10629_v62  ;;  %7875 = vmatpush1.bf16.msra.mxu1 %v10632_v63  ;;  %v10718_v62 = vld [vmem:[%s14442_s1 + $0x1928] ss:$16 sps:$4 sm:$0xff]   ;;  %v10723_v63 = vld [vmem:[%s14442_s1 + $0x1944] ss:$16 sps:$4 sm:$0xff]  }
 0x2f0   :  { %7060 = vmatprep.subr.bf16.mxu0 %v10637_v0  ;;  %7876 = vmatprep.subr.bf16.mxu1 %v10640_v3  ;;  %v10726_v0 = vld [vmem:[%s14442_s1 + $0x194c] ss:$16 sps:$4 sm:$0xff]   ;;  %v10721_v3 = vld [vmem:[%s14442_s1 + $0x1940] ss:$16 sps:$4 sm:$0xff]  }
 0x2f3   :  { %7061 = vmatpush1.bf16.msra.mxu0 %v10635_v1  ;;  %7877 = vmatpush1.bf16.msra.mxu1 %v10638_v2  ;;  %v10724_v1 = vld [vmem:[%s14442_s1 + $0x1948] ss:$16 sps:$4 sm:$0xff]   ;;  %v10729_v2 = vld [vmem:[%s14442_s1 + $0x1964] ss:$16 sps:$4 sm:$0xff]  }
 0x2f4   :  { %7062 = vmatprep.subr.bf16.mxu0 %v10643_v4  ;;  %7878 = vmatprep.subr.bf16.mxu1 %v10646_v5  ;;  %v10732_v4 = vld [vmem:[%s14442_s1 + $0x196c] ss:$16 sps:$4 sm:$0xff]   ;;  %v10727_v5 = vld [vmem:[%s14442_s1 + $0x1960] ss:$16 sps:$4 sm:$0xff]  }
 0x2f7   :  { %7063 = vmatpush1.bf16.msra.mxu0 %v10641_v6  ;;  %7879 = vmatpush1.bf16.msra.mxu1 %v10644_v7  ;;  %v10730_v6 = vld [vmem:[%s14442_s1 + $0x1968] ss:$16 sps:$4 sm:$0xff]   ;;  %v10735_v7 = vld [vmem:[%s14442_s1 + $0x1984] ss:$16 sps:$4 sm:$0xff]  }
 0x2f8   :  { %7064 = vmatprep.subr.bf16.mxu0 %v10650_v8  ;;  %7880 = vmatprep.subr.bf16.mxu1 %v10653_v9  ;;  %v10738_v8 = vld [vmem:[%s14442_s1 + $0x198c] ss:$16 sps:$4 sm:$0xff]   ;;  %v10733_v9 = vld [vmem:[%s14442_s1 + $0x1980] ss:$16 sps:$4 sm:$0xff]  }
 0x2fb   :  { %7065 = vmatpush1.bf16.msra.mxu0 %v10648_v10  ;;  %7881 = vmatpush1.bf16.msra.mxu1 %v10651_v11  ;;  %v10736_v10 = vld [vmem:[%s14442_s1 + $0x1988] ss:$16 sps:$4 sm:$0xff]   ;;  %v10741_v11 = vld [vmem:[%s14442_s1 + $0x19a4] ss:$16 sps:$4 sm:$0xff]  }
 0x2fc   :  { %7066 = vmatprep.subr.bf16.mxu0 %v10657_v12  ;;  %7882 = vmatprep.subr.bf16.mxu1 %v10660_v13  ;;  %v10744_v12 = vld [vmem:[%s14442_s1 + $0x19ac] ss:$16 sps:$4 sm:$0xff]   ;;  %v10739_v13 = vld [vmem:[%s14442_s1 + $0x19a0] ss:$16 sps:$4 sm:$0xff]  }
 0x2ff   :  { %7067 = vmatpush1.bf16.msra.mxu0 %v10655_v14  ;;  %7883 = vmatpush1.bf16.msra.mxu1 %v10658_v15  ;;  %v10742_v14 = vld [vmem:[%s14442_s1 + $0x19a8] ss:$16 sps:$4 sm:$0xff]   ;;  %v10748_v15 = vld [vmem:[%s14442_s1 + $0x19c4] ss:$16 sps:$4 sm:$0xff]  }
 0x300   :  { %7087 = vmatprep.subr.bf16.mxu0 %v10663_v16  ;;  %7903 = vmatprep.subr.bf16.mxu1 %v10666_v17  ;;  %v10751_v16 = vld [vmem:[%s14442_s1 + $0x19cc] ss:$16 sps:$4 sm:$0xff]   ;;  %v10746_v17 = vld [vmem:[%s14442_s1 + $0x19c0] ss:$16 sps:$4 sm:$0xff]  }
 0x302   :  { %7069 = vmatmul.mubr.bf16.vlgmr.msra.gmra.mrb[0].mxu0 %v8181_v18  ;;  %7885 = vmatmul.mubr.bf16.vlgmr.msra.gmra.mrb[0].mxu1 %v8181_v18  ;;  %v10749_v18 = vld [vmem:[%s14442_s1 + $0x19c8] ss:$16 sps:$4 sm:$0xff]  }
 0x303   :  { %7088 = vmatpush1.bf16.msra.mxu0 %v10661_v20  ;;  %7904 = vmatpush1.bf16.msra.mxu1 %v10664_v21  ;;  %v10758_v20 = vld [vmem:[%s14442_s1 + $0x19ec] ss:$16 sps:$4 sm:$0xff]   ;;  %v10753_v21 = vld [vmem:[%s14442_s1 + $0x19e0] ss:$16 sps:$4 sm:$0xff]  }
 0x304   :  { %7089 = vmatprep.subr.bf16.mxu0 %v10669_v22  ;;  %7905 = vmatprep.subr.bf16.mxu1 %v10672_v23  ;;  %v10756_v22 = vld [vmem:[%s14442_s1 + $0x19e8] ss:$16 sps:$4 sm:$0xff]   ;;  %v10761_v23 = vld [vmem:[%s14442_s1 + $0x1a04] ss:$16 sps:$4 sm:$0xff]  }
 0x305   :  { %7078 = vmatprep.mubr.bf16.mxu0 %v8214_v24  ;;  %7894 = vmatprep.mubr.bf16.mxu1 %v8214_v24  ;;  %v10764_v24 = vld [vmem:[%s14442_s1 + $0x1a0c] ss:$16 sps:$4 sm:$0xff]  }
 0x307   :  { %7090 = vmatpush1.bf16.msra.mxu0 %v10667_v25  ;;  %7906 = vmatpush1.bf16.msra.mxu1 %v10670_v26  ;;  %v8183_v25 = vcombine.low %v13603_v30, %v13608_v31  ;;  %v55_v26 = vld [vmem:[%s14443_s0 + $0x160] sm:$0xff]  ;;  %v10770_v30 = vld [vmem:[%s14442_s1 + $0x1a2c] ss:$16 sps:$4 sm:$0xff]  }
 0x308   :  { %7091 = vmatprep.subr.bf16.mxu0 %v10675_v27  ;;  %7907 = vmatprep.subr.bf16.mxu1 %v10678_v28  ;;  %v10759_v27 = vld [vmem:[%s14442_s1 + $0x1a00] ss:$16 sps:$4 sm:$0xff]   ;;  %v10762_v28 = vld [vmem:[%s14442_s1 + $0x1a08] ss:$16 sps:$4 sm:$0xff]   ;;  %v8216_v31 = vcombine.high %v55_v26, %v55_v26 }
 0x30a   :  { %7079 = vmatmul.mubr.bf16.gmra.mrb[4].mxu0 %v8213_v29  ;;  %7895 = vmatmul.mubr.bf16.gmra.mrb[4].mxu1 %v8213_v29  ;;  %v10767_v29 = vld [vmem:[%s14442_s1 + $0x1a24] ss:$16 sps:$4 sm:$0xff]  }
 0x30b   :  { %7092 = vmatpush1.bf16.msra.mxu0 %v10673_v32  ;;  %7908 = vmatpush1.bf16.msra.mxu1 %v10676_v33  ;;  %v10765_v32 = vld [vmem:[%s14442_s1 + $0x1a20] ss:$16 sps:$4 sm:$0xff]   ;;  %v10768_v33 = vld [vmem:[%s14442_s1 + $0x1a28] ss:$16 sps:$4 sm:$0xff]  }
 0x30c   :  { %7093 = vmatprep.subr.bf16.mxu0 %v10681_v34  ;;  %7909 = vmatprep.subr.bf16.mxu1 %v10684_v35  ;;  %v10773_v34 = vld [vmem:[%s14442_s1 + $0x1a44] ss:$16 sps:$4 sm:$0xff]   ;;  %v10776_v35 = vld [vmem:[%s14442_s1 + $0x1a4c] ss:$16 sps:$4 sm:$0xff]  }
 0x30d   :  { %7119 = vmatprep.mubr.bf16.mxu0 %v8184_v36  ;;  %7935 = vmatprep.mubr.bf16.mxu1 %v8184_v36  ;;  %v8215_v36 = vcombine.low %v55_v26, %v55_v26  ;;  %v10853_v26 = vld [vmem:[%s14442_s1 + $0x1be4] ss:$16 sps:$4 sm:$0xff]  }
 0x30f   :  { %7094 = vmatpush1.bf16.msra.mxu0 %v10679_v37  ;;  %7910 = vmatpush1.bf16.msra.mxu1 %v10682_v38  ;;  %v13812_v37 = vld [vmem:[%s14443_s0 + $0x68] sm:$0xff] }
 0x310   :  { %7095 = vmatprep.subr.bf16.mxu0 %v10687_v39  ;;  %7911 = vmatprep.subr.bf16.mxu1 %v10690_v40  ;;  %v13817_v38 = vld [vmem:[%s14443_s0 + $0xe8] sm:$0xff]  ;;  %v10771_v39 = vld [vmem:[%s14442_s1 + $0x1a40] ss:$16 sps:$4 sm:$0xff]  }
 0x311   :  { %v10774_v40 = vld [vmem:[%s14442_s1 + $0x1a48] ss:$16 sps:$4 sm:$0xff]  }
 0x313   :  { %7096 = vmatpush1.bf16.msra.mxu0 %v10685_v41  ;;  %7912 = vmatpush1.bf16.msra.mxu1 %v10688_v42  ;;  %v10779_v41 = vld [vmem:[%s14442_s1 + $0x1a64] ss:$16 sps:$4 sm:$0xff]   ;;  %v10782_v42 = vld [vmem:[%s14442_s1 + $0x1a6c] ss:$16 sps:$4 sm:$0xff]  }
 0x314   :  { %7097 = vmatprep.subr.bf16.mxu0 %v10693_v43  ;;  %7913 = vmatprep.subr.bf16.mxu1 %v10696_v46  ;;  %v8186_v43 = vcombine.high %v13812_v37, %v13817_v38  ;;  %v10777_v46 = vld [vmem:[%s14442_s1 + $0x1a60] ss:$16 sps:$4 sm:$0xff]  }
 0x317   :  { %7098 = vmatpush1.bf16.msra.mxu0 %v10691_v44  ;;  %7914 = vmatpush1.bf16.msra.mxu1 %v10694_v45  ;;  %v10780_v44 = vld [vmem:[%s14442_s1 + $0x1a68] ss:$16 sps:$4 sm:$0xff]   ;;  %v10785_v45 = vld [vmem:[%s14442_s1 + $0x1a84] ss:$16 sps:$4 sm:$0xff]  }
 0x318   :  { %7099 = vmatprep.subr.bf16.mxu0 %v10699_v47  ;;  %7915 = vmatprep.subr.bf16.mxu1 %v10702_v48  ;;  %v10788_v47 = vld [vmem:[%s14442_s1 + $0x1a8c] ss:$16 sps:$4 sm:$0xff]   ;;  %v10783_v48 = vld [vmem:[%s14442_s1 + $0x1a80] ss:$16 sps:$4 sm:$0xff]  }
 0x31b   :  { %7100 = vmatpush1.bf16.msra.mxu0 %v10697_v49  ;;  %7916 = vmatpush1.bf16.msra.mxu1 %v10700_v50  ;;  %v10786_v49 = vld [vmem:[%s14442_s1 + $0x1a88] ss:$16 sps:$4 sm:$0xff]   ;;  %v10791_v50 = vld [vmem:[%s14442_s1 + $0x1aa4] ss:$16 sps:$4 sm:$0xff]  }
 0x31c   :  { %7101 = vmatprep.subr.bf16.mxu0 %v10705_v53  ;;  %7917 = vmatprep.subr.bf16.mxu1 %v10708_v51  ;;  %v10794_v53 = vld [vmem:[%s14442_s1 + $0x1aac] ss:$16 sps:$4 sm:$0xff]   ;;  %v10789_v51 = vld [vmem:[%s14442_s1 + $0x1aa0] ss:$16 sps:$4 sm:$0xff]  }
 0x31f   :  { %7102 = vmatpush1.bf16.msra.mxu0 %v10703_v52  ;;  %7918 = vmatpush1.bf16.msra.mxu1 %v10706_v54  ;;  %v10792_v52 = vld [vmem:[%s14442_s1 + $0x1aa8] ss:$16 sps:$4 sm:$0xff]   ;;  %v10797_v54 = vld [vmem:[%s14442_s1 + $0x1ac4] ss:$16 sps:$4 sm:$0xff]  }
 0x320   :  { %7103 = vmatprep.subr.bf16.mxu0 %v10711_v55  ;;  %7919 = vmatprep.subr.bf16.mxu1 %v10714_v56  ;;  %v10800_v55 = vld [vmem:[%s14442_s1 + $0x1acc] ss:$16 sps:$4 sm:$0xff]   ;;  %v10795_v56 = vld [vmem:[%s14442_s1 + $0x1ac0] ss:$16 sps:$4 sm:$0xff]  }
 0x323   :  { %7104 = vmatpush1.bf16.msra.mxu0 %v10709_v57  ;;  %7920 = vmatpush1.bf16.msra.mxu1 %v10712_v60  ;;  %v10798_v57 = vld [vmem:[%s14442_s1 + $0x1ac8] ss:$16 sps:$4 sm:$0xff]   ;;  %v10803_v60 = vld [vmem:[%s14442_s1 + $0x1ae4] ss:$16 sps:$4 sm:$0xff]  }
 0x324   :  { %7105 = vmatprep.subr.bf16.mxu0 %v10717_v58  ;;  %7921 = vmatprep.subr.bf16.mxu1 %v10720_v59  ;;  %v10806_v58 = vld [vmem:[%s14442_s1 + $0x1aec] ss:$16 sps:$4 sm:$0xff]   ;;  %v10801_v59 = vld [vmem:[%s14442_s1 + $0x1ae0] ss:$16 sps:$4 sm:$0xff]  }
 0x327   :  { %7106 = vmatpush1.bf16.msra.mxu0 %v10715_v61  ;;  %7922 = vmatpush1.bf16.msra.mxu1 %v10718_v62  ;;  %v10804_v61 = vld [vmem:[%s14442_s1 + $0x1ae8] ss:$16 sps:$4 sm:$0xff]   ;;  %v10809_v62 = vld [vmem:[%s14442_s1 + $0x1b04] ss:$16 sps:$4 sm:$0xff]  }
 0x328   :  { %7107 = vmatprep.subr.bf16.mxu0 %v10723_v63  ;;  %7923 = vmatprep.subr.bf16.mxu1 %v10726_v0  ;;  %v10812_v63 = vld [vmem:[%s14442_s1 + $0x1b0c] ss:$16 sps:$4 sm:$0xff]   ;;  %v10807_v0 = vld [vmem:[%s14442_s1 + $0x1b00] ss:$16 sps:$4 sm:$0xff]  }
 0x32b   :  { %7108 = vmatpush1.bf16.msra.mxu0 %v10721_v3  ;;  %7924 = vmatpush1.bf16.msra.mxu1 %v10724_v1  ;;  %v10810_v3 = vld [vmem:[%s14442_s1 + $0x1b08] ss:$16 sps:$4 sm:$0xff]   ;;  %v10815_v1 = vld [vmem:[%s14442_s1 + $0x1b24] ss:$16 sps:$4 sm:$0xff]  }
 0x32c   :  { %7109 = vmatprep.subr.bf16.mxu0 %v10729_v2  ;;  %7925 = vmatprep.subr.bf16.mxu1 %v10732_v4  ;;  %v10818_v2 = vld [vmem:[%s14442_s1 + $0x1b2c] ss:$16 sps:$4 sm:$0xff]   ;;  %v10813_v4 = vld [vmem:[%s14442_s1 + $0x1b20] ss:$16 sps:$4 sm:$0xff]  }
 0x32f   :  { %7110 = vmatpush1.bf16.msra.mxu0 %v10727_v5  ;;  %7926 = vmatpush1.bf16.msra.mxu1 %v10730_v6  ;;  %v10816_v5 = vld [vmem:[%s14442_s1 + $0x1b28] ss:$16 sps:$4 sm:$0xff]   ;;  %v10821_v6 = vld [vmem:[%s14442_s1 + $0x1b44] ss:$16 sps:$4 sm:$0xff]  }
 0x330   :  { %7111 = vmatprep.subr.bf16.mxu0 %v10735_v7  ;;  %7927 = vmatprep.subr.bf16.mxu1 %v10738_v8  ;;  %v10824_v7 = vld [vmem:[%s14442_s1 + $0x1b4c] ss:$16 sps:$4 sm:$0xff]   ;;  %v10819_v8 = vld [vmem:[%s14442_s1 + $0x1b40] ss:$16 sps:$4 sm:$0xff]  }
 0x333   :  { %7112 = vmatpush1.bf16.msra.mxu0 %v10733_v9  ;;  %7928 = vmatpush1.bf16.msra.mxu1 %v10736_v10  ;;  %v10822_v9 = vld [vmem:[%s14442_s1 + $0x1b48] ss:$16 sps:$4 sm:$0xff]   ;;  %v10827_v10 = vld [vmem:[%s14442_s1 + $0x1b64] ss:$16 sps:$4 sm:$0xff]  }
 0x334   :  { %7113 = vmatprep.subr.bf16.mxu0 %v10741_v11  ;;  %7929 = vmatprep.subr.bf16.mxu1 %v10744_v12  ;;  %v10830_v11 = vld [vmem:[%s14442_s1 + $0x1b6c] ss:$16 sps:$4 sm:$0xff]   ;;  %v10825_v12 = vld [vmem:[%s14442_s1 + $0x1b60] ss:$16 sps:$4 sm:$0xff]  }
 0x337   :  { %7114 = vmatpush1.bf16.msra.mxu0 %v10739_v13  ;;  %7930 = vmatpush1.bf16.msra.mxu1 %v10742_v14  ;;  %v10828_v13 = vld [vmem:[%s14442_s1 + $0x1b68] ss:$16 sps:$4 sm:$0xff]   ;;  %v10833_v14 = vld [vmem:[%s14442_s1 + $0x1b84] ss:$16 sps:$4 sm:$0xff]  }
 0x338   :  { %7115 = vmatprep.subr.bf16.mxu0 %v10748_v15  ;;  %7931 = vmatprep.subr.bf16.mxu1 %v10751_v16  ;;  %v10836_v15 = vld [vmem:[%s14442_s1 + $0x1b8c] ss:$16 sps:$4 sm:$0xff]   ;;  %v10831_v16 = vld [vmem:[%s14442_s1 + $0x1b80] ss:$16 sps:$4 sm:$0xff]  }
 0x33b   :  { %7116 = vmatpush1.bf16.msra.mxu0 %v10746_v17  ;;  %7932 = vmatpush1.bf16.msra.mxu1 %v10749_v18  ;;  %v10834_v17 = vld [vmem:[%s14442_s1 + $0x1b88] ss:$16 sps:$4 sm:$0xff]   ;;  %v10839_v18 = vld [vmem:[%s14442_s1 + $0x1ba4] ss:$16 sps:$4 sm:$0xff]  }
 0x33c   :  { %7117 = vmatprep.subr.bf16.mxu0 %v10755_v19  ;;  %7933 = vmatprep.subr.bf16.mxu1 %v10758_v20  ;;  %v10842_v19 = vld [vmem:[%s14442_s1 + $0x1bac] ss:$16 sps:$4 sm:$0xff]   ;;  %v10837_v20 = vld [vmem:[%s14442_s1 + $0x1ba0] ss:$16 sps:$4 sm:$0xff]  }
 0x33f   :  { %7118 = vmatpush1.bf16.msra.mxu0 %v10753_v21  ;;  %7934 = vmatpush1.bf16.msra.mxu1 %v10756_v22  ;;  %v10840_v21 = vld [vmem:[%s14442_s1 + $0x1ba8] ss:$16 sps:$4 sm:$0xff]   ;;  %v10846_v22 = vld [vmem:[%s14442_s1 + $0x1bc4] ss:$16 sps:$4 sm:$0xff]  }
 0x340   :  { %7138 = vmatprep.subr.bf16.mxu0 %v10761_v23  ;;  %7954 = vmatprep.subr.bf16.mxu1 %v10764_v24  ;;  %v10849_v23 = vld [vmem:[%s14442_s1 + $0x1bcc] ss:$16 sps:$4 sm:$0xff]   ;;  %v10844_v24 = vld [vmem:[%s14442_s1 + $0x1bc0] ss:$16 sps:$4 sm:$0xff]  }
 0x342   :  { %7120 = vmatmul.mubr.bf16.vlgmr.msra.gmra.mrb[0].mxu0 %v8183_v25  ;;  %7936 = vmatmul.mubr.bf16.vlgmr.msra.gmra.mrb[0].mxu1 %v8183_v25  ;;  %v10847_v25 = vld [vmem:[%s14442_s1 + $0x1bc8] ss:$16 sps:$4 sm:$0xff]  }
 0x343   :  { %7139 = vmatpush1.bf16.msra.mxu0 %v10759_v27  ;;  %7955 = vmatpush1.bf16.msra.mxu1 %v10762_v28  ;;  %v10856_v27 = vld [vmem:[%s14442_s1 + $0x1bec] ss:$16 sps:$4 sm:$0xff]   ;;  %v10851_v28 = vld [vmem:[%s14442_s1 + $0x1be0] ss:$16 sps:$4 sm:$0xff]  }
 0x344   :  { %7140 = vmatprep.subr.bf16.mxu0 %v10767_v29  ;;  %7956 = vmatprep.subr.bf16.mxu1 %v10770_v30  ;;  %v10854_v29 = vld [vmem:[%s14442_s1 + $0x1be8] ss:$16 sps:$4 sm:$0xff]   ;;  %v10859_v30 = vld [vmem:[%s14442_s1 + $0x1c04] ss:$16 sps:$4 sm:$0xff]  }
 0x345   :  { %7129 = vmatprep.mubr.bf16.mxu0 %v8216_v31  ;;  %7945 = vmatprep.mubr.bf16.mxu1 %v8216_v31  ;;  %v10862_v31 = vld [vmem:[%s14442_s1 + $0x1c0c] ss:$16 sps:$4 sm:$0xff]  }
 0x347   :  { %7141 = vmatpush1.bf16.msra.mxu0 %v10765_v32  ;;  %7957 = vmatpush1.bf16.msra.mxu1 %v10768_v33  ;;  %v8185_v32 = vcombine.low %v13812_v37, %v13817_v38  ;;  %v56_v33 = vld [vmem:[%s14443_s0 + $0x168] sm:$0xff] }
 0x348   :  { %7142 = vmatprep.subr.bf16.mxu0 %v10773_v34  ;;  %7958 = vmatprep.subr.bf16.mxu1 %v10776_v35  ;;  %v10857_v34 = vld [vmem:[%s14442_s1 + $0x1c00] ss:$16 sps:$4 sm:$0xff]   ;;  %v10860_v35 = vld [vmem:[%s14442_s1 + $0x1c08] ss:$16 sps:$4 sm:$0xff]   ;;  %v10868_v37 = vld [vmem:[%s14442_s1 + $0x1c2c] ss:$16 sps:$4 sm:$0xff]   ;;  %v8218_v38 = vcombine.high %v56_v33, %v56_v33 }
 0x34a   :  { %7130 = vmatmul.mubr.bf16.gmra.mrb[4].mxu0 %v8215_v36  ;;  %7946 = vmatmul.mubr.bf16.gmra.mrb[4].mxu1 %v8215_v36  ;;  %v10865_v36 = vld [vmem:[%s14442_s1 + $0x1c24] ss:$16 sps:$4 sm:$0xff]  }
 0x34b   :  { %7143 = vmatpush1.bf16.msra.mxu0 %v10771_v39  ;;  %7959 = vmatpush1.bf16.msra.mxu1 %v10774_v40  ;;  %v10863_v39 = vld [vmem:[%s14442_s1 + $0x1c20] ss:$16 sps:$4 sm:$0xff]   ;;  %v10866_v40 = vld [vmem:[%s14442_s1 + $0x1c28] ss:$16 sps:$4 sm:$0xff]  }
 0x34c   :  { %7144 = vmatprep.subr.bf16.mxu0 %v10779_v41  ;;  %7960 = vmatprep.subr.bf16.mxu1 %v10782_v42  ;;  %v10871_v41 = vld [vmem:[%s14442_s1 + $0x1c44] ss:$16 sps:$4 sm:$0xff]   ;;  %v10874_v42 = vld [vmem:[%s14442_s1 + $0x1c4c] ss:$16 sps:$4 sm:$0xff]  }
 0x34d   :  { %7170 = vmatprep.mubr.bf16.mxu0 %v8186_v43  ;;  %7986 = vmatprep.mubr.bf16.mxu1 %v8186_v43  ;;  %v8217_v43 = vcombine.low %v56_v33, %v56_v33  ;;  %v10951_v33 = vld [vmem:[%s14442_s1 + $0x1de4] ss:$16 sps:$4 sm:$0xff]  }
 0x34f   :  { %7145 = vmatpush1.bf16.msra.mxu0 %v10777_v46  ;;  %7961 = vmatpush1.bf16.msra.mxu1 %v10780_v44  ;;  %v14021_v46 = vld [vmem:[%s14443_s0 + $0x70] sm:$0xff] }
 0x350   :  { %7146 = vmatprep.subr.bf16.mxu0 %v10785_v45  ;;  %7962 = vmatprep.subr.bf16.mxu1 %v10788_v47  ;;  %v14026_v44 = vld [vmem:[%s14443_s0 + $0xf0] sm:$0xff]  ;;  %v10872_v47 = vld [vmem:[%s14442_s1 + $0x1c48] ss:$16 sps:$4 sm:$0xff]  }
 0x351   :  { %v10869_v45 = vld [vmem:[%s14442_s1 + $0x1c40] ss:$16 sps:$4 sm:$0xff]  }
 0x353   :  { %7147 = vmatpush1.bf16.msra.mxu0 %v10783_v48  ;;  %7963 = vmatpush1.bf16.msra.mxu1 %v10786_v49  ;;  %v10877_v48 = vld [vmem:[%s14442_s1 + $0x1c64] ss:$16 sps:$4 sm:$0xff]   ;;  %v10880_v49 = vld [vmem:[%s14442_s1 + $0x1c6c] ss:$16 sps:$4 sm:$0xff]  }
 0x354   :  { %7148 = vmatprep.subr.bf16.mxu0 %v10791_v50  ;;  %7964 = vmatprep.subr.bf16.mxu1 %v10794_v53  ;;  %v8188_v50 = vcombine.high %v14021_v46, %v14026_v44  ;;  %v10875_v53 = vld [vmem:[%s14442_s1 + $0x1c60] ss:$16 sps:$4 sm:$0xff]  }
 0x357   :  { %7149 = vmatpush1.bf16.msra.mxu0 %v10789_v51  ;;  %7965 = vmatpush1.bf16.msra.mxu1 %v10792_v52  ;;  %v10878_v51 = vld [vmem:[%s14442_s1 + $0x1c68] ss:$16 sps:$4 sm:$0xff]   ;;  %v10883_v52 = vld [vmem:[%s14442_s1 + $0x1c84] ss:$16 sps:$4 sm:$0xff]  }
 0x358   :  { %7150 = vmatprep.subr.bf16.mxu0 %v10797_v54  ;;  %7966 = vmatprep.subr.bf16.mxu1 %v10800_v55  ;;  %v10886_v54 = vld [vmem:[%s14442_s1 + $0x1c8c] ss:$16 sps:$4 sm:$0xff]   ;;  %v10881_v55 = vld [vmem:[%s14442_s1 + $0x1c80] ss:$16 sps:$4 sm:$0xff]  }
 0x35b   :  { %7151 = vmatpush1.bf16.msra.mxu0 %v10795_v56  ;;  %7967 = vmatpush1.bf16.msra.mxu1 %v10798_v57  ;;  %v10884_v56 = vld [vmem:[%s14442_s1 + $0x1c88] ss:$16 sps:$4 sm:$0xff]   ;;  %v10889_v57 = vld [vmem:[%s14442_s1 + $0x1ca4] ss:$16 sps:$4 sm:$0xff]  }
 0x35c   :  { %7152 = vmatprep.subr.bf16.mxu0 %v10803_v60  ;;  %7968 = vmatprep.subr.bf16.mxu1 %v10806_v58  ;;  %v10892_v60 = vld [vmem:[%s14442_s1 + $0x1cac] ss:$16 sps:$4 sm:$0xff]   ;;  %v10887_v58 = vld [vmem:[%s14442_s1 + $0x1ca0] ss:$16 sps:$4 sm:$0xff]  }
 0x35f   :  { %7153 = vmatpush1.bf16.msra.mxu0 %v10801_v59  ;;  %7969 = vmatpush1.bf16.msra.mxu1 %v10804_v61  ;;  %v10890_v59 = vld [vmem:[%s14442_s1 + $0x1ca8] ss:$16 sps:$4 sm:$0xff]   ;;  %v10895_v61 = vld [vmem:[%s14442_s1 + $0x1cc4] ss:$16 sps:$4 sm:$0xff]  }
 0x360   :  { %7154 = vmatprep.subr.bf16.mxu0 %v10809_v62  ;;  %7970 = vmatprep.subr.bf16.mxu1 %v10812_v63  ;;  %v10898_v62 = vld [vmem:[%s14442_s1 + $0x1ccc] ss:$16 sps:$4 sm:$0xff]   ;;  %v10893_v63 = vld [vmem:[%s14442_s1 + $0x1cc0] ss:$16 sps:$4 sm:$0xff]  }
 0x363   :  { %7155 = vmatpush1.bf16.msra.mxu0 %v10807_v0  ;;  %7971 = vmatpush1.bf16.msra.mxu1 %v10810_v3  ;;  %v10896_v0 = vld [vmem:[%s14442_s1 + $0x1cc8] ss:$16 sps:$4 sm:$0xff]   ;;  %v10901_v3 = vld [vmem:[%s14442_s1 + $0x1ce4] ss:$16 sps:$4 sm:$0xff]  }
 0x364   :  { %7156 = vmatprep.subr.bf16.mxu0 %v10815_v1  ;;  %7972 = vmatprep.subr.bf16.mxu1 %v10818_v2  ;;  %v10904_v1 = vld [vmem:[%s14442_s1 + $0x1cec] ss:$16 sps:$4 sm:$0xff]   ;;  %v10899_v2 = vld [vmem:[%s14442_s1 + $0x1ce0] ss:$16 sps:$4 sm:$0xff]  }
 0x367   :  { %7157 = vmatpush1.bf16.msra.mxu0 %v10813_v4  ;;  %7973 = vmatpush1.bf16.msra.mxu1 %v10816_v5  ;;  %v10902_v4 = vld [vmem:[%s14442_s1 + $0x1ce8] ss:$16 sps:$4 sm:$0xff]   ;;  %v10907_v5 = vld [vmem:[%s14442_s1 + $0x1d04] ss:$16 sps:$4 sm:$0xff]  }
 0x368   :  { %7158 = vmatprep.subr.bf16.mxu0 %v10821_v6  ;;  %7974 = vmatprep.subr.bf16.mxu1 %v10824_v7  ;;  %v10910_v6 = vld [vmem:[%s14442_s1 + $0x1d0c] ss:$16 sps:$4 sm:$0xff]   ;;  %v10905_v7 = vld [vmem:[%s14442_s1 + $0x1d00] ss:$16 sps:$4 sm:$0xff]  }
 0x36b   :  { %7159 = vmatpush1.bf16.msra.mxu0 %v10819_v8  ;;  %7975 = vmatpush1.bf16.msra.mxu1 %v10822_v9  ;;  %v10908_v8 = vld [vmem:[%s14442_s1 + $0x1d08] ss:$16 sps:$4 sm:$0xff]   ;;  %v10913_v9 = vld [vmem:[%s14442_s1 + $0x1d24] ss:$16 sps:$4 sm:$0xff]  }
 0x36c   :  { %7160 = vmatprep.subr.bf16.mxu0 %v10827_v10  ;;  %7976 = vmatprep.subr.bf16.mxu1 %v10830_v11  ;;  %v10916_v10 = vld [vmem:[%s14442_s1 + $0x1d2c] ss:$16 sps:$4 sm:$0xff]   ;;  %v10911_v11 = vld [vmem:[%s14442_s1 + $0x1d20] ss:$16 sps:$4 sm:$0xff]  }
 0x36f   :  { %7161 = vmatpush1.bf16.msra.mxu0 %v10825_v12  ;;  %7977 = vmatpush1.bf16.msra.mxu1 %v10828_v13  ;;  %v10914_v12 = vld [vmem:[%s14442_s1 + $0x1d28] ss:$16 sps:$4 sm:$0xff]   ;;  %v10919_v13 = vld [vmem:[%s14442_s1 + $0x1d44] ss:$16 sps:$4 sm:$0xff]  }
 0x370   :  { %7162 = vmatprep.subr.bf16.mxu0 %v10833_v14  ;;  %7978 = vmatprep.subr.bf16.mxu1 %v10836_v15  ;;  %v10922_v14 = vld [vmem:[%s14442_s1 + $0x1d4c] ss:$16 sps:$4 sm:$0xff]   ;;  %v10917_v15 = vld [vmem:[%s14442_s1 + $0x1d40] ss:$16 sps:$4 sm:$0xff]  }
 0x373   :  { %7163 = vmatpush1.bf16.msra.mxu0 %v10831_v16  ;;  %7979 = vmatpush1.bf16.msra.mxu1 %v10834_v17  ;;  %v10920_v16 = vld [vmem:[%s14442_s1 + $0x1d48] ss:$16 sps:$4 sm:$0xff]   ;;  %v10925_v17 = vld [vmem:[%s14442_s1 + $0x1d64] ss:$16 sps:$4 sm:$0xff]  }
 0x374   :  { %7164 = vmatprep.subr.bf16.mxu0 %v10839_v18  ;;  %7980 = vmatprep.subr.bf16.mxu1 %v10842_v19  ;;  %v10928_v18 = vld [vmem:[%s14442_s1 + $0x1d6c] ss:$16 sps:$4 sm:$0xff]   ;;  %v10923_v19 = vld [vmem:[%s14442_s1 + $0x1d60] ss:$16 sps:$4 sm:$0xff]  }
 0x377   :  { %7165 = vmatpush1.bf16.msra.mxu0 %v10837_v20  ;;  %7981 = vmatpush1.bf16.msra.mxu1 %v10840_v21  ;;  %v10926_v20 = vld [vmem:[%s14442_s1 + $0x1d68] ss:$16 sps:$4 sm:$0xff]   ;;  %v10931_v21 = vld [vmem:[%s14442_s1 + $0x1d84] ss:$16 sps:$4 sm:$0xff]  }
 0x378   :  { %7166 = vmatprep.subr.bf16.mxu0 %v10846_v22  ;;  %7982 = vmatprep.subr.bf16.mxu1 %v10849_v23  ;;  %v10934_v22 = vld [vmem:[%s14442_s1 + $0x1d8c] ss:$16 sps:$4 sm:$0xff]   ;;  %v10929_v23 = vld [vmem:[%s14442_s1 + $0x1d80] ss:$16 sps:$4 sm:$0xff]  }
 0x37b   :  { %7167 = vmatpush1.bf16.msra.mxu0 %v10844_v24  ;;  %7983 = vmatpush1.bf16.msra.mxu1 %v10847_v25  ;;  %v10932_v24 = vld [vmem:[%s14442_s1 + $0x1d88] ss:$16 sps:$4 sm:$0xff]   ;;  %v10937_v25 = vld [vmem:[%s14442_s1 + $0x1da4] ss:$16 sps:$4 sm:$0xff]  }
 0x37c   :  { %7168 = vmatprep.subr.bf16.mxu0 %v10853_v26  ;;  %7984 = vmatprep.subr.bf16.mxu1 %v10856_v27  ;;  %v10940_v26 = vld [vmem:[%s14442_s1 + $0x1dac] ss:$16 sps:$4 sm:$0xff]   ;;  %v10935_v27 = vld [vmem:[%s14442_s1 + $0x1da0] ss:$16 sps:$4 sm:$0xff]  }
 0x37f   :  { %7169 = vmatpush1.bf16.msra.mxu0 %v10851_v28  ;;  %7985 = vmatpush1.bf16.msra.mxu1 %v10854_v29  ;;  %v10938_v28 = vld [vmem:[%s14442_s1 + $0x1da8] ss:$16 sps:$4 sm:$0xff]   ;;  %v10944_v29 = vld [vmem:[%s14442_s1 + $0x1dc4] ss:$16 sps:$4 sm:$0xff]  }
 0x380   :  { %7189 = vmatprep.subr.bf16.mxu0 %v10859_v30  ;;  %8005 = vmatprep.subr.bf16.mxu1 %v10862_v31  ;;  %v10947_v30 = vld [vmem:[%s14442_s1 + $0x1dcc] ss:$16 sps:$4 sm:$0xff]   ;;  %v10942_v31 = vld [vmem:[%s14442_s1 + $0x1dc0] ss:$16 sps:$4 sm:$0xff]  }
 0x382   :  { %7171 = vmatmul.mubr.bf16.vlgmr.msra.gmra.mrb[0].mxu0 %v8185_v32  ;;  %7987 = vmatmul.mubr.bf16.vlgmr.msra.gmra.mrb[0].mxu1 %v8185_v32  ;;  %v10945_v32 = vld [vmem:[%s14442_s1 + $0x1dc8] ss:$16 sps:$4 sm:$0xff]  }
 0x383   :  { %7190 = vmatpush1.bf16.msra.mxu0 %v10857_v34  ;;  %8006 = vmatpush1.bf16.msra.mxu1 %v10860_v35  ;;  %v10954_v34 = vld [vmem:[%s14442_s1 + $0x1dec] ss:$16 sps:$4 sm:$0xff]   ;;  %v10949_v35 = vld [vmem:[%s14442_s1 + $0x1de0] ss:$16 sps:$4 sm:$0xff]  }
 0x384   :  { %7191 = vmatprep.subr.bf16.mxu0 %v10865_v36  ;;  %8007 = vmatprep.subr.bf16.mxu1 %v10868_v37  ;;  %v10952_v36 = vld [vmem:[%s14442_s1 + $0x1de8] ss:$16 sps:$4 sm:$0xff]   ;;  %v10957_v37 = vld [vmem:[%s14442_s1 + $0x1e04] ss:$16 sps:$4 sm:$0xff]  }
 0x385   :  { %7180 = vmatprep.mubr.bf16.mxu0 %v8218_v38  ;;  %7996 = vmatprep.mubr.bf16.mxu1 %v8218_v38  ;;  %v10960_v38 = vld [vmem:[%s14442_s1 + $0x1e0c] ss:$16 sps:$4 sm:$0xff]  }
 0x387   :  { %7192 = vmatpush1.bf16.msra.mxu0 %v10863_v39  ;;  %8008 = vmatpush1.bf16.msra.mxu1 %v10866_v40  ;;  %v8187_v39 = vcombine.low %v14021_v46, %v14026_v44  ;;  %v57_v40 = vld [vmem:[%s14443_s0 + $0x170] sm:$0xff]  ;;  %v10966_v46 = vld [vmem:[%s14442_s1 + $0x1e2c] ss:$16 sps:$4 sm:$0xff]  }
 0x388   :  { %7193 = vmatprep.subr.bf16.mxu0 %v10871_v41  ;;  %8009 = vmatprep.subr.bf16.mxu1 %v10874_v42  ;;  %v10955_v41 = vld [vmem:[%s14442_s1 + $0x1e00] ss:$16 sps:$4 sm:$0xff]   ;;  %v10958_v42 = vld [vmem:[%s14442_s1 + $0x1e08] ss:$16 sps:$4 sm:$0xff]   ;;  %v8220_v44 = vcombine.high %v57_v40, %v57_v40 }
 0x38a   :  { %7181 = vmatmul.mubr.bf16.gmra.mrb[4].mxu0 %v8217_v43  ;;  %7997 = vmatmul.mubr.bf16.gmra.mrb[4].mxu1 %v8217_v43  ;;  %v10963_v43 = vld [vmem:[%s14442_s1 + $0x1e24] ss:$16 sps:$4 sm:$0xff]  }
 0x38b   :  { %7194 = vmatpush1.bf16.msra.mxu0 %v10869_v45  ;;  %8010 = vmatpush1.bf16.msra.mxu1 %v10872_v47  ;;  %v10961_v45 = vld [vmem:[%s14442_s1 + $0x1e20] ss:$16 sps:$4 sm:$0xff]   ;;  %v10964_v47 = vld [vmem:[%s14442_s1 + $0x1e28] ss:$16 sps:$4 sm:$0xff]  }
 0x38c   :  { %7195 = vmatprep.subr.bf16.mxu0 %v10877_v48  ;;  %8011 = vmatprep.subr.bf16.mxu1 %v10880_v49  ;;  %v10969_v48 = vld [vmem:[%s14442_s1 + $0x1e44] ss:$16 sps:$4 sm:$0xff]   ;;  %v10972_v49 = vld [vmem:[%s14442_s1 + $0x1e4c] ss:$16 sps:$4 sm:$0xff]  }
 0x38d   :  { %7221 = vmatprep.mubr.bf16.mxu0 %v8188_v50  ;;  %8037 = vmatprep.mubr.bf16.mxu1 %v8188_v50  ;;  %v8219_v50 = vcombine.low %v57_v40, %v57_v40  ;;  %v11049_v40 = vld [vmem:[%s14442_s1 + $0x1fe4] ss:$16 sps:$4 sm:$0xff]  }
 0x38f   :  { %7196 = vmatpush1.bf16.msra.mxu0 %v10875_v53  ;;  %8012 = vmatpush1.bf16.msra.mxu1 %v10878_v51  ;;  %v14230_v53 = vld [vmem:[%s14443_s0 + $0x78] sm:$0xff] }
 0x390   :  { %7197 = vmatprep.subr.bf16.mxu0 %v10883_v52  ;;  %8013 = vmatprep.subr.bf16.mxu1 %v10886_v54  ;;  %v14235_v51 = vld [vmem:[%s14443_s0 + $0xf8] sm:$0xff]  ;;  %v10967_v52 = vld [vmem:[%s14442_s1 + $0x1e40] ss:$16 sps:$4 sm:$0xff]  }
 0x391   :  { %v10970_v54 = vld [vmem:[%s14442_s1 + $0x1e48] ss:$16 sps:$4 sm:$0xff]  }
 0x393   :  { %7198 = vmatpush1.bf16.msra.mxu0 %v10881_v55  ;;  %8014 = vmatpush1.bf16.msra.mxu1 %v10884_v56  ;;  %v10975_v55 = vld [vmem:[%s14442_s1 + $0x1e64] ss:$16 sps:$4 sm:$0xff]   ;;  %v10978_v56 = vld [vmem:[%s14442_s1 + $0x1e6c] ss:$16 sps:$4 sm:$0xff]  }
 0x394   :  { %7199 = vmatprep.subr.bf16.mxu0 %v10889_v57  ;;  %8015 = vmatprep.subr.bf16.mxu1 %v10892_v60  ;;  %v8190_v57 = vcombine.high %v14230_v53, %v14235_v51  ;;  %v10973_v60 = vld [vmem:[%s14442_s1 + $0x1e60] ss:$16 sps:$4 sm:$0xff]  }
 0x397   :  { %7200 = vmatpush1.bf16.msra.mxu0 %v10887_v58  ;;  %8016 = vmatpush1.bf16.msra.mxu1 %v10890_v59  ;;  %v10976_v58 = vld [vmem:[%s14442_s1 + $0x1e68] ss:$16 sps:$4 sm:$0xff]   ;;  %v10981_v59 = vld [vmem:[%s14442_s1 + $0x1e84] ss:$16 sps:$4 sm:$0xff]  }
 0x398   :  { %7201 = vmatprep.subr.bf16.mxu0 %v10895_v61  ;;  %8017 = vmatprep.subr.bf16.mxu1 %v10898_v62  ;;  %v10984_v61 = vld [vmem:[%s14442_s1 + $0x1e8c] ss:$16 sps:$4 sm:$0xff]   ;;  %v10979_v62 = vld [vmem:[%s14442_s1 + $0x1e80] ss:$16 sps:$4 sm:$0xff]  }
 0x39b   :  { %7202 = vmatpush1.bf16.msra.mxu0 %v10893_v63  ;;  %8018 = vmatpush1.bf16.msra.mxu1 %v10896_v0  ;;  %v10982_v63 = vld [vmem:[%s14442_s1 + $0x1e88] ss:$16 sps:$4 sm:$0xff]   ;;  %v10987_v0 = vld [vmem:[%s14442_s1 + $0x1ea4] ss:$16 sps:$4 sm:$0xff]  }
 0x39c   :  { %7203 = vmatprep.subr.bf16.mxu0 %v10901_v3  ;;  %8019 = vmatprep.subr.bf16.mxu1 %v10904_v1  ;;  %v10990_v3 = vld [vmem:[%s14442_s1 + $0x1eac] ss:$16 sps:$4 sm:$0xff]   ;;  %v10985_v1 = vld [vmem:[%s14442_s1 + $0x1ea0] ss:$16 sps:$4 sm:$0xff]  }
 0x39f   :  { %7204 = vmatpush1.bf16.msra.mxu0 %v10899_v2  ;;  %8020 = vmatpush1.bf16.msra.mxu1 %v10902_v4  ;;  %v10988_v2 = vld [vmem:[%s14442_s1 + $0x1ea8] ss:$16 sps:$4 sm:$0xff]   ;;  %v10993_v4 = vld [vmem:[%s14442_s1 + $0x1ec4] ss:$16 sps:$4 sm:$0xff]  }
 0x3a0   :  { %7205 = vmatprep.subr.bf16.mxu0 %v10907_v5  ;;  %8021 = vmatprep.subr.bf16.mxu1 %v10910_v6  ;;  %v10996_v5 = vld [vmem:[%s14442_s1 + $0x1ecc] ss:$16 sps:$4 sm:$0xff]   ;;  %v10991_v6 = vld [vmem:[%s14442_s1 + $0x1ec0] ss:$16 sps:$4 sm:$0xff]  }
 0x3a3   :  { %7206 = vmatpush1.bf16.msra.mxu0 %v10905_v7  ;;  %8022 = vmatpush1.bf16.msra.mxu1 %v10908_v8  ;;  %v10994_v7 = vld [vmem:[%s14442_s1 + $0x1ec8] ss:$16 sps:$4 sm:$0xff]   ;;  %v10999_v8 = vld [vmem:[%s14442_s1 + $0x1ee4] ss:$16 sps:$4 sm:$0xff]  }
 0x3a4   :  { %7207 = vmatprep.subr.bf16.mxu0 %v10913_v9  ;;  %8023 = vmatprep.subr.bf16.mxu1 %v10916_v10  ;;  %v11002_v9 = vld [vmem:[%s14442_s1 + $0x1eec] ss:$16 sps:$4 sm:$0xff]   ;;  %v10997_v10 = vld [vmem:[%s14442_s1 + $0x1ee0] ss:$16 sps:$4 sm:$0xff]  }
 0x3a7   :  { %7208 = vmatpush1.bf16.msra.mxu0 %v10911_v11  ;;  %8024 = vmatpush1.bf16.msra.mxu1 %v10914_v12  ;;  %v11000_v11 = vld [vmem:[%s14442_s1 + $0x1ee8] ss:$16 sps:$4 sm:$0xff]   ;;  %v11005_v12 = vld [vmem:[%s14442_s1 + $0x1f04] ss:$16 sps:$4 sm:$0xff]  }
 0x3a8   :  { %7209 = vmatprep.subr.bf16.mxu0 %v10919_v13  ;;  %8025 = vmatprep.subr.bf16.mxu1 %v10922_v14  ;;  %v11008_v13 = vld [vmem:[%s14442_s1 + $0x1f0c] ss:$16 sps:$4 sm:$0xff]   ;;  %v11003_v14 = vld [vmem:[%s14442_s1 + $0x1f00] ss:$16 sps:$4 sm:$0xff]  }
 0x3ab   :  { %7210 = vmatpush1.bf16.msra.mxu0 %v10917_v15  ;;  %8026 = vmatpush1.bf16.msra.mxu1 %v10920_v16  ;;  %v11006_v15 = vld [vmem:[%s14442_s1 + $0x1f08] ss:$16 sps:$4 sm:$0xff]   ;;  %v11011_v16 = vld [vmem:[%s14442_s1 + $0x1f24] ss:$16 sps:$4 sm:$0xff]  }
 0x3ac   :  { %7211 = vmatprep.subr.bf16.mxu0 %v10925_v17  ;;  %8027 = vmatprep.subr.bf16.mxu1 %v10928_v18  ;;  %v11014_v17 = vld [vmem:[%s14442_s1 + $0x1f2c] ss:$16 sps:$4 sm:$0xff]   ;;  %v11009_v18 = vld [vmem:[%s14442_s1 + $0x1f20] ss:$16 sps:$4 sm:$0xff]  }
 0x3af   :  { %7212 = vmatpush1.bf16.msra.mxu0 %v10923_v19  ;;  %8028 = vmatpush1.bf16.msra.mxu1 %v10926_v20  ;;  %v11012_v19 = vld [vmem:[%s14442_s1 + $0x1f28] ss:$16 sps:$4 sm:$0xff]   ;;  %v11017_v20 = vld [vmem:[%s14442_s1 + $0x1f44] ss:$16 sps:$4 sm:$0xff]  }
 0x3b0   :  { %7213 = vmatprep.subr.bf16.mxu0 %v10931_v21  ;;  %8029 = vmatprep.subr.bf16.mxu1 %v10934_v22  ;;  %v11020_v21 = vld [vmem:[%s14442_s1 + $0x1f4c] ss:$16 sps:$4 sm:$0xff]   ;;  %v11015_v22 = vld [vmem:[%s14442_s1 + $0x1f40] ss:$16 sps:$4 sm:$0xff]  }
 0x3b3   :  { %7214 = vmatpush1.bf16.msra.mxu0 %v10929_v23  ;;  %8030 = vmatpush1.bf16.msra.mxu1 %v10932_v24  ;;  %v11018_v23 = vld [vmem:[%s14442_s1 + $0x1f48] ss:$16 sps:$4 sm:$0xff]   ;;  %v11023_v24 = vld [vmem:[%s14442_s1 + $0x1f64] ss:$16 sps:$4 sm:$0xff]  }
 0x3b4   :  { %7215 = vmatprep.subr.bf16.mxu0 %v10937_v25  ;;  %8031 = vmatprep.subr.bf16.mxu1 %v10940_v26  ;;  %v11026_v25 = vld [vmem:[%s14442_s1 + $0x1f6c] ss:$16 sps:$4 sm:$0xff]   ;;  %v11021_v26 = vld [vmem:[%s14442_s1 + $0x1f60] ss:$16 sps:$4 sm:$0xff]  }
 0x3b7   :  { %7216 = vmatpush1.bf16.msra.mxu0 %v10935_v27  ;;  %8032 = vmatpush1.bf16.msra.mxu1 %v10938_v28  ;;  %v11024_v27 = vld [vmem:[%s14442_s1 + $0x1f68] ss:$16 sps:$4 sm:$0xff]   ;;  %v11029_v28 = vld [vmem:[%s14442_s1 + $0x1f84] ss:$16 sps:$4 sm:$0xff]  }
 0x3b8   :  { %7217 = vmatprep.subr.bf16.mxu0 %v10944_v29  ;;  %8033 = vmatprep.subr.bf16.mxu1 %v10947_v30  ;;  %v11032_v29 = vld [vmem:[%s14442_s1 + $0x1f8c] ss:$16 sps:$4 sm:$0xff]   ;;  %v11027_v30 = vld [vmem:[%s14442_s1 + $0x1f80] ss:$16 sps:$4 sm:$0xff]  }
 0x3bb   :  { %7218 = vmatpush1.bf16.msra.mxu0 %v10942_v31  ;;  %8034 = vmatpush1.bf16.msra.mxu1 %v10945_v32  ;;  %v11030_v31 = vld [vmem:[%s14442_s1 + $0x1f88] ss:$16 sps:$4 sm:$0xff]   ;;  %v11035_v32 = vld [vmem:[%s14442_s1 + $0x1fa4] ss:$16 sps:$4 sm:$0xff]  }
 0x3bc   :  { %7219 = vmatprep.subr.bf16.mxu0 %v10951_v33  ;;  %8035 = vmatprep.subr.bf16.mxu1 %v10954_v34  ;;  %v11038_v33 = vld [vmem:[%s14442_s1 + $0x1fac] ss:$16 sps:$4 sm:$0xff]   ;;  %v11033_v34 = vld [vmem:[%s14442_s1 + $0x1fa0] ss:$16 sps:$4 sm:$0xff]  }
 0x3bf   :  { %7220 = vmatpush1.bf16.msra.mxu0 %v10949_v35  ;;  %8036 = vmatpush1.bf16.msra.mxu1 %v10952_v36  ;;  %v11036_v35 = vld [vmem:[%s14442_s1 + $0x1fa8] ss:$16 sps:$4 sm:$0xff]   ;;  %v11043_v36 = vld [vmem:[%s14442_s1 + $0x1fc4] ss:$16 sps:$4 sm:$0xff]  }
 0x3c0   :  { %7240 = vmatprep.subr.bf16.mxu0 %v10957_v37  ;;  %8056 = vmatprep.subr.bf16.mxu1 %v10960_v38  ;;  %v11046_v37 = vld [vmem:[%s14442_s1 + $0x1fcc] ss:$16 sps:$4 sm:$0xff]   ;;  %v11041_v38 = vld [vmem:[%s14442_s1 + $0x1fc0] ss:$16 sps:$4 sm:$0xff]  }
 0x3c2   :  { %7222 = vmatmul.mubr.bf16.vlgmr.msra.gmra.mrb[0].mxu0 %v8187_v39  ;;  %8038 = vmatmul.mubr.bf16.vlgmr.msra.gmra.mrb[0].mxu1 %v8187_v39  ;;  %v11044_v39 = vld [vmem:[%s14442_s1 + $0x1fc8] ss:$16 sps:$4 sm:$0xff]  }
 0x3c3   :  { %7241 = vmatpush1.bf16.msra.mxu0 %v10955_v41  ;;  %8057 = vmatpush1.bf16.msra.mxu1 %v10958_v42  ;;  %v11052_v41 = vld [vmem:[%s14442_s1 + $0x1fec] ss:$16 sps:$4 sm:$0xff]   ;;  %v11047_v42 = vld [vmem:[%s14442_s1 + $0x1fe0] ss:$16 sps:$4 sm:$0xff]  }
 0x3c4   :  { %7242 = vmatprep.subr.bf16.mxu0 %v10963_v43  ;;  %8058 = vmatprep.subr.bf16.mxu1 %v10966_v46  ;;  %v11050_v43 = vld [vmem:[%s14442_s1 + $0x1fe8] ss:$16 sps:$4 sm:$0xff]  }
 0x3c5   :  { %7231 = vmatprep.mubr.bf16.mxu0 %v8220_v44  ;;  %8047 = vmatprep.mubr.bf16.mxu1 %v8220_v44  ;;  %v58_v46 = vld [vmem:[%s14443_s0 + $0x178] sm:$0xff]  ;;  %v8189_v44 = vcombine.low %v14230_v53, %v14235_v51 }
 0x3c7   :  { %7243 = vmatpush1.bf16.msra.mxu0 %v10961_v45  ;;  %8059 = vmatpush1.bf16.msra.mxu1 %v10964_v47  ;;  %v8222_v45 = vcombine.high %v58_v46, %v58_v46  ;;  %v8221_v47 = vcombine.low %v58_v46, %v58_v46 }
 0x3c8   :  { %7244 = vmatprep.subr.bf16.mxu0 %v10969_v48  ;;  %8060 = vmatprep.subr.bf16.mxu1 %v10972_v49 }
 0x3ca   :  { %7232 = vmatmul.mubr.bf16.gmra.mrb[4].mxu0 %v8219_v50  ;;  %8048 = vmatmul.mubr.bf16.gmra.mrb[4].mxu1 %v8219_v50 }
 0x3cb   :  { %7245 = vmatpush1.bf16.msra.mxu0 %v10967_v52  ;;  %8061 = vmatpush1.bf16.msra.mxu1 %v10970_v54 }
 0x3cc   :  { %7246 = vmatprep.subr.bf16.mxu0 %v10975_v55  ;;  %8062 = vmatprep.subr.bf16.mxu1 %v10978_v56 }
 0x3cd   :  { %7272 = vmatprep.mubr.bf16.mxu0 %v8190_v57  ;;  %8088 = vmatprep.mubr.bf16.mxu1 %v8190_v57 }
 0x3cf   :  { %7247 = vmatpush1.bf16.msra.mxu0 %v10973_v60  ;;  %8063 = vmatpush1.bf16.msra.mxu1 %v10976_v58 }
 0x3d0   :  { %7248 = vmatprep.subr.bf16.mxu0 %v10981_v59  ;;  %8064 = vmatprep.subr.bf16.mxu1 %v10984_v61 }
 0x3d3   :  { %7249 = vmatpush1.bf16.msra.mxu0 %v10979_v62  ;;  %8065 = vmatpush1.bf16.msra.mxu1 %v10982_v63 }
 0x3d4   :  { %7250 = vmatprep.subr.bf16.mxu0 %v10987_v0  ;;  %8066 = vmatprep.subr.bf16.mxu1 %v10990_v3 }
 0x3d7   :  { %7251 = vmatpush1.bf16.msra.mxu0 %v10985_v1  ;;  %8067 = vmatpush1.bf16.msra.mxu1 %v10988_v2 }
 0x3d8   :  { %7252 = vmatprep.subr.bf16.mxu0 %v10993_v4  ;;  %8068 = vmatprep.subr.bf16.mxu1 %v10996_v5 }
 0x3db   :  { %7253 = vmatpush1.bf16.msra.mxu0 %v10991_v6  ;;  %8069 = vmatpush1.bf16.msra.mxu1 %v10994_v7 }
 0x3dc   :  { %7254 = vmatprep.subr.bf16.mxu0 %v10999_v8  ;;  %8070 = vmatprep.subr.bf16.mxu1 %v11002_v9 }
 0x3df   :  { %7255 = vmatpush1.bf16.msra.mxu0 %v10997_v10  ;;  %8071 = vmatpush1.bf16.msra.mxu1 %v11000_v11 }
 0x3e0   :  { %7256 = vmatprep.subr.bf16.mxu0 %v11005_v12  ;;  %8072 = vmatprep.subr.bf16.mxu1 %v11008_v13 }
 0x3e3   :  { %7257 = vmatpush1.bf16.msra.mxu0 %v11003_v14  ;;  %8073 = vmatpush1.bf16.msra.mxu1 %v11006_v15 }
 0x3e4   :  { %7258 = vmatprep.subr.bf16.mxu0 %v11011_v16  ;;  %8074 = vmatprep.subr.bf16.mxu1 %v11014_v17 }
 0x3e7   :  { %7259 = vmatpush1.bf16.msra.mxu0 %v11009_v18  ;;  %8075 = vmatpush1.bf16.msra.mxu1 %v11012_v19 }
 0x3e8   :  { %7260 = vmatprep.subr.bf16.mxu0 %v11017_v20  ;;  %8076 = vmatprep.subr.bf16.mxu1 %v11020_v21 }
 0x3eb   :  { %7261 = vmatpush1.bf16.msra.mxu0 %v11015_v22  ;;  %8077 = vmatpush1.bf16.msra.mxu1 %v11018_v23 }
 0x3ec   :  { %7262 = vmatprep.subr.bf16.mxu0 %v11023_v24  ;;  %8078 = vmatprep.subr.bf16.mxu1 %v11026_v25 }
 0x3ef   :  { %7263 = vmatpush1.bf16.msra.mxu0 %v11021_v26  ;;  %8079 = vmatpush1.bf16.msra.mxu1 %v11024_v27 }
 0x3f0   :  { %7264 = vmatprep.subr.bf16.mxu0 %v11029_v28  ;;  %8080 = vmatprep.subr.bf16.mxu1 %v11032_v29 }
 0x3f3   :  { %7265 = vmatpush1.bf16.msra.mxu0 %v11027_v30  ;;  %8081 = vmatpush1.bf16.msra.mxu1 %v11030_v31 }
 0x3f4   :  { %7266 = vmatprep.subr.bf16.mxu0 %v11035_v32  ;;  %8082 = vmatprep.subr.bf16.mxu1 %v11038_v33 }
 0x3f7   :  { %7267 = vmatpush1.bf16.msra.mxu0 %v11033_v34  ;;  %8083 = vmatpush1.bf16.msra.mxu1 %v11036_v35 }
 0x3f8   :  { %7268 = vmatprep.subr.bf16.mxu0 %v11043_v36  ;;  %8084 = vmatprep.subr.bf16.mxu1 %v11046_v37 }
 0x3fb   :  { %7269 = vmatpush1.bf16.msra.mxu0 %v11041_v38  ;;  %8085 = vmatpush1.bf16.msra.mxu1 %v11044_v39 }
 0x3fc   :  { %7270 = vmatprep.subr.bf16.mxu0 %v11049_v40  ;;  %8086 = vmatprep.subr.bf16.mxu1 %v11052_v41 }
 0x3ff   :  { %7271 = vmatpush1.bf16.msra.mxu0 %v11047_v42  ;;  %8087 = vmatpush1.bf16.msra.mxu1 %v11050_v43 }
 0x402   :  { %7273 = vmatmul.mubr.bf16.vlgmr.msra.gmra.mrb[0].mxu0 %v8189_v44  ;;  %8089 = vmatmul.mubr.bf16.vlgmr.msra.gmra.mrb[0].mxu1 %v8189_v44 }
 0x403   :  { %7282 = vmatprep.mubr.bf16.mxu0 %v8222_v45  ;;  %8098 = vmatprep.mubr.bf16.mxu1 %v8222_v45 }
 0x40a   :  { %7283 = vmatmul.mubr.bf16.gmra.mrb[4].mxu0 %v8221_v47  ;;  %8099 = vmatmul.mubr.bf16.gmra.mrb[4].mxu1 %v8221_v47 }
 0x4d5   :  { %v7274_v48 = vpop.f32.mrb[0].mxu0  ;;  %v8090_v49 = vpop.f32.mrb[0].mxu1 }
 0x4d6   :  { %vm8107_vm0 = vcmp.ge.f32.partialorder %v7274_v48, 0.0  ;;  %v8119_v50 = vmul.f32 0.2, %v7274_v48  ;;  %vm8109_vm1 = vcmp.ge.f32.partialorder %v8090_v49, 0.0  ;;  %v8121_v52 = vmul.f32 0.2, %v8090_v49 }
 0x4d7   :  { %v7276_v54 = vpop.f32.mrb[1].mxu0  ;;  %v8092_v55 = vpop.f32.mrb[1].mxu1 }
 0x4d8   :  { %v8131_v56 = vsel %vm8107_vm0, %v7274_v48, %v8119_v50  ;;  %v8133_v53 = vsel %vm8109_vm1, %v8090_v49, %v8121_v52  ;;  %vm8108_vm2 = vcmp.ge.f32.partialorder %v7276_v54, 0.0  ;;  %v8120_v51 = vmul.f32 0.2, %v7276_v54  ;;  %v7278_v57 = vpop.f32.mrb[2].mxu0  ;;  %v8094_v60 = vpop.f32.mrb[2].mxu1 }
 0x4d9   :  { %8143 = vst [vmem:[%s14444_s2] sm:$0xff] %v8131_v56  ;;  %8145 = vst [vmem:[%s14444_s2 + $0x10] sm:$0xff] %v8133_v53  ;;  %vm8110_vm3 = vcmp.ge.f32.partialorder %v8092_v55, 0.0  ;;  %v8122_v58 = vmul.f32 0.2, %v8092_v55  ;;  %vm8111_vm4 = vcmp.ge.f32.partialorder %v7278_v57, 0.0  ;;  %vm8113_vm5 = vcmp.ge.f32.partialorder %v8094_v60, 0.0 }
 0x4da   :  { %v8123_v59 = vmul.f32 0.2, %v7278_v57  ;;  %v8132_v61 = vsel %vm8108_vm2, %v7276_v54, %v8120_v51  ;;  %v8125_v62 = vmul.f32 0.2, %v8094_v60  ;;  %v7280_v63 = vpop.f32.mrb[3].mxu0  ;;  %v8096_v0 = vpop.f32.mrb[3].mxu1 }
 0x4db   :  { %8144 = vst [vmem:[%s14444_s2 + $0x8] sm:$0xff] %v8132_v61  ;;  %v8134_v3 = vsel %vm8110_vm3, %v8092_v55, %v8122_v58  ;;  %vm8112_vm6 = vcmp.ge.f32.partialorder %v7280_v63, 0.0  ;;  %v8124_v2 = vmul.f32 0.2, %v7280_v63  ;;  %vm8114_vm7 = vcmp.ge.f32.partialorder %v8096_v0, 0.0 }
 0x4dc   :  { %v8135_v1 = vsel %vm8111_vm4, %v7278_v57, %v8123_v59  ;;  %8146 = vst [vmem:[%s14444_s2 + $0x18] sm:$0xff] %v8134_v3  ;;  %v8137_v4 = vsel %vm8113_vm5, %v8094_v60, %v8125_v62  ;;  %v8126_v5 = vmul.f32 0.2, %v8096_v0 }
 0x4dd   :  { %8147 = vst [vmem:[%s14444_s2 + $0x20] sm:$0xff] %v8135_v1  ;;  %8149 = vst [vmem:[%s14444_s2 + $0x30] sm:$0xff] %v8137_v4  ;;  %v8136_v6 = vsel %vm8112_vm6, %v7280_v63, %v8124_v2  ;;  %v7284_v7 = vpop.f32.mrb[4].mxu0  ;;  %v8100_v8 = vpop.f32.mrb[4].mxu1 }
 0x4de   :  { %8148 = vst [vmem:[%s14444_s2 + $0x28] sm:$0xff] %v8136_v6  ;;  %v8138_v9 = vsel %vm8114_vm7, %v8096_v0, %v8126_v5  ;;  %vm8115_vm8 = vcmp.ge.f32.partialorder %v7284_v7, 0.0  ;;  %v8127_v10 = vmul.f32 0.2, %v7284_v7  ;;  %vm8117_vm9 = vcmp.ge.f32.partialorder %v8100_v8, 0.0  ;;  %v7286_v11 = vpop.f32.mrb[5].mxu0 }
 0x4df   :  { %v8102_v12 = vpop.f32.mrb[5].mxu1  ;;  %8150 = vst [vmem:[%s14444_s2 + $0x38] sm:$0xff] %v8138_v9  ;;  %v8129_v13 = vmul.f32 0.2, %v8100_v8  ;;  %vm8116_vm10 = vcmp.ge.f32.partialorder %v7286_v11, 0.0  ;;  %v7288_v17 = vpop.f32.mrb[6].mxu0 }
 0x4e0   :  { %v8128_v14 = vmul.f32 0.2, %v7286_v11  ;;  %vm8118_vm11 = vcmp.ge.f32.partialorder %v8102_v12, 0.0  ;;  %v8139_v15 = vsel %vm8115_vm8, %v7284_v7, %v8127_v10  ;;  %v8130_v16 = vmul.f32 0.2, %v8102_v12  ;;  %v8104_v18 = vpop.f32.mrb[6].mxu1 }
 0x4e1   :  { %8151 = vst [vmem:[%s14444_s2 + $0x40] sm:$0xff] %v8139_v15  ;;  %v8141_v19 = vsel %vm8117_vm9, %v8100_v8, %v8129_v13  ;;  %v7289_v21 = vpop.f32.mrb[7].mxu0  ;;  %v8105_v22 = vpop.f32.mrb[7].mxu1 }
 0x4e2   :  { %v8140_v20 = vsel %vm8116_vm10, %v7286_v11, %v8128_v14  ;;  %8153 = vst [vmem:[%s14444_s2 + $0x50] sm:$0xff] %v8141_v19  ;;  %v8142_v23 = vsel %vm8118_vm11, %v8102_v12, %v8130_v16 }
 0x4e3   :  { %8152 = vst [vmem:[%s14444_s2 + $0x48] sm:$0xff] %v8140_v20  ;;  %8154 = vst [vmem:[%s14444_s2 + $0x58] sm:$0xff] %v8142_v23 }

// kernel: discriminator_forward.9
= control target key start
LH: loop header
LB: loop body
LE: loop exit
PB: predicated region body
PF: predicated region fallthrough
CT: control target
= control target key end

     0   :  { %s9204_s1 = inlined_call_operand.vmem [shape: bf16[8192,128], index: 1, kind: input, shape index: {}]   ;;  %s9205_s0 = inlined_call_operand.vmem [shape: bf16[8,8192], index: 0, kind: input, shape index: {}]   ;;  %s9206_s2 = inlined_call_operand.vmem [shape: f32[8,128], index: 2, kind: output, shape index: {0}]   ;;  %s9207_s3 = inlined_call_operand.vmem [shape: f32[8,128], index: 3, kind: output, shape index: {1}]  }
   0x1   :  { %v6942_v0 = vld [vmem:[%s9204_s1 + $0x40] sm:$0xff]   ;;  %v6946_v4 = vld [vmem:[%s9204_s1 + $0x48] sm:$0xff]   ;;  %v6950_v8 = vld [vmem:[%s9204_s1 + $0x50] sm:$0xff]  }
   0x2   :  { %v6943_v1 = vld [vmem:[%s9204_s1 + $0xc0] sm:$0xff]   ;;  %6238 = vmatprep.subr.bf16.mxu0 %v6942_v0  ;;  %v6947_v5 = vld [vmem:[%s9204_s1 + $0xc8] sm:$0xff]   ;;  %v6951_v9 = vld [vmem:[%s9204_s1 + $0xd0] sm:$0xff]  }
   0x3   :  { %v6944_v2 = vld [vmem:[%s9204_s1] sm:$0xff]   ;;  %6260 = vmatprep.subr.bf16.mxu1 %v6943_v1  ;;  %v6948_v6 = vld [vmem:[%s9204_s1 + $0x8] sm:$0xff]   ;;  %v6952_v10 = vld [vmem:[%s9204_s1 + $0x10] sm:$0xff]  }
   0x4   :  { %v6945_v3 = vld [vmem:[%s9204_s1 + $0x80] sm:$0xff]   ;;  %6239 = vmatpush3.bf16.msra.mxu0 %v6944_v2  ;;  %v6949_v7 = vld [vmem:[%s9204_s1 + $0x88] sm:$0xff]   ;;  %v6953_v11 = vld [vmem:[%s9204_s1 + $0x90] sm:$0xff]  }
   0x5   :  { %6261 = vmatpush3.bf16.msra.mxu1 %v6945_v3  ;;  %6240 = vmatprep.subr.bf16.mxu0 %v6946_v4  ;;  %v6954_v12 = vld [vmem:[%s9204_s1 + $0x58] sm:$0xff]   ;;  %v6958_v16 = vld [vmem:[%s9204_s1 + $0x60] sm:$0xff]   ;;  %v6962_v20 = vld [vmem:[%s9204_s1 + $0x68] sm:$0xff]  }
   0x6   :  { %6262 = vmatprep.subr.bf16.mxu1 %v6947_v5  ;;  %v6955_v13 = vld [vmem:[%s9204_s1 + $0xd8] sm:$0xff]   ;;  %v6959_v17 = vld [vmem:[%s9204_s1 + $0xe0] sm:$0xff]   ;;  %v6963_v21 = vld [vmem:[%s9204_s1 + $0xe8] sm:$0xff]  }
   0x7   :  { %v6956_v14 = vld [vmem:[%s9204_s1 + $0x18] sm:$0xff]   ;;  %v6960_v18 = vld [vmem:[%s9204_s1 + $0x20] sm:$0xff]   ;;  %v6964_v22 = vld [vmem:[%s9204_s1 + $0x28] sm:$0xff]  }
   0x8   :  { %6241 = vmatpush3.bf16.msra.mxu0 %v6948_v6  ;;  %v6957_v15 = vld [vmem:[%s9204_s1 + $0x98] sm:$0xff]   ;;  %v6961_v19 = vld [vmem:[%s9204_s1 + $0xa0] sm:$0xff]   ;;  %v6965_v23 = vld [vmem:[%s9204_s1 + $0xa8] sm:$0xff]  }
   0x9   :  { %6263 = vmatpush3.bf16.msra.mxu1 %v6949_v7  ;;  %6242 = vmatprep.subr.bf16.mxu0 %v6950_v8  ;;  %v6966_v24 = vld [vmem:[%s9204_s1 + $0x70] sm:$0xff]   ;;  %v6970_v28 = vld [vmem:[%s9204_s1 + $0x78] sm:$0xff]   ;;  %v14_v32 = vld [vmem:[%s9205_s0] sm:$0xff] }
   0xa   :  { %6264 = vmatprep.subr.bf16.mxu1 %v6951_v9  ;;  %v6967_v25 = vld [vmem:[%s9204_s1 + $0xf0] sm:$0xff]   ;;  %v6971_v29 = vld [vmem:[%s9204_s1 + $0xf8] sm:$0xff]   ;;  %v15_v33 = vld [vmem:[%s9205_s0 + $0x8] sm:$0xff]  ;;  %v5662_v34 = vcombine.low %v14_v32, %v14_v32  ;;  %v5663_v35 = vcombine.high %v14_v32, %v14_v32 }
   0xb   :  { %v6968_v26 = vld [vmem:[%s9204_s1 + $0x30] sm:$0xff]   ;;  %v6972_v30 = vld [vmem:[%s9204_s1 + $0x38] sm:$0xff]   ;;  %v5664_v36 = vcombine.low %v15_v33, %v15_v33  ;;  %v5665_v37 = vcombine.high %v15_v33, %v15_v33  ;;  %v6978_v38 = vld [vmem:[%s9204_s1 + $0x140] sm:$0xff]  }
   0xc   :  { %6243 = vmatpush3.bf16.msra.mxu0 %v6952_v10  ;;  %v6969_v27 = vld [vmem:[%s9204_s1 + $0xb0] sm:$0xff]   ;;  %v6973_v31 = vld [vmem:[%s9204_s1 + $0xb8] sm:$0xff]   ;;  %v6979_v39 = vld [vmem:[%s9204_s1 + $0x1c0] sm:$0xff]   ;;  %4398 = vmatprep.mubr.bf16.mxu0 %v5663_v35 }
   0xd   :  { %6265 = vmatpush3.bf16.msra.mxu1 %v6953_v11  ;;  %6244 = vmatprep.subr.bf16.mxu0 %v6954_v12  ;;  %v6980_v40 = vld [vmem:[%s9204_s1 + $0x100] sm:$0xff]   ;;  %v6982_v42 = vld [vmem:[%s9204_s1 + $0x148] sm:$0xff]   ;;  %v6986_v46 = vld [vmem:[%s9204_s1 + $0x150] sm:$0xff]  }
   0xe   :  { %6266 = vmatprep.subr.bf16.mxu1 %v6955_v13  ;;  %4438 = vmatprep.mubr.bf16.mxu1 %v5665_v37  ;;  %v6981_v41 = vld [vmem:[%s9204_s1 + $0x180] sm:$0xff]   ;;  %v6983_v43 = vld [vmem:[%s9204_s1 + $0x1c8] sm:$0xff]   ;;  %v6987_v47 = vld [vmem:[%s9204_s1 + $0x1d0] sm:$0xff]  }
   0xf   :  { %v6984_v44 = vld [vmem:[%s9204_s1 + $0x108] sm:$0xff]   ;;  %v6988_v48 = vld [vmem:[%s9204_s1 + $0x110] sm:$0xff]   ;;  %v6990_v50 = vld [vmem:[%s9204_s1 + $0x158] sm:$0xff]  }
  0x10   :  { %6245 = vmatpush3.bf16.msra.mxu0 %v6956_v14  ;;  %v6985_v45 = vld [vmem:[%s9204_s1 + $0x188] sm:$0xff]   ;;  %v6989_v49 = vld [vmem:[%s9204_s1 + $0x190] sm:$0xff]   ;;  %v6991_v51 = vld [vmem:[%s9204_s1 + $0x1d8] sm:$0xff]  }
  0x11   :  { %6267 = vmatpush3.bf16.msra.mxu1 %v6957_v15  ;;  %6246 = vmatprep.subr.bf16.mxu0 %v6958_v16  ;;  %v6992_v52 = vld [vmem:[%s9204_s1 + $0x118] sm:$0xff]   ;;  %v6994_v54 = vld [vmem:[%s9204_s1 + $0x160] sm:$0xff]   ;;  %v6998_v58 = vld [vmem:[%s9204_s1 + $0x168] sm:$0xff]  }
  0x12   :  { %6268 = vmatprep.subr.bf16.mxu1 %v6959_v17  ;;  %v6993_v53 = vld [vmem:[%s9204_s1 + $0x198] sm:$0xff]   ;;  %v6995_v55 = vld [vmem:[%s9204_s1 + $0x1e0] sm:$0xff]   ;;  %v6999_v59 = vld [vmem:[%s9204_s1 + $0x1e8] sm:$0xff]  }
  0x13   :  { %v6996_v56 = vld [vmem:[%s9204_s1 + $0x120] sm:$0xff]   ;;  %v7000_v60 = vld [vmem:[%s9204_s1 + $0x128] sm:$0xff]   ;;  %v7002_v62 = vld [vmem:[%s9204_s1 + $0x170] sm:$0xff]  }
  0x14   :  { %6247 = vmatpush3.bf16.msra.mxu0 %v6960_v18  ;;  %v6997_v57 = vld [vmem:[%s9204_s1 + $0x1a0] sm:$0xff]   ;;  %v7001_v61 = vld [vmem:[%s9204_s1 + $0x1a8] sm:$0xff]   ;;  %v7003_v63 = vld [vmem:[%s9204_s1 + $0x1f0] sm:$0xff]  }
  0x15   :  { %6269 = vmatpush3.bf16.msra.mxu1 %v6961_v19  ;;  %6248 = vmatprep.subr.bf16.mxu0 %v6962_v20  ;;  %v7004_v0 = vld [vmem:[%s9204_s1 + $0x130] sm:$0xff]   ;;  %v7006_v2 = vld [vmem:[%s9204_s1 + $0x178] sm:$0xff]   ;;  %v7014_v12 = vld [vmem:[%s9204_s1 + $0x240] sm:$0xff]  }
  0x16   :  { %6270 = vmatprep.subr.bf16.mxu1 %v6963_v21  ;;  %v7005_v1 = vld [vmem:[%s9204_s1 + $0x1b0] sm:$0xff]   ;;  %v7007_v3 = vld [vmem:[%s9204_s1 + $0x1f8] sm:$0xff]   ;;  %v7015_v13 = vld [vmem:[%s9204_s1 + $0x2c0] sm:$0xff]  }
  0x17   :  { %v7008_v4 = vld [vmem:[%s9204_s1 + $0x138] sm:$0xff]   ;;  %v16_v6 = vld [vmem:[%s9205_s0 + $0x10] sm:$0xff]  ;;  %v7016_v14 = vld [vmem:[%s9204_s1 + $0x200] sm:$0xff]  }
  0x18   :  { %6249 = vmatpush3.bf16.msra.mxu0 %v6964_v22  ;;  %v7009_v5 = vld [vmem:[%s9204_s1 + $0x1b8] sm:$0xff]   ;;  %v5666_v7 = vcombine.low %v16_v6, %v16_v6  ;;  %v5667_v8 = vcombine.high %v16_v6, %v16_v6  ;;  %v7017_v15 = vld [vmem:[%s9204_s1 + $0x280] sm:$0xff]   ;;  %v7018_v16 = vld [vmem:[%s9204_s1 + $0x248] sm:$0xff]  }
  0x19   :  { %6271 = vmatpush3.bf16.msra.mxu1 %v6965_v23  ;;  %6250 = vmatprep.subr.bf16.mxu0 %v6966_v24  ;;  %v17_v9 = vld [vmem:[%s9205_s0 + $0x18] sm:$0xff]  ;;  %v7019_v17 = vld [vmem:[%s9204_s1 + $0x2c8] sm:$0xff]   ;;  %v7022_v20 = vld [vmem:[%s9204_s1 + $0x250] sm:$0xff]  }
  0x1a   :  { %6272 = vmatprep.subr.bf16.mxu1 %v6967_v25  ;;  %v5668_v10 = vcombine.low %v17_v9, %v17_v9  ;;  %v5669_v11 = vcombine.high %v17_v9, %v17_v9  ;;  %v7020_v18 = vld [vmem:[%s9204_s1 + $0x208] sm:$0xff]   ;;  %v7023_v21 = vld [vmem:[%s9204_s1 + $0x2d0] sm:$0xff]   ;;  %v7026_v24 = vld [vmem:[%s9204_s1 + $0x258] sm:$0xff]  }
  0x1b   :  { %v7021_v19 = vld [vmem:[%s9204_s1 + $0x288] sm:$0xff]   ;;  %v7024_v22 = vld [vmem:[%s9204_s1 + $0x210] sm:$0xff]   ;;  %v7027_v25 = vld [vmem:[%s9204_s1 + $0x2d8] sm:$0xff]  }
  0x1c   :  { %6251 = vmatpush3.bf16.msra.mxu0 %v6968_v26  ;;  %v7025_v23 = vld [vmem:[%s9204_s1 + $0x290] sm:$0xff]   ;;  %v7028_v26 = vld [vmem:[%s9204_s1 + $0x218] sm:$0xff]   ;;  %v7034_v32 = vld [vmem:[%s9204_s1 + $0x268] sm:$0xff]  }
  0x1d   :  { %6273 = vmatpush3.bf16.msra.mxu1 %v6969_v27  ;;  %6252 = vmatprep.subr.bf16.mxu0 %v6970_v28  ;;  %v7029_v27 = vld [vmem:[%s9204_s1 + $0x298] sm:$0xff]   ;;  %v7030_v28 = vld [vmem:[%s9204_s1 + $0x260] sm:$0xff]   ;;  %v7035_v33 = vld [vmem:[%s9204_s1 + $0x2e8] sm:$0xff]  }
  0x1e   :  { %6274 = vmatprep.subr.bf16.mxu1 %v6971_v29  ;;  %v7031_v29 = vld [vmem:[%s9204_s1 + $0x2e0] sm:$0xff]   ;;  %v7037_v35 = vld [vmem:[%s9204_s1 + $0x2a8] sm:$0xff]   ;;  %v7039_v37 = vld [vmem:[%s9204_s1 + $0x2f0] sm:$0xff]  }
  0x1f   :  { %v7070_v6 = vld [vmem:[%s9204_s1 + $0x368] sm:$0xff]  }
  0x20   :  { %6253 = vmatpush3.bf16.msra.mxu0 %v6972_v30  ;;  %v7032_v30 = vld [vmem:[%s9204_s1 + $0x220] sm:$0xff]   ;;  %v7073_v9 = vld [vmem:[%s9204_s1 + $0x3a8] sm:$0xff]  }
  0x21   :  { %6275 = vmatpush3.bf16.msra.mxu1 %v6973_v31  ;;  %6282 = vmatprep.subr.bf16.mxu0 %v6978_v38  ;;  %v7033_v31 = vld [vmem:[%s9204_s1 + $0x2a0] sm:$0xff]   ;;  %v7040_v38 = vld [vmem:[%s9204_s1 + $0x230] sm:$0xff]  }
  0x22   :  { %6304 = vmatprep.subr.bf16.mxu1 %v6979_v39  ;;  %v7041_v39 = vld [vmem:[%s9204_s1 + $0x2b0] sm:$0xff]  }
  0x23   :  { %4399 = vmatmul.mubr.bf16.vlgmr.msra.gmra.mrb[0].mxu0 %v5662_v34  ;;  %v7036_v34 = vld [vmem:[%s9204_s1 + $0x228] sm:$0xff]  }
  0x24   :  { %4439 = vmatmul.mubr.bf16.vlgmr.msra.gmra.mrb[0].mxu1 %v5664_v36  ;;  %6283 = vmatpush3.bf16.msra.mxu0 %v6980_v40  ;;  %v7038_v36 = vld [vmem:[%s9204_s1 + $0x270] sm:$0xff]   ;;  %v7042_v40 = vld [vmem:[%s9204_s1 + $0x278] sm:$0xff]  }
  0x25   :  { %6305 = vmatpush3.bf16.msra.mxu1 %v6981_v41  ;;  %6284 = vmatprep.subr.bf16.mxu0 %v6982_v42  ;;  %v7043_v41 = vld [vmem:[%s9204_s1 + $0x2f8] sm:$0xff]  }
  0x26   :  { %6306 = vmatprep.subr.bf16.mxu1 %v6983_v43  ;;  %4478 = vmatprep.mubr.bf16.mxu0 %v5667_v8  ;;  %v7044_v42 = vld [vmem:[%s9204_s1 + $0x238] sm:$0xff]   ;;  %v7072_v8 = vld [vmem:[%s9204_s1 + $0x328] sm:$0xff]  }
  0x27   :  { %4518 = vmatprep.mubr.bf16.mxu1 %v5669_v11  ;;  %v7045_v43 = vld [vmem:[%s9204_s1 + $0x2b8] sm:$0xff]   ;;  %v7075_v11 = vld [vmem:[%s9204_s1 + $0x3f0] sm:$0xff]  }
  0x28   :  { %6285 = vmatpush3.bf16.msra.mxu0 %v6984_v44  ;;  %v18_v44 = vld [vmem:[%s9205_s0 + $0x20] sm:$0xff] }
  0x29   :  { %6307 = vmatpush3.bf16.msra.mxu1 %v6985_v45  ;;  %6286 = vmatprep.subr.bf16.mxu0 %v6986_v46  ;;  %v19_v45 = vld [vmem:[%s9205_s0 + $0x28] sm:$0xff]  ;;  %v5670_v46 = vcombine.low %v18_v44, %v18_v44 }
  0x2a   :  { %6308 = vmatprep.subr.bf16.mxu1 %v6987_v47  ;;  %v5671_v47 = vcombine.high %v18_v44, %v18_v44  ;;  %v7106_v44 = vld [vmem:[%s9204_s1 + $0x468] sm:$0xff]  }
  0x2c   :  { %6287 = vmatpush3.bf16.msra.mxu0 %v6988_v48  ;;  %v5672_v48 = vcombine.low %v19_v45, %v19_v45 }
  0x2d   :  { %6309 = vmatpush3.bf16.msra.mxu1 %v6989_v49  ;;  %6288 = vmatprep.subr.bf16.mxu0 %v6990_v50  ;;  %v5673_v49 = vcombine.high %v19_v45, %v19_v45  ;;  %v7050_v50 = vld [vmem:[%s9204_s1 + $0x340] sm:$0xff]   ;;  %v7107_v45 = vld [vmem:[%s9204_s1 + $0x4e8] sm:$0xff]  }
  0x2e   :  { %6310 = vmatprep.subr.bf16.mxu1 %v6991_v51  ;;  %v7051_v51 = vld [vmem:[%s9204_s1 + $0x3c0] sm:$0xff]  }
  0x30   :  { %6289 = vmatpush3.bf16.msra.mxu0 %v6992_v52  ;;  %v7052_v52 = vld [vmem:[%s9204_s1 + $0x300] sm:$0xff]  }
  0x31   :  { %6311 = vmatpush3.bf16.msra.mxu1 %v6993_v53  ;;  %6290 = vmatprep.subr.bf16.mxu0 %v6994_v54  ;;  %v7053_v53 = vld [vmem:[%s9204_s1 + $0x380] sm:$0xff]   ;;  %v7054_v54 = vld [vmem:[%s9204_s1 + $0x348] sm:$0xff]  }
  0x32   :  { %6312 = vmatprep.subr.bf16.mxu1 %v6995_v55  ;;  %v7055_v55 = vld [vmem:[%s9204_s1 + $0x3c8] sm:$0xff]  }
  0x34   :  { %6291 = vmatpush3.bf16.msra.mxu0 %v6996_v56  ;;  %v7056_v56 = vld [vmem:[%s9204_s1 + $0x308] sm:$0xff]  }
  0x35   :  { %6313 = vmatpush3.bf16.msra.mxu1 %v6997_v57  ;;  %6292 = vmatprep.subr.bf16.mxu0 %v6998_v58  ;;  %v7057_v57 = vld [vmem:[%s9204_s1 + $0x388] sm:$0xff]   ;;  %v7058_v58 = vld [vmem:[%s9204_s1 + $0x350] sm:$0xff]  }
  0x36   :  { %6314 = vmatprep.subr.bf16.mxu1 %v6999_v59  ;;  %v7059_v59 = vld [vmem:[%s9204_s1 + $0x3d0] sm:$0xff]  }
  0x38   :  { %6293 = vmatpush3.bf16.msra.mxu0 %v7000_v60  ;;  %v7060_v60 = vld [vmem:[%s9204_s1 + $0x310] sm:$0xff]  }
  0x39   :  { %6315 = vmatpush3.bf16.msra.mxu1 %v7001_v61  ;;  %6294 = vmatprep.subr.bf16.mxu0 %v7002_v62  ;;  %v7061_v61 = vld [vmem:[%s9204_s1 + $0x390] sm:$0xff]   ;;  %v7062_v62 = vld [vmem:[%s9204_s1 + $0x358] sm:$0xff]  }
  0x3a   :  { %6316 = vmatprep.subr.bf16.mxu1 %v7003_v63  ;;  %v7063_v63 = vld [vmem:[%s9204_s1 + $0x3d8] sm:$0xff]  }
  0x3c   :  { %6295 = vmatpush3.bf16.msra.mxu0 %v7004_v0  ;;  %v7064_v0 = vld [vmem:[%s9204_s1 + $0x318] sm:$0xff]  }
  0x3d   :  { %6317 = vmatpush3.bf16.msra.mxu1 %v7005_v1  ;;  %6296 = vmatprep.subr.bf16.mxu0 %v7006_v2  ;;  %v7065_v1 = vld [vmem:[%s9204_s1 + $0x398] sm:$0xff]   ;;  %v7066_v2 = vld [vmem:[%s9204_s1 + $0x360] sm:$0xff]  }
  0x3e   :  { %6318 = vmatprep.subr.bf16.mxu1 %v7007_v3  ;;  %v7067_v3 = vld [vmem:[%s9204_s1 + $0x3e0] sm:$0xff]  }
  0x40   :  { %6297 = vmatpush3.bf16.msra.mxu0 %v7008_v4  ;;  %v7068_v4 = vld [vmem:[%s9204_s1 + $0x320] sm:$0xff]  }
  0x41   :  { %6319 = vmatpush3.bf16.msra.mxu1 %v7009_v5  ;;  %6326 = vmatprep.subr.bf16.mxu0 %v7014_v12  ;;  %v7069_v5 = vld [vmem:[%s9204_s1 + $0x3a0] sm:$0xff]   ;;  %v7076_v12 = vld [vmem:[%s9204_s1 + $0x330] sm:$0xff]  }
  0x42   :  { %6348 = vmatprep.subr.bf16.mxu1 %v7015_v13  ;;  %v7077_v13 = vld [vmem:[%s9204_s1 + $0x3b0] sm:$0xff]  }
  0x43   :  { %4479 = vmatmul.mubr.bf16.vlgmr.msra.gmra.mrb[4].mxu0 %v5666_v7  ;;  %v7071_v7 = vld [vmem:[%s9204_s1 + $0x3e8] sm:$0xff]  }
  0x44   :  { %4519 = vmatmul.mubr.bf16.vlgmr.msra.gmra.mrb[4].mxu1 %v5668_v10  ;;  %6327 = vmatpush3.bf16.msra.mxu0 %v7016_v14  ;;  %v7074_v10 = vld [vmem:[%s9204_s1 + $0x370] sm:$0xff]   ;;  %v7078_v14 = vld [vmem:[%s9204_s1 + $0x378] sm:$0xff]  }
  0x45   :  { %6349 = vmatpush3.bf16.msra.mxu1 %v7017_v15  ;;  %6328 = vmatprep.subr.bf16.mxu0 %v7018_v16  ;;  %v7079_v15 = vld [vmem:[%s9204_s1 + $0x3f8] sm:$0xff]  }
  0x46   :  { %6350 = vmatprep.subr.bf16.mxu1 %v7019_v17  ;;  %4558 = vmatprep.mubr.bf16.mxu0 %v5671_v47  ;;  %v7080_v16 = vld [vmem:[%s9204_s1 + $0x338] sm:$0xff]   ;;  %v7109_v47 = vld [vmem:[%s9204_s1 + $0x4a8] sm:$0xff]  }
  0x47   :  { %4598 = vmatprep.mubr.bf16.mxu1 %v5673_v49  ;;  %v7081_v17 = vld [vmem:[%s9204_s1 + $0x3b8] sm:$0xff]   ;;  %v7111_v49 = vld [vmem:[%s9204_s1 + $0x4f0] sm:$0xff]  }
  0x48   :  { %6329 = vmatpush3.bf16.msra.mxu0 %v7020_v18  ;;  %v20_v18 = vld [vmem:[%s9205_s0 + $0x30] sm:$0xff] }
  0x49   :  { %6351 = vmatpush3.bf16.msra.mxu1 %v7021_v19  ;;  %6330 = vmatprep.subr.bf16.mxu0 %v7022_v20  ;;  %v21_v19 = vld [vmem:[%s9205_s0 + $0x38] sm:$0xff]  ;;  %v5674_v20 = vcombine.low %v20_v18, %v20_v18 }
  0x4a   :  { %6352 = vmatprep.subr.bf16.mxu1 %v7023_v21  ;;  %v5675_v21 = vcombine.high %v20_v18, %v20_v18  ;;  %v7142_v18 = vld [vmem:[%s9204_s1 + $0x568] sm:$0xff]  }
  0x4c   :  { %6331 = vmatpush3.bf16.msra.mxu0 %v7024_v22  ;;  %v5676_v22 = vcombine.low %v21_v19, %v21_v19 }
  0x4d   :  { %6353 = vmatpush3.bf16.msra.mxu1 %v7025_v23  ;;  %6332 = vmatprep.subr.bf16.mxu0 %v7026_v24  ;;  %v7086_v23 = vld [vmem:[%s9204_s1 + $0x440] sm:$0xff]   ;;  %v5677_v24 = vcombine.high %v21_v19, %v21_v19  ;;  %v7143_v19 = vld [vmem:[%s9204_s1 + $0x5e8] sm:$0xff]  }
  0x4e   :  { %6354 = vmatprep.subr.bf16.mxu1 %v7027_v25  ;;  %v7087_v25 = vld [vmem:[%s9204_s1 + $0x4c0] sm:$0xff]  }
  0x50   :  { %6333 = vmatpush3.bf16.msra.mxu0 %v7028_v26  ;;  %v7088_v26 = vld [vmem:[%s9204_s1 + $0x400] sm:$0xff]  }
  0x51   :  { %6355 = vmatpush3.bf16.msra.mxu1 %v7029_v27  ;;  %6334 = vmatprep.subr.bf16.mxu0 %v7030_v28  ;;  %v7089_v27 = vld [vmem:[%s9204_s1 + $0x480] sm:$0xff]   ;;  %v7090_v28 = vld [vmem:[%s9204_s1 + $0x448] sm:$0xff]  }
  0x52   :  { %6356 = vmatprep.subr.bf16.mxu1 %v7031_v29  ;;  %v7091_v29 = vld [vmem:[%s9204_s1 + $0x4c8] sm:$0xff]  }
  0x54   :  { %6335 = vmatpush3.bf16.msra.mxu0 %v7032_v30  ;;  %v7092_v30 = vld [vmem:[%s9204_s1 + $0x408] sm:$0xff]  }
  0x55   :  { %6357 = vmatpush3.bf16.msra.mxu1 %v7033_v31  ;;  %6336 = vmatprep.subr.bf16.mxu0 %v7034_v32  ;;  %v7093_v31 = vld [vmem:[%s9204_s1 + $0x488] sm:$0xff]   ;;  %v7094_v32 = vld [vmem:[%s9204_s1 + $0x450] sm:$0xff]  }
  0x56   :  { %6358 = vmatprep.subr.bf16.mxu1 %v7035_v33  ;;  %v7095_v33 = vld [vmem:[%s9204_s1 + $0x4d0] sm:$0xff]  }
  0x58   :  { %6337 = vmatpush3.bf16.msra.mxu0 %v7036_v34  ;;  %v7096_v34 = vld [vmem:[%s9204_s1 + $0x410] sm:$0xff]  }
  0x59   :  { %6359 = vmatpush3.bf16.msra.mxu1 %v7037_v35  ;;  %6338 = vmatprep.subr.bf16.mxu0 %v7038_v36  ;;  %v7097_v35 = vld [vmem:[%s9204_s1 + $0x490] sm:$0xff]   ;;  %v7098_v36 = vld [vmem:[%s9204_s1 + $0x458] sm:$0xff]  }
  0x5a   :  { %6360 = vmatprep.subr.bf16.mxu1 %v7039_v37  ;;  %v7099_v37 = vld [vmem:[%s9204_s1 + $0x4d8] sm:$0xff]  }
  0x5c   :  { %6339 = vmatpush3.bf16.msra.mxu0 %v7040_v38  ;;  %v7100_v38 = vld [vmem:[%s9204_s1 + $0x418] sm:$0xff]  }
  0x5d   :  { %6361 = vmatpush3.bf16.msra.mxu1 %v7041_v39  ;;  %6340 = vmatprep.subr.bf16.mxu0 %v7042_v40  ;;  %v7101_v39 = vld [vmem:[%s9204_s1 + $0x498] sm:$0xff]   ;;  %v7102_v40 = vld [vmem:[%s9204_s1 + $0x460] sm:$0xff]  }
  0x5e   :  { %6362 = vmatprep.subr.bf16.mxu1 %v7043_v41  ;;  %v7103_v41 = vld [vmem:[%s9204_s1 + $0x4e0] sm:$0xff]  }
  0x60   :  { %6341 = vmatpush3.bf16.msra.mxu0 %v7044_v42  ;;  %v7104_v42 = vld [vmem:[%s9204_s1 + $0x420] sm:$0xff]  }
  0x61   :  { %6363 = vmatpush3.bf16.msra.mxu1 %v7045_v43  ;;  %6370 = vmatprep.subr.bf16.mxu0 %v7050_v50  ;;  %v7105_v43 = vld [vmem:[%s9204_s1 + $0x4a0] sm:$0xff]   ;;  %v7112_v50 = vld [vmem:[%s9204_s1 + $0x430] sm:$0xff]  }
  0x62   :  { %6392 = vmatprep.subr.bf16.mxu1 %v7051_v51  ;;  %v7113_v51 = vld [vmem:[%s9204_s1 + $0x4b0] sm:$0xff]  }
  0x63   :  { %4559 = vmatmul.mubr.bf16.vlgmr.msra.gmra.mrb[8].mxu0 %v5670_v46  ;;  %v7108_v46 = vld [vmem:[%s9204_s1 + $0x428] sm:$0xff]  }
  0x64   :  { %4599 = vmatmul.mubr.bf16.vlgmr.msra.gmra.mrb[8].mxu1 %v5672_v48  ;;  %6371 = vmatpush3.bf16.msra.mxu0 %v7052_v52  ;;  %v7110_v48 = vld [vmem:[%s9204_s1 + $0x470] sm:$0xff]   ;;  %v7114_v52 = vld [vmem:[%s9204_s1 + $0x478] sm:$0xff]  }
  0x65   :  { %6393 = vmatpush3.bf16.msra.mxu1 %v7053_v53  ;;  %6372 = vmatprep.subr.bf16.mxu0 %v7054_v54  ;;  %v7115_v53 = vld [vmem:[%s9204_s1 + $0x4f8] sm:$0xff]  }
  0x66   :  { %6394 = vmatprep.subr.bf16.mxu1 %v7055_v55  ;;  %4638 = vmatprep.mubr.bf16.mxu0 %v5675_v21  ;;  %v7116_v54 = vld [vmem:[%s9204_s1 + $0x438] sm:$0xff]   ;;  %v7145_v21 = vld [vmem:[%s9204_s1 + $0x5a8] sm:$0xff]  }
  0x67   :  { %4678 = vmatprep.mubr.bf16.mxu1 %v5677_v24  ;;  %v7117_v55 = vld [vmem:[%s9204_s1 + $0x4b8] sm:$0xff]   ;;  %v7148_v24 = vld [vmem:[%s9204_s1 + $0x530] sm:$0xff]  }
  0x68   :  { %6373 = vmatpush3.bf16.msra.mxu0 %v7056_v56  ;;  %v22_v56 = vld [vmem:[%s9205_s0 + $0x40] sm:$0xff] }
  0x69   :  { %6395 = vmatpush3.bf16.msra.mxu1 %v7057_v57  ;;  %6374 = vmatprep.subr.bf16.mxu0 %v7058_v58  ;;  %v5678_v57 = vcombine.low %v22_v56, %v22_v56  ;;  %v5679_v58 = vcombine.high %v22_v56, %v22_v56  ;;  %v7178_v56 = vld [vmem:[%s9204_s1 + $0x668] sm:$0xff]  }
  0x6a   :  { %6396 = vmatprep.subr.bf16.mxu1 %v7059_v59  ;;  %v23_v59 = vld [vmem:[%s9205_s0 + $0x48] sm:$0xff] }
  0x6c   :  { %6375 = vmatpush3.bf16.msra.mxu0 %v7060_v60  ;;  %v5680_v60 = vcombine.low %v23_v59, %v23_v59 }
  0x6d   :  { %6397 = vmatpush3.bf16.msra.mxu1 %v7061_v61  ;;  %6376 = vmatprep.subr.bf16.mxu0 %v7062_v62  ;;  %v5681_v61 = vcombine.high %v23_v59, %v23_v59  ;;  %v7122_v62 = vld [vmem:[%s9204_s1 + $0x540] sm:$0xff]   ;;  %v7181_v59 = vld [vmem:[%s9204_s1 + $0x6a8] sm:$0xff]  }
  0x6e   :  { %6398 = vmatprep.subr.bf16.mxu1 %v7063_v63  ;;  %v7123_v63 = vld [vmem:[%s9204_s1 + $0x5c0] sm:$0xff]  }
  0x70   :  { %6377 = vmatpush3.bf16.msra.mxu0 %v7064_v0  ;;  %v7124_v0 = vld [vmem:[%s9204_s1 + $0x500] sm:$0xff]  }
  0x71   :  { %6399 = vmatpush3.bf16.msra.mxu1 %v7065_v1  ;;  %6378 = vmatprep.subr.bf16.mxu0 %v7066_v2  ;;  %v7125_v1 = vld [vmem:[%s9204_s1 + $0x580] sm:$0xff]   ;;  %v7126_v2 = vld [vmem:[%s9204_s1 + $0x548] sm:$0xff]  }
  0x72   :  { %6400 = vmatprep.subr.bf16.mxu1 %v7067_v3  ;;  %v7127_v3 = vld [vmem:[%s9204_s1 + $0x5c8] sm:$0xff]  }
  0x74   :  { %6379 = vmatpush3.bf16.msra.mxu0 %v7068_v4  ;;  %v7128_v4 = vld [vmem:[%s9204_s1 + $0x508] sm:$0xff]  }
  0x75   :  { %6401 = vmatpush3.bf16.msra.mxu1 %v7069_v5  ;;  %6380 = vmatprep.subr.bf16.mxu0 %v7070_v6  ;;  %v7129_v5 = vld [vmem:[%s9204_s1 + $0x588] sm:$0xff]   ;;  %v7130_v6 = vld [vmem:[%s9204_s1 + $0x550] sm:$0xff]  }
  0x76   :  { %6402 = vmatprep.subr.bf16.mxu1 %v7071_v7  ;;  %v7131_v7 = vld [vmem:[%s9204_s1 + $0x5d0] sm:$0xff]  }
  0x78   :  { %6381 = vmatpush3.bf16.msra.mxu0 %v7072_v8  ;;  %v7132_v8 = vld [vmem:[%s9204_s1 + $0x510] sm:$0xff]  }
  0x79   :  { %6403 = vmatpush3.bf16.msra.mxu1 %v7073_v9  ;;  %6382 = vmatprep.subr.bf16.mxu0 %v7074_v10  ;;  %v7133_v9 = vld [vmem:[%s9204_s1 + $0x590] sm:$0xff]   ;;  %v7134_v10 = vld [vmem:[%s9204_s1 + $0x558] sm:$0xff]  }
  0x7a   :  { %6404 = vmatprep.subr.bf16.mxu1 %v7075_v11  ;;  %v7135_v11 = vld [vmem:[%s9204_s1 + $0x5d8] sm:$0xff]  }
  0x7c   :  { %6383 = vmatpush3.bf16.msra.mxu0 %v7076_v12  ;;  %v7136_v12 = vld [vmem:[%s9204_s1 + $0x518] sm:$0xff]  }
  0x7d   :  { %6405 = vmatpush3.bf16.msra.mxu1 %v7077_v13  ;;  %6384 = vmatprep.subr.bf16.mxu0 %v7078_v14  ;;  %v7137_v13 = vld [vmem:[%s9204_s1 + $0x598] sm:$0xff]   ;;  %v7138_v14 = vld [vmem:[%s9204_s1 + $0x560] sm:$0xff]  }
  0x7e   :  { %6406 = vmatprep.subr.bf16.mxu1 %v7079_v15  ;;  %v7139_v15 = vld [vmem:[%s9204_s1 + $0x5e0] sm:$0xff]  }
  0x80   :  { %6385 = vmatpush3.bf16.msra.mxu0 %v7080_v16  ;;  %v7140_v16 = vld [vmem:[%s9204_s1 + $0x520] sm:$0xff]  }
  0x81   :  { %6407 = vmatpush3.bf16.msra.mxu1 %v7081_v17  ;;  %6414 = vmatprep.subr.bf16.mxu0 %v7086_v23  ;;  %v7141_v17 = vld [vmem:[%s9204_s1 + $0x5a0] sm:$0xff]   ;;  %v7147_v23 = vld [vmem:[%s9204_s1 + $0x5f0] sm:$0xff]  }
  0x82   :  { %6436 = vmatprep.subr.bf16.mxu1 %v7087_v25  ;;  %v7149_v25 = vld [vmem:[%s9204_s1 + $0x5b0] sm:$0xff]  }
  0x83   :  { %4639 = vmatmul.mubr.bf16.vlgmr.msra.gmra.mrb[12].mxu0 %v5674_v20  ;;  %v7144_v20 = vld [vmem:[%s9204_s1 + $0x528] sm:$0xff]  }
  0x84   :  { %4679 = vmatmul.mubr.bf16.vlgmr.msra.gmra.mrb[12].mxu1 %v5676_v22  ;;  %6415 = vmatpush3.bf16.msra.mxu0 %v7088_v26  ;;  %v7146_v22 = vld [vmem:[%s9204_s1 + $0x570] sm:$0xff]   ;;  %v7150_v26 = vld [vmem:[%s9204_s1 + $0x578] sm:$0xff]  }
  0x85   :  { %6437 = vmatpush3.bf16.msra.mxu1 %v7089_v27  ;;  %6416 = vmatprep.subr.bf16.mxu0 %v7090_v28  ;;  %v7151_v27 = vld [vmem:[%s9204_s1 + $0x5f8] sm:$0xff]  }
  0x86   :  { %6438 = vmatprep.subr.bf16.mxu1 %v7091_v29  ;;  %4718 = vmatprep.mubr.bf16.mxu0 %v5679_v58  ;;  %v7152_v28 = vld [vmem:[%s9204_s1 + $0x538] sm:$0xff]   ;;  %v7180_v58 = vld [vmem:[%s9204_s1 + $0x628] sm:$0xff]  }
  0x87   :  { %4758 = vmatprep.mubr.bf16.mxu1 %v5681_v61  ;;  %v7153_v29 = vld [vmem:[%s9204_s1 + $0x5b8] sm:$0xff]   ;;  %v7183_v61 = vld [vmem:[%s9204_s1 + $0x6f0] sm:$0xff]  }
  0x88   :  { %6417 = vmatpush3.bf16.msra.mxu0 %v7092_v30  ;;  %v24_v30 = vld [vmem:[%s9205_s0 + $0x50] sm:$0xff] }
  0x89   :  { %6439 = vmatpush3.bf16.msra.mxu1 %v7093_v31  ;;  %6418 = vmatprep.subr.bf16.mxu0 %v7094_v32  ;;  %v25_v31 = vld [vmem:[%s9205_s0 + $0x58] sm:$0xff]  ;;  %v5682_v32 = vcombine.low %v24_v30, %v24_v30 }
  0x8a   :  { %6440 = vmatprep.subr.bf16.mxu1 %v7095_v33  ;;  %v5683_v33 = vcombine.high %v24_v30, %v24_v30  ;;  %v7213_v30 = vld [vmem:[%s9204_s1 + $0x7a0] sm:$0xff]  }
  0x8c   :  { %6419 = vmatpush3.bf16.msra.mxu0 %v7096_v34  ;;  %v5684_v34 = vcombine.low %v25_v31, %v25_v31 }
  0x8d   :  { %6441 = vmatpush3.bf16.msra.mxu1 %v7097_v35  ;;  %6420 = vmatprep.subr.bf16.mxu0 %v7098_v36  ;;  %v5685_v35 = vcombine.high %v25_v31, %v25_v31  ;;  %v7158_v36 = vld [vmem:[%s9204_s1 + $0x640] sm:$0xff]  }
  0x8e   :  { %6442 = vmatprep.subr.bf16.mxu1 %v7099_v37  ;;  %v7159_v37 = vld [vmem:[%s9204_s1 + $0x6c0] sm:$0xff]  }
  0x90   :  { %6421 = vmatpush3.bf16.msra.mxu0 %v7100_v38  ;;  %v7160_v38 = vld [vmem:[%s9204_s1 + $0x600] sm:$0xff]  }
  0x91   :  { %6443 = vmatpush3.bf16.msra.mxu1 %v7101_v39  ;;  %6422 = vmatprep.subr.bf16.mxu0 %v7102_v40  ;;  %v7161_v39 = vld [vmem:[%s9204_s1 + $0x680] sm:$0xff]   ;;  %v7162_v40 = vld [vmem:[%s9204_s1 + $0x648] sm:$0xff]  }
  0x92   :  { %6444 = vmatprep.subr.bf16.mxu1 %v7103_v41  ;;  %v7163_v41 = vld [vmem:[%s9204_s1 + $0x6c8] sm:$0xff]  }
  0x94   :  { %6423 = vmatpush3.bf16.msra.mxu0 %v7104_v42  ;;  %v7164_v42 = vld [vmem:[%s9204_s1 + $0x608] sm:$0xff]  }
  0x95   :  { %6445 = vmatpush3.bf16.msra.mxu1 %v7105_v43  ;;  %6424 = vmatprep.subr.bf16.mxu0 %v7106_v44  ;;  %v7165_v43 = vld [vmem:[%s9204_s1 + $0x688] sm:$0xff]   ;;  %v7166_v44 = vld [vmem:[%s9204_s1 + $0x650] sm:$0xff]  }
  0x96   :  { %6446 = vmatprep.subr.bf16.mxu1 %v7107_v45  ;;  %v7167_v45 = vld [vmem:[%s9204_s1 + $0x6d0] sm:$0xff]  }
  0x98   :  { %6425 = vmatpush3.bf16.msra.mxu0 %v7108_v46  ;;  %v7168_v46 = vld [vmem:[%s9204_s1 + $0x610] sm:$0xff]  }
  0x99   :  { %6447 = vmatpush3.bf16.msra.mxu1 %v7109_v47  ;;  %6426 = vmatprep.subr.bf16.mxu0 %v7110_v48  ;;  %v7169_v47 = vld [vmem:[%s9204_s1 + $0x690] sm:$0xff]   ;;  %v7170_v48 = vld [vmem:[%s9204_s1 + $0x658] sm:$0xff]  }
  0x9a   :  { %6448 = vmatprep.subr.bf16.mxu1 %v7111_v49  ;;  %v7171_v49 = vld [vmem:[%s9204_s1 + $0x6d8] sm:$0xff]  }
  0x9c   :  { %6427 = vmatpush3.bf16.msra.mxu0 %v7112_v50  ;;  %v7172_v50 = vld [vmem:[%s9204_s1 + $0x618] sm:$0xff]  }
  0x9d   :  { %6449 = vmatpush3.bf16.msra.mxu1 %v7113_v51  ;;  %6428 = vmatprep.subr.bf16.mxu0 %v7114_v52  ;;  %v7173_v51 = vld [vmem:[%s9204_s1 + $0x698] sm:$0xff]   ;;  %v7174_v52 = vld [vmem:[%s9204_s1 + $0x660] sm:$0xff]  }
  0x9e   :  { %6450 = vmatprep.subr.bf16.mxu1 %v7115_v53  ;;  %v7175_v53 = vld [vmem:[%s9204_s1 + $0x6e0] sm:$0xff]  }
  0xa0   :  { %6429 = vmatpush3.bf16.msra.mxu0 %v7116_v54  ;;  %v7176_v54 = vld [vmem:[%s9204_s1 + $0x620] sm:$0xff]  }
  0xa1   :  { %6451 = vmatpush3.bf16.msra.mxu1 %v7117_v55  ;;  %6458 = vmatprep.subr.bf16.mxu0 %v7122_v62  ;;  %v7177_v55 = vld [vmem:[%s9204_s1 + $0x6a0] sm:$0xff]   ;;  %v7184_v62 = vld [vmem:[%s9204_s1 + $0x630] sm:$0xff]  }
  0xa2   :  { %6480 = vmatprep.subr.bf16.mxu1 %v7123_v63  ;;  %v7185_v63 = vld [vmem:[%s9204_s1 + $0x6b0] sm:$0xff]  }
  0xa3   :  { %4719 = vmatmul.mubr.bf16.vlgmr.msra.gmra.mrb[16].mxu0 %v5678_v57  ;;  %v7179_v57 = vld [vmem:[%s9204_s1 + $0x6e8] sm:$0xff]  }
  0xa4   :  { %4759 = vmatmul.mubr.bf16.vlgmr.msra.gmra.mrb[16].mxu1 %v5680_v60  ;;  %6459 = vmatpush3.bf16.msra.mxu0 %v7124_v0  ;;  %v7182_v60 = vld [vmem:[%s9204_s1 + $0x670] sm:$0xff]   ;;  %v7186_v0 = vld [vmem:[%s9204_s1 + $0x678] sm:$0xff]  }
  0xa5   :  { %6481 = vmatpush3.bf16.msra.mxu1 %v7125_v1  ;;  %6460 = vmatprep.subr.bf16.mxu0 %v7126_v2  ;;  %v7187_v1 = vld [vmem:[%s9204_s1 + $0x6f8] sm:$0xff]  }
  0xa6   :  { %6482 = vmatprep.subr.bf16.mxu1 %v7127_v3  ;;  %4798 = vmatprep.mubr.bf16.mxu0 %v5683_v33  ;;  %v7188_v2 = vld [vmem:[%s9204_s1 + $0x638] sm:$0xff]   ;;  %v7214_v33 = vld [vmem:[%s9204_s1 + $0x768] sm:$0xff]  }
  0xa7   :  { %4838 = vmatprep.mubr.bf16.mxu1 %v5685_v35  ;;  %v7189_v3 = vld [vmem:[%s9204_s1 + $0x6b8] sm:$0xff]  }
  0xa8   :  { %6461 = vmatpush3.bf16.msra.mxu0 %v7128_v4  ;;  %v26_v4 = vld [vmem:[%s9205_s0 + $0x60] sm:$0xff] }
  0xa9   :  { %6483 = vmatpush3.bf16.msra.mxu1 %v7129_v5  ;;  %6462 = vmatprep.subr.bf16.mxu0 %v7130_v6  ;;  %v27_v5 = vld [vmem:[%s9205_s0 + $0x68] sm:$0xff]  ;;  %v5686_v6 = vcombine.low %v26_v4, %v26_v4 }
  0xaa   :  { %6484 = vmatprep.subr.bf16.mxu1 %v7131_v7  ;;  %v5687_v7 = vcombine.high %v26_v4, %v26_v4  ;;  %v7239_v4 = vld [vmem:[%s9204_s1 + $0x8d0] sm:$0xff]  }
  0xac   :  { %6463 = vmatpush3.bf16.msra.mxu0 %v7132_v8  ;;  %v5688_v8 = vcombine.low %v27_v5, %v27_v5 }
  0xad   :  { %6485 = vmatpush3.bf16.msra.mxu1 %v7133_v9  ;;  %6464 = vmatprep.subr.bf16.mxu0 %v7134_v10  ;;  %v7194_v9 = vld [vmem:[%s9204_s1 + $0x740] sm:$0xff]   ;;  %v5689_v10 = vcombine.high %v27_v5, %v27_v5  ;;  %v7240_v5 = vld [vmem:[%s9204_s1 + $0x810] sm:$0xff]  }
  0xae   :  { %6486 = vmatprep.subr.bf16.mxu1 %v7135_v11  ;;  %v7195_v11 = vld [vmem:[%s9204_s1 + $0x7c0] sm:$0xff]  }
  0xb0   :  { %6465 = vmatpush3.bf16.msra.mxu0 %v7136_v12  ;;  %v7196_v12 = vld [vmem:[%s9204_s1 + $0x700] sm:$0xff]  }
  0xb1   :  { %6487 = vmatpush3.bf16.msra.mxu1 %v7137_v13  ;;  %6466 = vmatprep.subr.bf16.mxu0 %v7138_v14  ;;  %v7197_v13 = vld [vmem:[%s9204_s1 + $0x780] sm:$0xff]   ;;  %v7198_v14 = vld [vmem:[%s9204_s1 + $0x748] sm:$0xff]  }
  0xb2   :  { %6488 = vmatprep.subr.bf16.mxu1 %v7139_v15  ;;  %v7199_v15 = vld [vmem:[%s9204_s1 + $0x7c8] sm:$0xff]  }
  0xb4   :  { %6467 = vmatpush3.bf16.msra.mxu0 %v7140_v16  ;;  %v7200_v16 = vld [vmem:[%s9204_s1 + $0x708] sm:$0xff]  }
  0xb5   :  { %6489 = vmatpush3.bf16.msra.mxu1 %v7141_v17  ;;  %6468 = vmatprep.subr.bf16.mxu0 %v7142_v18  ;;  %v7201_v17 = vld [vmem:[%s9204_s1 + $0x788] sm:$0xff]   ;;  %v7202_v18 = vld [vmem:[%s9204_s1 + $0x750] sm:$0xff]  }
  0xb6   :  { %6490 = vmatprep.subr.bf16.mxu1 %v7143_v19  ;;  %v7203_v19 = vld [vmem:[%s9204_s1 + $0x7d0] sm:$0xff]  }
  0xb8   :  { %6469 = vmatpush3.bf16.msra.mxu0 %v7144_v20  ;;  %v7204_v20 = vld [vmem:[%s9204_s1 + $0x710] sm:$0xff]  }
  0xb9   :  { %6491 = vmatpush3.bf16.msra.mxu1 %v7145_v21  ;;  %6470 = vmatprep.subr.bf16.mxu0 %v7146_v22  ;;  %v7205_v21 = vld [vmem:[%s9204_s1 + $0x790] sm:$0xff]   ;;  %v7206_v22 = vld [vmem:[%s9204_s1 + $0x758] sm:$0xff]  }
  0xba   :  { %6492 = vmatprep.subr.bf16.mxu1 %v7147_v23  ;;  %v7207_v23 = vld [vmem:[%s9204_s1 + $0x7d8] sm:$0xff]  }
  0xbc   :  { %6471 = vmatpush3.bf16.msra.mxu0 %v7148_v24  ;;  %v7208_v24 = vld [vmem:[%s9204_s1 + $0x718] sm:$0xff]  }
  0xbd   :  { %6493 = vmatpush3.bf16.msra.mxu1 %v7149_v25  ;;  %6472 = vmatprep.subr.bf16.mxu0 %v7150_v26  ;;  %v7209_v25 = vld [vmem:[%s9204_s1 + $0x798] sm:$0xff]   ;;  %v7210_v26 = vld [vmem:[%s9204_s1 + $0x760] sm:$0xff]  }
  0xbe   :  { %6494 = vmatprep.subr.bf16.mxu1 %v7151_v27  ;;  %v7211_v27 = vld [vmem:[%s9204_s1 + $0x7e0] sm:$0xff]  }
  0xc0   :  { %6473 = vmatpush3.bf16.msra.mxu0 %v7152_v28  ;;  %v7212_v28 = vld [vmem:[%s9204_s1 + $0x720] sm:$0xff]  }
  0xc1   :  { %6495 = vmatpush3.bf16.msra.mxu1 %v7153_v29  ;;  %6502 = vmatprep.subr.bf16.mxu0 %v7158_v36  ;;  %v7215_v36 = vld [vmem:[%s9204_s1 + $0x7e8] sm:$0xff]  }
  0xc2   :  { %6524 = vmatprep.subr.bf16.mxu1 %v7159_v37 }
  0xc3   :  { %4799 = vmatmul.mubr.bf16.vlgmr.msra.gmra.mrb[20].mxu0 %v5682_v32 }
  0xc4   :  { %4839 = vmatmul.mubr.bf16.vlgmr.msra.gmra.mrb[20].mxu1 %v5684_v34  ;;  %6503 = vmatpush3.bf16.msra.mxu0 %v7160_v38 }
  0xc5   :  { %6525 = vmatpush3.bf16.msra.mxu1 %v7161_v39  ;;  %6504 = vmatprep.subr.bf16.mxu0 %v7162_v40  ;;  %v7216_v40 = vld [vmem:[%s9204_s1 + $0x728] sm:$0xff]  }
  0xc6   :  { %6526 = vmatprep.subr.bf16.mxu1 %v7163_v41  ;;  %4878 = vmatprep.mubr.bf16.mxu0 %v5687_v7  ;;  %v7242_v7 = vld [vmem:[%s9204_s1 + $0x858] sm:$0xff]  }
  0xc7   :  { %4918 = vmatprep.mubr.bf16.mxu1 %v5689_v10  ;;  %v7245_v10 = vld [vmem:[%s9204_s1 + $0x898] sm:$0xff]  }
  0xc8   :  { %6505 = vmatpush3.bf16.msra.mxu0 %v7164_v42 }
  0xc9   :  { %6527 = vmatpush3.bf16.msra.mxu1 %v7165_v43  ;;  %6506 = vmatprep.subr.bf16.mxu0 %v7166_v44  ;;  %v7217_v43 = vld [vmem:[%s9204_s1 + $0x7a8] sm:$0xff]  }
  0xca   :  { %6528 = vmatprep.subr.bf16.mxu1 %v7167_v45  ;;  %v7218_v45 = vld [vmem:[%s9204_s1 + $0x770] sm:$0xff]  }
  0xcc   :  { %6507 = vmatpush3.bf16.msra.mxu0 %v7168_v46  ;;  %v7219_v46 = vld [vmem:[%s9204_s1 + $0x7f0] sm:$0xff]  }
  0xcd   :  { %6529 = vmatpush3.bf16.msra.mxu1 %v7169_v47  ;;  %6508 = vmatprep.subr.bf16.mxu0 %v7170_v48  ;;  %v7220_v47 = vld [vmem:[%s9204_s1 + $0x730] sm:$0xff]  }
  0xce   :  { %6530 = vmatprep.subr.bf16.mxu1 %v7171_v49  ;;  %v7221_v48 = vld [vmem:[%s9204_s1 + $0x7b0] sm:$0xff]   ;;  %v7222_v49 = vld [vmem:[%s9204_s1 + $0x778] sm:$0xff]  }
  0xd0   :  { %6509 = vmatpush3.bf16.msra.mxu0 %v7172_v50  ;;  %v7223_v50 = vld [vmem:[%s9204_s1 + $0x7f8] sm:$0xff]  }
  0xd1   :  { %6531 = vmatpush3.bf16.msra.mxu1 %v7173_v51  ;;  %6510 = vmatprep.subr.bf16.mxu0 %v7174_v52  ;;  %v7224_v51 = vld [vmem:[%s9204_s1 + $0x738] sm:$0xff]  }
  0xd2   :  { %6532 = vmatprep.subr.bf16.mxu1 %v7175_v53  ;;  %v7225_v52 = vld [vmem:[%s9204_s1 + $0x7b8] sm:$0xff]   ;;  %v28_v53 = vld [vmem:[%s9205_s0 + $0x70] sm:$0xff] }
  0xd4   :  { %6511 = vmatpush3.bf16.msra.mxu0 %v7176_v54  ;;  %v29_v54 = vld [vmem:[%s9205_s0 + $0x78] sm:$0xff] }
  0xd5   :  { %6533 = vmatpush3.bf16.msra.mxu1 %v7177_v55  ;;  %6512 = vmatprep.subr.bf16.mxu0 %v7178_v56  ;;  %v5690_v55 = vcombine.low %v28_v53, %v28_v53  ;;  %v5691_v56 = vcombine.high %v28_v53, %v28_v53  ;;  %v7274_v53 = vld [vmem:[%s9204_s1 + $0x950] sm:$0xff]  }
  0xd6   :  { %6534 = vmatprep.subr.bf16.mxu1 %v7179_v57  ;;  %v5692_v57 = vcombine.low %v29_v54, %v29_v54 }
  0xd8   :  { %6513 = vmatpush3.bf16.msra.mxu0 %v7180_v58  ;;  %v7230_v58 = vld [vmem:[%s9204_s1 + $0x840] sm:$0xff]  }
  0xd9   :  { %6535 = vmatpush3.bf16.msra.mxu1 %v7181_v59  ;;  %6514 = vmatprep.subr.bf16.mxu0 %v7182_v60  ;;  %v5693_v59 = vcombine.high %v29_v54, %v29_v54  ;;  %v7231_v60 = vld [vmem:[%s9204_s1 + $0x8c0] sm:$0xff]   ;;  %v7275_v54 = vld [vmem:[%s9204_s1 + $0x9d0] sm:$0xff]  }
  0xda   :  { %6536 = vmatprep.subr.bf16.mxu1 %v7183_v61  ;;  %v7232_v61 = vld [vmem:[%s9204_s1 + $0x800] sm:$0xff]  }
  0xdc   :  { %6515 = vmatpush3.bf16.msra.mxu0 %v7184_v62  ;;  %v7233_v62 = vld [vmem:[%s9204_s1 + $0x880] sm:$0xff]  }
  0xdd   :  { %6537 = vmatpush3.bf16.msra.mxu1 %v7185_v63  ;;  %6516 = vmatprep.subr.bf16.mxu0 %v7186_v0  ;;  %v7234_v63 = vld [vmem:[%s9204_s1 + $0x848] sm:$0xff]  }
  0xde   :  { %6538 = vmatprep.subr.bf16.mxu1 %v7187_v1  ;;  %v7235_v0 = vld [vmem:[%s9204_s1 + $0x8c8] sm:$0xff]  }
  0xdf   :  { %v7236_v1 = vld [vmem:[%s9204_s1 + $0x808] sm:$0xff]  }
  0xe0   :  { %6517 = vmatpush3.bf16.msra.mxu0 %v7188_v2  ;;  %v7237_v2 = vld [vmem:[%s9204_s1 + $0x888] sm:$0xff]  }
  0xe1   :  { %6539 = vmatpush3.bf16.msra.mxu1 %v7189_v3  ;;  %6546 = vmatprep.subr.bf16.mxu0 %v7194_v9  ;;  %v7238_v3 = vld [vmem:[%s9204_s1 + $0x850] sm:$0xff]   ;;  %v7244_v9 = vld [vmem:[%s9204_s1 + $0x818] sm:$0xff]  }
  0xe2   :  { %6568 = vmatprep.subr.bf16.mxu1 %v7195_v11  ;;  %v7246_v11 = vld [vmem:[%s9204_s1 + $0x860] sm:$0xff]  }
  0xe3   :  { %4879 = vmatmul.mubr.bf16.vlgmr.msra.gmra.mrb[24].mxu0 %v5686_v6  ;;  %v7241_v6 = vld [vmem:[%s9204_s1 + $0x890] sm:$0xff]  }
  0xe4   :  { %4919 = vmatmul.mubr.bf16.vlgmr.msra.gmra.mrb[24].mxu1 %v5688_v8  ;;  %6547 = vmatpush3.bf16.msra.mxu0 %v7196_v12  ;;  %v7243_v8 = vld [vmem:[%s9204_s1 + $0x8d8] sm:$0xff]   ;;  %v7247_v12 = vld [vmem:[%s9204_s1 + $0x8e0] sm:$0xff]  }
  0xe5   :  { %6569 = vmatpush3.bf16.msra.mxu1 %v7197_v13  ;;  %6548 = vmatprep.subr.bf16.mxu0 %v7198_v14  ;;  %v7248_v13 = vld [vmem:[%s9204_s1 + $0x820] sm:$0xff]  }
  0xe6   :  { %6570 = vmatprep.subr.bf16.mxu1 %v7199_v15  ;;  %4958 = vmatprep.mubr.bf16.mxu0 %v5691_v56  ;;  %v7249_v15 = vld [vmem:[%s9204_s1 + $0x8a0] sm:$0xff]   ;;  %v7277_v56 = vld [vmem:[%s9204_s1 + $0x990] sm:$0xff]  }
  0xe7   :  { %4998 = vmatprep.mubr.bf16.mxu1 %v5693_v59  ;;  %v7280_v59 = vld [vmem:[%s9204_s1 + $0x918] sm:$0xff]  }
  0xe8   :  { %6549 = vmatpush3.bf16.msra.mxu0 %v7200_v16 }
  0xe9   :  { %6571 = vmatpush3.bf16.msra.mxu1 %v7201_v17  ;;  %6550 = vmatprep.subr.bf16.mxu0 %v7202_v18  ;;  %v7250_v18 = vld [vmem:[%s9204_s1 + $0x868] sm:$0xff]  }
  0xea   :  { %6572 = vmatprep.subr.bf16.mxu1 %v7203_v19 }
  0xec   :  { %6551 = vmatpush3.bf16.msra.mxu0 %v7204_v20 }
  0xed   :  { %6573 = vmatpush3.bf16.msra.mxu1 %v7205_v21  ;;  %6552 = vmatprep.subr.bf16.mxu0 %v7206_v22  ;;  %v7251_v21 = vld [vmem:[%s9204_s1 + $0x8e8] sm:$0xff]  }
  0xee   :  { %6574 = vmatprep.subr.bf16.mxu1 %v7207_v23 }
  0xf0   :  { %6553 = vmatpush3.bf16.msra.mxu0 %v7208_v24 }
  0xf1   :  { %6575 = vmatpush3.bf16.msra.mxu1 %v7209_v25  ;;  %6554 = vmatprep.subr.bf16.mxu0 %v7210_v26  ;;  %v7252_v26 = vld [vmem:[%s9204_s1 + $0x828] sm:$0xff]  }
  0xf2   :  { %6576 = vmatprep.subr.bf16.mxu1 %v7211_v27 }
  0xf4   :  { %6555 = vmatpush3.bf16.msra.mxu0 %v7212_v28  ;;  %v7253_v28 = vld [vmem:[%s9204_s1 + $0x8a8] sm:$0xff]  }
  0xf5   :  { %6577 = vmatpush3.bf16.msra.mxu1 %v7213_v30  ;;  %6556 = vmatprep.subr.bf16.mxu0 %v7214_v33  ;;  %v7256_v33 = vld [vmem:[%s9204_s1 + $0x830] sm:$0xff]  }
  0xf6   :  { %v6254_v29 = vpop.f32.mrb[0].mxu0  ;;  %6578 = vmatprep.subr.bf16.mxu1 %v7215_v36  ;;  %v7259_v36 = vld [vmem:[%s9204_s1 + $0x8f8] sm:$0xff]  }
  0xf7   :  { %v6276_v31 = vpop.f32.mrb[0].mxu1  ;;  %v6255_v32 = vpop.f32.mrb[1].mxu0 }
  0xf8   :  { %v6256_v34 = vadd.f32 %v6255_v32, %v6254_v29  ;;  %v6277_v35 = vpop.f32.mrb[1].mxu1  ;;  %v6257_v38 = vpop.f32.mrb[2].mxu0  ;;  %6557 = vmatpush3.bf16.msra.mxu0 %v7216_v40  ;;  %v7255_v32 = vld [vmem:[%s9204_s1 + $0x8f0] sm:$0xff]   ;;  %v31_v40 = vld [vmem:[%s9205_s0 + $0x88] sm:$0xff] }
  0xf9   :  { %v6278_v37 = vadd.f32 %v6277_v35, %v6276_v31  ;;  %v6279_v39 = vpop.f32.mrb[2].mxu1  ;;  %v6258_v41 = vpop.f32.mrb[3].mxu0  ;;  %6579 = vmatpush3.bf16.msra.mxu1 %v7217_v43  ;;  %6558 = vmatprep.subr.bf16.mxu0 %v7218_v45  ;;  %v7254_v31 = vld [vmem:[%s9204_s1 + $0x870] sm:$0xff]   ;;  %v7258_v35 = vld [vmem:[%s9204_s1 + $0x878] sm:$0xff]   ;;  %v5696_v43 = vcombine.low %v31_v40, %v31_v40  ;;  %v5697_v45 = vcombine.high %v31_v40, %v31_v40 }
  0xfa   :  { %v6280_v44 = vpop.f32.mrb[3].mxu1  ;;  %6580 = vmatprep.subr.bf16.mxu1 %v7219_v46  ;;  %v7261_v38 = vld [vmem:[%s9204_s1 + $0x8b8] sm:$0xff]   ;;  %v30_v39 = vld [vmem:[%s9205_s0 + $0x80] sm:$0xff]  ;;  %v7311_v40 = vld [vmem:[%s9204_s1 + $0xad0] sm:$0xff]  }
  0xfb   :  { %v8325_v42 = vadd.f32 %v6278_v37, %v6256_v34  ;;  %v7257_v34 = vld [vmem:[%s9204_s1 + $0x8b0] sm:$0xff]   ;;  %v7260_v37 = vld [vmem:[%s9204_s1 + $0x838] sm:$0xff]   ;;  %v5694_v41 = vcombine.low %v30_v39, %v30_v39  ;;  %v7266_v44 = vld [vmem:[%s9204_s1 + $0x940] sm:$0xff]  }
  0xfc   :  { %6559 = vmatpush3.bf16.msra.mxu0 %v7220_v47  ;;  %v7267_v46 = vld [vmem:[%s9204_s1 + $0x9c0] sm:$0xff]  }
  0xfd   :  { %6581 = vmatpush3.bf16.msra.mxu1 %v7221_v48  ;;  %6560 = vmatprep.subr.bf16.mxu0 %v7222_v49  ;;  %v7268_v47 = vld [vmem:[%s9204_s1 + $0x900] sm:$0xff]   ;;  %v7270_v49 = vld [vmem:[%s9204_s1 + $0x948] sm:$0xff]  }
  0xfe   :  { %6582 = vmatprep.subr.bf16.mxu1 %v7223_v50  ;;  %v7269_v48 = vld [vmem:[%s9204_s1 + $0x980] sm:$0xff]   ;;  %v7271_v50 = vld [vmem:[%s9204_s1 + $0x9c8] sm:$0xff]  }
 0x100   :  { %6561 = vmatpush3.bf16.msra.mxu0 %v7224_v51  ;;  %v7272_v51 = vld [vmem:[%s9204_s1 + $0x908] sm:$0xff]  }
 0x101   :  { %6583 = vmatpush3.bf16.msra.mxu1 %v7225_v52  ;;  %6590 = vmatprep.subr.bf16.mxu0 %v7230_v58  ;;  %v7273_v52 = vld [vmem:[%s9204_s1 + $0x988] sm:$0xff]   ;;  %v7279_v58 = vld [vmem:[%s9204_s1 + $0x9d8] sm:$0xff]  }
 0x102   :  { %6612 = vmatprep.subr.bf16.mxu1 %v7231_v60  ;;  %v7281_v60 = vld [vmem:[%s9204_s1 + $0x998] sm:$0xff]  }
 0x103   :  { %4959 = vmatmul.mubr.bf16.vlgmr.msra.gmra.mrb[28].mxu0 %v5690_v55  ;;  %v7276_v55 = vld [vmem:[%s9204_s1 + $0x910] sm:$0xff]  }
 0x104   :  { %4999 = vmatmul.mubr.bf16.vlgmr.msra.gmra.mrb[28].mxu1 %v5692_v57  ;;  %6591 = vmatpush3.bf16.msra.mxu0 %v7232_v61  ;;  %v7278_v57 = vld [vmem:[%s9204_s1 + $0x958] sm:$0xff]   ;;  %v7282_v61 = vld [vmem:[%s9204_s1 + $0x960] sm:$0xff]  }
 0x105   :  { %6613 = vmatpush3.bf16.msra.mxu1 %v7233_v62  ;;  %6592 = vmatprep.subr.bf16.mxu0 %v7234_v63  ;;  %v7283_v62 = vld [vmem:[%s9204_s1 + $0x9e0] sm:$0xff]  }
 0x106   :  { %6614 = vmatprep.subr.bf16.mxu1 %v7235_v0  ;;  %5078 = vmatprep.mubr.bf16.mxu1 %v5697_v45  ;;  %v7284_v0 = vld [vmem:[%s9204_s1 + $0x920] sm:$0xff]   ;;  %v7316_v45 = vld [vmem:[%s9204_s1 + $0xa18] sm:$0xff]  }
 0x108   :  { %6593 = vmatpush3.bf16.msra.mxu0 %v7236_v1 }
 0x109   :  { %6615 = vmatpush3.bf16.msra.mxu1 %v7237_v2  ;;  %6594 = vmatprep.subr.bf16.mxu0 %v7238_v3  ;;  %v7285_v2 = vld [vmem:[%s9204_s1 + $0x9a0] sm:$0xff]  }
 0x10a   :  { %6616 = vmatprep.subr.bf16.mxu1 %v7239_v4 }
 0x10c   :  { %6595 = vmatpush3.bf16.msra.mxu0 %v7240_v5  ;;  %v7286_v5 = vld [vmem:[%s9204_s1 + $0x968] sm:$0xff]  }
 0x10d   :  { %6617 = vmatpush3.bf16.msra.mxu1 %v7241_v6  ;;  %6596 = vmatprep.subr.bf16.mxu0 %v7242_v7 }
 0x10e   :  { %6618 = vmatprep.subr.bf16.mxu1 %v7243_v8  ;;  %v7287_v8 = vld [vmem:[%s9204_s1 + $0x9e8] sm:$0xff]  }
 0x110   :  { %6597 = vmatpush3.bf16.msra.mxu0 %v7244_v9 }
 0x111   :  { %6619 = vmatpush3.bf16.msra.mxu1 %v7245_v10  ;;  %6598 = vmatprep.subr.bf16.mxu0 %v7246_v11  ;;  %v7288_v11 = vld [vmem:[%s9204_s1 + $0x928] sm:$0xff]  }
 0x112   :  { %6620 = vmatprep.subr.bf16.mxu1 %v7247_v12 }
 0x114   :  { %6599 = vmatpush3.bf16.msra.mxu0 %v7248_v13  ;;  %v7289_v13 = vld [vmem:[%s9204_s1 + $0x9a8] sm:$0xff]  }
 0x115   :  { %6621 = vmatpush3.bf16.msra.mxu1 %v7249_v15  ;;  %6600 = vmatprep.subr.bf16.mxu0 %v7250_v18  ;;  %v7291_v18 = vld [vmem:[%s9204_s1 + $0x9f0] sm:$0xff]  }
 0x116   :  { %v6298_v14 = vpop.f32.mrb[4].mxu0  ;;  %6622 = vmatprep.subr.bf16.mxu1 %v7251_v21  ;;  %v7294_v21 = vld [vmem:[%s9204_s1 + $0x978] sm:$0xff]  }
 0x117   :  { %v6320_v16 = vpop.f32.mrb[4].mxu1  ;;  %v6299_v17 = vpop.f32.mrb[5].mxu0 }
 0x118   :  { %v6300_v19 = vadd.f32 %v6299_v17, %v6298_v14  ;;  %v6321_v20 = vpop.f32.mrb[5].mxu1  ;;  %v6301_v23 = vpop.f32.mrb[6].mxu0  ;;  %6601 = vmatpush3.bf16.msra.mxu0 %v7252_v26 }
 0x119   :  { %v6322_v22 = vadd.f32 %v6321_v20, %v6320_v16  ;;  %v6323_v24 = vpop.f32.mrb[6].mxu1  ;;  %v6302_v27 = vpop.f32.mrb[7].mxu0  ;;  %6623 = vmatpush3.bf16.msra.mxu1 %v7253_v28  ;;  %6602 = vmatprep.subr.bf16.mxu0 %v7254_v31  ;;  %v7290_v16 = vld [vmem:[%s9204_s1 + $0x970] sm:$0xff]   ;;  %v7296_v23 = vld [vmem:[%s9204_s1 + $0x938] sm:$0xff]   ;;  %v7302_v31 = vld [vmem:[%s9204_s1 + $0xa40] sm:$0xff]  }
 0x11a   :  { %v4481_v25 = vadd.f32 %v6300_v19, %v8325_v42  ;;  %v6324_v29 = vpop.f32.mrb[7].mxu1  ;;  %6624 = vmatprep.subr.bf16.mxu1 %v7255_v32  ;;  %v5695_v42 = vcombine.high %v30_v39, %v30_v39  ;;  %v7292_v19 = vld [vmem:[%s9204_s1 + $0x930] sm:$0xff]   ;;  %v7297_v24 = vld [vmem:[%s9204_s1 + $0x9b8] sm:$0xff]   ;;  %v7303_v32 = vld [vmem:[%s9204_s1 + $0xac0] sm:$0xff]  }
 0x11b   :  { %v7293_v20 = vld [vmem:[%s9204_s1 + $0x9b0] sm:$0xff]   ;;  %v33_v28 = vld [vmem:[%s9205_s0 + $0x98] sm:$0xff] }
 0x11c   :  { %v8433_v30 = vadd.f32 %v6322_v22, %v4481_v25  ;;  %6603 = vmatpush3.bf16.msra.mxu0 %v7256_v33  ;;  %5038 = vmatprep.mubr.bf16.mxu0 %v5695_v42  ;;  %v7295_v22 = vld [vmem:[%s9204_s1 + $0x9f8] sm:$0xff]   ;;  %v32_v25 = vld [vmem:[%s9205_s0 + $0x90] sm:$0xff]  ;;  %v5700_v29 = vcombine.low %v33_v28, %v33_v28  ;;  %v7304_v33 = vld [vmem:[%s9204_s1 + $0xa00] sm:$0xff]  }
 0x11d   :  { %6625 = vmatpush3.bf16.msra.mxu1 %v7257_v34  ;;  %6604 = vmatprep.subr.bf16.mxu0 %v7258_v35  ;;  %v5698_v26 = vcombine.low %v32_v25, %v32_v25  ;;  %v5699_v27 = vcombine.high %v32_v25, %v32_v25  ;;  %v7305_v34 = vld [vmem:[%s9204_s1 + $0xa80] sm:$0xff]   ;;  %v7306_v35 = vld [vmem:[%s9204_s1 + $0xa48] sm:$0xff]   ;;  %v7310_v39 = vld [vmem:[%s9204_s1 + $0xa50] sm:$0xff]  }
 0x11e   :  { %6626 = vmatprep.subr.bf16.mxu1 %v7259_v36  ;;  %v7307_v36 = vld [vmem:[%s9204_s1 + $0xac8] sm:$0xff]   ;;  %v7313_v42 = vld [vmem:[%s9204_s1 + $0xa90] sm:$0xff]  }
 0x11f   :  { %v7346_v25 = vld [vmem:[%s9204_s1 + $0xb50] sm:$0xff]  }
 0x120   :  { %6605 = vmatpush3.bf16.msra.mxu0 %v7260_v37  ;;  %v7308_v37 = vld [vmem:[%s9204_s1 + $0xa08] sm:$0xff]  }
 0x121   :  { %6627 = vmatpush3.bf16.msra.mxu1 %v7261_v38  ;;  %6634 = vmatprep.subr.bf16.mxu0 %v7266_v44  ;;  %v7309_v38 = vld [vmem:[%s9204_s1 + $0xa88] sm:$0xff]   ;;  %v7315_v44 = vld [vmem:[%s9204_s1 + $0xad8] sm:$0xff]  }
 0x122   :  { %6656 = vmatprep.subr.bf16.mxu1 %v7267_v46  ;;  %v7317_v46 = vld [vmem:[%s9204_s1 + $0xa98] sm:$0xff]  }
 0x123   :  { %5039 = vmatmul.mubr.bf16.vlgmr.msra.gmra.mrb[32].mxu0 %v5694_v41  ;;  %v7312_v41 = vld [vmem:[%s9204_s1 + $0xa10] sm:$0xff]  }
 0x124   :  { %5079 = vmatmul.mubr.bf16.vlgmr.msra.gmra.mrb[32].mxu1 %v5696_v43  ;;  %6635 = vmatpush3.bf16.msra.mxu0 %v7268_v47  ;;  %v7314_v43 = vld [vmem:[%s9204_s1 + $0xa58] sm:$0xff]   ;;  %v7318_v47 = vld [vmem:[%s9204_s1 + $0xa60] sm:$0xff]  }
 0x125   :  { %6657 = vmatpush3.bf16.msra.mxu1 %v7269_v48  ;;  %6636 = vmatprep.subr.bf16.mxu0 %v7270_v49  ;;  %v7319_v48 = vld [vmem:[%s9204_s1 + $0xae0] sm:$0xff]  }
 0x126   :  { %6658 = vmatprep.subr.bf16.mxu1 %v7271_v50  ;;  %5118 = vmatprep.mubr.bf16.mxu0 %v5699_v27  ;;  %v7320_v50 = vld [vmem:[%s9204_s1 + $0xa20] sm:$0xff]   ;;  %v7348_v27 = vld [vmem:[%s9204_s1 + $0xb10] sm:$0xff]  }
 0x128   :  { %6637 = vmatpush3.bf16.msra.mxu0 %v7272_v51 }
 0x129   :  { %6659 = vmatpush3.bf16.msra.mxu1 %v7273_v52  ;;  %6638 = vmatprep.subr.bf16.mxu0 %v7274_v53  ;;  %v7321_v52 = vld [vmem:[%s9204_s1 + $0xaa0] sm:$0xff]  }
 0x12a   :  { %6660 = vmatprep.subr.bf16.mxu1 %v7275_v54 }
 0x12c   :  { %6639 = vmatpush3.bf16.msra.mxu0 %v7276_v55  ;;  %v7322_v55 = vld [vmem:[%s9204_s1 + $0xa68] sm:$0xff]  }
 0x12d   :  { %6661 = vmatpush3.bf16.msra.mxu1 %v7277_v56  ;;  %6640 = vmatprep.subr.bf16.mxu0 %v7278_v57 }
 0x12e   :  { %6662 = vmatprep.subr.bf16.mxu1 %v7279_v58  ;;  %v7323_v58 = vld [vmem:[%s9204_s1 + $0xae8] sm:$0xff]  }
 0x130   :  { %6641 = vmatpush3.bf16.msra.mxu0 %v7280_v59 }
 0x131   :  { %6663 = vmatpush3.bf16.msra.mxu1 %v7281_v60  ;;  %6642 = vmatprep.subr.bf16.mxu0 %v7282_v61  ;;  %v7324_v61 = vld [vmem:[%s9204_s1 + $0xa28] sm:$0xff]  }
 0x132   :  { %6664 = vmatprep.subr.bf16.mxu1 %v7283_v62 }
 0x134   :  { %6643 = vmatpush3.bf16.msra.mxu0 %v7284_v0 }
 0x135   :  { %6665 = vmatpush3.bf16.msra.mxu1 %v7285_v2  ;;  %6644 = vmatprep.subr.bf16.mxu0 %v7286_v5  ;;  %v7326_v2 = vld [vmem:[%s9204_s1 + $0xa70] sm:$0xff]  }
 0x136   :  { %v6342_v63 = vpop.f32.mrb[8].mxu0  ;;  %6666 = vmatprep.subr.bf16.mxu1 %v7287_v8  ;;  %v7328_v5 = vld [vmem:[%s9204_s1 + $0xa30] sm:$0xff]   ;;  %v7331_v8 = vld [vmem:[%s9204_s1 + $0xaf8] sm:$0xff]  }
 0x137   :  { %v6364_v1 = vpop.f32.mrb[8].mxu1  ;;  %v6343_v3 = vpop.f32.mrb[9].mxu0 }
 0x138   :  { %v6365_v4 = vpop.f32.mrb[9].mxu1  ;;  %v6344_v6 = vadd.f32 %v6343_v3, %v6342_v63  ;;  %v6345_v9 = vpop.f32.mrb[10].mxu0  ;;  %6645 = vmatpush3.bf16.msra.mxu0 %v7288_v11  ;;  %v7325_v63 = vld [vmem:[%s9204_s1 + $0xaa8] sm:$0xff]   ;;  %v34_v11 = vld [vmem:[%s9205_s0 + $0xa0] sm:$0xff] }
 0x139   :  { %v6366_v7 = vadd.f32 %v6365_v4, %v6364_v1  ;;  %v6367_v10 = vpop.f32.mrb[10].mxu1  ;;  %v6346_v14 = vpop.f32.mrb[11].mxu0  ;;  %6667 = vmatpush3.bf16.msra.mxu1 %v7289_v13  ;;  %6646 = vmatprep.subr.bf16.mxu0 %v7290_v16  ;;  %v7327_v4 = vld [vmem:[%s9204_s1 + $0xaf0] sm:$0xff]   ;;  %v7332_v9 = vld [vmem:[%s9204_s1 + $0xa38] sm:$0xff]   ;;  %v5702_v13 = vcombine.low %v34_v11, %v34_v11 }
 0x13a   :  { %v4561_v12 = vadd.f32 %v6344_v6, %v8433_v30  ;;  %v6368_v15 = vpop.f32.mrb[11].mxu1  ;;  %6668 = vmatprep.subr.bf16.mxu1 %v7291_v18  ;;  %v5701_v30 = vcombine.high %v33_v28, %v33_v28  ;;  %v7329_v6 = vld [vmem:[%s9204_s1 + $0xab0] sm:$0xff]   ;;  %v7333_v10 = vld [vmem:[%s9204_s1 + $0xab8] sm:$0xff]   ;;  %v5703_v14 = vcombine.high %v34_v11, %v34_v11  ;;  %v7339_v18 = vld [vmem:[%s9204_s1 + $0xbc0] sm:$0xff]  }
 0x13b   :  { %v7349_v28 = vld [vmem:[%s9204_s1 + $0xb90] sm:$0xff]  }
 0x13c   :  { %v8541_v17 = vadd.f32 %v6366_v7, %v4561_v12  ;;  %6647 = vmatpush3.bf16.msra.mxu0 %v7292_v19  ;;  %5158 = vmatprep.mubr.bf16.mxu1 %v5701_v30  ;;  %v7330_v7 = vld [vmem:[%s9204_s1 + $0xa78] sm:$0xff]   ;;  %v35_v12 = vld [vmem:[%s9205_s0 + $0xa8] sm:$0xff]  ;;  %v7340_v19 = vld [vmem:[%s9204_s1 + $0xb00] sm:$0xff]  }
 0x13d   :  { %6669 = vmatpush3.bf16.msra.mxu1 %v7293_v20  ;;  %6648 = vmatprep.subr.bf16.mxu0 %v7294_v21  ;;  %v5704_v15 = vcombine.low %v35_v12, %v35_v12  ;;  %v5705_v16 = vcombine.high %v35_v12, %v35_v12  ;;  %v7341_v20 = vld [vmem:[%s9204_s1 + $0xb80] sm:$0xff]   ;;  %v7342_v21 = vld [vmem:[%s9204_s1 + $0xb48] sm:$0xff]   ;;  %v7351_v30 = vld [vmem:[%s9204_s1 + $0xbd8] sm:$0xff]  }
 0x13e   :  { %6670 = vmatprep.subr.bf16.mxu1 %v7295_v22  ;;  %v7343_v22 = vld [vmem:[%s9204_s1 + $0xbc8] sm:$0xff]   ;;  %v7382_v11 = vld [vmem:[%s9204_s1 + $0xc50] sm:$0xff]  }
 0x13f   :  { %v7383_v12 = vld [vmem:[%s9204_s1 + $0xcd0] sm:$0xff]  }
 0x140   :  { %6649 = vmatpush3.bf16.msra.mxu0 %v7296_v23  ;;  %v7344_v23 = vld [vmem:[%s9204_s1 + $0xb08] sm:$0xff]  }
 0x141   :  { %6671 = vmatpush3.bf16.msra.mxu1 %v7297_v24  ;;  %6678 = vmatprep.subr.bf16.mxu0 %v7302_v31  ;;  %v7345_v24 = vld [vmem:[%s9204_s1 + $0xb88] sm:$0xff]   ;;  %v7352_v31 = vld [vmem:[%s9204_s1 + $0xb18] sm:$0xff]  }
 0x142   :  { %6700 = vmatprep.subr.bf16.mxu1 %v7303_v32  ;;  %v7353_v32 = vld [vmem:[%s9204_s1 + $0xb98] sm:$0xff]  }
 0x143   :  { %5119 = vmatmul.mubr.bf16.vlgmr.msra.gmra.mrb[36].mxu0 %v5698_v26  ;;  %v7347_v26 = vld [vmem:[%s9204_s1 + $0xbd0] sm:$0xff]  }
 0x144   :  { %5159 = vmatmul.mubr.bf16.vlgmr.msra.gmra.mrb[36].mxu1 %v5700_v29  ;;  %6679 = vmatpush3.bf16.msra.mxu0 %v7304_v33  ;;  %v7350_v29 = vld [vmem:[%s9204_s1 + $0xb58] sm:$0xff]   ;;  %v7354_v33 = vld [vmem:[%s9204_s1 + $0xb60] sm:$0xff]  }
 0x145   :  { %6701 = vmatpush3.bf16.msra.mxu1 %v7305_v34  ;;  %6680 = vmatprep.subr.bf16.mxu0 %v7306_v35  ;;  %v7355_v34 = vld [vmem:[%s9204_s1 + $0xbe0] sm:$0xff]  }
 0x146   :  { %6702 = vmatprep.subr.bf16.mxu1 %v7307_v36  ;;  %5198 = vmatprep.mubr.bf16.mxu0 %v5703_v14  ;;  %v7356_v35 = vld [vmem:[%s9204_s1 + $0xb20] sm:$0xff]   ;;  %v7385_v14 = vld [vmem:[%s9204_s1 + $0xc90] sm:$0xff]  }
 0x147   :  { %5238 = vmatprep.mubr.bf16.mxu1 %v5705_v16  ;;  %v7387_v16 = vld [vmem:[%s9204_s1 + $0xcd8] sm:$0xff]  }
 0x148   :  { %6681 = vmatpush3.bf16.msra.mxu0 %v7308_v37  ;;  %v7357_v37 = vld [vmem:[%s9204_s1 + $0xba0] sm:$0xff]  }
 0x149   :  { %6703 = vmatpush3.bf16.msra.mxu1 %v7309_v38  ;;  %6682 = vmatprep.subr.bf16.mxu0 %v7310_v39 }
 0x14a   :  { %6704 = vmatprep.subr.bf16.mxu1 %v7311_v40 }
 0x14c   :  { %6683 = vmatpush3.bf16.msra.mxu0 %v7312_v41 }
 0x14d   :  { %6705 = vmatpush3.bf16.msra.mxu1 %v7313_v42  ;;  %6684 = vmatprep.subr.bf16.mxu0 %v7314_v43  ;;  %v7358_v43 = vld [vmem:[%s9204_s1 + $0xb68] sm:$0xff]  }
 0x14e   :  { %6706 = vmatprep.subr.bf16.mxu1 %v7315_v44 }
 0x150   :  { %6685 = vmatpush3.bf16.msra.mxu0 %v7316_v45  ;;  %v7359_v45 = vld [vmem:[%s9204_s1 + $0xbe8] sm:$0xff]  }
 0x151   :  { %6707 = vmatpush3.bf16.msra.mxu1 %v7317_v46  ;;  %6686 = vmatprep.subr.bf16.mxu0 %v7318_v47 }
 0x152   :  { %6708 = vmatprep.subr.bf16.mxu1 %v7319_v48  ;;  %v7360_v48 = vld [vmem:[%s9204_s1 + $0xb28] sm:$0xff]  }
 0x154   :  { %6687 = vmatpush3.bf16.msra.mxu0 %v7320_v50  ;;  %v7361_v50 = vld [vmem:[%s9204_s1 + $0xba8] sm:$0xff]  }
 0x155   :  { %6709 = vmatpush3.bf16.msra.mxu1 %v7321_v52  ;;  %6688 = vmatprep.subr.bf16.mxu0 %v7322_v55  ;;  %v7364_v55 = vld [vmem:[%s9204_s1 + $0xb30] sm:$0xff]  }
 0x156   :  { %v6386_v49 = vpop.f32.mrb[12].mxu0  ;;  %6710 = vmatprep.subr.bf16.mxu1 %v7323_v58  ;;  %v7367_v58 = vld [vmem:[%s9204_s1 + $0xbf8] sm:$0xff]  }
 0x157   :  { %v6408_v51 = vpop.f32.mrb[12].mxu1  ;;  %v6387_v53 = vpop.f32.mrb[13].mxu0 }
 0x158   :  { %v6409_v54 = vpop.f32.mrb[13].mxu1  ;;  %v6388_v56 = vadd.f32 %v6387_v53, %v6386_v49  ;;  %v6389_v59 = vpop.f32.mrb[14].mxu0  ;;  %6689 = vmatpush3.bf16.msra.mxu0 %v7324_v61  ;;  %v7362_v53 = vld [vmem:[%s9204_s1 + $0xb70] sm:$0xff]  }
 0x159   :  { %v6410_v57 = vadd.f32 %v6409_v54, %v6408_v51  ;;  %v6411_v60 = vpop.f32.mrb[14].mxu1  ;;  %v6390_v0 = vpop.f32.mrb[15].mxu0  ;;  %6711 = vmatpush3.bf16.msra.mxu1 %v7325_v63  ;;  %6690 = vmatprep.subr.bf16.mxu0 %v7326_v2  ;;  %v7363_v54 = vld [vmem:[%s9204_s1 + $0xbf0] sm:$0xff]   ;;  %v7368_v59 = vld [vmem:[%s9204_s1 + $0xb38] sm:$0xff]  }
 0x15a   :  { %v4641_v62 = vadd.f32 %v6388_v56, %v8541_v17  ;;  %v6412_v1 = vpop.f32.mrb[15].mxu1  ;;  %6712 = vmatprep.subr.bf16.mxu1 %v7327_v4  ;;  %v7338_v17 = vld [vmem:[%s9204_s1 + $0xb40] sm:$0xff]   ;;  %v7365_v56 = vld [vmem:[%s9204_s1 + $0xbb0] sm:$0xff]   ;;  %v7369_v60 = vld [vmem:[%s9204_s1 + $0xbb8] sm:$0xff]  }
 0x15b   :  { %v36_v61 = vld [vmem:[%s9205_s0 + $0xb0] sm:$0xff]  ;;  %v7375_v4 = vld [vmem:[%s9204_s1 + $0xcc0] sm:$0xff]  }
 0x15c   :  { %v8646_v3 = vadd.f32 %v6410_v57, %v4641_v62  ;;  %6691 = vmatpush3.bf16.msra.mxu0 %v7328_v5  ;;  %v7366_v57 = vld [vmem:[%s9204_s1 + $0xb78] sm:$0xff]   ;;  %v5706_v63 = vcombine.low %v36_v61, %v36_v61  ;;  %v5707_v0 = vcombine.high %v36_v61, %v36_v61  ;;  %v7376_v5 = vld [vmem:[%s9204_s1 + $0xc00] sm:$0xff]   ;;  %v7418_v61 = vld [vmem:[%s9204_s1 + $0xd50] sm:$0xff]  }
 0x15d   :  { %6713 = vmatpush3.bf16.msra.mxu1 %v7329_v6  ;;  %6692 = vmatprep.subr.bf16.mxu0 %v7330_v7  ;;  %v37_v62 = vld [vmem:[%s9205_s0 + $0xb8] sm:$0xff]  ;;  %v7377_v6 = vld [vmem:[%s9204_s1 + $0xc80] sm:$0xff]   ;;  %v7378_v7 = vld [vmem:[%s9204_s1 + $0xc48] sm:$0xff]  }
 0x15e   :  { %6714 = vmatprep.subr.bf16.mxu1 %v7331_v8  ;;  %v5708_v1 = vcombine.low %v37_v62, %v37_v62  ;;  %v5709_v2 = vcombine.high %v37_v62, %v37_v62  ;;  %v7379_v8 = vld [vmem:[%s9204_s1 + $0xcc8] sm:$0xff]   ;;  %v7419_v62 = vld [vmem:[%s9204_s1 + $0xdd0] sm:$0xff]  }
 0x160   :  { %6693 = vmatpush3.bf16.msra.mxu0 %v7332_v9  ;;  %v7380_v9 = vld [vmem:[%s9204_s1 + $0xc08] sm:$0xff]  }
 0x161   :  { %6715 = vmatpush3.bf16.msra.mxu1 %v7333_v10  ;;  %6722 = vmatprep.subr.bf16.mxu0 %v7338_v17  ;;  %v7381_v10 = vld [vmem:[%s9204_s1 + $0xc88] sm:$0xff]   ;;  %v7388_v17 = vld [vmem:[%s9204_s1 + $0xc18] sm:$0xff]  }
 0x162   :  { %6744 = vmatprep.subr.bf16.mxu1 %v7339_v18  ;;  %v7389_v18 = vld [vmem:[%s9204_s1 + $0xc98] sm:$0xff]  }
 0x163   :  { %5199 = vmatmul.mubr.bf16.vlgmr.msra.gmra.mrb[40].mxu0 %v5702_v13  ;;  %v7384_v13 = vld [vmem:[%s9204_s1 + $0xc10] sm:$0xff]  }
 0x164   :  { %5239 = vmatmul.mubr.bf16.vlgmr.msra.gmra.mrb[40].mxu1 %v5704_v15  ;;  %6723 = vmatpush3.bf16.msra.mxu0 %v7340_v19  ;;  %v7386_v15 = vld [vmem:[%s9204_s1 + $0xc58] sm:$0xff]   ;;  %v7390_v19 = vld [vmem:[%s9204_s1 + $0xc60] sm:$0xff]  }
 0x165   :  { %6745 = vmatpush3.bf16.msra.mxu1 %v7341_v20  ;;  %6724 = vmatprep.subr.bf16.mxu0 %v7342_v21  ;;  %v7391_v20 = vld [vmem:[%s9204_s1 + $0xce0] sm:$0xff]  }
 0x166   :  { %6746 = vmatprep.subr.bf16.mxu1 %v7343_v22  ;;  %5278 = vmatprep.mubr.bf16.mxu0 %v5707_v0  ;;  %v7392_v22 = vld [vmem:[%s9204_s1 + $0xc20] sm:$0xff]   ;;  %v7421_v0 = vld [vmem:[%s9204_s1 + $0xd90] sm:$0xff]  }
 0x167   :  { %5318 = vmatprep.mubr.bf16.mxu1 %v5709_v2  ;;  %v7423_v2 = vld [vmem:[%s9204_s1 + $0xdd8] sm:$0xff]  }
 0x168   :  { %6725 = vmatpush3.bf16.msra.mxu0 %v7344_v23 }
 0x169   :  { %6747 = vmatpush3.bf16.msra.mxu1 %v7345_v24  ;;  %6726 = vmatprep.subr.bf16.mxu0 %v7346_v25  ;;  %v7393_v24 = vld [vmem:[%s9204_s1 + $0xca0] sm:$0xff]  }
 0x16a   :  { %6748 = vmatprep.subr.bf16.mxu1 %v7347_v26 }
 0x16c   :  { %6727 = vmatpush3.bf16.msra.mxu0 %v7348_v27 }
 0x16d   :  { %6749 = vmatpush3.bf16.msra.mxu1 %v7349_v28  ;;  %6728 = vmatprep.subr.bf16.mxu0 %v7350_v29  ;;  %v7394_v28 = vld [vmem:[%s9204_s1 + $0xc68] sm:$0xff]  }
 0x16e   :  { %6750 = vmatprep.subr.bf16.mxu1 %v7351_v30  ;;  %v7395_v30 = vld [vmem:[%s9204_s1 + $0xce8] sm:$0xff]  }
 0x170   :  { %6729 = vmatpush3.bf16.msra.mxu0 %v7352_v31 }
 0x171   :  { %6751 = vmatpush3.bf16.msra.mxu1 %v7353_v32  ;;  %6730 = vmatprep.subr.bf16.mxu0 %v7354_v33 }
 0x172   :  { %6752 = vmatprep.subr.bf16.mxu1 %v7355_v34  ;;  %v7396_v34 = vld [vmem:[%s9204_s1 + $0xc28] sm:$0xff]  }
 0x174   :  { %6731 = vmatpush3.bf16.msra.mxu0 %v7356_v35  ;;  %v7397_v35 = vld [vmem:[%s9204_s1 + $0xca8] sm:$0xff]  }
 0x175   :  { %6753 = vmatpush3.bf16.msra.mxu1 %v7357_v37  ;;  %6732 = vmatprep.subr.bf16.mxu0 %v7358_v43  ;;  %v7402_v43 = vld [vmem:[%s9204_s1 + $0xc78] sm:$0xff]  }
 0x176   :  { %v6430_v36 = vpop.f32.mrb[16].mxu0  ;;  %6754 = vmatprep.subr.bf16.mxu1 %v7359_v45  ;;  %v7404_v45 = vld [vmem:[%s9204_s1 + $0xc38] sm:$0xff]  }
 0x177   :  { %v6452_v38 = vpop.f32.mrb[16].mxu1  ;;  %v6431_v39 = vpop.f32.mrb[17].mxu0 }
 0x178   :  { %v6453_v40 = vpop.f32.mrb[17].mxu1  ;;  %v6432_v41 = vadd.f32 %v6431_v39, %v6430_v36  ;;  %v6433_v44 = vpop.f32.mrb[18].mxu0  ;;  %6733 = vmatpush3.bf16.msra.mxu0 %v7360_v48  ;;  %v7398_v39 = vld [vmem:[%s9204_s1 + $0xc70] sm:$0xff]   ;;  %v39_v48 = vld [vmem:[%s9205_s0 + $0xc8] sm:$0xff] }
 0x179   :  { %v6454_v42 = vadd.f32 %v6453_v40, %v6452_v38  ;;  %v6455_v46 = vpop.f32.mrb[18].mxu1  ;;  %v6434_v49 = vpop.f32.mrb[19].mxu0  ;;  %6755 = vmatpush3.bf16.msra.mxu1 %v7361_v50  ;;  %6734 = vmatprep.subr.bf16.mxu0 %v7362_v53  ;;  %v7399_v40 = vld [vmem:[%s9204_s1 + $0xcf0] sm:$0xff]   ;;  %v7403_v44 = vld [vmem:[%s9204_s1 + $0xcf8] sm:$0xff]   ;;  %v5713_v53 = vcombine.high %v39_v48, %v39_v48 }
 0x17a   :  { %v4721_v47 = vadd.f32 %v6432_v41, %v8646_v3  ;;  %v6456_v51 = vpop.f32.mrb[19].mxu1  ;;  %6756 = vmatprep.subr.bf16.mxu1 %v7363_v54  ;;  %v7374_v3 = vld [vmem:[%s9204_s1 + $0xc40] sm:$0xff]   ;;  %v7400_v41 = vld [vmem:[%s9204_s1 + $0xc30] sm:$0xff]   ;;  %v7405_v46 = vld [vmem:[%s9204_s1 + $0xcb8] sm:$0xff]  }
 0x17b   :  { %v5712_v51 = vcombine.low %v39_v48, %v39_v48  ;;  %v7411_v54 = vld [vmem:[%s9204_s1 + $0xdc0] sm:$0xff]   ;;  %v7455_v48 = vld [vmem:[%s9204_s1 + $0xed0] sm:$0xff]  }
 0x17c   :  { %v8748_v52 = vadd.f32 %v6454_v42, %v4721_v47  ;;  %6735 = vmatpush3.bf16.msra.mxu0 %v7364_v55  ;;  %v7401_v42 = vld [vmem:[%s9204_s1 + $0xcb0] sm:$0xff]   ;;  %v38_v47 = vld [vmem:[%s9205_s0 + $0xc0] sm:$0xff] }
 0x17d   :  { %6757 = vmatpush3.bf16.msra.mxu1 %v7365_v56  ;;  %6736 = vmatprep.subr.bf16.mxu0 %v7366_v57  ;;  %v5710_v49 = vcombine.low %v38_v47, %v38_v47  ;;  %v5711_v50 = vcombine.high %v38_v47, %v38_v47  ;;  %v7412_v55 = vld [vmem:[%s9204_s1 + $0xd00] sm:$0xff]   ;;  %v7414_v57 = vld [vmem:[%s9204_s1 + $0xd48] sm:$0xff]   ;;  %v7454_v47 = vld [vmem:[%s9204_s1 + $0xe50] sm:$0xff]  }
 0x17e   :  { %6758 = vmatprep.subr.bf16.mxu1 %v7367_v58  ;;  %v7413_v56 = vld [vmem:[%s9204_s1 + $0xd80] sm:$0xff]   ;;  %v7415_v58 = vld [vmem:[%s9204_s1 + $0xdc8] sm:$0xff]  }
 0x180   :  { %6737 = vmatpush3.bf16.msra.mxu0 %v7368_v59  ;;  %v7416_v59 = vld [vmem:[%s9204_s1 + $0xd08] sm:$0xff]  }
 0x181   :  { %6759 = vmatpush3.bf16.msra.mxu1 %v7369_v60  ;;  %6766 = vmatprep.subr.bf16.mxu0 %v7374_v3  ;;  %v7417_v60 = vld [vmem:[%s9204_s1 + $0xd88] sm:$0xff]   ;;  %v7424_v3 = vld [vmem:[%s9204_s1 + $0xd18] sm:$0xff]  }
 0x182   :  { %6788 = vmatprep.subr.bf16.mxu1 %v7375_v4  ;;  %v7425_v4 = vld [vmem:[%s9204_s1 + $0xd98] sm:$0xff]  }
 0x183   :  { %5279 = vmatmul.mubr.bf16.vlgmr.msra.gmra.mrb[44].mxu0 %v5706_v63  ;;  %v7420_v63 = vld [vmem:[%s9204_s1 + $0xd10] sm:$0xff]  }
 0x184   :  { %5319 = vmatmul.mubr.bf16.vlgmr.msra.gmra.mrb[44].mxu1 %v5708_v1  ;;  %6767 = vmatpush3.bf16.msra.mxu0 %v7376_v5  ;;  %v7422_v1 = vld [vmem:[%s9204_s1 + $0xd58] sm:$0xff]   ;;  %v7426_v5 = vld [vmem:[%s9204_s1 + $0xd60] sm:$0xff]  }
 0x185   :  { %6789 = vmatpush3.bf16.msra.mxu1 %v7377_v6  ;;  %6768 = vmatprep.subr.bf16.mxu0 %v7378_v7  ;;  %v7427_v6 = vld [vmem:[%s9204_s1 + $0xde0] sm:$0xff]  }
 0x186   :  { %6790 = vmatprep.subr.bf16.mxu1 %v7379_v8  ;;  %5358 = vmatprep.mubr.bf16.mxu0 %v5711_v50  ;;  %v7428_v8 = vld [vmem:[%s9204_s1 + $0xd20] sm:$0xff]   ;;  %v7457_v50 = vld [vmem:[%s9204_s1 + $0xe90] sm:$0xff]  }
 0x187   :  { %5398 = vmatprep.mubr.bf16.mxu1 %v5713_v53  ;;  %v7460_v53 = vld [vmem:[%s9204_s1 + $0xe18] sm:$0xff]  }
 0x188   :  { %6769 = vmatpush3.bf16.msra.mxu0 %v7380_v9 }
 0x189   :  { %6791 = vmatpush3.bf16.msra.mxu1 %v7381_v10  ;;  %6770 = vmatprep.subr.bf16.mxu0 %v7382_v11  ;;  %v7429_v10 = vld [vmem:[%s9204_s1 + $0xda0] sm:$0xff]  }
 0x18a   :  { %6792 = vmatprep.subr.bf16.mxu1 %v7383_v12 }
 0x18c   :  { %6771 = vmatpush3.bf16.msra.mxu0 %v7384_v13  ;;  %v7430_v13 = vld [vmem:[%s9204_s1 + $0xd68] sm:$0xff]  }
 0x18d   :  { %6793 = vmatpush3.bf16.msra.mxu1 %v7385_v14  ;;  %6772 = vmatprep.subr.bf16.mxu0 %v7386_v15 }
 0x18e   :  { %6794 = vmatprep.subr.bf16.mxu1 %v7387_v16  ;;  %v7431_v16 = vld [vmem:[%s9204_s1 + $0xde8] sm:$0xff]  }
 0x190   :  { %6773 = vmatpush3.bf16.msra.mxu0 %v7388_v17 }
 0x191   :  { %6795 = vmatpush3.bf16.msra.mxu1 %v7389_v18  ;;  %6774 = vmatprep.subr.bf16.mxu0 %v7390_v19  ;;  %v7432_v19 = vld [vmem:[%s9204_s1 + $0xd28] sm:$0xff]  }
 0x192   :  { %6796 = vmatprep.subr.bf16.mxu1 %v7391_v20 }
 0x194   :  { %6775 = vmatpush3.bf16.msra.mxu0 %v7392_v22 }
 0x195   :  { %6797 = vmatpush3.bf16.msra.mxu1 %v7393_v24  ;;  %6776 = vmatprep.subr.bf16.mxu0 %v7394_v28  ;;  %v7434_v24 = vld [vmem:[%s9204_s1 + $0xd70] sm:$0xff]  }
 0x196   :  { %v6474_v21 = vpop.f32.mrb[20].mxu0  ;;  %6798 = vmatprep.subr.bf16.mxu1 %v7395_v30  ;;  %v7437_v28 = vld [vmem:[%s9204_s1 + $0xdb0] sm:$0xff]   ;;  %v7439_v30 = vld [vmem:[%s9204_s1 + $0xdf8] sm:$0xff]  }
 0x197   :  { %v6496_v23 = vpop.f32.mrb[20].mxu1  ;;  %v6475_v25 = vpop.f32.mrb[21].mxu0 }
 0x198   :  { %v6476_v26 = vadd.f32 %v6475_v25, %v6474_v21  ;;  %v6497_v27 = vpop.f32.mrb[21].mxu1  ;;  %v6477_v31 = vpop.f32.mrb[22].mxu0  ;;  %6777 = vmatpush3.bf16.msra.mxu0 %v7396_v34  ;;  %v7433_v21 = vld [vmem:[%s9204_s1 + $0xda8] sm:$0xff]  }
 0x199   :  { %v6498_v29 = vadd.f32 %v6497_v27, %v6496_v23  ;;  %v6499_v33 = vpop.f32.mrb[22].mxu1  ;;  %v6478_v36 = vpop.f32.mrb[23].mxu0  ;;  %6799 = vmatpush3.bf16.msra.mxu1 %v7397_v35  ;;  %6778 = vmatprep.subr.bf16.mxu0 %v7398_v39  ;;  %v7436_v27 = vld [vmem:[%s9204_s1 + $0xd30] sm:$0xff]   ;;  %v7440_v31 = vld [vmem:[%s9204_s1 + $0xd38] sm:$0xff]   ;;  %v7446_v39 = vld [vmem:[%s9204_s1 + $0xe40] sm:$0xff]  }
 0x19a   :  { %v4801_v32 = vadd.f32 %v6476_v26, %v8748_v52  ;;  %v6500_v38 = vpop.f32.mrb[23].mxu1  ;;  %6800 = vmatprep.subr.bf16.mxu1 %v7399_v40  ;;  %v7410_v52 = vld [vmem:[%s9204_s1 + $0xd40] sm:$0xff]   ;;  %v7435_v26 = vld [vmem:[%s9204_s1 + $0xdf0] sm:$0xff]   ;;  %v41_v36 = vld [vmem:[%s9205_s0 + $0xd8] sm:$0xff] }
 0x19b   :  { %v40_v33 = vld [vmem:[%s9205_s0 + $0xd0] sm:$0xff]  ;;  %v5717_v38 = vcombine.high %v41_v36, %v41_v36  ;;  %v7447_v40 = vld [vmem:[%s9204_s1 + $0xec0] sm:$0xff]  }
 0x19c   :  { %v8853_v37 = vadd.f32 %v6498_v29, %v4801_v32  ;;  %6779 = vmatpush3.bf16.msra.mxu0 %v7400_v41  ;;  %v7438_v29 = vld [vmem:[%s9204_s1 + $0xd78] sm:$0xff]   ;;  %v5714_v34 = vcombine.low %v40_v33, %v40_v33  ;;  %v5715_v35 = vcombine.high %v40_v33, %v40_v33  ;;  %v7448_v41 = vld [vmem:[%s9204_s1 + $0xe00] sm:$0xff]   ;;  %v7490_v33 = vld [vmem:[%s9204_s1 + $0xf50] sm:$0xff]  }
 0x19d   :  { %6801 = vmatpush3.bf16.msra.mxu1 %v7401_v42  ;;  %6780 = vmatprep.subr.bf16.mxu0 %v7402_v43  ;;  %v7441_v32 = vld [vmem:[%s9204_s1 + $0xdb8] sm:$0xff]   ;;  %v7449_v42 = vld [vmem:[%s9204_s1 + $0xe80] sm:$0xff]   ;;  %v7450_v43 = vld [vmem:[%s9204_s1 + $0xe48] sm:$0xff]  }
 0x19e   :  { %6802 = vmatprep.subr.bf16.mxu1 %v7403_v44  ;;  %v7451_v44 = vld [vmem:[%s9204_s1 + $0xec8] sm:$0xff]  }
 0x1a0   :  { %6781 = vmatpush3.bf16.msra.mxu0 %v7404_v45  ;;  %v7452_v45 = vld [vmem:[%s9204_s1 + $0xe08] sm:$0xff]  }
 0x1a1   :  { %6803 = vmatpush3.bf16.msra.mxu1 %v7405_v46  ;;  %6810 = vmatprep.subr.bf16.mxu0 %v7410_v52  ;;  %v7453_v46 = vld [vmem:[%s9204_s1 + $0xe88] sm:$0xff]   ;;  %v7459_v52 = vld [vmem:[%s9204_s1 + $0xed8] sm:$0xff]  }
 0x1a2   :  { %6832 = vmatprep.subr.bf16.mxu1 %v7411_v54  ;;  %v7461_v54 = vld [vmem:[%s9204_s1 + $0xe98] sm:$0xff]  }
 0x1a3   :  { %5359 = vmatmul.mubr.bf16.vlgmr.msra.gmra.mrb[48].mxu0 %v5710_v49  ;;  %v7456_v49 = vld [vmem:[%s9204_s1 + $0xe10] sm:$0xff]  }
 0x1a4   :  { %5399 = vmatmul.mubr.bf16.vlgmr.msra.gmra.mrb[48].mxu1 %v5712_v51  ;;  %6811 = vmatpush3.bf16.msra.mxu0 %v7412_v55  ;;  %v7458_v51 = vld [vmem:[%s9204_s1 + $0xe58] sm:$0xff]   ;;  %v7462_v55 = vld [vmem:[%s9204_s1 + $0xe60] sm:$0xff]  }
 0x1a5   :  { %6833 = vmatpush3.bf16.msra.mxu1 %v7413_v56  ;;  %6812 = vmatprep.subr.bf16.mxu0 %v7414_v57  ;;  %v7463_v56 = vld [vmem:[%s9204_s1 + $0xee0] sm:$0xff]  }
 0x1a6   :  { %6834 = vmatprep.subr.bf16.mxu1 %v7415_v58  ;;  %5438 = vmatprep.mubr.bf16.mxu0 %v5715_v35  ;;  %v7464_v58 = vld [vmem:[%s9204_s1 + $0xe20] sm:$0xff]   ;;  %v7492_v35 = vld [vmem:[%s9204_s1 + $0xf10] sm:$0xff]  }
 0x1a7   :  { %5478 = vmatprep.mubr.bf16.mxu1 %v5717_v38  ;;  %v7495_v38 = vld [vmem:[%s9204_s1 + $0xfd8] sm:$0xff]  }
 0x1a8   :  { %6813 = vmatpush3.bf16.msra.mxu0 %v7416_v59 }
 0x1a9   :  { %6835 = vmatpush3.bf16.msra.mxu1 %v7417_v60  ;;  %6814 = vmatprep.subr.bf16.mxu0 %v7418_v61  ;;  %v7465_v60 = vld [vmem:[%s9204_s1 + $0xea0] sm:$0xff]  }
 0x1aa   :  { %6836 = vmatprep.subr.bf16.mxu1 %v7419_v62 }
 0x1ac   :  { %6815 = vmatpush3.bf16.msra.mxu0 %v7420_v63  ;;  %v7466_v63 = vld [vmem:[%s9204_s1 + $0xe68] sm:$0xff]  }
 0x1ad   :  { %6837 = vmatpush3.bf16.msra.mxu1 %v7421_v0  ;;  %6816 = vmatprep.subr.bf16.mxu0 %v7422_v1 }
 0x1ae   :  { %6838 = vmatprep.subr.bf16.mxu1 %v7423_v2  ;;  %v7467_v2 = vld [vmem:[%s9204_s1 + $0xee8] sm:$0xff]  }
 0x1b0   :  { %6817 = vmatpush3.bf16.msra.mxu0 %v7424_v3 }
 0x1b1   :  { %6839 = vmatpush3.bf16.msra.mxu1 %v7425_v4  ;;  %6818 = vmatprep.subr.bf16.mxu0 %v7426_v5  ;;  %v7468_v5 = vld [vmem:[%s9204_s1 + $0xe28] sm:$0xff]  }
 0x1b2   :  { %6840 = vmatprep.subr.bf16.mxu1 %v7427_v6 }
 0x1b4   :  { %6819 = vmatpush3.bf16.msra.mxu0 %v7428_v8 }
 0x1b5   :  { %6841 = vmatpush3.bf16.msra.mxu1 %v7429_v10  ;;  %6820 = vmatprep.subr.bf16.mxu0 %v7430_v13  ;;  %v7470_v10 = vld [vmem:[%s9204_s1 + $0xe70] sm:$0xff]  }
 0x1b6   :  { %v6518_v7 = vpop.f32.mrb[24].mxu0  ;;  %6842 = vmatprep.subr.bf16.mxu1 %v7431_v16  ;;  %v7472_v13 = vld [vmem:[%s9204_s1 + $0xe30] sm:$0xff]   ;;  %v7475_v16 = vld [vmem:[%s9204_s1 + $0xef8] sm:$0xff]  }
 0x1b7   :  { %v6540_v9 = vpop.f32.mrb[24].mxu1  ;;  %v6519_v11 = vpop.f32.mrb[25].mxu0 }
 0x1b8   :  { %v6541_v12 = vpop.f32.mrb[25].mxu1  ;;  %v6520_v14 = vadd.f32 %v6519_v11, %v6518_v7  ;;  %v6521_v17 = vpop.f32.mrb[26].mxu0  ;;  %6821 = vmatpush3.bf16.msra.mxu0 %v7432_v19  ;;  %v7469_v7 = vld [vmem:[%s9204_s1 + $0xea8] sm:$0xff]   ;;  %v42_v19 = vld [vmem:[%s9205_s0 + $0xe0] sm:$0xff] }
 0x1b9   :  { %v6542_v15 = vadd.f32 %v6541_v12, %v6540_v9  ;;  %v6543_v18 = vpop.f32.mrb[26].mxu1  ;;  %v6522_v22 = vpop.f32.mrb[27].mxu0  ;;  %6843 = vmatpush3.bf16.msra.mxu1 %v7433_v21  ;;  %6822 = vmatprep.subr.bf16.mxu0 %v7434_v24  ;;  %v7471_v12 = vld [vmem:[%s9204_s1 + $0xef0] sm:$0xff]   ;;  %v7476_v17 = vld [vmem:[%s9204_s1 + $0xe38] sm:$0xff]   ;;  %v5718_v21 = vcombine.low %v42_v19, %v42_v19 }
 0x1ba   :  { %v4881_v20 = vadd.f32 %v6520_v14, %v8853_v37  ;;  %v6544_v23 = vpop.f32.mrb[27].mxu1  ;;  %6844 = vmatprep.subr.bf16.mxu1 %v7435_v26  ;;  %v5716_v37 = vcombine.low %v41_v36, %v41_v36  ;;  %v7473_v14 = vld [vmem:[%s9204_s1 + $0xeb0] sm:$0xff]   ;;  %v7477_v18 = vld [vmem:[%s9204_s1 + $0xeb8] sm:$0xff]   ;;  %v5719_v22 = vcombine.high %v42_v19, %v42_v19  ;;  %v7483_v26 = vld [vmem:[%s9204_s1 + $0xfc0] sm:$0xff]  }
 0x1bb   :  { %v7493_v36 = vld [vmem:[%s9204_s1 + $0xf90] sm:$0xff]  }
 0x1bc   :  { %v8961_v25 = vadd.f32 %v6542_v15, %v4881_v20  ;;  %6823 = vmatpush3.bf16.msra.mxu0 %v7436_v27  ;;  %v7474_v15 = vld [vmem:[%s9204_s1 + $0xe78] sm:$0xff]   ;;  %v43_v20 = vld [vmem:[%s9205_s0 + $0xe8] sm:$0xff]  ;;  %v7484_v27 = vld [vmem:[%s9204_s1 + $0xf00] sm:$0xff]  }
 0x1bd   :  { %6845 = vmatpush3.bf16.msra.mxu1 %v7437_v28  ;;  %6824 = vmatprep.subr.bf16.mxu0 %v7438_v29  ;;  %v5720_v23 = vcombine.low %v43_v20, %v43_v20  ;;  %v5721_v24 = vcombine.high %v43_v20, %v43_v20  ;;  %v7485_v28 = vld [vmem:[%s9204_s1 + $0xf80] sm:$0xff]   ;;  %v7486_v29 = vld [vmem:[%s9204_s1 + $0xf48] sm:$0xff]  }
 0x1be   :  { %6846 = vmatprep.subr.bf16.mxu1 %v7439_v30  ;;  %v7487_v30 = vld [vmem:[%s9204_s1 + $0xfc8] sm:$0xff]  }
 0x1c0   :  { %6825 = vmatpush3.bf16.msra.mxu0 %v7440_v31  ;;  %v7488_v31 = vld [vmem:[%s9204_s1 + $0xf08] sm:$0xff]  }
 0x1c1   :  { %6847 = vmatpush3.bf16.msra.mxu1 %v7441_v32  ;;  %6854 = vmatprep.subr.bf16.mxu0 %v7446_v39  ;;  %v7489_v32 = vld [vmem:[%s9204_s1 + $0xf88] sm:$0xff]   ;;  %v7496_v39 = vld [vmem:[%s9204_s1 + $0xf18] sm:$0xff]  }
 0x1c2   :  { %6876 = vmatprep.subr.bf16.mxu1 %v7447_v40  ;;  %v7497_v40 = vld [vmem:[%s9204_s1 + $0xf98] sm:$0xff]  }
 0x1c3   :  { %5439 = vmatmul.mubr.bf16.vlgmr.msra.gmra.mrb[52].mxu0 %v5714_v34  ;;  %v7491_v34 = vld [vmem:[%s9204_s1 + $0xfd0] sm:$0xff]  }
 0x1c4   :  { %5479 = vmatmul.mubr.bf16.vlgmr.msra.gmra.mrb[52].mxu1 %v5716_v37  ;;  %6855 = vmatpush3.bf16.msra.mxu0 %v7448_v41  ;;  %v7494_v37 = vld [vmem:[%s9204_s1 + $0xf58] sm:$0xff]   ;;  %v7498_v41 = vld [vmem:[%s9204_s1 + $0xf60] sm:$0xff]  }
 0x1c5   :  { %6877 = vmatpush3.bf16.msra.mxu1 %v7449_v42  ;;  %6856 = vmatprep.subr.bf16.mxu0 %v7450_v43  ;;  %v7499_v42 = vld [vmem:[%s9204_s1 + $0xfe0] sm:$0xff]  }
 0x1c6   :  { %6878 = vmatprep.subr.bf16.mxu1 %v7451_v44  ;;  %5518 = vmatprep.mubr.bf16.mxu0 %v5719_v22  ;;  %v7500_v43 = vld [vmem:[%s9204_s1 + $0xf20] sm:$0xff]  }
 0x1c7   :  { %5558 = vmatprep.mubr.bf16.mxu1 %v5721_v24 }
 0x1c8   :  { %6857 = vmatpush3.bf16.msra.mxu0 %v7452_v45  ;;  %v7501_v45 = vld [vmem:[%s9204_s1 + $0xfa0] sm:$0xff]  }
 0x1c9   :  { %6879 = vmatpush3.bf16.msra.mxu1 %v7453_v46  ;;  %6858 = vmatprep.subr.bf16.mxu0 %v7454_v47 }
 0x1ca   :  { %6880 = vmatprep.subr.bf16.mxu1 %v7455_v48 }
 0x1cc   :  { %6859 = vmatpush3.bf16.msra.mxu0 %v7456_v49 }
 0x1cd   :  { %6881 = vmatpush3.bf16.msra.mxu1 %v7457_v50  ;;  %6860 = vmatprep.subr.bf16.mxu0 %v7458_v51  ;;  %v7502_v51 = vld [vmem:[%s9204_s1 + $0xf68] sm:$0xff]  }
 0x1ce   :  { %6882 = vmatprep.subr.bf16.mxu1 %v7459_v52 }
 0x1d0   :  { %6861 = vmatpush3.bf16.msra.mxu0 %v7460_v53  ;;  %v7503_v53 = vld [vmem:[%s9204_s1 + $0xfe8] sm:$0xff]  }
 0x1d1   :  { %6883 = vmatpush3.bf16.msra.mxu1 %v7461_v54  ;;  %6862 = vmatprep.subr.bf16.mxu0 %v7462_v55 }
 0x1d2   :  { %6884 = vmatprep.subr.bf16.mxu1 %v7463_v56  ;;  %v7504_v56 = vld [vmem:[%s9204_s1 + $0xf28] sm:$0xff]  }
 0x1d4   :  { %6863 = vmatpush3.bf16.msra.mxu0 %v7464_v58  ;;  %v7505_v58 = vld [vmem:[%s9204_s1 + $0xfa8] sm:$0xff]  }
 0x1d5   :  { %6885 = vmatpush3.bf16.msra.mxu1 %v7465_v60  ;;  %6864 = vmatprep.subr.bf16.mxu0 %v7466_v63  ;;  %v7508_v63 = vld [vmem:[%s9204_s1 + $0xf30] sm:$0xff]  }
 0x1d6   :  { %v6562_v57 = vpop.f32.mrb[28].mxu0  ;;  %6886 = vmatprep.subr.bf16.mxu1 %v7467_v2  ;;  %v7511_v2 = vld [vmem:[%s9204_s1 + $0xff8] sm:$0xff]  }
 0x1d7   :  { %v6584_v59 = vpop.f32.mrb[28].mxu1  ;;  %v6563_v61 = vpop.f32.mrb[29].mxu0 }
 0x1d8   :  { %v6585_v62 = vpop.f32.mrb[29].mxu1  ;;  %v6564_v0 = vadd.f32 %v6563_v61, %v6562_v57  ;;  %v6565_v3 = vpop.f32.mrb[30].mxu0  ;;  %6865 = vmatpush3.bf16.msra.mxu0 %v7468_v5  ;;  %v7506_v61 = vld [vmem:[%s9204_s1 + $0xf70] sm:$0xff]  }
 0x1d9   :  { %v6586_v1 = vadd.f32 %v6585_v62, %v6584_v59  ;;  %v6587_v4 = vpop.f32.mrb[30].mxu1  ;;  %v6566_v8 = vpop.f32.mrb[31].mxu0  ;;  %6887 = vmatpush3.bf16.msra.mxu1 %v7469_v7  ;;  %6866 = vmatprep.subr.bf16.mxu0 %v7470_v10  ;;  %v7507_v62 = vld [vmem:[%s9204_s1 + $0xff0] sm:$0xff]   ;;  %v7512_v3 = vld [vmem:[%s9204_s1 + $0xf38] sm:$0xff]  }
 0x1da   :  { %v4961_v6 = vadd.f32 %v6564_v0, %v8961_v25  ;;  %v6588_v9 = vpop.f32.mrb[31].mxu1  ;;  %6888 = vmatprep.subr.bf16.mxu1 %v7471_v12  ;;  %v7482_v25 = vld [vmem:[%s9204_s1 + $0xf40] sm:$0xff]   ;;  %v7509_v0 = vld [vmem:[%s9204_s1 + $0xfb0] sm:$0xff]   ;;  %v7513_v4 = vld [vmem:[%s9204_s1 + $0xfb8] sm:$0xff]  }
 0x1db   :  { %v44_v5 = vld [vmem:[%s9205_s0 + $0xf0] sm:$0xff] }
 0x1dc   :  { %v9066_v11 = vadd.f32 %v6586_v1, %v4961_v6  ;;  %6867 = vmatpush3.bf16.msra.mxu0 %v7472_v13  ;;  %v7510_v1 = vld [vmem:[%s9204_s1 + $0xf78] sm:$0xff]   ;;  %v5722_v7 = vcombine.low %v44_v5, %v44_v5  ;;  %v5723_v8 = vcombine.high %v44_v5, %v44_v5 }
 0x1dd   :  { %6889 = vmatpush3.bf16.msra.mxu1 %v7473_v14  ;;  %6868 = vmatprep.subr.bf16.mxu0 %v7474_v15  ;;  %v45_v6 = vld [vmem:[%s9205_s0 + $0xf8] sm:$0xff] }
 0x1de   :  { %6890 = vmatprep.subr.bf16.mxu1 %v7475_v16  ;;  %v5724_v9 = vcombine.low %v45_v6, %v45_v6  ;;  %v5725_v10 = vcombine.high %v45_v6, %v45_v6 }
 0x1e0   :  { %6869 = vmatpush3.bf16.msra.mxu0 %v7476_v17 }
 0x1e1   :  { %6891 = vmatpush3.bf16.msra.mxu1 %v7477_v18  ;;  %6898 = vmatprep.subr.bf16.mxu0 %v7482_v25 }
 0x1e2   :  { %6920 = vmatprep.subr.bf16.mxu1 %v7483_v26 }
 0x1e3   :  { %5519 = vmatmul.mubr.bf16.vlgmr.msra.gmra.mrb[56].mxu0 %v5718_v21 }
 0x1e4   :  { %5559 = vmatmul.mubr.bf16.vlgmr.msra.gmra.mrb[56].mxu1 %v5720_v23  ;;  %6899 = vmatpush3.bf16.msra.mxu0 %v7484_v27 }
 0x1e5   :  { %6921 = vmatpush3.bf16.msra.mxu1 %v7485_v28  ;;  %6900 = vmatprep.subr.bf16.mxu0 %v7486_v29 }
 0x1e6   :  { %6922 = vmatprep.subr.bf16.mxu1 %v7487_v30  ;;  %5598 = vmatprep.mubr.bf16.mxu0 %v5723_v8 }
 0x1e7   :  { %5638 = vmatprep.mubr.bf16.mxu1 %v5725_v10 }
 0x1e8   :  { %6901 = vmatpush3.bf16.msra.mxu0 %v7488_v31 }
 0x1e9   :  { %6923 = vmatpush3.bf16.msra.mxu1 %v7489_v32  ;;  %6902 = vmatprep.subr.bf16.mxu0 %v7490_v33 }
 0x1ea   :  { %6924 = vmatprep.subr.bf16.mxu1 %v7491_v34 }
 0x1ec   :  { %6903 = vmatpush3.bf16.msra.mxu0 %v7492_v35 }
 0x1ed   :  { %6925 = vmatpush3.bf16.msra.mxu1 %v7493_v36  ;;  %6904 = vmatprep.subr.bf16.mxu0 %v7494_v37 }
 0x1ee   :  { %6926 = vmatprep.subr.bf16.mxu1 %v7495_v38 }
 0x1f0   :  { %6905 = vmatpush3.bf16.msra.mxu0 %v7496_v39 }
 0x1f1   :  { %6927 = vmatpush3.bf16.msra.mxu1 %v7497_v40  ;;  %6906 = vmatprep.subr.bf16.mxu0 %v7498_v41 }
 0x1f2   :  { %6928 = vmatprep.subr.bf16.mxu1 %v7499_v42 }
 0x1f4   :  { %6907 = vmatpush3.bf16.msra.mxu0 %v7500_v43 }
 0x1f5   :  { %6929 = vmatpush3.bf16.msra.mxu1 %v7501_v45  ;;  %6908 = vmatprep.subr.bf16.mxu0 %v7502_v51 }
 0x1f6   :  { %v6606_v44 = vpop.f32.mrb[32].mxu0  ;;  %6930 = vmatprep.subr.bf16.mxu1 %v7503_v53 }
 0x1f7   :  { %v6628_v46 = vpop.f32.mrb[32].mxu1  ;;  %v6607_v47 = vpop.f32.mrb[33].mxu0 }
 0x1f8   :  { %v6629_v48 = vpop.f32.mrb[33].mxu1  ;;  %v6608_v49 = vadd.f32 %v6607_v47, %v6606_v44  ;;  %v6609_v52 = vpop.f32.mrb[34].mxu0  ;;  %6909 = vmatpush3.bf16.msra.mxu0 %v7504_v56 }
 0x1f9   :  { %v6630_v50 = vadd.f32 %v6629_v48, %v6628_v46  ;;  %v6631_v54 = vpop.f32.mrb[34].mxu1  ;;  %v6610_v57 = vpop.f32.mrb[35].mxu0  ;;  %6931 = vmatpush3.bf16.msra.mxu1 %v7505_v58  ;;  %6910 = vmatprep.subr.bf16.mxu0 %v7506_v61 }
 0x1fa   :  { %v5041_v55 = vadd.f32 %v6608_v49, %v9066_v11  ;;  %v6632_v59 = vpop.f32.mrb[35].mxu1  ;;  %6932 = vmatprep.subr.bf16.mxu1 %v7507_v62 }
 0x1fc   :  { %v5081_v60 = vadd.f32 %v6630_v50, %v5041_v55  ;;  %6911 = vmatpush3.bf16.msra.mxu0 %v7508_v63 }
 0x1fd   :  { %6933 = vmatpush3.bf16.msra.mxu1 %v7509_v0  ;;  %6912 = vmatprep.subr.bf16.mxu0 %v7510_v1 }
 0x1fe   :  { %6934 = vmatprep.subr.bf16.mxu1 %v7511_v2 }
 0x200   :  { %6913 = vmatpush3.bf16.msra.mxu0 %v7512_v3 }
 0x201   :  { %6935 = vmatpush3.bf16.msra.mxu1 %v7513_v4 }
 0x203   :  { %5599 = vmatmul.mubr.bf16.vlgmr.msra.gmra.mrb[60].mxu0 %v5722_v7 }
 0x204   :  { %5639 = vmatmul.mubr.bf16.vlgmr.msra.gmra.mrb[60].mxu1 %v5724_v9 }
 0x216   :  { %v6650_v11 = vpop.f32.mrb[36].mxu0 }
 0x217   :  { %v6672_v12 = vpop.f32.mrb[36].mxu1  ;;  %v6651_v13 = vpop.f32.mrb[37].mxu0 }
 0x218   :  { %v6673_v14 = vpop.f32.mrb[37].mxu1  ;;  %v6652_v15 = vadd.f32 %v6651_v13, %v6650_v11  ;;  %v6653_v17 = vpop.f32.mrb[38].mxu0 }
 0x219   :  { %v6674_v16 = vadd.f32 %v6673_v14, %v6672_v12  ;;  %v6675_v18 = vpop.f32.mrb[38].mxu1  ;;  %v6654_v19 = vpop.f32.mrb[39].mxu0 }
 0x21a   :  { %v6676_v20 = vpop.f32.mrb[39].mxu1  ;;  %v5121_v21 = vadd.f32 %v6652_v15, %v5081_v60 }
 0x21c   :  { %v5161_v22 = vadd.f32 %v6674_v16, %v5121_v21 }
 0x236   :  { %v6694_v23 = vpop.f32.mrb[40].mxu0 }
 0x237   :  { %v6716_v24 = vpop.f32.mrb[40].mxu1  ;;  %v6695_v25 = vpop.f32.mrb[41].mxu0 }
 0x238   :  { %v6696_v26 = vadd.f32 %v6695_v25, %v6694_v23  ;;  %v6717_v27 = vpop.f32.mrb[41].mxu1  ;;  %v6697_v28 = vpop.f32.mrb[42].mxu0 }
 0x239   :  { %v6718_v29 = vadd.f32 %v6717_v27, %v6716_v24  ;;  %v6719_v30 = vpop.f32.mrb[42].mxu1  ;;  %v6698_v31 = vpop.f32.mrb[43].mxu0 }
 0x23a   :  { %v5201_v32 = vadd.f32 %v6696_v26, %v5161_v22  ;;  %v6720_v33 = vpop.f32.mrb[43].mxu1 }
 0x23c   :  { %v5241_v34 = vadd.f32 %v6718_v29, %v5201_v32 }
 0x256   :  { %v6738_v35 = vpop.f32.mrb[44].mxu0 }
 0x257   :  { %v6760_v36 = vpop.f32.mrb[44].mxu1  ;;  %v6739_v37 = vpop.f32.mrb[45].mxu0 }
 0x258   :  { %v6740_v38 = vadd.f32 %v6739_v37, %v6738_v35  ;;  %v6761_v39 = vpop.f32.mrb[45].mxu1  ;;  %v6741_v40 = vpop.f32.mrb[46].mxu0 }
 0x259   :  { %v6762_v41 = vadd.f32 %v6761_v39, %v6760_v36  ;;  %v6763_v42 = vpop.f32.mrb[46].mxu1  ;;  %v6742_v43 = vpop.f32.mrb[47].mxu0 }
 0x25a   :  { %v5281_v44 = vadd.f32 %v6740_v38, %v5241_v34  ;;  %v6764_v45 = vpop.f32.mrb[47].mxu1 }
 0x25c   :  { %v5321_v46 = vadd.f32 %v6762_v41, %v5281_v44 }
 0x276   :  { %v6782_v47 = vpop.f32.mrb[48].mxu0 }
 0x277   :  { %v6804_v48 = vpop.f32.mrb[48].mxu1  ;;  %v6783_v49 = vpop.f32.mrb[49].mxu0 }
 0x278   :  { %v6784_v50 = vadd.f32 %v6783_v49, %v6782_v47  ;;  %v6805_v51 = vpop.f32.mrb[49].mxu1  ;;  %v6785_v52 = vpop.f32.mrb[50].mxu0 }
 0x279   :  { %v6806_v53 = vadd.f32 %v6805_v51, %v6804_v48  ;;  %v6807_v54 = vpop.f32.mrb[50].mxu1  ;;  %v6786_v55 = vpop.f32.mrb[51].mxu0 }
 0x27a   :  { %v5361_v56 = vadd.f32 %v6784_v50, %v5321_v46  ;;  %v6808_v57 = vpop.f32.mrb[51].mxu1 }
 0x27c   :  { %v5401_v58 = vadd.f32 %v6806_v53, %v5361_v56 }
 0x296   :  { %v6826_v59 = vpop.f32.mrb[52].mxu0 }
 0x297   :  { %v6848_v60 = vpop.f32.mrb[52].mxu1  ;;  %v6827_v61 = vpop.f32.mrb[53].mxu0 }
 0x298   :  { %v6849_v62 = vpop.f32.mrb[53].mxu1  ;;  %v6828_v63 = vadd.f32 %v6827_v61, %v6826_v59  ;;  %v6829_v1 = vpop.f32.mrb[54].mxu0 }
 0x299   :  { %v6850_v0 = vadd.f32 %v6849_v62, %v6848_v60  ;;  %v6851_v2 = vpop.f32.mrb[54].mxu1  ;;  %v6830_v3 = vpop.f32.mrb[55].mxu0 }
 0x29a   :  { %v6852_v4 = vpop.f32.mrb[55].mxu1  ;;  %v5441_v5 = vadd.f32 %v6828_v63, %v5401_v58 }
 0x29c   :  { %v5481_v6 = vadd.f32 %v6850_v0, %v5441_v5 }
 0x2b6   :  { %v6870_v7 = vpop.f32.mrb[56].mxu0 }
 0x2b7   :  { %v6892_v8 = vpop.f32.mrb[56].mxu1  ;;  %v6871_v9 = vpop.f32.mrb[57].mxu0 }
 0x2b8   :  { %v6872_v10 = vadd.f32 %v6871_v9, %v6870_v7  ;;  %v6893_v11 = vpop.f32.mrb[57].mxu1  ;;  %v6873_v12 = vpop.f32.mrb[58].mxu0 }
 0x2b9   :  { %v6894_v13 = vadd.f32 %v6893_v11, %v6892_v8  ;;  %v6895_v14 = vpop.f32.mrb[58].mxu1  ;;  %v6874_v15 = vpop.f32.mrb[59].mxu0 }
 0x2ba   :  { %v5521_v16 = vadd.f32 %v6872_v10, %v5481_v6  ;;  %v6896_v17 = vpop.f32.mrb[59].mxu1 }
 0x2bc   :  { %v5561_v18 = vadd.f32 %v6894_v13, %v5521_v16 }
 0x2d6   :  { %v6914_v19 = vpop.f32.mrb[60].mxu0 }
 0x2d7   :  { %v6936_v20 = vpop.f32.mrb[60].mxu1  ;;  %v6915_v21 = vpop.f32.mrb[61].mxu0 }
 0x2d8   :  { %v6916_v22 = vadd.f32 %v6915_v21, %v6914_v19  ;;  %v6937_v23 = vpop.f32.mrb[61].mxu1  ;;  %v6917_v24 = vpop.f32.mrb[62].mxu0 }
 0x2d9   :  { %v6938_v25 = vadd.f32 %v6937_v23, %v6936_v20  ;;  %v6939_v26 = vpop.f32.mrb[62].mxu1  ;;  %v6918_v27 = vpop.f32.mrb[63].mxu0 }
 0x2da   :  { %v5601_v28 = vadd.f32 %v6916_v22, %v5561_v18  ;;  %v6940_v29 = vpop.f32.mrb[63].mxu1 }
 0x2dc   :  { %v5641_v30 = vadd.f32 %v6938_v25, %v5601_v28 }
 0x2de   :  { %5646 = vst [vmem:[%s9206_s2] sm:$0xff] %v5641_v30  ;;  %v5647_v31 = vsub.f32 0.0, %v5641_v30 }
 0x2e0   :  { %v5648_v32 = vmul.f32 1.442695, %v5647_v31 }
 0x2e2   :  { %7518 = vpow2.f32 %v5648_v32 }
 0x2ec   :  { %v7519_v33 = vpop.eup %7518 }
 0x2ed   :  { %v5650_v34 = vadd.f32 1.0, %v7519_v33 }
 0x2ef   :  { %7520 = vrcp.f32 %v5650_v34 }
 0x2f9   :  { %v7521_v35 = vpop.eup %7520 }
 0x2fa   :  { %5653 = vst [vmem:[%s9207_s3] sm:$0xff] %v7521_v35 }

</bundles_post_ra>
